<compile_context>
chip_gen: v7x
topology: tpu7x:2x2x1
jax: 0.10.0
libtpu: 0.0.40
codegen_flags: <defaults>
</compile_context>

<pallas_src>
import math
import functools

import jax
import jax.numpy as jnp
from jax import lax
from jax.experimental import pallas as pl
from jax.experimental.pallas import tpu as pltpu

_INV_SQRT2 = 0.7071067811865476


def _gelu_exact(x):
    # nn.GELU default = exact erf-based GELU (matches PyTorch semantics)
    return 0.5 * x * (1.0 + lax.erf(x * _INV_SQRT2))


def _convmixer_kernel(x_ref, dw_ref, pw_ref, vec_ref, o_ref, xs_ref, *, K, P, STRIP):
    """One batch-group (NB samples) per grid step.

    x_ref  : (NB, H, W, C)        input block (also the residual source)
    dw_ref : (K, K, 1, C)         depthwise kernel
    pw_ref : (C, C)               pointwise weight, [c_in, c_out]
    vec_ref: (6, 1, C)            rows: dw_b, bn1_scale, bn1_shift, pw_b, bn2_scale, bn2_shift
    o_ref  : (NB, H, W, C)
    xs_ref : (NB, H+2P, W+2P, C)  single zero-halo padded slab (I/O dtype)
    """
    f32 = jnp.float32
    NB, H, W, C = x_ref.shape
    Hp = H + 2 * P
    Wp = W + 2 * P

    # ---- build the single padded slab: zero halos only, then interior copy --
    zdt = xs_ref.dtype
    if P > 0:
        xs_ref[:, 0:P, :, :] = jnp.zeros((NB, P, Wp, C), zdt)            # top halo
        xs_ref[:, P + H:Hp, :, :] = jnp.zeros((NB, P, Wp, C), zdt)       # bottom halo
        xs_ref[:, P:P + H, 0:P, :] = jnp.zeros((NB, H, P, C), zdt)       # left halo
        xs_ref[:, P:P + H, P + W:Wp, :] = jnp.zeros((NB, H, P, C), zdt)  # right halo
    xs_ref[:, P:P + H, P:P + W, :] = x_ref[...]                          # interior

    n_strips = H // STRIP

    @pl.loop(0, n_strips)
    def _(s):
        h0 = pl.multiple_of(s * STRIP, STRIP)

        # ---- depthwise KxK conv: register-blocked 81-tap accumulation -------
        def dy_step(dy, acc):
            wrow = dw_ref[dy]                                # (K, 1, C), io dtype
            for dx in range(K):                              # unrolled
                tap = xs_ref[:, pl.ds(h0 + dy, STRIP), pl.ds(dx, W), :]
                acc = acc + (tap * wrow[dx]).astype(f32)
            return acc

        acc = lax.fori_loop(0, K, dy_step,
                            jnp.zeros((NB, STRIP, W, C), f32),
                            unroll=True)

        # ---- bias -> GELU -> folded BN1 -> residual --------------------------
        dw_b, s1, b1 = vec_ref[0], vec_ref[1], vec_ref[2]    # (1, C), f32
        xres = x_ref[:, pl.ds(h0, STRIP), :, :].astype(f32)
        h = _gelu_exact(acc + dw_b) * s1 + b1 + xres

        # ---- pointwise 1x1 conv: (NB*STRIP*W, C) x (C, C) MXU matmul ---------
        pw = pw_ref[...]
        p = jnp.dot(h.reshape(NB * STRIP * W, C).astype(pw.dtype), pw,
                    preferred_element_type=f32)

        # ---- bias -> GELU -> folded BN2 -> store ------------------------------
        pw_b, s2, b2 = vec_ref[3], vec_ref[4], vec_ref[5]
        p = _gelu_exact(p + pw_b) * s2 + b2
        o_ref[:, pl.ds(h0, STRIP), :, :] = (
            p.reshape(NB, STRIP, W, C).astype(o_ref.dtype))


def _round_up(x, m):
    return ((x + m - 1) // m) * m


def _vmem_budget_bytes():
    """Per-generation VMEM budget: ~48 MiB on v7x, up to ~96 MiB on v5e/v6e."""
    cap = 64 * 1024 * 1024
    try:
        cap = int(pltpu.get_tpu_info().vmem_capacity_bytes)
    except Exception:
        pass
    return min((cap * 3) // 4, 100 * 1024 * 1024)


def _pick_batch_block(N, H, W, C, K, io_itemsize, budget):
    """Largest divisor of N (capped at N//2) whose VMEM footprint fits budget."""
    P = (K - 1) // 2
    Hp, Wp = H + 2 * P, W + 2 * P
    Wr = _round_up(W, 8)
    Wpr = _round_up(Wp, 8)
    Cr = _round_up(C, 128)

    def estimate(nb):
        io_block = nb * H * Wr * Cr * io_itemsize            # one (NB,H,W,C) block
        slab = nb * Hp * Wpr * Cr * io_itemsize              # single padded slab
        strip = min(H, 8)
        live = 4 * nb * strip * Wr * Cr * 4                  # acc/h/matmul f32 lives
        weights = (K * K * 8 * Cr + Cr * Cr) * io_itemsize + 6 * 8 * Cr * 4
        return 4 * io_block + slab + live + 2 * weights + (1 << 20)

    nb_max = max(1, N // 2)                                   # >=2 grid steps if N>=2
    nb = 1
    for cand in range(1, nb_max + 1):
        if N % cand == 0 and estimate(cand) <= budget:
            nb = cand
    return nb


def _pick_strip(H, row_bytes, cap=8, target=64 * 1024):
    """Largest divisor of H (<= cap rows) whose f32 strip accumulator is small."""
    best = 1
    for s in range(1, min(H, cap) + 1):
        if H % s == 0 and s * row_bytes <= target:
            best = s
    return best


def convmixer_subblock(x, params, *, kernel_size=9, eps=1e-5,
                       channels_last=False, use_bf16=False,
                       batch_block=None, h_strip=None):
    """Applies ConvMixerSubBlock.forward.

    x is NCHW (PyTorch) unless channels_last=True (NHWC, which skips the two
    layout transposes).  use_bf16=True keeps HBM I/O, the padded slab and the
    MXU/VPU operands in bf16 with f32 accumulation everywhere.
    """
    K = kernel_size
    assert K % 2 == 1, "padding='same' path implemented for odd kernel_size"
    P = (K - 1) // 2

    if not channels_last:
        # TODO(synk): accept NHWC end-to-end to drop these two full-tensor passes.
        x = jnp.transpose(x, (0, 2, 3, 1))                    # NCHW -> NHWC
    N, H, W, C = x.shape

    io_dtype = jnp.bfloat16 if use_bf16 else jnp.float32
    x = x.astype(io_dtype)
    dw_w = params['dw_w'].reshape(K, K, 1, C).astype(io_dtype)
    pw_w = params['pw_w'].astype(io_dtype)                    # (C_in, C_out)

    # Fold eval-mode BatchNorm into per-channel scale/shift and pack every
    # per-channel vector into one (6, 1, C) f32 array (one tiny DMA per step).
    def bn_fold(bn):
        scale = bn['gamma'] / jnp.sqrt(bn['var'] + eps)
        shift = bn['beta'] - bn['mean'] * scale
        return scale, shift

    s1, b1 = bn_fold(params['bn1'])
    s2, b2 = bn_fold(params['bn2'])
    vecs = jnp.stack([params['dw_b'], s1, b1, params['pw_b'], s2, b2]
                     ).astype(jnp.float32).reshape(6, 1, C)

    budget = _vmem_budget_bytes()
    NB = batch_block or _pick_batch_block(N, H, W, C, K,
                                          jnp.dtype(io_dtype).itemsize, budget)
    assert N % NB == 0, "batch_block must divide the batch size"
    STRIP = h_strip or _pick_strip(H, NB * _round_up(W, 8) * _round_up(C, 128) * 4)
    assert H % STRIP == 0, "h_strip must divide H"
    Hp, Wp = H + 2 * P, W + 2 * P

    kernel = functools.partial(_convmixer_kernel, K=K, P=P, STRIP=STRIP)

    out = pl.pallas_call(
        kernel,
        out_shape=jax.ShapeDtypeStruct((N, H, W, C), io_dtype),
        grid_spec=pltpu.PrefetchScalarGridSpec(
            num_scalar_prefetch=0,
            grid=(N // NB,),
            in_specs=[
                pl.BlockSpec((NB, H, W, C), lambda g: (g, 0, 0, 0)),   # x (+residual)
                pl.BlockSpec((K, K, 1, C), lambda g: (0, 0, 0, 0)),    # depthwise w
                pl.BlockSpec((C, C), lambda g: (0, 0)),                # pointwise w
                pl.BlockSpec((6, 1, C), lambda g: (0, 0, 0)),          # packed per-C vecs
            ],
            out_specs=pl.BlockSpec((NB, H, W, C), lambda g: (g, 0, 0, 0)),
            scratch_shapes=[pltpu.VMEM((NB, Hp, Wp, C), io_dtype)],    # single slab
        ),
        compiler_params=pltpu.CompilerParams(
            dimension_semantics=("parallel",),
            vmem_limit_bytes=budget,
        ),
    )(x, dw_w, pw_w, vecs)

    if not channels_last:
        out = jnp.transpose(out, (0, 3, 1, 2))                # NHWC -> NCHW
    return out


def init_params(key, dim, kernel_size=9):
    """Deterministic init matching ConvMixerSubBlock._init_weights."""
    k_dw, k_pw = jax.random.split(key)
    K = kernel_size
    # depthwise conv: fan_out = K*K*dim // dim = K*K
    std_dw = math.sqrt(2.0 / (K * K))
    dw_w = std_dw * jax.random.normal(k_dw, (K, K, dim), jnp.float32)   # [ky,kx,c]
    dw_b = jnp.zeros((dim,), jnp.float32)
    # pointwise conv: fan_out = 1*1*dim // 1 = dim
    std_pw = math.sqrt(2.0 / dim)
    pw_w = std_pw * jax.random.normal(k_pw, (dim, dim), jnp.float32)    # [c_in, c_out]
    pw_b = jnp.zeros((dim,), jnp.float32)
    bn = lambda: dict(gamma=jnp.ones((dim,), jnp.float32),
                      beta=jnp.zeros((dim,), jnp.float32),
                      mean=jnp.zeros((dim,), jnp.float32),
                      var=jnp.ones((dim,), jnp.float32))
    return dict(dw_w=dw_w, dw_b=dw_b, pw_w=pw_w, pw_b=pw_b, bn1=bn(), bn2=bn())


def reference_forward(x_nchw, params, *, kernel_size=9, eps=1e-5):
    """Pure-JAX reference (same semantics) for a correctness check."""
    N, C, H, W = x_nchw.shape
    K = kernel_size
    x = jnp.transpose(x_nchw, (0, 2, 3, 1)).astype(jnp.float32)  # NHWC
    w_dw = params['dw_w'].reshape(K, K, 1, C)                    # HWIO, depthwise
    y = jax.lax.conv_general_dilated(
        x, w_dw, window_strides=(1, 1), padding='SAME',
        dimension_numbers=('NHWC', 'HWIO', 'NHWC'), feature_group_count=C)
    y = y + params['dw_b']
    y = _gelu_exact(y)
    s1 = params['bn1']['gamma'] / jnp.sqrt(params['bn1']['var'] + eps)
    y = (y - params['bn1']['mean']) * s1 + params['bn1']['beta']
    y = x + y
    z = jnp.einsum('nhwc,cd->nhwd', y, params['pw_w']) + params['pw_b']
    z = _gelu_exact(z)
    s2 = params['bn2']['gamma'] / jnp.sqrt(params['bn2']['var'] + eps)
    z = (z - params['bn2']['mean']) * s2 + params['bn2']['beta']
    return jnp.transpose(z, (0, 3, 1, 2))


if __name__ == "__main__":
    key = jax.random.PRNGKey(0)
    k_x, k_p = jax.random.split(key)

    N, C, H, W = 2, 4, 16, 16          # small shapes, NCHW like PyTorch
    x = jax.random.normal(k_x, (N, C, H, W), jnp.float32)
    params = init_params(k_p, C, kernel_size=9)

    ref = jax.block_until_ready(reference_forward(x, params, kernel_size=9))

    # f32 path — matches the PyTorch module's numerics.
    out = jax.block_until_ready(convmixer_subblock(x, params, kernel_size=9))
    assert out.shape == (N, C, H, W)
    assert out.dtype == jnp.float32
    assert jnp.max(jnp.abs(out - ref)) < 1e-4, "mismatch vs pure-JAX reference"

    # bf16 HBM I/O + bf16 slab/taps + bf16 MXU operands fast path (f32 accum).
    # Coarse sanity bound only: inputs/weights are rounded to bf16.
    out_bf16 = jax.block_until_ready(
        convmixer_subblock(x, params, kernel_size=9, use_bf16=True))
    assert out_bf16.dtype == jnp.bfloat16
    assert jnp.max(jnp.abs(out_bf16.astype(jnp.float32) - ref)) < 0.5

    print("KERNEL_OK")
</pallas_src>

<mosaic_0001>
module attributes {stable_mosaic.version = 11 : i64} {
  func.func @_convmixer_kernel(%arg0: i32, %arg1: memref<1x16x16x4xf32, #tpu.memory_space<vmem>>, %arg2: memref<9x9x1x4xf32, #tpu.memory_space<vmem>>, %arg3: memref<4x4xf32, #tpu.memory_space<vmem>>, %arg4: memref<6x1x4xf32, #tpu.memory_space<vmem>>, %arg5: memref<1x16x16x4xf32, #tpu.memory_space<vmem>>, %arg6: memref<1x24x24x4xf32, #tpu.memory_space<vmem>>) attributes {dimension_semantics = [#tpu.dimension_semantics<parallel>], iteration_bounds = array<i64: 2>, scalar_prefetch = 0 : i64, scratch_operands = 1 : i64, tpu.core_type = #tpu.core_type<tc>, window_params = [{transform_indices = @transform_0, window_bounds = array<i64: 1, 16, 16, 4>}, {pipeline_mode = #tpu.pipeline_mode<synchronous>, transform_indices = @transform_1, window_bounds = array<i64: 9, 9, 1, 4>}, {pipeline_mode = #tpu.pipeline_mode<synchronous>, transform_indices = @transform_2, window_bounds = array<i64: 4, 4>}, {pipeline_mode = #tpu.pipeline_mode<synchronous>, transform_indices = @transform_3, window_bounds = array<i64: 6, 1, 4>}, {transform_indices = @transform_4, window_bounds = array<i64: 1, 16, 16, 4>}]} {
    %cst = arith.constant 0.000000e+00 : f32
    %0 = vector.broadcast %cst : f32 to vector<1x4x24x4xf32>
    %c0 = arith.constant 0 : index
    %c0_0 = arith.constant 0 : index
    %c0_1 = arith.constant 0 : index
    %c0_2 = arith.constant 0 : index
    %1 = vector.load %arg6[%c0, %c0_0, %c0_1, %c0_2] : memref<1x24x24x4xf32, #tpu.memory_space<vmem>>, vector<1x4x24x4xf32>
    tpu.vector_store %arg6[%c0, %c0_0, %c0_1, %c0_2], %0 {strides = array<i32>} : memref<1x24x24x4xf32, #tpu.memory_space<vmem>>, vector<1x4x24x4xf32>,
    %cst_3 = arith.constant 0.000000e+00 : f32
    %2 = vector.broadcast %cst_3 : f32 to vector<1x4x24x4xf32>
    %c0_4 = arith.constant 0 : index
    %c20 = arith.constant 20 : index
    %c0_5 = arith.constant 0 : index
    %c0_6 = arith.constant 0 : index
    %3 = vector.load %arg6[%c0_4, %c20, %c0_5, %c0_6] : memref<1x24x24x4xf32, #tpu.memory_space<vmem>>, vector<1x4x24x4xf32>
    tpu.vector_store %arg6[%c0_4, %c20, %c0_5, %c0_6], %2 {strides = array<i32>} : memref<1x24x24x4xf32, #tpu.memory_space<vmem>>, vector<1x4x24x4xf32>,
    %cst_7 = arith.constant 0.000000e+00 : f32
    %4 = vector.broadcast %cst_7 : f32 to vector<1x16x4x4xf32>
    %c0_8 = arith.constant 0 : index
    %c4 = arith.constant 4 : index
    %c0_9 = arith.constant 0 : index
    %c0_10 = arith.constant 0 : index
    %5 = vector.load %arg6[%c0_8, %c4, %c0_9, %c0_10] : memref<1x24x24x4xf32, #tpu.memory_space<vmem>>, vector<1x16x4x4xf32>
    tpu.vector_store %arg6[%c0_8, %c4, %c0_9, %c0_10], %4 {strides = array<i32>} : memref<1x24x24x4xf32, #tpu.memory_space<vmem>>, vector<1x16x4x4xf32>,
    %cst_11 = arith.constant 0.000000e+00 : f32
    %6 = vector.broadcast %cst_11 : f32 to vector<1x16x4x4xf32>
    %c0_12 = arith.constant 0 : index
    %c4_13 = arith.constant 4 : index
    %c20_14 = arith.constant 20 : index
    %c0_15 = arith.constant 0 : index
    %7 = vector.load %arg6[%c0_12, %c4_13, %c20_14, %c0_15] : memref<1x24x24x4xf32, #tpu.memory_space<vmem>>, vector<1x16x4x4xf32>
    tpu.vector_store %arg6[%c0_12, %c4_13, %c20_14, %c0_15], %6 {strides = array<i32>} : memref<1x24x24x4xf32, #tpu.memory_space<vmem>>, vector<1x16x4x4xf32>,
    %c0_16 = arith.constant 0 : index
    %c0_17 = arith.constant 0 : index
    %c0_18 = arith.constant 0 : index
    %c0_19 = arith.constant 0 : index
    %8 = vector.load %arg1[%c0_16, %c0_17, %c0_18, %c0_19] : memref<1x16x16x4xf32, #tpu.memory_space<vmem>>, vector<1x16x16x4xf32>
    %c0_20 = arith.constant 0 : index
    %c4_21 = arith.constant 4 : index
    %c4_22 = arith.constant 4 : index
    %c0_23 = arith.constant 0 : index
    %9 = vector.load %arg6[%c0_20, %c4_21, %c4_22, %c0_23] : memref<1x24x24x4xf32, #tpu.memory_space<vmem>>, vector<1x16x16x4xf32>
    tpu.vector_store %arg6[%c0_20, %c4_21, %c4_22, %c0_23], %8 {strides = array<i32>} : memref<1x24x24x4xf32, #tpu.memory_space<vmem>>, vector<1x16x16x4xf32>,
    %c0_i32 = arith.constant 0 : i32
    %c2_i32 = arith.constant 2 : i32
    %10 = arith.addi %c0_i32, %c2_i32 : i32
    %c1_i32 = arith.constant 1 : i32
    scf.for %arg7 = %c0_i32 to %10 step %c1_i32  : i32 {
      %c1_i32_25 = arith.constant 1 : i32
      %11 = arith.muli %arg7, %c1_i32_25 : i32
      %c0_i32_26 = arith.constant 0 : i32
      %12 = arith.addi %c0_i32_26, %11 : i32
      %c8_i32 = arith.constant 8 : i32
      %13 = arith.muli %12, %c8_i32 : i32
      %14 = tpu.assume_multiple %13, 8 : i32
      %cst_27 = arith.constant 0.000000e+00 : f32
      %15 = vector.broadcast %cst_27 : f32 to vector<1x8x16x4xf32>
      %c0_i32_28 = arith.constant 0 : i32
      %16 = arith.index_cast %c0_i32_28 : i32 to index
      %c0_29 = arith.constant 0 : index
      %c0_30 = arith.constant 0 : index
      %c0_31 = arith.constant 0 : index
      %17 = vector.load %arg2[%16, %c0_29, %c0_30, %c0_31] : memref<9x9x1x4xf32, #tpu.memory_space<vmem>>, vector<1x9x1x4xf32>
      %18 = vector.shape_cast %17 : vector<1x9x1x4xf32> to vector<9x1x4xf32>
      %19 = arith.addi %14, %c0_i32_28 : i32
      %c0_32 = arith.constant 0 : index
      %20 = arith.index_cast %19 : i32 to index
      %c0_33 = arith.constant 0 : index
      %c0_34 = arith.constant 0 : index
      %21 = vector.load %arg6[%c0_32, %20, %c0_33, %c0_34] : memref<1x24x24x4xf32, #tpu.memory_space<vmem>>, vector<1x8x16x4xf32>
      %22 = vector.extract_strided_slice %18 {offsets = [0, 0, 0], sizes = [1, 1, 4], strides = [1, 1, 1]} : vector<9x1x4xf32> to vector<1x1x4xf32>
      %23 = vector.shape_cast %22 : vector<1x1x4xf32> to vector<1x4xf32>
      %24 = vector.shape_cast %23 : vector<1x4xf32> to vector<1x1x1x4xf32>
      %25 = vector.broadcast %24 : vector<1x1x1x4xf32> to vector<1x8x16x4xf32>
      %26 = arith.mulf %21, %25 : vector<1x8x16x4xf32>
      %27 = arith.addf %15, %26 : vector<1x8x16x4xf32>
      %28 = arith.addi %14, %c0_i32_28 : i32
      %c0_35 = arith.constant 0 : index
      %29 = arith.index_cast %28 : i32 to index
      %c1 = arith.constant 1 : index
      %c0_36 = arith.constant 0 : index
      %30 = vector.load %arg6[%c0_35, %29, %c1, %c0_36] : memref<1x24x24x4xf32, #tpu.memory_space<vmem>>, vector<1x8x16x4xf32>
      %31 = vector.extract_strided_slice %18 {offsets = [1, 0, 0], sizes = [1, 1, 4], strides = [1, 1, 1]} : vector<9x1x4xf32> to vector<1x1x4xf32>
      %32 = vector.shape_cast %31 : vector<1x1x4xf32> to vector<1x4xf32>
      %33 = vector.shape_cast %32 : vector<1x4xf32> to vector<1x1x1x4xf32>
      %34 = vector.broadcast %33 : vector<1x1x1x4xf32> to vector<1x8x16x4xf32>
      %35 = arith.mulf %30, %34 : vector<1x8x16x4xf32>
      %36 = arith.addf %27, %35 : vector<1x8x16x4xf32>
      %37 = arith.addi %14, %c0_i32_28 : i32
      %c0_37 = arith.constant 0 : index
      %38 = arith.index_cast %37 : i32 to index
      %c2 = arith.constant 2 : index
      %c0_38 = arith.constant 0 : index
      %39 = vector.load %arg6[%c0_37, %38, %c2, %c0_38] : memref<1x24x24x4xf32, #tpu.memory_space<vmem>>, vector<1x8x16x4xf32>
      %40 = vector.extract_strided_slice %18 {offsets = [2, 0, 0], sizes = [1, 1, 4], strides = [1, 1, 1]} : vector<9x1x4xf32> to vector<1x1x4xf32>
      %41 = vector.shape_cast %40 : vector<1x1x4xf32> to vector<1x4xf32>
      %42 = vector.shape_cast %41 : vector<1x4xf32> to vector<1x1x1x4xf32>
      %43 = vector.broadcast %42 : vector<1x1x1x4xf32> to vector<1x8x16x4xf32>
      %44 = arith.mulf %39, %43 : vector<1x8x16x4xf32>
      %45 = arith.addf %36, %44 : vector<1x8x16x4xf32>
      %46 = arith.addi %14, %c0_i32_28 : i32
      %c0_39 = arith.constant 0 : index
      %47 = arith.index_cast %46 : i32 to index
      %c3 = arith.constant 3 : index
      %c0_40 = arith.constant 0 : index
      %48 = vector.load %arg6[%c0_39, %47, %c3, %c0_40] : memref<1x24x24x4xf32, #tpu.memory_space<vmem>>, vector<1x8x16x4xf32>
      %49 = vector.extract_strided_slice %18 {offsets = [3, 0, 0], sizes = [1, 1, 4], strides = [1, 1, 1]} : vector<9x1x4xf32> to vector<1x1x4xf32>
      %50 = vector.shape_cast %49 : vector<1x1x4xf32> to vector<1x4xf32>
      %51 = vector.shape_cast %50 : vector<1x4xf32> to vector<1x1x1x4xf32>
      %52 = vector.broadcast %51 : vector<1x1x1x4xf32> to vector<1x8x16x4xf32>
      %53 = arith.mulf %48, %52 : vector<1x8x16x4xf32>
      %54 = arith.addf %45, %53 : vector<1x8x16x4xf32>
      %55 = arith.addi %14, %c0_i32_28 : i32
      %c0_41 = arith.constant 0 : index
      %56 = arith.index_cast %55 : i32 to index
      %c4_42 = arith.constant 4 : index
      %c0_43 = arith.constant 0 : index
      %57 = vector.load %arg6[%c0_41, %56, %c4_42, %c0_43] : memref<1x24x24x4xf32, #tpu.memory_space<vmem>>, vector<1x8x16x4xf32>
      %58 = vector.extract_strided_slice %18 {offsets = [4, 0, 0], sizes = [1, 1, 4], strides = [1, 1, 1]} : vector<9x1x4xf32> to vector<1x1x4xf32>
      %59 = vector.shape_cast %58 : vector<1x1x4xf32> to vector<1x4xf32>
      %60 = vector.shape_cast %59 : vector<1x4xf32> to vector<1x1x1x4xf32>
      %61 = vector.broadcast %60 : vector<1x1x1x4xf32> to vector<1x8x16x4xf32>
      %62 = arith.mulf %57, %61 : vector<1x8x16x4xf32>
      %63 = arith.addf %54, %62 : vector<1x8x16x4xf32>
      %64 = arith.addi %14, %c0_i32_28 : i32
      %c0_44 = arith.constant 0 : index
      %65 = arith.index_cast %64 : i32 to index
      %c5 = arith.constant 5 : index
      %c0_45 = arith.constant 0 : index
      %66 = vector.load %arg6[%c0_44, %65, %c5, %c0_45] : memref<1x24x24x4xf32, #tpu.memory_space<vmem>>, vector<1x8x16x4xf32>
      %67 = vector.extract_strided_slice %18 {offsets = [5, 0, 0], sizes = [1, 1, 4], strides = [1, 1, 1]} : vector<9x1x4xf32> to vector<1x1x4xf32>
      %68 = vector.shape_cast %67 : vector<1x1x4xf32> to vector<1x4xf32>
      %69 = vector.shape_cast %68 : vector<1x4xf32> to vector<1x1x1x4xf32>
      %70 = vector.broadcast %69 : vector<1x1x1x4xf32> to vector<1x8x16x4xf32>
      %71 = arith.mulf %66, %70 : vector<1x8x16x4xf32>
      %72 = arith.addf %63, %71 : vector<1x8x16x4xf32>
      %73 = arith.addi %14, %c0_i32_28 : i32
      %c0_46 = arith.constant 0 : index
      %74 = arith.index_cast %73 : i32 to index
      %c6 = arith.constant 6 : index
      %c0_47 = arith.constant 0 : index
      %75 = vector.load %arg6[%c0_46, %74, %c6, %c0_47] : memref<1x24x24x4xf32, #tpu.memory_space<vmem>>, vector<1x8x16x4xf32>
      %76 = vector.extract_strided_slice %18 {offsets = [6, 0, 0], sizes = [1, 1, 4], strides = [1, 1, 1]} : vector<9x1x4xf32> to vector<1x1x4xf32>
      %77 = vector.shape_cast %76 : vector<1x1x4xf32> to vector<1x4xf32>
      %78 = vector.shape_cast %77 : vector<1x4xf32> to vector<1x1x1x4xf32>
      %79 = vector.broadcast %78 : vector<1x1x1x4xf32> to vector<1x8x16x4xf32>
      %80 = arith.mulf %75, %79 : vector<1x8x16x4xf32>
      %81 = arith.addf %72, %80 : vector<1x8x16x4xf32>
      %82 = arith.addi %14, %c0_i32_28 : i32
      %c0_48 = arith.constant 0 : index
      %83 = arith.index_cast %82 : i32 to index
      %c7 = arith.constant 7 : index
      %c0_49 = arith.constant 0 : index
      %84 = vector.load %arg6[%c0_48, %83, %c7, %c0_49] : memref<1x24x24x4xf32, #tpu.memory_space<vmem>>, vector<1x8x16x4xf32>
      %85 = vector.extract_strided_slice %18 {offsets = [7, 0, 0], sizes = [1, 1, 4], strides = [1, 1, 1]} : vector<9x1x4xf32> to vector<1x1x4xf32>
      %86 = vector.shape_cast %85 : vector<1x1x4xf32> to vector<1x4xf32>
      %87 = vector.shape_cast %86 : vector<1x4xf32> to vector<1x1x1x4xf32>
      %88 = vector.broadcast %87 : vector<1x1x1x4xf32> to vector<1x8x16x4xf32>
      %89 = arith.mulf %84, %88 : vector<1x8x16x4xf32>
      %90 = arith.addf %81, %89 : vector<1x8x16x4xf32>
      %91 = arith.addi %14, %c0_i32_28 : i32
      %c0_50 = arith.constant 0 : index
      %92 = arith.index_cast %91 : i32 to index
      %c8 = arith.constant 8 : index
      %c0_51 = arith.constant 0 : index
      %93 = vector.load %arg6[%c0_50, %92, %c8, %c0_51] : memref<1x24x24x4xf32, #tpu.memory_space<vmem>>, vector<1x8x16x4xf32>
      %94 = vector.extract_strided_slice %18 {offsets = [8, 0, 0], sizes = [1, 1, 4], strides = [1, 1, 1]} : vector<9x1x4xf32> to vector<1x1x4xf32>
      %95 = vector.shape_cast %94 : vector<1x1x4xf32> to vector<1x4xf32>
      %96 = vector.shape_cast %95 : vector<1x4xf32> to vector<1x1x1x4xf32>
      %97 = vector.broadcast %96 : vector<1x1x1x4xf32> to vector<1x8x16x4xf32>
      %98 = arith.mulf %93, %97 : vector<1x8x16x4xf32>
      %99 = arith.addf %90, %98 : vector<1x8x16x4xf32>
      %c1_i32_52 = arith.constant 1 : i32
      %100 = arith.index_cast %c1_i32_52 : i32 to index
      %c0_53 = arith.constant 0 : index
      %c0_54 = arith.constant 0 : index
      %c0_55 = arith.constant 0 : index
      %101 = vector.load %arg2[%100, %c0_53, %c0_54, %c0_55] : memref<9x9x1x4xf32, #tpu.memory_space<vmem>>, vector<1x9x1x4xf32>
      %102 = vector.shape_cast %101 : vector<1x9x1x4xf32> to vector<9x1x4xf32>
      %103 = arith.addi %14, %c1_i32_52 : i32
      %c0_56 = arith.constant 0 : index
      %104 = arith.index_cast %103 : i32 to index
      %c0_57 = arith.constant 0 : index
      %c0_58 = arith.constant 0 : index
      %105 = vector.load %arg6[%c0_56, %104, %c0_57, %c0_58] : memref<1x24x24x4xf32, #tpu.memory_space<vmem>>, vector<1x8x16x4xf32>
      %106 = vector.extract_strided_slice %102 {offsets = [0, 0, 0], sizes = [1, 1, 4], strides = [1, 1, 1]} : vector<9x1x4xf32> to vector<1x1x4xf32>
      %107 = vector.shape_cast %106 : vector<1x1x4xf32> to vector<1x4xf32>
      %108 = vector.shape_cast %107 : vector<1x4xf32> to vector<1x1x1x4xf32>
      %109 = vector.broadcast %108 : vector<1x1x1x4xf32> to vector<1x8x16x4xf32>
      %110 = arith.mulf %105, %109 : vector<1x8x16x4xf32>
      %111 = arith.addf %99, %110 : vector<1x8x16x4xf32>
      %112 = arith.addi %14, %c1_i32_52 : i32
      %c0_59 = arith.constant 0 : index
      %113 = arith.index_cast %112 : i32 to index
      %c1_60 = arith.constant 1 : index
      %c0_61 = arith.constant 0 : index
      %114 = vector.load %arg6[%c0_59, %113, %c1_60, %c0_61] : memref<1x24x24x4xf32, #tpu.memory_space<vmem>>, vector<1x8x16x4xf32>
      %115 = vector.extract_strided_slice %102 {offsets = [1, 0, 0], sizes = [1, 1, 4], strides = [1, 1, 1]} : vector<9x1x4xf32> to vector<1x1x4xf32>
      %116 = vector.shape_cast %115 : vector<1x1x4xf32> to vector<1x4xf32>
      %117 = vector.shape_cast %116 : vector<1x4xf32> to vector<1x1x1x4xf32>
      %118 = vector.broadcast %117 : vector<1x1x1x4xf32> to vector<1x8x16x4xf32>
      %119 = arith.mulf %114, %118 : vector<1x8x16x4xf32>
      %120 = arith.addf %111, %119 : vector<1x8x16x4xf32>
      %121 = arith.addi %14, %c1_i32_52 : i32
      %c0_62 = arith.constant 0 : index
      %122 = arith.index_cast %121 : i32 to index
      %c2_63 = arith.constant 2 : index
      %c0_64 = arith.constant 0 : index
      %123 = vector.load %arg6[%c0_62, %122, %c2_63, %c0_64] : memref<1x24x24x4xf32, #tpu.memory_space<vmem>>, vector<1x8x16x4xf32>
      %124 = vector.extract_strided_slice %102 {offsets = [2, 0, 0], sizes = [1, 1, 4], strides = [1, 1, 1]} : vector<9x1x4xf32> to vector<1x1x4xf32>
      %125 = vector.shape_cast %124 : vector<1x1x4xf32> to vector<1x4xf32>
      %126 = vector.shape_cast %125 : vector<1x4xf32> to vector<1x1x1x4xf32>
      %127 = vector.broadcast %126 : vector<1x1x1x4xf32> to vector<1x8x16x4xf32>
      %128 = arith.mulf %123, %127 : vector<1x8x16x4xf32>
      %129 = arith.addf %120, %128 : vector<1x8x16x4xf32>
      %130 = arith.addi %14, %c1_i32_52 : i32
      %c0_65 = arith.constant 0 : index
      %131 = arith.index_cast %130 : i32 to index
      %c3_66 = arith.constant 3 : index
      %c0_67 = arith.constant 0 : index
      %132 = vector.load %arg6[%c0_65, %131, %c3_66, %c0_67] : memref<1x24x24x4xf32, #tpu.memory_space<vmem>>, vector<1x8x16x4xf32>
      %133 = vector.extract_strided_slice %102 {offsets = [3, 0, 0], sizes = [1, 1, 4], strides = [1, 1, 1]} : vector<9x1x4xf32> to vector<1x1x4xf32>
      %134 = vector.shape_cast %133 : vector<1x1x4xf32> to vector<1x4xf32>
      %135 = vector.shape_cast %134 : vector<1x4xf32> to vector<1x1x1x4xf32>
      %136 = vector.broadcast %135 : vector<1x1x1x4xf32> to vector<1x8x16x4xf32>
      %137 = arith.mulf %132, %136 : vector<1x8x16x4xf32>
      %138 = arith.addf %129, %137 : vector<1x8x16x4xf32>
      %139 = arith.addi %14, %c1_i32_52 : i32
      %c0_68 = arith.constant 0 : index
      %140 = arith.index_cast %139 : i32 to index
      %c4_69 = arith.constant 4 : index
      %c0_70 = arith.constant 0 : index
      %141 = vector.load %arg6[%c0_68, %140, %c4_69, %c0_70] : memref<1x24x24x4xf32, #tpu.memory_space<vmem>>, vector<1x8x16x4xf32>
      %142 = vector.extract_strided_slice %102 {offsets = [4, 0, 0], sizes = [1, 1, 4], strides = [1, 1, 1]} : vector<9x1x4xf32> to vector<1x1x4xf32>
      %143 = vector.shape_cast %142 : vector<1x1x4xf32> to vector<1x4xf32>
      %144 = vector.shape_cast %143 : vector<1x4xf32> to vector<1x1x1x4xf32>
      %145 = vector.broadcast %144 : vector<1x1x1x4xf32> to vector<1x8x16x4xf32>
      %146 = arith.mulf %141, %145 : vector<1x8x16x4xf32>
      %147 = arith.addf %138, %146 : vector<1x8x16x4xf32>
      %148 = arith.addi %14, %c1_i32_52 : i32
      %c0_71 = arith.constant 0 : index
      %149 = arith.index_cast %148 : i32 to index
      %c5_72 = arith.constant 5 : index
      %c0_73 = arith.constant 0 : index
      %150 = vector.load %arg6[%c0_71, %149, %c5_72, %c0_73] : memref<1x24x24x4xf32, #tpu.memory_space<vmem>>, vector<1x8x16x4xf32>
      %151 = vector.extract_strided_slice %102 {offsets = [5, 0, 0], sizes = [1, 1, 4], strides = [1, 1, 1]} : vector<9x1x4xf32> to vector<1x1x4xf32>
      %152 = vector.shape_cast %151 : vector<1x1x4xf32> to vector<1x4xf32>
      %153 = vector.shape_cast %152 : vector<1x4xf32> to vector<1x1x1x4xf32>
      %154 = vector.broadcast %153 : vector<1x1x1x4xf32> to vector<1x8x16x4xf32>
      %155 = arith.mulf %150, %154 : vector<1x8x16x4xf32>
      %156 = arith.addf %147, %155 : vector<1x8x16x4xf32>
      %157 = arith.addi %14, %c1_i32_52 : i32
      %c0_74 = arith.constant 0 : index
      %158 = arith.index_cast %157 : i32 to index
      %c6_75 = arith.constant 6 : index
      %c0_76 = arith.constant 0 : index
      %159 = vector.load %arg6[%c0_74, %158, %c6_75, %c0_76] : memref<1x24x24x4xf32, #tpu.memory_space<vmem>>, vector<1x8x16x4xf32>
      %160 = vector.extract_strided_slice %102 {offsets = [6, 0, 0], sizes = [1, 1, 4], strides = [1, 1, 1]} : vector<9x1x4xf32> to vector<1x1x4xf32>
      %161 = vector.shape_cast %160 : vector<1x1x4xf32> to vector<1x4xf32>
      %162 = vector.shape_cast %161 : vector<1x4xf32> to vector<1x1x1x4xf32>
      %163 = vector.broadcast %162 : vector<1x1x1x4xf32> to vector<1x8x16x4xf32>
      %164 = arith.mulf %159, %163 : vector<1x8x16x4xf32>
      %165 = arith.addf %156, %164 : vector<1x8x16x4xf32>
      %166 = arith.addi %14, %c1_i32_52 : i32
      %c0_77 = arith.constant 0 : index
      %167 = arith.index_cast %166 : i32 to index
      %c7_78 = arith.constant 7 : index
      %c0_79 = arith.constant 0 : index
      %168 = vector.load %arg6[%c0_77, %167, %c7_78, %c0_79] : memref<1x24x24x4xf32, #tpu.memory_space<vmem>>, vector<1x8x16x4xf32>
      %169 = vector.extract_strided_slice %102 {offsets = [7, 0, 0], sizes = [1, 1, 4], strides = [1, 1, 1]} : vector<9x1x4xf32> to vector<1x1x4xf32>
      %170 = vector.shape_cast %169 : vector<1x1x4xf32> to vector<1x4xf32>
      %171 = vector.shape_cast %170 : vector<1x4xf32> to vector<1x1x1x4xf32>
      %172 = vector.broadcast %171 : vector<1x1x1x4xf32> to vector<1x8x16x4xf32>
      %173 = arith.mulf %168, %172 : vector<1x8x16x4xf32>
      %174 = arith.addf %165, %173 : vector<1x8x16x4xf32>
      %175 = arith.addi %14, %c1_i32_52 : i32
      %c0_80 = arith.constant 0 : index
      %176 = arith.index_cast %175 : i32 to index
      %c8_81 = arith.constant 8 : index
      %c0_82 = arith.constant 0 : index
      %177 = vector.load %arg6[%c0_80, %176, %c8_81, %c0_82] : memref<1x24x24x4xf32, #tpu.memory_space<vmem>>, vector<1x8x16x4xf32>
      %178 = vector.extract_strided_slice %102 {offsets = [8, 0, 0], sizes = [1, 1, 4], strides = [1, 1, 1]} : vector<9x1x4xf32> to vector<1x1x4xf32>
      %179 = vector.shape_cast %178 : vector<1x1x4xf32> to vector<1x4xf32>
      %180 = vector.shape_cast %179 : vector<1x4xf32> to vector<1x1x1x4xf32>
      %181 = vector.broadcast %180 : vector<1x1x1x4xf32> to vector<1x8x16x4xf32>
      %182 = arith.mulf %177, %181 : vector<1x8x16x4xf32>
      %183 = arith.addf %174, %182 : vector<1x8x16x4xf32>
      %c2_i32_83 = arith.constant 2 : i32
      %184 = arith.index_cast %c2_i32_83 : i32 to index
      %c0_84 = arith.constant 0 : index
      %c0_85 = arith.constant 0 : index
      %c0_86 = arith.constant 0 : index
      %185 = vector.load %arg2[%184, %c0_84, %c0_85, %c0_86] : memref<9x9x1x4xf32, #tpu.memory_space<vmem>>, vector<1x9x1x4xf32>
      %186 = vector.shape_cast %185 : vector<1x9x1x4xf32> to vector<9x1x4xf32>
      %187 = arith.addi %14, %c2_i32_83 : i32
      %c0_87 = arith.constant 0 : index
      %188 = arith.index_cast %187 : i32 to index
      %c0_88 = arith.constant 0 : index
      %c0_89 = arith.constant 0 : index
      %189 = vector.load %arg6[%c0_87, %188, %c0_88, %c0_89] : memref<1x24x24x4xf32, #tpu.memory_space<vmem>>, vector<1x8x16x4xf32>
      %190 = vector.extract_strided_slice %186 {offsets = [0, 0, 0], sizes = [1, 1, 4], strides = [1, 1, 1]} : vector<9x1x4xf32> to vector<1x1x4xf32>
      %191 = vector.shape_cast %190 : vector<1x1x4xf32> to vector<1x4xf32>
      %192 = vector.shape_cast %191 : vector<1x4xf32> to vector<1x1x1x4xf32>
      %193 = vector.broadcast %192 : vector<1x1x1x4xf32> to vector<1x8x16x4xf32>
      %194 = arith.mulf %189, %193 : vector<1x8x16x4xf32>
      %195 = arith.addf %183, %194 : vector<1x8x16x4xf32>
      %196 = arith.addi %14, %c2_i32_83 : i32
      %c0_90 = arith.constant 0 : index
      %197 = arith.index_cast %196 : i32 to index
      %c1_91 = arith.constant 1 : index
      %c0_92 = arith.constant 0 : index
      %198 = vector.load %arg6[%c0_90, %197, %c1_91, %c0_92] : memref<1x24x24x4xf32, #tpu.memory_space<vmem>>, vector<1x8x16x4xf32>
      %199 = vector.extract_strided_slice %186 {offsets = [1, 0, 0], sizes = [1, 1, 4], strides = [1, 1, 1]} : vector<9x1x4xf32> to vector<1x1x4xf32>
      %200 = vector.shape_cast %199 : vector<1x1x4xf32> to vector<1x4xf32>
      %201 = vector.shape_cast %200 : vector<1x4xf32> to vector<1x1x1x4xf32>
      %202 = vector.broadcast %201 : vector<1x1x1x4xf32> to vector<1x8x16x4xf32>
      %203 = arith.mulf %198, %202 : vector<1x8x16x4xf32>
      %204 = arith.addf %195, %203 : vector<1x8x16x4xf32>
      %205 = arith.addi %14, %c2_i32_83 : i32
      %c0_93 = arith.constant 0 : index
      %206 = arith.index_cast %205 : i32 to index
      %c2_94 = arith.constant 2 : index
      %c0_95 = arith.constant 0 : index
      %207 = vector.load %arg6[%c0_93, %206, %c2_94, %c0_95] : memref<1x24x24x4xf32, #tpu.memory_space<vmem>>, vector<1x8x16x4xf32>
      %208 = vector.extract_strided_slice %186 {offsets = [2, 0, 0], sizes = [1, 1, 4], strides = [1, 1, 1]} : vector<9x1x4xf32> to vector<1x1x4xf32>
      %209 = vector.shape_cast %208 : vector<1x1x4xf32> to vector<1x4xf32>
      %210 = vector.shape_cast %209 : vector<1x4xf32> to vector<1x1x1x4xf32>
      %211 = vector.broadcast %210 : vector<1x1x1x4xf32> to vector<1x8x16x4xf32>
      %212 = arith.mulf %207, %211 : vector<1x8x16x4xf32>
      %213 = arith.addf %204, %212 : vector<1x8x16x4xf32>
      %214 = arith.addi %14, %c2_i32_83 : i32
      %c0_96 = arith.constant 0 : index
      %215 = arith.index_cast %214 : i32 to index
      %c3_97 = arith.constant 3 : index
      %c0_98 = arith.constant 0 : index
      %216 = vector.load %arg6[%c0_96, %215, %c3_97, %c0_98] : memref<1x24x24x4xf32, #tpu.memory_space<vmem>>, vector<1x8x16x4xf32>
      %217 = vector.extract_strided_slice %186 {offsets = [3, 0, 0], sizes = [1, 1, 4], strides = [1, 1, 1]} : vector<9x1x4xf32> to vector<1x1x4xf32>
      %218 = vector.shape_cast %217 : vector<1x1x4xf32> to vector<1x4xf32>
      %219 = vector.shape_cast %218 : vector<1x4xf32> to vector<1x1x1x4xf32>
      %220 = vector.broadcast %219 : vector<1x1x1x4xf32> to vector<1x8x16x4xf32>
      %221 = arith.mulf %216, %220 : vector<1x8x16x4xf32>
      %222 = arith.addf %213, %221 : vector<1x8x16x4xf32>
      %223 = arith.addi %14, %c2_i32_83 : i32
      %c0_99 = arith.constant 0 : index
      %224 = arith.index_cast %223 : i32 to index
      %c4_100 = arith.constant 4 : index
      %c0_101 = arith.constant 0 : index
      %225 = vector.load %arg6[%c0_99, %224, %c4_100, %c0_101] : memref<1x24x24x4xf32, #tpu.memory_space<vmem>>, vector<1x8x16x4xf32>
      %226 = vector.extract_strided_slice %186 {offsets = [4, 0, 0], sizes = [1, 1, 4], strides = [1, 1, 1]} : vector<9x1x4xf32> to vector<1x1x4xf32>
      %227 = vector.shape_cast %226 : vector<1x1x4xf32> to vector<1x4xf32>
      %228 = vector.shape_cast %227 : vector<1x4xf32> to vector<1x1x1x4xf32>
      %229 = vector.broadcast %228 : vector<1x1x1x4xf32> to vector<1x8x16x4xf32>
      %230 = arith.mulf %225, %229 : vector<1x8x16x4xf32>
      %231 = arith.addf %222, %230 : vector<1x8x16x4xf32>
      %232 = arith.addi %14, %c2_i32_83 : i32
      %c0_102 = arith.constant 0 : index
      %233 = arith.index_cast %232 : i32 to index
      %c5_103 = arith.constant 5 : index
      %c0_104 = arith.constant 0 : index
      %234 = vector.load %arg6[%c0_102, %233, %c5_103, %c0_104] : memref<1x24x24x4xf32, #tpu.memory_space<vmem>>, vector<1x8x16x4xf32>
      %235 = vector.extract_strided_slice %186 {offsets = [5, 0, 0], sizes = [1, 1, 4], strides = [1, 1, 1]} : vector<9x1x4xf32> to vector<1x1x4xf32>
      %236 = vector.shape_cast %235 : vector<1x1x4xf32> to vector<1x4xf32>
      %237 = vector.shape_cast %236 : vector<1x4xf32> to vector<1x1x1x4xf32>
      %238 = vector.broadcast %237 : vector<1x1x1x4xf32> to vector<1x8x16x4xf32>
      %239 = arith.mulf %234, %238 : vector<1x8x16x4xf32>
      %240 = arith.addf %231, %239 : vector<1x8x16x4xf32>
      %241 = arith.addi %14, %c2_i32_83 : i32
      %c0_105 = arith.constant 0 : index
      %242 = arith.index_cast %241 : i32 to index
      %c6_106 = arith.constant 6 : index
      %c0_107 = arith.constant 0 : index
      %243 = vector.load %arg6[%c0_105, %242, %c6_106, %c0_107] : memref<1x24x24x4xf32, #tpu.memory_space<vmem>>, vector<1x8x16x4xf32>
      %244 = vector.extract_strided_slice %186 {offsets = [6, 0, 0], sizes = [1, 1, 4], strides = [1, 1, 1]} : vector<9x1x4xf32> to vector<1x1x4xf32>
      %245 = vector.shape_cast %244 : vector<1x1x4xf32> to vector<1x4xf32>
      %246 = vector.shape_cast %245 : vector<1x4xf32> to vector<1x1x1x4xf32>
      %247 = vector.broadcast %246 : vector<1x1x1x4xf32> to vector<1x8x16x4xf32>
      %248 = arith.mulf %243, %247 : vector<1x8x16x4xf32>
      %249 = arith.addf %240, %248 : vector<1x8x16x4xf32>
      %250 = arith.addi %14, %c2_i32_83 : i32
      %c0_108 = arith.constant 0 : index
      %251 = arith.index_cast %250 : i32 to index
      %c7_109 = arith.constant 7 : index
      %c0_110 = arith.constant 0 : index
      %252 = vector.load %arg6[%c0_108, %251, %c7_109, %c0_110] : memref<1x24x24x4xf32, #tpu.memory_space<vmem>>, vector<1x8x16x4xf32>
      %253 = vector.extract_strided_slice %186 {offsets = [7, 0, 0], sizes = [1, 1, 4], strides = [1, 1, 1]} : vector<9x1x4xf32> to vector<1x1x4xf32>
      %254 = vector.shape_cast %253 : vector<1x1x4xf32> to vector<1x4xf32>
      %255 = vector.shape_cast %254 : vector<1x4xf32> to vector<1x1x1x4xf32>
      %256 = vector.broadcast %255 : vector<1x1x1x4xf32> to vector<1x8x16x4xf32>
      %257 = arith.mulf %252, %256 : vector<1x8x16x4xf32>
      %258 = arith.addf %249, %257 : vector<1x8x16x4xf32>
      %259 = arith.addi %14, %c2_i32_83 : i32
      %c0_111 = arith.constant 0 : index
      %260 = arith.index_cast %259 : i32 to index
      %c8_112 = arith.constant 8 : index
      %c0_113 = arith.constant 0 : index
      %261 = vector.load %arg6[%c0_111, %260, %c8_112, %c0_113] : memref<1x24x24x4xf32, #tpu.memory_space<vmem>>, vector<1x8x16x4xf32>
      %262 = vector.extract_strided_slice %186 {offsets = [8, 0, 0], sizes = [1, 1, 4], strides = [1, 1, 1]} : vector<9x1x4xf32> to vector<1x1x4xf32>
      %263 = vector.shape_cast %262 : vector<1x1x4xf32> to vector<1x4xf32>
      %264 = vector.shape_cast %263 : vector<1x4xf32> to vector<1x1x1x4xf32>
      %265 = vector.broadcast %264 : vector<1x1x1x4xf32> to vector<1x8x16x4xf32>
      %266 = arith.mulf %261, %265 : vector<1x8x16x4xf32>
      %267 = arith.addf %258, %266 : vector<1x8x16x4xf32>
      %c3_i32 = arith.constant 3 : i32
      %268 = arith.index_cast %c3_i32 : i32 to index
      %c0_114 = arith.constant 0 : index
      %c0_115 = arith.constant 0 : index
      %c0_116 = arith.constant 0 : index
      %269 = vector.load %arg2[%268, %c0_114, %c0_115, %c0_116] : memref<9x9x1x4xf32, #tpu.memory_space<vmem>>, vector<1x9x1x4xf32>
      %270 = vector.shape_cast %269 : vector<1x9x1x4xf32> to vector<9x1x4xf32>
      %271 = arith.addi %14, %c3_i32 : i32
      %c0_117 = arith.constant 0 : index
      %272 = arith.index_cast %271 : i32 to index
      %c0_118 = arith.constant 0 : index
      %c0_119 = arith.constant 0 : index
      %273 = vector.load %arg6[%c0_117, %272, %c0_118, %c0_119] : memref<1x24x24x4xf32, #tpu.memory_space<vmem>>, vector<1x8x16x4xf32>
      %274 = vector.extract_strided_slice %270 {offsets = [0, 0, 0], sizes = [1, 1, 4], strides = [1, 1, 1]} : vector<9x1x4xf32> to vector<1x1x4xf32>
      %275 = vector.shape_cast %274 : vector<1x1x4xf32> to vector<1x4xf32>
      %276 = vector.shape_cast %275 : vector<1x4xf32> to vector<1x1x1x4xf32>
      %277 = vector.broadcast %276 : vector<1x1x1x4xf32> to vector<1x8x16x4xf32>
      %278 = arith.mulf %273, %277 : vector<1x8x16x4xf32>
      %279 = arith.addf %267, %278 : vector<1x8x16x4xf32>
      %280 = arith.addi %14, %c3_i32 : i32
      %c0_120 = arith.constant 0 : index
      %281 = arith.index_cast %280 : i32 to index
      %c1_121 = arith.constant 1 : index
      %c0_122 = arith.constant 0 : index
      %282 = vector.load %arg6[%c0_120, %281, %c1_121, %c0_122] : memref<1x24x24x4xf32, #tpu.memory_space<vmem>>, vector<1x8x16x4xf32>
      %283 = vector.extract_strided_slice %270 {offsets = [1, 0, 0], sizes = [1, 1, 4], strides = [1, 1, 1]} : vector<9x1x4xf32> to vector<1x1x4xf32>
      %284 = vector.shape_cast %283 : vector<1x1x4xf32> to vector<1x4xf32>
      %285 = vector.shape_cast %284 : vector<1x4xf32> to vector<1x1x1x4xf32>
      %286 = vector.broadcast %285 : vector<1x1x1x4xf32> to vector<1x8x16x4xf32>
      %287 = arith.mulf %282, %286 : vector<1x8x16x4xf32>
      %288 = arith.addf %279, %287 : vector<1x8x16x4xf32>
      %289 = arith.addi %14, %c3_i32 : i32
      %c0_123 = arith.constant 0 : index
      %290 = arith.index_cast %289 : i32 to index
      %c2_124 = arith.constant 2 : index
      %c0_125 = arith.constant 0 : index
      %291 = vector.load %arg6[%c0_123, %290, %c2_124, %c0_125] : memref<1x24x24x4xf32, #tpu.memory_space<vmem>>, vector<1x8x16x4xf32>
      %292 = vector.extract_strided_slice %270 {offsets = [2, 0, 0], sizes = [1, 1, 4], strides = [1, 1, 1]} : vector<9x1x4xf32> to vector<1x1x4xf32>
      %293 = vector.shape_cast %292 : vector<1x1x4xf32> to vector<1x4xf32>
      %294 = vector.shape_cast %293 : vector<1x4xf32> to vector<1x1x1x4xf32>
      %295 = vector.broadcast %294 : vector<1x1x1x4xf32> to vector<1x8x16x4xf32>
      %296 = arith.mulf %291, %295 : vector<1x8x16x4xf32>
      %297 = arith.addf %288, %296 : vector<1x8x16x4xf32>
      %298 = arith.addi %14, %c3_i32 : i32
      %c0_126 = arith.constant 0 : index
      %299 = arith.index_cast %298 : i32 to index
      %c3_127 = arith.constant 3 : index
      %c0_128 = arith.constant 0 : index
      %300 = vector.load %arg6[%c0_126, %299, %c3_127, %c0_128] : memref<1x24x24x4xf32, #tpu.memory_space<vmem>>, vector<1x8x16x4xf32>
      %301 = vector.extract_strided_slice %270 {offsets = [3, 0, 0], sizes = [1, 1, 4], strides = [1, 1, 1]} : vector<9x1x4xf32> to vector<1x1x4xf32>
      %302 = vector.shape_cast %301 : vector<1x1x4xf32> to vector<1x4xf32>
      %303 = vector.shape_cast %302 : vector<1x4xf32> to vector<1x1x1x4xf32>
      %304 = vector.broadcast %303 : vector<1x1x1x4xf32> to vector<1x8x16x4xf32>
      %305 = arith.mulf %300, %304 : vector<1x8x16x4xf32>
      %306 = arith.addf %297, %305 : vector<1x8x16x4xf32>
      %307 = arith.addi %14, %c3_i32 : i32
      %c0_129 = arith.constant 0 : index
      %308 = arith.index_cast %307 : i32 to index
      %c4_130 = arith.constant 4 : index
      %c0_131 = arith.constant 0 : index
      %309 = vector.load %arg6[%c0_129, %308, %c4_130, %c0_131] : memref<1x24x24x4xf32, #tpu.memory_space<vmem>>, vector<1x8x16x4xf32>
      %310 = vector.extract_strided_slice %270 {offsets = [4, 0, 0], sizes = [1, 1, 4], strides = [1, 1, 1]} : vector<9x1x4xf32> to vector<1x1x4xf32>
      %311 = vector.shape_cast %310 : vector<1x1x4xf32> to vector<1x4xf32>
      %312 = vector.shape_cast %311 : vector<1x4xf32> to vector<1x1x1x4xf32>
      %313 = vector.broadcast %312 : vector<1x1x1x4xf32> to vector<1x8x16x4xf32>
      %314 = arith.mulf %309, %313 : vector<1x8x16x4xf32>
      %315 = arith.addf %306, %314 : vector<1x8x16x4xf32>
      %316 = arith.addi %14, %c3_i32 : i32
      %c0_132 = arith.constant 0 : index
      %317 = arith.index_cast %316 : i32 to index
      %c5_133 = arith.constant 5 : index
      %c0_134 = arith.constant 0 : index
      %318 = vector.load %arg6[%c0_132, %317, %c5_133, %c0_134] : memref<1x24x24x4xf32, #tpu.memory_space<vmem>>, vector<1x8x16x4xf32>
      %319 = vector.extract_strided_slice %270 {offsets = [5, 0, 0], sizes = [1, 1, 4], strides = [1, 1, 1]} : vector<9x1x4xf32> to vector<1x1x4xf32>
      %320 = vector.shape_cast %319 : vector<1x1x4xf32> to vector<1x4xf32>
      %321 = vector.shape_cast %320 : vector<1x4xf32> to vector<1x1x1x4xf32>
      %322 = vector.broadcast %321 : vector<1x1x1x4xf32> to vector<1x8x16x4xf32>
      %323 = arith.mulf %318, %322 : vector<1x8x16x4xf32>
      %324 = arith.addf %315, %323 : vector<1x8x16x4xf32>
      %325 = arith.addi %14, %c3_i32 : i32
      %c0_135 = arith.constant 0 : index
      %326 = arith.index_cast %325 : i32 to index
      %c6_136 = arith.constant 6 : index
      %c0_137 = arith.constant 0 : index
      %327 = vector.load %arg6[%c0_135, %326, %c6_136, %c0_137] : memref<1x24x24x4xf32, #tpu.memory_space<vmem>>, vector<1x8x16x4xf32>
      %328 = vector.extract_strided_slice %270 {offsets = [6, 0, 0], sizes = [1, 1, 4], strides = [1, 1, 1]} : vector<9x1x4xf32> to vector<1x1x4xf32>
      %329 = vector.shape_cast %328 : vector<1x1x4xf32> to vector<1x4xf32>
      %330 = vector.shape_cast %329 : vector<1x4xf32> to vector<1x1x1x4xf32>
      %331 = vector.broadcast %330 : vector<1x1x1x4xf32> to vector<1x8x16x4xf32>
      %332 = arith.mulf %327, %331 : vector<1x8x16x4xf32>
      %333 = arith.addf %324, %332 : vector<1x8x16x4xf32>
      %334 = arith.addi %14, %c3_i32 : i32
      %c0_138 = arith.constant 0 : index
      %335 = arith.index_cast %334 : i32 to index
      %c7_139 = arith.constant 7 : index
      %c0_140 = arith.constant 0 : index
      %336 = vector.load %arg6[%c0_138, %335, %c7_139, %c0_140] : memref<1x24x24x4xf32, #tpu.memory_space<vmem>>, vector<1x8x16x4xf32>
      %337 = vector.extract_strided_slice %270 {offsets = [7, 0, 0], sizes = [1, 1, 4], strides = [1, 1, 1]} : vector<9x1x4xf32> to vector<1x1x4xf32>
      %338 = vector.shape_cast %337 : vector<1x1x4xf32> to vector<1x4xf32>
      %339 = vector.shape_cast %338 : vector<1x4xf32> to vector<1x1x1x4xf32>
      %340 = vector.broadcast %339 : vector<1x1x1x4xf32> to vector<1x8x16x4xf32>
      %341 = arith.mulf %336, %340 : vector<1x8x16x4xf32>
      %342 = arith.addf %333, %341 : vector<1x8x16x4xf32>
      %343 = arith.addi %14, %c3_i32 : i32
      %c0_141 = arith.constant 0 : index
      %344 = arith.index_cast %343 : i32 to index
      %c8_142 = arith.constant 8 : index
      %c0_143 = arith.constant 0 : index
      %345 = vector.load %arg6[%c0_141, %344, %c8_142, %c0_143] : memref<1x24x24x4xf32, #tpu.memory_space<vmem>>, vector<1x8x16x4xf32>
      %346 = vector.extract_strided_slice %270 {offsets = [8, 0, 0], sizes = [1, 1, 4], strides = [1, 1, 1]} : vector<9x1x4xf32> to vector<1x1x4xf32>
      %347 = vector.shape_cast %346 : vector<1x1x4xf32> to vector<1x4xf32>
      %348 = vector.shape_cast %347 : vector<1x4xf32> to vector<1x1x1x4xf32>
      %349 = vector.broadcast %348 : vector<1x1x1x4xf32> to vector<1x8x16x4xf32>
      %350 = arith.mulf %345, %349 : vector<1x8x16x4xf32>
      %351 = arith.addf %342, %350 : vector<1x8x16x4xf32>
      %c4_i32 = arith.constant 4 : i32
      %352 = arith.index_cast %c4_i32 : i32 to index
      %c0_144 = arith.constant 0 : index
      %c0_145 = arith.constant 0 : index
      %c0_146 = arith.constant 0 : index
      %353 = vector.load %arg2[%352, %c0_144, %c0_145, %c0_146] : memref<9x9x1x4xf32, #tpu.memory_space<vmem>>, vector<1x9x1x4xf32>
      %354 = vector.shape_cast %353 : vector<1x9x1x4xf32> to vector<9x1x4xf32>
      %355 = arith.addi %14, %c4_i32 : i32
      %c0_147 = arith.constant 0 : index
      %356 = arith.index_cast %355 : i32 to index
      %c0_148 = arith.constant 0 : index
      %c0_149 = arith.constant 0 : index
      %357 = vector.load %arg6[%c0_147, %356, %c0_148, %c0_149] : memref<1x24x24x4xf32, #tpu.memory_space<vmem>>, vector<1x8x16x4xf32>
      %358 = vector.extract_strided_slice %354 {offsets = [0, 0, 0], sizes = [1, 1, 4], strides = [1, 1, 1]} : vector<9x1x4xf32> to vector<1x1x4xf32>
      %359 = vector.shape_cast %358 : vector<1x1x4xf32> to vector<1x4xf32>
      %360 = vector.shape_cast %359 : vector<1x4xf32> to vector<1x1x1x4xf32>
      %361 = vector.broadcast %360 : vector<1x1x1x4xf32> to vector<1x8x16x4xf32>
      %362 = arith.mulf %357, %361 : vector<1x8x16x4xf32>
      %363 = arith.addf %351, %362 : vector<1x8x16x4xf32>
      %364 = arith.addi %14, %c4_i32 : i32
      %c0_150 = arith.constant 0 : index
      %365 = arith.index_cast %364 : i32 to index
      %c1_151 = arith.constant 1 : index
      %c0_152 = arith.constant 0 : index
      %366 = vector.load %arg6[%c0_150, %365, %c1_151, %c0_152] : memref<1x24x24x4xf32, #tpu.memory_space<vmem>>, vector<1x8x16x4xf32>
      %367 = vector.extract_strided_slice %354 {offsets = [1, 0, 0], sizes = [1, 1, 4], strides = [1, 1, 1]} : vector<9x1x4xf32> to vector<1x1x4xf32>
      %368 = vector.shape_cast %367 : vector<1x1x4xf32> to vector<1x4xf32>
      %369 = vector.shape_cast %368 : vector<1x4xf32> to vector<1x1x1x4xf32>
      %370 = vector.broadcast %369 : vector<1x1x1x4xf32> to vector<1x8x16x4xf32>
      %371 = arith.mulf %366, %370 : vector<1x8x16x4xf32>
      %372 = arith.addf %363, %371 : vector<1x8x16x4xf32>
      %373 = arith.addi %14, %c4_i32 : i32
      %c0_153 = arith.constant 0 : index
      %374 = arith.index_cast %373 : i32 to index
      %c2_154 = arith.constant 2 : index
      %c0_155 = arith.constant 0 : index
      %375 = vector.load %arg6[%c0_153, %374, %c2_154, %c0_155] : memref<1x24x24x4xf32, #tpu.memory_space<vmem>>, vector<1x8x16x4xf32>
      %376 = vector.extract_strided_slice %354 {offsets = [2, 0, 0], sizes = [1, 1, 4], strides = [1, 1, 1]} : vector<9x1x4xf32> to vector<1x1x4xf32>
      %377 = vector.shape_cast %376 : vector<1x1x4xf32> to vector<1x4xf32>
      %378 = vector.shape_cast %377 : vector<1x4xf32> to vector<1x1x1x4xf32>
      %379 = vector.broadcast %378 : vector<1x1x1x4xf32> to vector<1x8x16x4xf32>
      %380 = arith.mulf %375, %379 : vector<1x8x16x4xf32>
      %381 = arith.addf %372, %380 : vector<1x8x16x4xf32>
      %382 = arith.addi %14, %c4_i32 : i32
      %c0_156 = arith.constant 0 : index
      %383 = arith.index_cast %382 : i32 to index
      %c3_157 = arith.constant 3 : index
      %c0_158 = arith.constant 0 : index
      %384 = vector.load %arg6[%c0_156, %383, %c3_157, %c0_158] : memref<1x24x24x4xf32, #tpu.memory_space<vmem>>, vector<1x8x16x4xf32>
      %385 = vector.extract_strided_slice %354 {offsets = [3, 0, 0], sizes = [1, 1, 4], strides = [1, 1, 1]} : vector<9x1x4xf32> to vector<1x1x4xf32>
      %386 = vector.shape_cast %385 : vector<1x1x4xf32> to vector<1x4xf32>
      %387 = vector.shape_cast %386 : vector<1x4xf32> to vector<1x1x1x4xf32>
      %388 = vector.broadcast %387 : vector<1x1x1x4xf32> to vector<1x8x16x4xf32>
      %389 = arith.mulf %384, %388 : vector<1x8x16x4xf32>
      %390 = arith.addf %381, %389 : vector<1x8x16x4xf32>
      %391 = arith.addi %14, %c4_i32 : i32
      %c0_159 = arith.constant 0 : index
      %392 = arith.index_cast %391 : i32 to index
      %c4_160 = arith.constant 4 : index
      %c0_161 = arith.constant 0 : index
      %393 = vector.load %arg6[%c0_159, %392, %c4_160, %c0_161] : memref<1x24x24x4xf32, #tpu.memory_space<vmem>>, vector<1x8x16x4xf32>
      %394 = vector.extract_strided_slice %354 {offsets = [4, 0, 0], sizes = [1, 1, 4], strides = [1, 1, 1]} : vector<9x1x4xf32> to vector<1x1x4xf32>
      %395 = vector.shape_cast %394 : vector<1x1x4xf32> to vector<1x4xf32>
      %396 = vector.shape_cast %395 : vector<1x4xf32> to vector<1x1x1x4xf32>
      %397 = vector.broadcast %396 : vector<1x1x1x4xf32> to vector<1x8x16x4xf32>
      %398 = arith.mulf %393, %397 : vector<1x8x16x4xf32>
      %399 = arith.addf %390, %398 : vector<1x8x16x4xf32>
      %400 = arith.addi %14, %c4_i32 : i32
      %c0_162 = arith.constant 0 : index
      %401 = arith.index_cast %400 : i32 to index
      %c5_163 = arith.constant 5 : index
      %c0_164 = arith.constant 0 : index
      %402 = vector.load %arg6[%c0_162, %401, %c5_163, %c0_164] : memref<1x24x24x4xf32, #tpu.memory_space<vmem>>, vector<1x8x16x4xf32>
      %403 = vector.extract_strided_slice %354 {offsets = [5, 0, 0], sizes = [1, 1, 4], strides = [1, 1, 1]} : vector<9x1x4xf32> to vector<1x1x4xf32>
      %404 = vector.shape_cast %403 : vector<1x1x4xf32> to vector<1x4xf32>
      %405 = vector.shape_cast %404 : vector<1x4xf32> to vector<1x1x1x4xf32>
      %406 = vector.broadcast %405 : vector<1x1x1x4xf32> to vector<1x8x16x4xf32>
      %407 = arith.mulf %402, %406 : vector<1x8x16x4xf32>
      %408 = arith.addf %399, %407 : vector<1x8x16x4xf32>
      %409 = arith.addi %14, %c4_i32 : i32
      %c0_165 = arith.constant 0 : index
      %410 = arith.index_cast %409 : i32 to index
      %c6_166 = arith.constant 6 : index
      %c0_167 = arith.constant 0 : index
      %411 = vector.load %arg6[%c0_165, %410, %c6_166, %c0_167] : memref<1x24x24x4xf32, #tpu.memory_space<vmem>>, vector<1x8x16x4xf32>
      %412 = vector.extract_strided_slice %354 {offsets = [6, 0, 0], sizes = [1, 1, 4], strides = [1, 1, 1]} : vector<9x1x4xf32> to vector<1x1x4xf32>
      %413 = vector.shape_cast %412 : vector<1x1x4xf32> to vector<1x4xf32>
      %414 = vector.shape_cast %413 : vector<1x4xf32> to vector<1x1x1x4xf32>
      %415 = vector.broadcast %414 : vector<1x1x1x4xf32> to vector<1x8x16x4xf32>
      %416 = arith.mulf %411, %415 : vector<1x8x16x4xf32>
      %417 = arith.addf %408, %416 : vector<1x8x16x4xf32>
      %418 = arith.addi %14, %c4_i32 : i32
      %c0_168 = arith.constant 0 : index
      %419 = arith.index_cast %418 : i32 to index
      %c7_169 = arith.constant 7 : index
      %c0_170 = arith.constant 0 : index
      %420 = vector.load %arg6[%c0_168, %419, %c7_169, %c0_170] : memref<1x24x24x4xf32, #tpu.memory_space<vmem>>, vector<1x8x16x4xf32>
      %421 = vector.extract_strided_slice %354 {offsets = [7, 0, 0], sizes = [1, 1, 4], strides = [1, 1, 1]} : vector<9x1x4xf32> to vector<1x1x4xf32>
      %422 = vector.shape_cast %421 : vector<1x1x4xf32> to vector<1x4xf32>
      %423 = vector.shape_cast %422 : vector<1x4xf32> to vector<1x1x1x4xf32>
      %424 = vector.broadcast %423 : vector<1x1x1x4xf32> to vector<1x8x16x4xf32>
      %425 = arith.mulf %420, %424 : vector<1x8x16x4xf32>
      %426 = arith.addf %417, %425 : vector<1x8x16x4xf32>
      %427 = arith.addi %14, %c4_i32 : i32
      %c0_171 = arith.constant 0 : index
      %428 = arith.index_cast %427 : i32 to index
      %c8_172 = arith.constant 8 : index
      %c0_173 = arith.constant 0 : index
      %429 = vector.load %arg6[%c0_171, %428, %c8_172, %c0_173] : memref<1x24x24x4xf32, #tpu.memory_space<vmem>>, vector<1x8x16x4xf32>
      %430 = vector.extract_strided_slice %354 {offsets = [8, 0, 0], sizes = [1, 1, 4], strides = [1, 1, 1]} : vector<9x1x4xf32> to vector<1x1x4xf32>
      %431 = vector.shape_cast %430 : vector<1x1x4xf32> to vector<1x4xf32>
      %432 = vector.shape_cast %431 : vector<1x4xf32> to vector<1x1x1x4xf32>
      %433 = vector.broadcast %432 : vector<1x1x1x4xf32> to vector<1x8x16x4xf32>
      %434 = arith.mulf %429, %433 : vector<1x8x16x4xf32>
      %435 = arith.addf %426, %434 : vector<1x8x16x4xf32>
      %c5_i32 = arith.constant 5 : i32
      %436 = arith.index_cast %c5_i32 : i32 to index
      %c0_174 = arith.constant 0 : index
      %c0_175 = arith.constant 0 : index
      %c0_176 = arith.constant 0 : index
      %437 = vector.load %arg2[%436, %c0_174, %c0_175, %c0_176] : memref<9x9x1x4xf32, #tpu.memory_space<vmem>>, vector<1x9x1x4xf32>
      %438 = vector.shape_cast %437 : vector<1x9x1x4xf32> to vector<9x1x4xf32>
      %439 = arith.addi %14, %c5_i32 : i32
      %c0_177 = arith.constant 0 : index
      %440 = arith.index_cast %439 : i32 to index
      %c0_178 = arith.constant 0 : index
      %c0_179 = arith.constant 0 : index
      %441 = vector.load %arg6[%c0_177, %440, %c0_178, %c0_179] : memref<1x24x24x4xf32, #tpu.memory_space<vmem>>, vector<1x8x16x4xf32>
      %442 = vector.extract_strided_slice %438 {offsets = [0, 0, 0], sizes = [1, 1, 4], strides = [1, 1, 1]} : vector<9x1x4xf32> to vector<1x1x4xf32>
      %443 = vector.shape_cast %442 : vector<1x1x4xf32> to vector<1x4xf32>
      %444 = vector.shape_cast %443 : vector<1x4xf32> to vector<1x1x1x4xf32>
      %445 = vector.broadcast %444 : vector<1x1x1x4xf32> to vector<1x8x16x4xf32>
      %446 = arith.mulf %441, %445 : vector<1x8x16x4xf32>
      %447 = arith.addf %435, %446 : vector<1x8x16x4xf32>
      %448 = arith.addi %14, %c5_i32 : i32
      %c0_180 = arith.constant 0 : index
      %449 = arith.index_cast %448 : i32 to index
      %c1_181 = arith.constant 1 : index
      %c0_182 = arith.constant 0 : index
      %450 = vector.load %arg6[%c0_180, %449, %c1_181, %c0_182] : memref<1x24x24x4xf32, #tpu.memory_space<vmem>>, vector<1x8x16x4xf32>
      %451 = vector.extract_strided_slice %438 {offsets = [1, 0, 0], sizes = [1, 1, 4], strides = [1, 1, 1]} : vector<9x1x4xf32> to vector<1x1x4xf32>
      %452 = vector.shape_cast %451 : vector<1x1x4xf32> to vector<1x4xf32>
      %453 = vector.shape_cast %452 : vector<1x4xf32> to vector<1x1x1x4xf32>
      %454 = vector.broadcast %453 : vector<1x1x1x4xf32> to vector<1x8x16x4xf32>
      %455 = arith.mulf %450, %454 : vector<1x8x16x4xf32>
      %456 = arith.addf %447, %455 : vector<1x8x16x4xf32>
      %457 = arith.addi %14, %c5_i32 : i32
      %c0_183 = arith.constant 0 : index
      %458 = arith.index_cast %457 : i32 to index
      %c2_184 = arith.constant 2 : index
      %c0_185 = arith.constant 0 : index
      %459 = vector.load %arg6[%c0_183, %458, %c2_184, %c0_185] : memref<1x24x24x4xf32, #tpu.memory_space<vmem>>, vector<1x8x16x4xf32>
      %460 = vector.extract_strided_slice %438 {offsets = [2, 0, 0], sizes = [1, 1, 4], strides = [1, 1, 1]} : vector<9x1x4xf32> to vector<1x1x4xf32>
      %461 = vector.shape_cast %460 : vector<1x1x4xf32> to vector<1x4xf32>
      %462 = vector.shape_cast %461 : vector<1x4xf32> to vector<1x1x1x4xf32>
      %463 = vector.broadcast %462 : vector<1x1x1x4xf32> to vector<1x8x16x4xf32>
      %464 = arith.mulf %459, %463 : vector<1x8x16x4xf32>
      %465 = arith.addf %456, %464 : vector<1x8x16x4xf32>
      %466 = arith.addi %14, %c5_i32 : i32
      %c0_186 = arith.constant 0 : index
      %467 = arith.index_cast %466 : i32 to index
      %c3_187 = arith.constant 3 : index
      %c0_188 = arith.constant 0 : index
      %468 = vector.load %arg6[%c0_186, %467, %c3_187, %c0_188] : memref<1x24x24x4xf32, #tpu.memory_space<vmem>>, vector<1x8x16x4xf32>
      %469 = vector.extract_strided_slice %438 {offsets = [3, 0, 0], sizes = [1, 1, 4], strides = [1, 1, 1]} : vector<9x1x4xf32> to vector<1x1x4xf32>
      %470 = vector.shape_cast %469 : vector<1x1x4xf32> to vector<1x4xf32>
      %471 = vector.shape_cast %470 : vector<1x4xf32> to vector<1x1x1x4xf32>
      %472 = vector.broadcast %471 : vector<1x1x1x4xf32> to vector<1x8x16x4xf32>
      %473 = arith.mulf %468, %472 : vector<1x8x16x4xf32>
      %474 = arith.addf %465, %473 : vector<1x8x16x4xf32>
      %475 = arith.addi %14, %c5_i32 : i32
      %c0_189 = arith.constant 0 : index
      %476 = arith.index_cast %475 : i32 to index
      %c4_190 = arith.constant 4 : index
      %c0_191 = arith.constant 0 : index
      %477 = vector.load %arg6[%c0_189, %476, %c4_190, %c0_191] : memref<1x24x24x4xf32, #tpu.memory_space<vmem>>, vector<1x8x16x4xf32>
      %478 = vector.extract_strided_slice %438 {offsets = [4, 0, 0], sizes = [1, 1, 4], strides = [1, 1, 1]} : vector<9x1x4xf32> to vector<1x1x4xf32>
      %479 = vector.shape_cast %478 : vector<1x1x4xf32> to vector<1x4xf32>
      %480 = vector.shape_cast %479 : vector<1x4xf32> to vector<1x1x1x4xf32>
      %481 = vector.broadcast %480 : vector<1x1x1x4xf32> to vector<1x8x16x4xf32>
      %482 = arith.mulf %477, %481 : vector<1x8x16x4xf32>
      %483 = arith.addf %474, %482 : vector<1x8x16x4xf32>
      %484 = arith.addi %14, %c5_i32 : i32
      %c0_192 = arith.constant 0 : index
      %485 = arith.index_cast %484 : i32 to index
      %c5_193 = arith.constant 5 : index
      %c0_194 = arith.constant 0 : index
      %486 = vector.load %arg6[%c0_192, %485, %c5_193, %c0_194] : memref<1x24x24x4xf32, #tpu.memory_space<vmem>>, vector<1x8x16x4xf32>
      %487 = vector.extract_strided_slice %438 {offsets = [5, 0, 0], sizes = [1, 1, 4], strides = [1, 1, 1]} : vector<9x1x4xf32> to vector<1x1x4xf32>
      %488 = vector.shape_cast %487 : vector<1x1x4xf32> to vector<1x4xf32>
      %489 = vector.shape_cast %488 : vector<1x4xf32> to vector<1x1x1x4xf32>
      %490 = vector.broadcast %489 : vector<1x1x1x4xf32> to vector<1x8x16x4xf32>
      %491 = arith.mulf %486, %490 : vector<1x8x16x4xf32>
      %492 = arith.addf %483, %491 : vector<1x8x16x4xf32>
      %493 = arith.addi %14, %c5_i32 : i32
      %c0_195 = arith.constant 0 : index
      %494 = arith.index_cast %493 : i32 to index
      %c6_196 = arith.constant 6 : index
      %c0_197 = arith.constant 0 : index
      %495 = vector.load %arg6[%c0_195, %494, %c6_196, %c0_197] : memref<1x24x24x4xf32, #tpu.memory_space<vmem>>, vector<1x8x16x4xf32>
      %496 = vector.extract_strided_slice %438 {offsets = [6, 0, 0], sizes = [1, 1, 4], strides = [1, 1, 1]} : vector<9x1x4xf32> to vector<1x1x4xf32>
      %497 = vector.shape_cast %496 : vector<1x1x4xf32> to vector<1x4xf32>
      %498 = vector.shape_cast %497 : vector<1x4xf32> to vector<1x1x1x4xf32>
      %499 = vector.broadcast %498 : vector<1x1x1x4xf32> to vector<1x8x16x4xf32>
      %500 = arith.mulf %495, %499 : vector<1x8x16x4xf32>
      %501 = arith.addf %492, %500 : vector<1x8x16x4xf32>
      %502 = arith.addi %14, %c5_i32 : i32
      %c0_198 = arith.constant 0 : index
      %503 = arith.index_cast %502 : i32 to index
      %c7_199 = arith.constant 7 : index
      %c0_200 = arith.constant 0 : index
      %504 = vector.load %arg6[%c0_198, %503, %c7_199, %c0_200] : memref<1x24x24x4xf32, #tpu.memory_space<vmem>>, vector<1x8x16x4xf32>
      %505 = vector.extract_strided_slice %438 {offsets = [7, 0, 0], sizes = [1, 1, 4], strides = [1, 1, 1]} : vector<9x1x4xf32> to vector<1x1x4xf32>
      %506 = vector.shape_cast %505 : vector<1x1x4xf32> to vector<1x4xf32>
      %507 = vector.shape_cast %506 : vector<1x4xf32> to vector<1x1x1x4xf32>
      %508 = vector.broadcast %507 : vector<1x1x1x4xf32> to vector<1x8x16x4xf32>
      %509 = arith.mulf %504, %508 : vector<1x8x16x4xf32>
      %510 = arith.addf %501, %509 : vector<1x8x16x4xf32>
      %511 = arith.addi %14, %c5_i32 : i32
      %c0_201 = arith.constant 0 : index
      %512 = arith.index_cast %511 : i32 to index
      %c8_202 = arith.constant 8 : index
      %c0_203 = arith.constant 0 : index
      %513 = vector.load %arg6[%c0_201, %512, %c8_202, %c0_203] : memref<1x24x24x4xf32, #tpu.memory_space<vmem>>, vector<1x8x16x4xf32>
      %514 = vector.extract_strided_slice %438 {offsets = [8, 0, 0], sizes = [1, 1, 4], strides = [1, 1, 1]} : vector<9x1x4xf32> to vector<1x1x4xf32>
      %515 = vector.shape_cast %514 : vector<1x1x4xf32> to vector<1x4xf32>
      %516 = vector.shape_cast %515 : vector<1x4xf32> to vector<1x1x1x4xf32>
      %517 = vector.broadcast %516 : vector<1x1x1x4xf32> to vector<1x8x16x4xf32>
      %518 = arith.mulf %513, %517 : vector<1x8x16x4xf32>
      %519 = arith.addf %510, %518 : vector<1x8x16x4xf32>
      %c6_i32 = arith.constant 6 : i32
      %520 = arith.index_cast %c6_i32 : i32 to index
      %c0_204 = arith.constant 0 : index
      %c0_205 = arith.constant 0 : index
      %c0_206 = arith.constant 0 : index
      %521 = vector.load %arg2[%520, %c0_204, %c0_205, %c0_206] : memref<9x9x1x4xf32, #tpu.memory_space<vmem>>, vector<1x9x1x4xf32>
      %522 = vector.shape_cast %521 : vector<1x9x1x4xf32> to vector<9x1x4xf32>
      %523 = arith.addi %14, %c6_i32 : i32
      %c0_207 = arith.constant 0 : index
      %524 = arith.index_cast %523 : i32 to index
      %c0_208 = arith.constant 0 : index
      %c0_209 = arith.constant 0 : index
      %525 = vector.load %arg6[%c0_207, %524, %c0_208, %c0_209] : memref<1x24x24x4xf32, #tpu.memory_space<vmem>>, vector<1x8x16x4xf32>
      %526 = vector.extract_strided_slice %522 {offsets = [0, 0, 0], sizes = [1, 1, 4], strides = [1, 1, 1]} : vector<9x1x4xf32> to vector<1x1x4xf32>
      %527 = vector.shape_cast %526 : vector<1x1x4xf32> to vector<1x4xf32>
      %528 = vector.shape_cast %527 : vector<1x4xf32> to vector<1x1x1x4xf32>
      %529 = vector.broadcast %528 : vector<1x1x1x4xf32> to vector<1x8x16x4xf32>
      %530 = arith.mulf %525, %529 : vector<1x8x16x4xf32>
      %531 = arith.addf %519, %530 : vector<1x8x16x4xf32>
      %532 = arith.addi %14, %c6_i32 : i32
      %c0_210 = arith.constant 0 : index
      %533 = arith.index_cast %532 : i32 to index
      %c1_211 = arith.constant 1 : index
      %c0_212 = arith.constant 0 : index
      %534 = vector.load %arg6[%c0_210, %533, %c1_211, %c0_212] : memref<1x24x24x4xf32, #tpu.memory_space<vmem>>, vector<1x8x16x4xf32>
      %535 = vector.extract_strided_slice %522 {offsets = [1, 0, 0], sizes = [1, 1, 4], strides = [1, 1, 1]} : vector<9x1x4xf32> to vector<1x1x4xf32>
      %536 = vector.shape_cast %535 : vector<1x1x4xf32> to vector<1x4xf32>
      %537 = vector.shape_cast %536 : vector<1x4xf32> to vector<1x1x1x4xf32>
      %538 = vector.broadcast %537 : vector<1x1x1x4xf32> to vector<1x8x16x4xf32>
      %539 = arith.mulf %534, %538 : vector<1x8x16x4xf32>
      %540 = arith.addf %531, %539 : vector<1x8x16x4xf32>
      %541 = arith.addi %14, %c6_i32 : i32
      %c0_213 = arith.constant 0 : index
      %542 = arith.index_cast %541 : i32 to index
      %c2_214 = arith.constant 2 : index
      %c0_215 = arith.constant 0 : index
      %543 = vector.load %arg6[%c0_213, %542, %c2_214, %c0_215] : memref<1x24x24x4xf32, #tpu.memory_space<vmem>>, vector<1x8x16x4xf32>
      %544 = vector.extract_strided_slice %522 {offsets = [2, 0, 0], sizes = [1, 1, 4], strides = [1, 1, 1]} : vector<9x1x4xf32> to vector<1x1x4xf32>
      %545 = vector.shape_cast %544 : vector<1x1x4xf32> to vector<1x4xf32>
      %546 = vector.shape_cast %545 : vector<1x4xf32> to vector<1x1x1x4xf32>
      %547 = vector.broadcast %546 : vector<1x1x1x4xf32> to vector<1x8x16x4xf32>
      %548 = arith.mulf %543, %547 : vector<1x8x16x4xf32>
      %549 = arith.addf %540, %548 : vector<1x8x16x4xf32>
      %550 = arith.addi %14, %c6_i32 : i32
      %c0_216 = arith.constant 0 : index
      %551 = arith.index_cast %550 : i32 to index
      %c3_217 = arith.constant 3 : index
      %c0_218 = arith.constant 0 : index
      %552 = vector.load %arg6[%c0_216, %551, %c3_217, %c0_218] : memref<1x24x24x4xf32, #tpu.memory_space<vmem>>, vector<1x8x16x4xf32>
      %553 = vector.extract_strided_slice %522 {offsets = [3, 0, 0], sizes = [1, 1, 4], strides = [1, 1, 1]} : vector<9x1x4xf32> to vector<1x1x4xf32>
      %554 = vector.shape_cast %553 : vector<1x1x4xf32> to vector<1x4xf32>
      %555 = vector.shape_cast %554 : vector<1x4xf32> to vector<1x1x1x4xf32>
      %556 = vector.broadcast %555 : vector<1x1x1x4xf32> to vector<1x8x16x4xf32>
      %557 = arith.mulf %552, %556 : vector<1x8x16x4xf32>
      %558 = arith.addf %549, %557 : vector<1x8x16x4xf32>
      %559 = arith.addi %14, %c6_i32 : i32
      %c0_219 = arith.constant 0 : index
      %560 = arith.index_cast %559 : i32 to index
      %c4_220 = arith.constant 4 : index
      %c0_221 = arith.constant 0 : index
      %561 = vector.load %arg6[%c0_219, %560, %c4_220, %c0_221] : memref<1x24x24x4xf32, #tpu.memory_space<vmem>>, vector<1x8x16x4xf32>
      %562 = vector.extract_strided_slice %522 {offsets = [4, 0, 0], sizes = [1, 1, 4], strides = [1, 1, 1]} : vector<9x1x4xf32> to vector<1x1x4xf32>
      %563 = vector.shape_cast %562 : vector<1x1x4xf32> to vector<1x4xf32>
      %564 = vector.shape_cast %563 : vector<1x4xf32> to vector<1x1x1x4xf32>
      %565 = vector.broadcast %564 : vector<1x1x1x4xf32> to vector<1x8x16x4xf32>
      %566 = arith.mulf %561, %565 : vector<1x8x16x4xf32>
      %567 = arith.addf %558, %566 : vector<1x8x16x4xf32>
      %568 = arith.addi %14, %c6_i32 : i32
      %c0_222 = arith.constant 0 : index
      %569 = arith.index_cast %568 : i32 to index
      %c5_223 = arith.constant 5 : index
      %c0_224 = arith.constant 0 : index
      %570 = vector.load %arg6[%c0_222, %569, %c5_223, %c0_224] : memref<1x24x24x4xf32, #tpu.memory_space<vmem>>, vector<1x8x16x4xf32>
      %571 = vector.extract_strided_slice %522 {offsets = [5, 0, 0], sizes = [1, 1, 4], strides = [1, 1, 1]} : vector<9x1x4xf32> to vector<1x1x4xf32>
      %572 = vector.shape_cast %571 : vector<1x1x4xf32> to vector<1x4xf32>
      %573 = vector.shape_cast %572 : vector<1x4xf32> to vector<1x1x1x4xf32>
      %574 = vector.broadcast %573 : vector<1x1x1x4xf32> to vector<1x8x16x4xf32>
      %575 = arith.mulf %570, %574 : vector<1x8x16x4xf32>
      %576 = arith.addf %567, %575 : vector<1x8x16x4xf32>
      %577 = arith.addi %14, %c6_i32 : i32
      %c0_225 = arith.constant 0 : index
      %578 = arith.index_cast %577 : i32 to index
      %c6_226 = arith.constant 6 : index
      %c0_227 = arith.constant 0 : index
      %579 = vector.load %arg6[%c0_225, %578, %c6_226, %c0_227] : memref<1x24x24x4xf32, #tpu.memory_space<vmem>>, vector<1x8x16x4xf32>
      %580 = vector.extract_strided_slice %522 {offsets = [6, 0, 0], sizes = [1, 1, 4], strides = [1, 1, 1]} : vector<9x1x4xf32> to vector<1x1x4xf32>
      %581 = vector.shape_cast %580 : vector<1x1x4xf32> to vector<1x4xf32>
      %582 = vector.shape_cast %581 : vector<1x4xf32> to vector<1x1x1x4xf32>
      %583 = vector.broadcast %582 : vector<1x1x1x4xf32> to vector<1x8x16x4xf32>
      %584 = arith.mulf %579, %583 : vector<1x8x16x4xf32>
      %585 = arith.addf %576, %584 : vector<1x8x16x4xf32>
      %586 = arith.addi %14, %c6_i32 : i32
      %c0_228 = arith.constant 0 : index
      %587 = arith.index_cast %586 : i32 to index
      %c7_229 = arith.constant 7 : index
      %c0_230 = arith.constant 0 : index
      %588 = vector.load %arg6[%c0_228, %587, %c7_229, %c0_230] : memref<1x24x24x4xf32, #tpu.memory_space<vmem>>, vector<1x8x16x4xf32>
      %589 = vector.extract_strided_slice %522 {offsets = [7, 0, 0], sizes = [1, 1, 4], strides = [1, 1, 1]} : vector<9x1x4xf32> to vector<1x1x4xf32>
      %590 = vector.shape_cast %589 : vector<1x1x4xf32> to vector<1x4xf32>
      %591 = vector.shape_cast %590 : vector<1x4xf32> to vector<1x1x1x4xf32>
      %592 = vector.broadcast %591 : vector<1x1x1x4xf32> to vector<1x8x16x4xf32>
      %593 = arith.mulf %588, %592 : vector<1x8x16x4xf32>
      %594 = arith.addf %585, %593 : vector<1x8x16x4xf32>
      %595 = arith.addi %14, %c6_i32 : i32
      %c0_231 = arith.constant 0 : index
      %596 = arith.index_cast %595 : i32 to index
      %c8_232 = arith.constant 8 : index
      %c0_233 = arith.constant 0 : index
      %597 = vector.load %arg6[%c0_231, %596, %c8_232, %c0_233] : memref<1x24x24x4xf32, #tpu.memory_space<vmem>>, vector<1x8x16x4xf32>
      %598 = vector.extract_strided_slice %522 {offsets = [8, 0, 0], sizes = [1, 1, 4], strides = [1, 1, 1]} : vector<9x1x4xf32> to vector<1x1x4xf32>
      %599 = vector.shape_cast %598 : vector<1x1x4xf32> to vector<1x4xf32>
      %600 = vector.shape_cast %599 : vector<1x4xf32> to vector<1x1x1x4xf32>
      %601 = vector.broadcast %600 : vector<1x1x1x4xf32> to vector<1x8x16x4xf32>
      %602 = arith.mulf %597, %601 : vector<1x8x16x4xf32>
      %603 = arith.addf %594, %602 : vector<1x8x16x4xf32>
      %c7_i32 = arith.constant 7 : i32
      %604 = arith.index_cast %c7_i32 : i32 to index
      %c0_234 = arith.constant 0 : index
      %c0_235 = arith.constant 0 : index
      %c0_236 = arith.constant 0 : index
      %605 = vector.load %arg2[%604, %c0_234, %c0_235, %c0_236] : memref<9x9x1x4xf32, #tpu.memory_space<vmem>>, vector<1x9x1x4xf32>
      %606 = vector.shape_cast %605 : vector<1x9x1x4xf32> to vector<9x1x4xf32>
      %607 = arith.addi %14, %c7_i32 : i32
      %c0_237 = arith.constant 0 : index
      %608 = arith.index_cast %607 : i32 to index
      %c0_238 = arith.constant 0 : index
      %c0_239 = arith.constant 0 : index
      %609 = vector.load %arg6[%c0_237, %608, %c0_238, %c0_239] : memref<1x24x24x4xf32, #tpu.memory_space<vmem>>, vector<1x8x16x4xf32>
      %610 = vector.extract_strided_slice %606 {offsets = [0, 0, 0], sizes = [1, 1, 4], strides = [1, 1, 1]} : vector<9x1x4xf32> to vector<1x1x4xf32>
      %611 = vector.shape_cast %610 : vector<1x1x4xf32> to vector<1x4xf32>
      %612 = vector.shape_cast %611 : vector<1x4xf32> to vector<1x1x1x4xf32>
      %613 = vector.broadcast %612 : vector<1x1x1x4xf32> to vector<1x8x16x4xf32>
      %614 = arith.mulf %609, %613 : vector<1x8x16x4xf32>
      %615 = arith.addf %603, %614 : vector<1x8x16x4xf32>
      %616 = arith.addi %14, %c7_i32 : i32
      %c0_240 = arith.constant 0 : index
      %617 = arith.index_cast %616 : i32 to index
      %c1_241 = arith.constant 1 : index
      %c0_242 = arith.constant 0 : index
      %618 = vector.load %arg6[%c0_240, %617, %c1_241, %c0_242] : memref<1x24x24x4xf32, #tpu.memory_space<vmem>>, vector<1x8x16x4xf32>
      %619 = vector.extract_strided_slice %606 {offsets = [1, 0, 0], sizes = [1, 1, 4], strides = [1, 1, 1]} : vector<9x1x4xf32> to vector<1x1x4xf32>
      %620 = vector.shape_cast %619 : vector<1x1x4xf32> to vector<1x4xf32>
      %621 = vector.shape_cast %620 : vector<1x4xf32> to vector<1x1x1x4xf32>
      %622 = vector.broadcast %621 : vector<1x1x1x4xf32> to vector<1x8x16x4xf32>
      %623 = arith.mulf %618, %622 : vector<1x8x16x4xf32>
      %624 = arith.addf %615, %623 : vector<1x8x16x4xf32>
      %625 = arith.addi %14, %c7_i32 : i32
      %c0_243 = arith.constant 0 : index
      %626 = arith.index_cast %625 : i32 to index
      %c2_244 = arith.constant 2 : index
      %c0_245 = arith.constant 0 : index
      %627 = vector.load %arg6[%c0_243, %626, %c2_244, %c0_245] : memref<1x24x24x4xf32, #tpu.memory_space<vmem>>, vector<1x8x16x4xf32>
      %628 = vector.extract_strided_slice %606 {offsets = [2, 0, 0], sizes = [1, 1, 4], strides = [1, 1, 1]} : vector<9x1x4xf32> to vector<1x1x4xf32>
      %629 = vector.shape_cast %628 : vector<1x1x4xf32> to vector<1x4xf32>
      %630 = vector.shape_cast %629 : vector<1x4xf32> to vector<1x1x1x4xf32>
      %631 = vector.broadcast %630 : vector<1x1x1x4xf32> to vector<1x8x16x4xf32>
      %632 = arith.mulf %627, %631 : vector<1x8x16x4xf32>
      %633 = arith.addf %624, %632 : vector<1x8x16x4xf32>
      %634 = arith.addi %14, %c7_i32 : i32
      %c0_246 = arith.constant 0 : index
      %635 = arith.index_cast %634 : i32 to index
      %c3_247 = arith.constant 3 : index
      %c0_248 = arith.constant 0 : index
      %636 = vector.load %arg6[%c0_246, %635, %c3_247, %c0_248] : memref<1x24x24x4xf32, #tpu.memory_space<vmem>>, vector<1x8x16x4xf32>
      %637 = vector.extract_strided_slice %606 {offsets = [3, 0, 0], sizes = [1, 1, 4], strides = [1, 1, 1]} : vector<9x1x4xf32> to vector<1x1x4xf32>
      %638 = vector.shape_cast %637 : vector<1x1x4xf32> to vector<1x4xf32>
      %639 = vector.shape_cast %638 : vector<1x4xf32> to vector<1x1x1x4xf32>
      %640 = vector.broadcast %639 : vector<1x1x1x4xf32> to vector<1x8x16x4xf32>
      %641 = arith.mulf %636, %640 : vector<1x8x16x4xf32>
      %642 = arith.addf %633, %641 : vector<1x8x16x4xf32>
      %643 = arith.addi %14, %c7_i32 : i32
      %c0_249 = arith.constant 0 : index
      %644 = arith.index_cast %643 : i32 to index
      %c4_250 = arith.constant 4 : index
      %c0_251 = arith.constant 0 : index
      %645 = vector.load %arg6[%c0_249, %644, %c4_250, %c0_251] : memref<1x24x24x4xf32, #tpu.memory_space<vmem>>, vector<1x8x16x4xf32>
      %646 = vector.extract_strided_slice %606 {offsets = [4, 0, 0], sizes = [1, 1, 4], strides = [1, 1, 1]} : vector<9x1x4xf32> to vector<1x1x4xf32>
      %647 = vector.shape_cast %646 : vector<1x1x4xf32> to vector<1x4xf32>
      %648 = vector.shape_cast %647 : vector<1x4xf32> to vector<1x1x1x4xf32>
      %649 = vector.broadcast %648 : vector<1x1x1x4xf32> to vector<1x8x16x4xf32>
      %650 = arith.mulf %645, %649 : vector<1x8x16x4xf32>
      %651 = arith.addf %642, %650 : vector<1x8x16x4xf32>
      %652 = arith.addi %14, %c7_i32 : i32
      %c0_252 = arith.constant 0 : index
      %653 = arith.index_cast %652 : i32 to index
      %c5_253 = arith.constant 5 : index
      %c0_254 = arith.constant 0 : index
      %654 = vector.load %arg6[%c0_252, %653, %c5_253, %c0_254] : memref<1x24x24x4xf32, #tpu.memory_space<vmem>>, vector<1x8x16x4xf32>
      %655 = vector.extract_strided_slice %606 {offsets = [5, 0, 0], sizes = [1, 1, 4], strides = [1, 1, 1]} : vector<9x1x4xf32> to vector<1x1x4xf32>
      %656 = vector.shape_cast %655 : vector<1x1x4xf32> to vector<1x4xf32>
      %657 = vector.shape_cast %656 : vector<1x4xf32> to vector<1x1x1x4xf32>
      %658 = vector.broadcast %657 : vector<1x1x1x4xf32> to vector<1x8x16x4xf32>
      %659 = arith.mulf %654, %658 : vector<1x8x16x4xf32>
      %660 = arith.addf %651, %659 : vector<1x8x16x4xf32>
      %661 = arith.addi %14, %c7_i32 : i32
      %c0_255 = arith.constant 0 : index
      %662 = arith.index_cast %661 : i32 to index
      %c6_256 = arith.constant 6 : index
      %c0_257 = arith.constant 0 : index
      %663 = vector.load %arg6[%c0_255, %662, %c6_256, %c0_257] : memref<1x24x24x4xf32, #tpu.memory_space<vmem>>, vector<1x8x16x4xf32>
      %664 = vector.extract_strided_slice %606 {offsets = [6, 0, 0], sizes = [1, 1, 4], strides = [1, 1, 1]} : vector<9x1x4xf32> to vector<1x1x4xf32>
      %665 = vector.shape_cast %664 : vector<1x1x4xf32> to vector<1x4xf32>
      %666 = vector.shape_cast %665 : vector<1x4xf32> to vector<1x1x1x4xf32>
      %667 = vector.broadcast %666 : vector<1x1x1x4xf32> to vector<1x8x16x4xf32>
      %668 = arith.mulf %663, %667 : vector<1x8x16x4xf32>
      %669 = arith.addf %660, %668 : vector<1x8x16x4xf32>
      %670 = arith.addi %14, %c7_i32 : i32
      %c0_258 = arith.constant 0 : index
      %671 = arith.index_cast %670 : i32 to index
      %c7_259 = arith.constant 7 : index
      %c0_260 = arith.constant 0 : index
      %672 = vector.load %arg6[%c0_258, %671, %c7_259, %c0_260] : memref<1x24x24x4xf32, #tpu.memory_space<vmem>>, vector<1x8x16x4xf32>
      %673 = vector.extract_strided_slice %606 {offsets = [7, 0, 0], sizes = [1, 1, 4], strides = [1, 1, 1]} : vector<9x1x4xf32> to vector<1x1x4xf32>
      %674 = vector.shape_cast %673 : vector<1x1x4xf32> to vector<1x4xf32>
      %675 = vector.shape_cast %674 : vector<1x4xf32> to vector<1x1x1x4xf32>
      %676 = vector.broadcast %675 : vector<1x1x1x4xf32> to vector<1x8x16x4xf32>
      %677 = arith.mulf %672, %676 : vector<1x8x16x4xf32>
      %678 = arith.addf %669, %677 : vector<1x8x16x4xf32>
      %679 = arith.addi %14, %c7_i32 : i32
      %c0_261 = arith.constant 0 : index
      %680 = arith.index_cast %679 : i32 to index
      %c8_262 = arith.constant 8 : index
      %c0_263 = arith.constant 0 : index
      %681 = vector.load %arg6[%c0_261, %680, %c8_262, %c0_263] : memref<1x24x24x4xf32, #tpu.memory_space<vmem>>, vector<1x8x16x4xf32>
      %682 = vector.extract_strided_slice %606 {offsets = [8, 0, 0], sizes = [1, 1, 4], strides = [1, 1, 1]} : vector<9x1x4xf32> to vector<1x1x4xf32>
      %683 = vector.shape_cast %682 : vector<1x1x4xf32> to vector<1x4xf32>
      %684 = vector.shape_cast %683 : vector<1x4xf32> to vector<1x1x1x4xf32>
      %685 = vector.broadcast %684 : vector<1x1x1x4xf32> to vector<1x8x16x4xf32>
      %686 = arith.mulf %681, %685 : vector<1x8x16x4xf32>
      %687 = arith.addf %678, %686 : vector<1x8x16x4xf32>
      %c8_i32_264 = arith.constant 8 : i32
      %688 = arith.index_cast %c8_i32_264 : i32 to index
      %c0_265 = arith.constant 0 : index
      %c0_266 = arith.constant 0 : index
      %c0_267 = arith.constant 0 : index
      %689 = vector.load %arg2[%688, %c0_265, %c0_266, %c0_267] : memref<9x9x1x4xf32, #tpu.memory_space<vmem>>, vector<1x9x1x4xf32>
      %690 = vector.shape_cast %689 : vector<1x9x1x4xf32> to vector<9x1x4xf32>
      %691 = arith.addi %14, %c8_i32_264 : i32
      %c0_268 = arith.constant 0 : index
      %692 = arith.index_cast %691 : i32 to index
      %c0_269 = arith.constant 0 : index
      %c0_270 = arith.constant 0 : index
      %693 = vector.load %arg6[%c0_268, %692, %c0_269, %c0_270] : memref<1x24x24x4xf32, #tpu.memory_space<vmem>>, vector<1x8x16x4xf32>
      %694 = vector.extract_strided_slice %690 {offsets = [0, 0, 0], sizes = [1, 1, 4], strides = [1, 1, 1]} : vector<9x1x4xf32> to vector<1x1x4xf32>
      %695 = vector.shape_cast %694 : vector<1x1x4xf32> to vector<1x4xf32>
      %696 = vector.shape_cast %695 : vector<1x4xf32> to vector<1x1x1x4xf32>
      %697 = vector.broadcast %696 : vector<1x1x1x4xf32> to vector<1x8x16x4xf32>
      %698 = arith.mulf %693, %697 : vector<1x8x16x4xf32>
      %699 = arith.addf %687, %698 : vector<1x8x16x4xf32>
      %700 = arith.addi %14, %c8_i32_264 : i32
      %c0_271 = arith.constant 0 : index
      %701 = arith.index_cast %700 : i32 to index
      %c1_272 = arith.constant 1 : index
      %c0_273 = arith.constant 0 : index
      %702 = vector.load %arg6[%c0_271, %701, %c1_272, %c0_273] : memref<1x24x24x4xf32, #tpu.memory_space<vmem>>, vector<1x8x16x4xf32>
      %703 = vector.extract_strided_slice %690 {offsets = [1, 0, 0], sizes = [1, 1, 4], strides = [1, 1, 1]} : vector<9x1x4xf32> to vector<1x1x4xf32>
      %704 = vector.shape_cast %703 : vector<1x1x4xf32> to vector<1x4xf32>
      %705 = vector.shape_cast %704 : vector<1x4xf32> to vector<1x1x1x4xf32>
      %706 = vector.broadcast %705 : vector<1x1x1x4xf32> to vector<1x8x16x4xf32>
      %707 = arith.mulf %702, %706 : vector<1x8x16x4xf32>
      %708 = arith.addf %699, %707 : vector<1x8x16x4xf32>
      %709 = arith.addi %14, %c8_i32_264 : i32
      %c0_274 = arith.constant 0 : index
      %710 = arith.index_cast %709 : i32 to index
      %c2_275 = arith.constant 2 : index
      %c0_276 = arith.constant 0 : index
      %711 = vector.load %arg6[%c0_274, %710, %c2_275, %c0_276] : memref<1x24x24x4xf32, #tpu.memory_space<vmem>>, vector<1x8x16x4xf32>
      %712 = vector.extract_strided_slice %690 {offsets = [2, 0, 0], sizes = [1, 1, 4], strides = [1, 1, 1]} : vector<9x1x4xf32> to vector<1x1x4xf32>
      %713 = vector.shape_cast %712 : vector<1x1x4xf32> to vector<1x4xf32>
      %714 = vector.shape_cast %713 : vector<1x4xf32> to vector<1x1x1x4xf32>
      %715 = vector.broadcast %714 : vector<1x1x1x4xf32> to vector<1x8x16x4xf32>
      %716 = arith.mulf %711, %715 : vector<1x8x16x4xf32>
      %717 = arith.addf %708, %716 : vector<1x8x16x4xf32>
      %718 = arith.addi %14, %c8_i32_264 : i32
      %c0_277 = arith.constant 0 : index
      %719 = arith.index_cast %718 : i32 to index
      %c3_278 = arith.constant 3 : index
      %c0_279 = arith.constant 0 : index
      %720 = vector.load %arg6[%c0_277, %719, %c3_278, %c0_279] : memref<1x24x24x4xf32, #tpu.memory_space<vmem>>, vector<1x8x16x4xf32>
      %721 = vector.extract_strided_slice %690 {offsets = [3, 0, 0], sizes = [1, 1, 4], strides = [1, 1, 1]} : vector<9x1x4xf32> to vector<1x1x4xf32>
      %722 = vector.shape_cast %721 : vector<1x1x4xf32> to vector<1x4xf32>
      %723 = vector.shape_cast %722 : vector<1x4xf32> to vector<1x1x1x4xf32>
      %724 = vector.broadcast %723 : vector<1x1x1x4xf32> to vector<1x8x16x4xf32>
      %725 = arith.mulf %720, %724 : vector<1x8x16x4xf32>
      %726 = arith.addf %717, %725 : vector<1x8x16x4xf32>
      %727 = arith.addi %14, %c8_i32_264 : i32
      %c0_280 = arith.constant 0 : index
      %728 = arith.index_cast %727 : i32 to index
      %c4_281 = arith.constant 4 : index
      %c0_282 = arith.constant 0 : index
      %729 = vector.load %arg6[%c0_280, %728, %c4_281, %c0_282] : memref<1x24x24x4xf32, #tpu.memory_space<vmem>>, vector<1x8x16x4xf32>
      %730 = vector.extract_strided_slice %690 {offsets = [4, 0, 0], sizes = [1, 1, 4], strides = [1, 1, 1]} : vector<9x1x4xf32> to vector<1x1x4xf32>
      %731 = vector.shape_cast %730 : vector<1x1x4xf32> to vector<1x4xf32>
      %732 = vector.shape_cast %731 : vector<1x4xf32> to vector<1x1x1x4xf32>
      %733 = vector.broadcast %732 : vector<1x1x1x4xf32> to vector<1x8x16x4xf32>
      %734 = arith.mulf %729, %733 : vector<1x8x16x4xf32>
      %735 = arith.addf %726, %734 : vector<1x8x16x4xf32>
      %736 = arith.addi %14, %c8_i32_264 : i32
      %c0_283 = arith.constant 0 : index
      %737 = arith.index_cast %736 : i32 to index
      %c5_284 = arith.constant 5 : index
      %c0_285 = arith.constant 0 : index
      %738 = vector.load %arg6[%c0_283, %737, %c5_284, %c0_285] : memref<1x24x24x4xf32, #tpu.memory_space<vmem>>, vector<1x8x16x4xf32>
      %739 = vector.extract_strided_slice %690 {offsets = [5, 0, 0], sizes = [1, 1, 4], strides = [1, 1, 1]} : vector<9x1x4xf32> to vector<1x1x4xf32>
      %740 = vector.shape_cast %739 : vector<1x1x4xf32> to vector<1x4xf32>
      %741 = vector.shape_cast %740 : vector<1x4xf32> to vector<1x1x1x4xf32>
      %742 = vector.broadcast %741 : vector<1x1x1x4xf32> to vector<1x8x16x4xf32>
      %743 = arith.mulf %738, %742 : vector<1x8x16x4xf32>
      %744 = arith.addf %735, %743 : vector<1x8x16x4xf32>
      %745 = arith.addi %14, %c8_i32_264 : i32
      %c0_286 = arith.constant 0 : index
      %746 = arith.index_cast %745 : i32 to index
      %c6_287 = arith.constant 6 : index
      %c0_288 = arith.constant 0 : index
      %747 = vector.load %arg6[%c0_286, %746, %c6_287, %c0_288] : memref<1x24x24x4xf32, #tpu.memory_space<vmem>>, vector<1x8x16x4xf32>
      %748 = vector.extract_strided_slice %690 {offsets = [6, 0, 0], sizes = [1, 1, 4], strides = [1, 1, 1]} : vector<9x1x4xf32> to vector<1x1x4xf32>
      %749 = vector.shape_cast %748 : vector<1x1x4xf32> to vector<1x4xf32>
      %750 = vector.shape_cast %749 : vector<1x4xf32> to vector<1x1x1x4xf32>
      %751 = vector.broadcast %750 : vector<1x1x1x4xf32> to vector<1x8x16x4xf32>
      %752 = arith.mulf %747, %751 : vector<1x8x16x4xf32>
      %753 = arith.addf %744, %752 : vector<1x8x16x4xf32>
      %754 = arith.addi %14, %c8_i32_264 : i32
      %c0_289 = arith.constant 0 : index
      %755 = arith.index_cast %754 : i32 to index
      %c7_290 = arith.constant 7 : index
      %c0_291 = arith.constant 0 : index
      %756 = vector.load %arg6[%c0_289, %755, %c7_290, %c0_291] : memref<1x24x24x4xf32, #tpu.memory_space<vmem>>, vector<1x8x16x4xf32>
      %757 = vector.extract_strided_slice %690 {offsets = [7, 0, 0], sizes = [1, 1, 4], strides = [1, 1, 1]} : vector<9x1x4xf32> to vector<1x1x4xf32>
      %758 = vector.shape_cast %757 : vector<1x1x4xf32> to vector<1x4xf32>
      %759 = vector.shape_cast %758 : vector<1x4xf32> to vector<1x1x1x4xf32>
      %760 = vector.broadcast %759 : vector<1x1x1x4xf32> to vector<1x8x16x4xf32>
      %761 = arith.mulf %756, %760 : vector<1x8x16x4xf32>
      %762 = arith.addf %753, %761 : vector<1x8x16x4xf32>
      %763 = arith.addi %14, %c8_i32_264 : i32
      %c0_292 = arith.constant 0 : index
      %764 = arith.index_cast %763 : i32 to index
      %c8_293 = arith.constant 8 : index
      %c0_294 = arith.constant 0 : index
      %765 = vector.load %arg6[%c0_292, %764, %c8_293, %c0_294] : memref<1x24x24x4xf32, #tpu.memory_space<vmem>>, vector<1x8x16x4xf32>
      %766 = vector.extract_strided_slice %690 {offsets = [8, 0, 0], sizes = [1, 1, 4], strides = [1, 1, 1]} : vector<9x1x4xf32> to vector<1x1x4xf32>
      %767 = vector.shape_cast %766 : vector<1x1x4xf32> to vector<1x4xf32>
      %768 = vector.shape_cast %767 : vector<1x4xf32> to vector<1x1x1x4xf32>
      %769 = vector.broadcast %768 : vector<1x1x1x4xf32> to vector<1x8x16x4xf32>
      %770 = arith.mulf %765, %769 : vector<1x8x16x4xf32>
      %771 = arith.addf %762, %770 : vector<1x8x16x4xf32>
      %c9_i32 = arith.constant 9 : i32
      %c0_295 = arith.constant 0 : index
      %c0_296 = arith.constant 0 : index
      %c0_297 = arith.constant 0 : index
      %772 = vector.load %arg4[%c0_295, %c0_296, %c0_297] : memref<6x1x4xf32, #tpu.memory_space<vmem>>, vector<1x1x4xf32>
      %773 = vector.shape_cast %772 : vector<1x1x4xf32> to vector<1x4xf32>
      %c1_298 = arith.constant 1 : index
      %c0_299 = arith.constant 0 : index
      %c0_300 = arith.constant 0 : index
      %774 = vector.load %arg4[%c1_298, %c0_299, %c0_300] : memref<6x1x4xf32, #tpu.memory_space<vmem>>, vector<1x1x4xf32>
      %775 = vector.shape_cast %774 : vector<1x1x4xf32> to vector<1x4xf32>
      %c2_301 = arith.constant 2 : index
      %c0_302 = arith.constant 0 : index
      %c0_303 = arith.constant 0 : index
      %776 = vector.load %arg4[%c2_301, %c0_302, %c0_303] : memref<6x1x4xf32, #tpu.memory_space<vmem>>, vector<1x1x4xf32>
      %777 = vector.shape_cast %776 : vector<1x1x4xf32> to vector<1x4xf32>
      %c0_304 = arith.constant 0 : index
      %778 = arith.index_cast %14 : i32 to index
      %c0_305 = arith.constant 0 : index
      %c0_306 = arith.constant 0 : index
      %779 = vector.load %arg1[%c0_304, %778, %c0_305, %c0_306] : memref<1x16x16x4xf32, #tpu.memory_space<vmem>>, vector<1x8x16x4xf32>
      %780 = vector.shape_cast %773 : vector<1x4xf32> to vector<1x1x1x4xf32>
      %781 = vector.broadcast %780 : vector<1x1x1x4xf32> to vector<1x8x16x4xf32>
      %782 = arith.addf %771, %781 : vector<1x8x16x4xf32>
      %cst_307 = arith.constant 5.000000e-01 : f32
      %783 = vector.broadcast %cst_307 : f32 to vector<1x8x16x4xf32>
      %784 = arith.mulf %783, %782 : vector<1x8x16x4xf32>
      %cst_308 = arith.constant 0.707106769 : f32
      %785 = vector.broadcast %cst_308 : f32 to vector<1x8x16x4xf32>
      %786 = arith.mulf %782, %785 : vector<1x8x16x4xf32>
      %787 = math.erf %786 : vector<1x8x16x4xf32>
      %cst_309 = arith.constant 1.000000e+00 : f32
      %788 = vector.broadcast %cst_309 : f32 to vector<1x8x16x4xf32>
      %789 = arith.addf %788, %787 : vector<1x8x16x4xf32>
      %790 = arith.mulf %784, %789 : vector<1x8x16x4xf32>
      %791 = vector.shape_cast %775 : vector<1x4xf32> to vector<1x1x1x4xf32>
      %792 = vector.broadcast %791 : vector<1x1x1x4xf32> to vector<1x8x16x4xf32>
      %793 = arith.mulf %790, %792 : vector<1x8x16x4xf32>
      %794 = vector.shape_cast %777 : vector<1x4xf32> to vector<1x1x1x4xf32>
      %795 = vector.broadcast %794 : vector<1x1x1x4xf32> to vector<1x8x16x4xf32>
      %796 = arith.addf %793, %795 : vector<1x8x16x4xf32>
      %797 = arith.addf %796, %779 : vector<1x8x16x4xf32>
      %c0_310 = arith.constant 0 : index
      %c0_311 = arith.constant 0 : index
      %798 = vector.load %arg3[%c0_310, %c0_311] : memref<4x4xf32, #tpu.memory_space<vmem>>, vector<4x4xf32>
      %799 = vector.shape_cast %797 : vector<1x8x16x4xf32> to vector<128x4xf32>
      %cst_312 = arith.constant dense<0.000000e+00> : vector<128x4xf32>
      %800 = tpu.matmul %799, %798, %cst_312 {dimension_numbers = #tpu.dot_dimension_numbers<[1], [0], [0], [1], [0, 0, 1, 1], [], []>} : vector<128x4xf32>, vector<4x4xf32>, vector<128x4xf32> -> vector<128x4xf32>
      %c3_313 = arith.constant 3 : index
      %c0_314 = arith.constant 0 : index
      %c0_315 = arith.constant 0 : index
      %801 = vector.load %arg4[%c3_313, %c0_314, %c0_315] : memref<6x1x4xf32, #tpu.memory_space<vmem>>, vector<1x1x4xf32>
      %802 = vector.shape_cast %801 : vector<1x1x4xf32> to vector<1x4xf32>
      %c4_316 = arith.constant 4 : index
      %c0_317 = arith.constant 0 : index
      %c0_318 = arith.constant 0 : index
      %803 = vector.load %arg4[%c4_316, %c0_317, %c0_318] : memref<6x1x4xf32, #tpu.memory_space<vmem>>, vector<1x1x4xf32>
      %804 = vector.shape_cast %803 : vector<1x1x4xf32> to vector<1x4xf32>
      %c5_319 = arith.constant 5 : index
      %c0_320 = arith.constant 0 : index
      %c0_321 = arith.constant 0 : index
      %805 = vector.load %arg4[%c5_319, %c0_320, %c0_321] : memref<6x1x4xf32, #tpu.memory_space<vmem>>, vector<1x1x4xf32>
      %806 = vector.shape_cast %805 : vector<1x1x4xf32> to vector<1x4xf32>
      %807 = vector.broadcast %802 : vector<1x4xf32> to vector<128x4xf32>
      %808 = arith.addf %800, %807 : vector<128x4xf32>
      %cst_322 = arith.constant 5.000000e-01 : f32
      %809 = vector.broadcast %cst_322 : f32 to vector<128x4xf32>
      %810 = arith.mulf %809, %808 : vector<128x4xf32>
      %cst_323 = arith.constant 0.707106769 : f32
      %811 = vector.broadcast %cst_323 : f32 to vector<128x4xf32>
      %812 = arith.mulf %808, %811 : vector<128x4xf32>
      %813 = math.erf %812 : vector<128x4xf32>
      %cst_324 = arith.constant 1.000000e+00 : f32
      %814 = vector.broadcast %cst_324 : f32 to vector<128x4xf32>
      %815 = arith.addf %814, %813 : vector<128x4xf32>
      %816 = arith.mulf %810, %815 : vector<128x4xf32>
      %817 = vector.broadcast %804 : vector<1x4xf32> to vector<128x4xf32>
      %818 = arith.mulf %816, %817 : vector<128x4xf32>
      %819 = vector.broadcast %806 : vector<1x4xf32> to vector<128x4xf32>
      %820 = arith.addf %818, %819 : vector<128x4xf32>
      %821 = vector.shape_cast %820 : vector<128x4xf32> to vector<1x8x16x4xf32>
      %c0_325 = arith.constant 0 : index
      %822 = arith.index_cast %14 : i32 to index
      %c0_326 = arith.constant 0 : index
      %c0_327 = arith.constant 0 : index
      %823 = vector.load %arg5[%c0_325, %822, %c0_326, %c0_327] : memref<1x16x16x4xf32, #tpu.memory_space<vmem>>, vector<1x8x16x4xf32>
      tpu.vector_store %arg5[%c0_325, %822, %c0_326, %c0_327], %821 {strides = array<i32>} : memref<1x16x16x4xf32, #tpu.memory_space<vmem>>, vector<1x8x16x4xf32>,
    }
    %c2_i32_24 = arith.constant 2 : i32
    return
  }
  func.func @transform_0(%arg0: i32) -> (i32, i32, i32, i32) {
    %c0_i32 = arith.constant 0 : i32
    %c0_i32_0 = arith.constant 0 : i32
    %c0_i32_1 = arith.constant 0 : i32
    %c0_i32_2 = arith.constant 0 : i32
    return %arg0, %c0_i32, %c0_i32_0, %c0_i32_1 : i32, i32, i32, i32
  }
  func.func @transform_1(%arg0: i32) -> (i32, i32, i32, i32) {
    %c0_i32 = arith.constant 0 : i32
    %c0_i32_0 = arith.constant 0 : i32
    %c0_i32_1 = arith.constant 0 : i32
    %c0_i32_2 = arith.constant 0 : i32
    %c0_i32_3 = arith.constant 0 : i32
    return %c0_i32, %c0_i32_0, %c0_i32_1, %c0_i32_2 : i32, i32, i32, i32
  }
  func.func @transform_2(%arg0: i32) -> (i32, i32) {
    %c0_i32 = arith.constant 0 : i32
    %c0_i32_0 = arith.constant 0 : i32
    %c0_i32_1 = arith.constant 0 : i32
    return %c0_i32, %c0_i32_0 : i32, i32
  }
  func.func @transform_3(%arg0: i32) -> (i32, i32, i32) {
    %c0_i32 = arith.constant 0 : i32
    %c0_i32_0 = arith.constant 0 : i32
    %c0_i32_1 = arith.constant 0 : i32
    %c0_i32_2 = arith.constant 0 : i32
    return %c0_i32, %c0_i32_0, %c0_i32_1 : i32, i32, i32
  }
  func.func @transform_4(%arg0: i32) -> (i32, i32, i32, i32) {
    %c0_i32 = arith.constant 0 : i32
    %c0_i32_0 = arith.constant 0 : i32
    %c0_i32_1 = arith.constant 0 : i32
    %c0_i32_2 = arith.constant 0 : i32
    return %arg0, %c0_i32, %c0_i32_0, %c0_i32_1 : i32, i32, i32, i32
  }
}

</mosaic_0001>

<bundles_post_ra>
// kernel: tpu_custom_call.1
= control target key start
LH: loop header
LB: loop body
LE: loop exit
PB: predicated region body
PF: predicated region fallthrough
CT: control target
= control target key end

     0   :  { %s6882_s15 = smov 0   ;;  %s10534_s0 = inlined_call_operand.vmem [shape: f32[2,16,16,4], index: 0, kind: input, shape index: {}]   ;;  %s10535_s1 = inlined_call_operand.vmem [shape: f32[9,9,1,4], index: 1, kind: input, shape index: {}]   ;;  %s10536_s2 = inlined_call_operand.vmem [shape: f32[4,4], index: 2, kind: input, shape index: {}]   ;;  %s10537_s3 = inlined_call_operand.vmem [shape: f32[6,1,4], index: 3, kind: input, shape index: {}]   ;;  %s10538_s4 = inlined_call_operand.vmem [shape: f32[2,16,16,4], index: 4, kind: output, shape index: {}]  }
   0x1 LB: > { %s5380_s16 = sadd.s32 4294967295, %s6850_s15   ;;  %p5384_p0 = scmp.ge.s32.totalorder %s6850_s15, 1  ;;  %s6850_s15 = sphi %s6882_s15, %s14_s15  }
   0x2   : > { %p162_p1 = scmp.lt.s32.totalorder %s6850_s15, 3 }
   0x4   : > { %p163_p2 = pnand %p5384_p0, %p162_p1 }
   0x5   : > { %vm198_vm0 = vcmask (!%p163_p2), 31744   ;;  %vm225_vm1 = vcmask (!%p163_p2), 27648   ;;  %p6892_p3 = scmp.lt.s32.totalorder (!%p163_p2), %s5380_s16, 1  ;;  %v6856_v0 = vmov (!%p163_p2), 0.0   ;;  %s7030_s25 = smov (!%p163_p2), 0  }
   0x6   : > { %166 = sbr.rel (%p163_p2) target bundleno = 1018 (0x3fa), region = 36  ;;  %199 = vst.msk [vmem:[#allocation2] sm:$0xff] (!%p163_p2), %vm198_vm0, %v6856_v0  ;;  %200 = vst.msk [vmem:[#allocation2 + $0x8] sm:$0xff] (!%p163_p2), %vm198_vm0, %v6856_v0 }
   0x7   : > { %201 = vst.msk [vmem:[#allocation2 + $0x10] sm:$0xff] (!%p163_p2), %vm198_vm0, %v6856_v0  ;;  %202 = vst.msk [vmem:[#allocation2 + $0x18] sm:$0xff] (!%p163_p2), %vm198_vm0, %v6856_v0 }
   0x8   : > { %203 = vst.msk [vmem:[#allocation2 + $0x20] sm:$0xff] (!%p163_p2), %vm198_vm0, %v6856_v0  ;;  %204 = vst.msk [vmem:[#allocation2 + $0x28] sm:$0xff] (!%p163_p2), %vm198_vm0, %v6856_v0 }
   0x9   : > { %205 = vst.msk [vmem:[#allocation2 + $0x30] sm:$0xff] (!%p163_p2), %vm198_vm0, %v6856_v0  ;;  %206 = vst.msk [vmem:[#allocation2 + $0x38] sm:$0xff] (!%p163_p2), %vm198_vm0, %v6856_v0 }
   0xa   : > { %207 = vst.msk [vmem:[#allocation2 + $0x40] sm:$0xff] (!%p163_p2), %vm198_vm0, %v6856_v0  ;;  %208 = vst.msk [vmem:[#allocation2 + $0x48] sm:$0xff] (!%p163_p2), %vm198_vm0, %v6856_v0 }
   0xb   : > { %209 = vst.msk [vmem:[#allocation2 + $0x50] sm:$0xff] (!%p163_p2), %vm198_vm0, %v6856_v0  ;;  %210 = vst.msk [vmem:[#allocation2 + $0x58] sm:$0xff] (!%p163_p2), %vm198_vm0, %v6856_v0 }
   0xc   : > { %212 = vst.msk [vmem:[#allocation2 + $0x1e0] sm:$0xff] (!%p163_p2), %vm198_vm0, %v6856_v0  ;;  %213 = vst.msk [vmem:[#allocation2 + $0x1e8] sm:$0xff] (!%p163_p2), %vm198_vm0, %v6856_v0 }
   0xd   : > { %214 = vst.msk [vmem:[#allocation2 + $0x1f0] sm:$0xff] %vm198_vm0, %v6856_v0  ;;  %215 = vst.msk [vmem:[#allocation2 + $0x1f8] sm:$0xff] %vm198_vm0, %v6856_v0  ;;  %s11780_s16 = smov (!%p6892_p3, %s5380_s16), 1 }
   0xe   : > { %216 = vst.msk [vmem:[#allocation2 + $0x200] sm:$0xff] %vm198_vm0, %v6856_v0  ;;  %217 = vst.msk [vmem:[#allocation2 + $0x208] sm:$0xff] %vm198_vm0, %v6856_v0  ;;  %s6679_s18 = sshll.u32 %s11780_s16, 8 }
   0xf   : > { %218 = vst.msk [vmem:[#allocation2 + $0x210] sm:$0xff] %vm198_vm0, %v6856_v0  ;;  %219 = vst.msk [vmem:[#allocation2 + $0x218] sm:$0xff] %vm198_vm0, %v6856_v0  ;;  %s6959_s21 = scalar_lea.vmem %s10534_s0, %s6679_s18  ;;  %s6964_s24 = scalar_lea.vmem %s10538_s4, %s6679_s18 }
  0x10   : > { %220 = vst.msk [vmem:[#allocation2 + $0x220] sm:$0xff] %vm198_vm0, %v6856_v0  ;;  %221 = vst.msk [vmem:[#allocation2 + $0x228] sm:$0xff] %vm198_vm0, %v6856_v0  ;;  %v258_v1 = vld [vmem:[%s6959_s21] sm:$0xff]  ;;  %v259_v2 = vld [vmem:[%s6959_s21 + $0x8] sm:$0xff] }
  0x11   : > { %222 = vst.msk [vmem:[#allocation2 + $0x230] sm:$0xff] %vm198_vm0, %v6856_v0  ;;  %223 = vst.msk [vmem:[#allocation2 + $0x238] sm:$0xff] %vm198_vm0, %v6856_v0  ;;  %v260_v3 = vld [vmem:[%s6959_s21 + $0x10] sm:$0xff]  ;;  %v261_v4 = vld [vmem:[%s6959_s21 + $0x18] sm:$0xff] }
  0x12   : > { %226 = vst.msk [vmem:[#allocation2 + $0x60] sm:$0xf] %vm225_vm1, %v6856_v0  ;;  %227 = vst.msk [vmem:[#allocation2 + $0x78] sm:$0xf] %vm225_vm1, %v6856_v0  ;;  %v262_v5 = vld [vmem:[%s6959_s21 + $0x20] sm:$0xff]  ;;  %v263_v6 = vld [vmem:[%s6959_s21 + $0x28] sm:$0xff] }
  0x13   : > { %228 = vst.msk [vmem:[#allocation2 + $0x90] sm:$0xf] %vm225_vm1, %v6856_v0  ;;  %229 = vst.msk [vmem:[#allocation2 + $0xa8] sm:$0xf] %vm225_vm1, %v6856_v0  ;;  %v264_v7 = vld [vmem:[%s6959_s21 + $0x30] sm:$0xff]  ;;  %v265_v8 = vld [vmem:[%s6959_s21 + $0x38] sm:$0xff] }
  0x14   : > { %230 = vst.msk [vmem:[#allocation2 + $0xc0] sm:$0xf] %vm225_vm1, %v6856_v0  ;;  %231 = vst.msk [vmem:[#allocation2 + $0xd8] sm:$0xf] %vm225_vm1, %v6856_v0  ;;  %v266_v9 = vld [vmem:[%s6959_s21 + $0x40] sm:$0xff]  ;;  %v267_v10 = vld [vmem:[%s6959_s21 + $0x48] sm:$0xff] }
  0x15   : > { %232 = vst.msk [vmem:[#allocation2 + $0xf0] sm:$0xf] %vm225_vm1, %v6856_v0  ;;  %233 = vst.msk [vmem:[#allocation2 + $0x108] sm:$0xf] %vm225_vm1, %v6856_v0  ;;  %v268_v11 = vld [vmem:[%s6959_s21 + $0x50] sm:$0xff]  ;;  %v269_v12 = vld [vmem:[%s6959_s21 + $0x58] sm:$0xff] }
  0x16   : > { %234 = vst.msk [vmem:[#allocation2 + $0x120] sm:$0xf] %vm225_vm1, %v6856_v0  ;;  %235 = vst.msk [vmem:[#allocation2 + $0x138] sm:$0xf] %vm225_vm1, %v6856_v0  ;;  %v270_v13 = vld [vmem:[%s6959_s21 + $0x60] sm:$0xff]  ;;  %v271_v14 = vld [vmem:[%s6959_s21 + $0x68] sm:$0xff] }
  0x17   : > { %236 = vst.msk [vmem:[#allocation2 + $0x150] sm:$0xf] %vm225_vm1, %v6856_v0  ;;  %237 = vst.msk [vmem:[#allocation2 + $0x168] sm:$0xf] %vm225_vm1, %v6856_v0  ;;  %v272_v15 = vld [vmem:[%s6959_s21 + $0x70] sm:$0xff]  ;;  %v273_v16 = vld [vmem:[%s6959_s21 + $0x78] sm:$0xff] }
  0x18   : > { %238 = vst.msk [vmem:[#allocation2 + $0x180] sm:$0xf] %vm225_vm1, %v6856_v0  ;;  %239 = vst.msk [vmem:[#allocation2 + $0x198] sm:$0xf] %vm225_vm1, %v6856_v0  ;;  %v274_v17 = vld [vmem:[%s6959_s21 + $0x80] sm:$0xff]  ;;  %v275_v18 = vld [vmem:[%s6959_s21 + $0x88] sm:$0xff] }
  0x19   : > { %240 = vst.msk [vmem:[#allocation2 + $0x1b0] sm:$0xf] %vm225_vm1, %v6856_v0  ;;  %241 = vst.msk [vmem:[#allocation2 + $0x1c8] sm:$0xf] %vm225_vm1, %v6856_v0  ;;  %v276_v19 = vld [vmem:[%s6959_s21 + $0x90] sm:$0xff]  ;;  %v277_v20 = vld [vmem:[%s6959_s21 + $0x98] sm:$0xff] }
  0x1a   : > { %242 = vst.msk [vmem:[#allocation2 + $0x74] sm:$0xf] %vm225_vm1, %v6856_v0  ;;  %243 = vst.msk [vmem:[#allocation2 + $0x8c] sm:$0xf] %vm225_vm1, %v6856_v0  ;;  %v278_v21 = vld [vmem:[%s6959_s21 + $0xa0] sm:$0xff]  ;;  %v279_v22 = vld [vmem:[%s6959_s21 + $0xa8] sm:$0xff] }
  0x1b   : > { %244 = vst.msk [vmem:[#allocation2 + $0xa4] sm:$0xf] %vm225_vm1, %v6856_v0  ;;  %245 = vst.msk [vmem:[#allocation2 + $0xbc] sm:$0xf] %vm225_vm1, %v6856_v0  ;;  %v280_v23 = vld [vmem:[%s6959_s21 + $0xb0] sm:$0xff]  ;;  %v281_v24 = vld [vmem:[%s6959_s21 + $0xb8] sm:$0xff] }
  0x1c   : > { %246 = vst.msk [vmem:[#allocation2 + $0xd4] sm:$0xf] %vm225_vm1, %v6856_v0  ;;  %247 = vst.msk [vmem:[#allocation2 + $0xec] sm:$0xf] %vm225_vm1, %v6856_v0  ;;  %v282_v25 = vld [vmem:[%s6959_s21 + $0xc0] sm:$0xff]  ;;  %v283_v26 = vld [vmem:[%s6959_s21 + $0xc8] sm:$0xff] }
  0x1d   : > { %248 = vst.msk [vmem:[#allocation2 + $0x104] sm:$0xf] %vm225_vm1, %v6856_v0  ;;  %249 = vst.msk [vmem:[#allocation2 + $0x11c] sm:$0xf] %vm225_vm1, %v6856_v0  ;;  %v284_v27 = vld [vmem:[%s6959_s21 + $0xd0] sm:$0xff]  ;;  %v285_v28 = vld [vmem:[%s6959_s21 + $0xd8] sm:$0xff] }
  0x1e   : > { %250 = vst.msk [vmem:[#allocation2 + $0x134] sm:$0xf] %vm225_vm1, %v6856_v0  ;;  %251 = vst.msk [vmem:[#allocation2 + $0x14c] sm:$0xf] %vm225_vm1, %v6856_v0  ;;  %v286_v29 = vld [vmem:[%s6959_s21 + $0xe0] sm:$0xff]  ;;  %v287_v30 = vld [vmem:[%s6959_s21 + $0xe8] sm:$0xff] }
  0x1f   : > { %252 = vst.msk [vmem:[#allocation2 + $0x164] sm:$0xf] %vm225_vm1, %v6856_v0  ;;  %253 = vst.msk [vmem:[#allocation2 + $0x17c] sm:$0xf] %vm225_vm1, %v6856_v0  ;;  %v288_v31 = vld [vmem:[%s6959_s21 + $0xf0] sm:$0xff]  ;;  %v289_v32 = vld [vmem:[%s6959_s21 + $0xf8] sm:$0xff] }
  0x20   : > { %254 = vst.msk [vmem:[#allocation2 + $0x194] sm:$0xf] %vm225_vm1, %v6856_v0  ;;  %255 = vst.msk [vmem:[#allocation2 + $0x1ac] sm:$0xf] %vm225_vm1, %v6856_v0 }
  0x21   : > { %256 = vst.msk [vmem:[#allocation2 + $0x1c4] sm:$0xf] %vm225_vm1, %v6856_v0  ;;  %257 = vst.msk [vmem:[#allocation2 + $0x1dc] sm:$0xf] %vm225_vm1, %v6856_v0 }
  0x22   : > { %290 = vst.msk [vmem:[#allocation2 + $0x64] sm:$0xff] %vm198_vm0, %v258_v1  ;;  %291 = vst.msk [vmem:[#allocation2 + $0x6c] sm:$0xff] %vm198_vm0, %v259_v2 }
  0x23   : > { %292 = vst.msk [vmem:[#allocation2 + $0x7c] sm:$0xff] %vm198_vm0, %v260_v3  ;;  %293 = vst.msk [vmem:[#allocation2 + $0x84] sm:$0xff] %vm198_vm0, %v261_v4 }
  0x24   : > { %294 = vst.msk [vmem:[#allocation2 + $0x94] sm:$0xff] %vm198_vm0, %v262_v5  ;;  %295 = vst.msk [vmem:[#allocation2 + $0x9c] sm:$0xff] %vm198_vm0, %v263_v6 }
  0x25   : > { %296 = vst.msk [vmem:[#allocation2 + $0xac] sm:$0xff] %vm198_vm0, %v264_v7  ;;  %297 = vst.msk [vmem:[#allocation2 + $0xb4] sm:$0xff] %vm198_vm0, %v265_v8 }
  0x26   : > { %298 = vst.msk [vmem:[#allocation2 + $0xc4] sm:$0xff] %vm198_vm0, %v266_v9  ;;  %299 = vst.msk [vmem:[#allocation2 + $0xcc] sm:$0xff] %vm198_vm0, %v267_v10 }
  0x27   : > { %300 = vst.msk [vmem:[#allocation2 + $0xdc] sm:$0xff] %vm198_vm0, %v268_v11  ;;  %301 = vst.msk [vmem:[#allocation2 + $0xe4] sm:$0xff] %vm198_vm0, %v269_v12 }
  0x28   : > { %302 = vst.msk [vmem:[#allocation2 + $0xf4] sm:$0xff] %vm198_vm0, %v270_v13  ;;  %303 = vst.msk [vmem:[#allocation2 + $0xfc] sm:$0xff] %vm198_vm0, %v271_v14 }
  0x29   : > { %304 = vst.msk [vmem:[#allocation2 + $0x10c] sm:$0xff] %vm198_vm0, %v272_v15  ;;  %305 = vst.msk [vmem:[#allocation2 + $0x114] sm:$0xff] %vm198_vm0, %v273_v16 }
  0x2a   : > { %306 = vst.msk [vmem:[#allocation2 + $0x124] sm:$0xff] %vm198_vm0, %v274_v17  ;;  %307 = vst.msk [vmem:[#allocation2 + $0x12c] sm:$0xff] %vm198_vm0, %v275_v18 }
  0x2b   : > { %308 = vst.msk [vmem:[#allocation2 + $0x13c] sm:$0xff] %vm198_vm0, %v276_v19  ;;  %309 = vst.msk [vmem:[#allocation2 + $0x144] sm:$0xff] %vm198_vm0, %v277_v20 }
  0x2c   : > { %310 = vst.msk [vmem:[#allocation2 + $0x154] sm:$0xff] %vm198_vm0, %v278_v21  ;;  %311 = vst.msk [vmem:[#allocation2 + $0x15c] sm:$0xff] %vm198_vm0, %v279_v22 }
  0x2d   : > { %312 = vst.msk [vmem:[#allocation2 + $0x16c] sm:$0xff] %vm198_vm0, %v280_v23  ;;  %313 = vst.msk [vmem:[#allocation2 + $0x174] sm:$0xff] %vm198_vm0, %v281_v24 }
  0x2e   : > { %314 = vst.msk [vmem:[#allocation2 + $0x184] sm:$0xff] %vm198_vm0, %v282_v25  ;;  %315 = vst.msk [vmem:[#allocation2 + $0x18c] sm:$0xff] %vm198_vm0, %v283_v26 }
  0x2f   : > { %316 = vst.msk [vmem:[#allocation2 + $0x19c] sm:$0xff] %vm198_vm0, %v284_v27  ;;  %317 = vst.msk [vmem:[#allocation2 + $0x1a4] sm:$0xff] %vm198_vm0, %v285_v28 }
  0x30   : > { %318 = vst.msk [vmem:[#allocation2 + $0x1b4] sm:$0xff] %vm198_vm0, %v286_v29  ;;  %319 = vst.msk [vmem:[#allocation2 + $0x1bc] sm:$0xff] %vm198_vm0, %v287_v30 }
  0x31   : > { %320 = vst.msk [vmem:[#allocation2 + $0x1cc] sm:$0xff] %vm198_vm0, %v288_v31  ;;  %321 = vst.msk [vmem:[#allocation2 + $0x1d4] sm:$0xff] %vm198_vm0, %v289_v32 }
  0x32 LB: >> { %s5390_s26 = smul.u32 192, %s6854_s25  ;;  %v5391_v33 = vld [vmem:[%s10535_s1] ss:$0 sm:$0xff]  ;;  %v7042_v34 = vld [vmem:[%s10535_s1 + $0x8] ss:$0 sm:$0xff]  ;;  %vm4992_vm2 = vcmask 1043456   ;;  %s6854_s25 = sphi %s7030_s25, %s327_s25  }
  0x33   : >> { %v5392_v48 = vld [vmem:[%s10535_s1 + $0x1] ss:$0 sm:$0xff]  ;;  %s6681_s28 = sshll.u32 %s6854_s25, 7  ;;  %s327_s25 = sadd.s32 1, %s6854_s25  }
  0x34   : >> { %s7044_s5 = scalar_lea.vmem [#allocation2], %s5390_s26  ;;  %s10342_s29 = scalar_lea.vmem %s6959_s21, %s6681_s28 }
  0x35   : >> { %s10457_s11 = scalar_lea.vmem %s6964_s24, %s6681_s28  ;;  %p324_p4 = scmp.ge.s32.totalorder %s327_s25, 2  }
  0x38   : >> { %v340_v35 = vld [vmem:[%s7044_s5] sm:$0xff]  ;;  %v341_v36 = vld [vmem:[%s7044_s5 + $0x8] sm:$0xff]  ;;  %v7049_v37 = vld [vmem:[%s7044_s5 + $0x18] sm:$0xff] }
  0x39   : >> { %v7052_v38 = vld [vmem:[%s7044_s5 + $0x20] sm:$0xff]  ;;  %v7055_v39 = vld [vmem:[%s7044_s5 + $0x30] sm:$0xff]  ;;  %v7058_v40 = vld [vmem:[%s7044_s5 + $0x38] sm:$0xff]  ;;  %v362_v47 = vmul.f32 %v5391_v33, %v340_v35  ;;  %v363_v52 = vmul.f32 %v5391_v33, %v341_v36  ;;  %v364_v53 = vmul.f32 %v5391_v33, %v7049_v37  ;;  %v7093_v55 = vmul.f32 %v7042_v34, %v341_v36 }
  0x3a   : >> { %v7061_v41 = vld [vmem:[%s7044_s5 + $0x48] sm:$0xff]  ;;  %v7064_v42 = vld [vmem:[%s7044_s5 + $0x50] sm:$0xff]  ;;  %v7067_v43 = vld [vmem:[%s7044_s5 + $0x60] sm:$0xff]  ;;  %v365_v54 = vmul.f32 %v5391_v33, %v7052_v38  ;;  %v366_v57 = vmul.f32 %v5391_v33, %v7055_v39  ;;  %v367_v58 = vmul.f32 %v5391_v33, %v7058_v40  ;;  %v7105_v62 = vmul.f32 %v7042_v34, %v7052_v38 }
  0x3b   : >> { %v7070_v44 = vld [vmem:[%s7044_s5 + $0x68] sm:$0xff]  ;;  %v7073_v45 = vld [vmem:[%s7044_s5 + $0x78] sm:$0xff]  ;;  %v7076_v46 = vld [vmem:[%s7044_s5 + $0x80] sm:$0xff]  ;;  %v368_v59 = vmul.f32 %v5391_v33, %v7061_v41  ;;  %v369_v63 = vmul.f32 %v5391_v33, %v7064_v42  ;;  %v370_v0 = vmul.f32 %v5391_v33, %v7067_v43  ;;  %v7121_v5 = vmul.f32 %v7042_v34, %v7058_v40 }
  0x3c   : >> { %10953 = vst [vmem:[#allocation3_spill] sm:$0xff] %v7073_v45  ;;  %10954 = vst [vmem:[#allocation4_spill] sm:$0xff] %v7076_v46  ;;  %v7082_v49 = vld [vmem:[%s7044_s5 + $0x90] sm:$0xff]  ;;  %v7085_v50 = vld [vmem:[%s7044_s5 + $0x98] sm:$0xff]  ;;  %v371_v1 = vmul.f32 %v5391_v33, %v7070_v44  ;;  %v372_v6 = vmul.f32 %v5391_v33, %v7073_v45  ;;  %v373_v7 = vmul.f32 %v5391_v33, %v7076_v46 }
  0x3d   : >> { %10955 = vst [vmem:[#allocation5_spill] sm:$0xff] %v7082_v49  ;;  %10956 = vst [vmem:[#allocation6_spill] sm:$0xff] %v7085_v50  ;;  %v7088_v51 = vld [vmem:[%s7044_s5 + $0xa8] sm:$0xff]  ;;  %v7096_v56 = vld [vmem:[%s7044_s5 + $0xb0] sm:$0xff]  ;;  %v374_v8 = vmul.f32 %v5391_v33, %v7082_v49  ;;  %v7137_v12 = vmul.f32 %v7042_v34, %v7064_v42  ;;  %v375_v13 = vmul.f32 %v5391_v33, %v7085_v50 }
  0x3e   : >> { %10957 = vst [vmem:[#allocation7_spill] sm:$0xff] %v7088_v51  ;;  %v394_v60 = vld [vmem:[%s7044_s5 + $0x1] sm:$0xff]  ;;  %v395_v61 = vld [vmem:[%s7044_s5 + $0x9] sm:$0xff]  ;;  %v7111_v2 = vld [vmem:[%s7044_s5 + $0x19] sm:$0xff]  ;;  %v376_v14 = vmul.f32 %v5391_v33, %v7088_v51  ;;  %v377_v15 = vmul.f32 %v5391_v33, %v7096_v56  ;;  %v7153_v19 = vmul.f32 %v7042_v34, %v7070_v44  ;;  %v7167_v26 = vmul.f32 %v7042_v34, %v7076_v46 }
  0x3f   : >> { %10958 = vst [vmem:[#allocation8_spill] sm:$0xff] %v7111_v2  ;;  %v7114_v3 = vld [vmem:[%s7044_s5 + $0x21] sm:$0xff]  ;;  %v7117_v4 = vld [vmem:[%s7044_s5 + $0x31] sm:$0xff]  ;;  %v7127_v9 = vld [vmem:[%s7044_s5 + $0x39] sm:$0xff]  ;;  %v416_v23 = vmul.f32 %v5392_v48, %v394_v60  ;;  %v417_v24 = vmul.f32 %v5392_v48, %v395_v61  ;;  %v418_v25 = vmul.f32 %v5392_v48, %v7111_v2  ;;  %v7180_v32 = vmul.f32 %v7042_v34, %v7085_v50 }
  0x40   : >> { %10959 = vst [vmem:[#allocation9_spill] sm:$0xff] %v7114_v3  ;;  %10960 = vst [vmem:[#allocation10_spill] sm:$0xff] %v7117_v4  ;;  %v7130_v10 = vld [vmem:[%s7044_s5 + $0x49] sm:$0xff]  ;;  %v7133_v11 = vld [vmem:[%s7044_s5 + $0x51] sm:$0xff]  ;;  %v419_v29 = vmul.f32 %v5392_v48, %v7114_v3  ;;  %v420_v30 = vmul.f32 %v5392_v48, %v7117_v4  ;;  %v421_v31 = vmul.f32 %v5392_v48, %v7127_v9 }
  0x41   : >> { %10961 = vst [vmem:[#allocation11_spill] sm:$0xff] %v7127_v9  ;;  %10962 = vst [vmem:[#allocation12_spill] sm:$0xff] %v7130_v10  ;;  %v7143_v16 = vld [vmem:[%s7044_s5 + $0x61] sm:$0xff]  ;;  %v7146_v17 = vld [vmem:[%s7044_s5 + $0x69] sm:$0xff]  ;;  %v422_v33 = vmul.f32 %v5392_v48, %v7130_v10  ;;  %v423_v35 = vmul.f32 %v5392_v48, %v7133_v11  ;;  %v434_v51 = vadd.f32 %v418_v25, %v364_v53 }
  0x42   : >> { %10963 = vst [vmem:[#allocation13_spill] sm:$0xff] %v7133_v11  ;;  %10964 = vst [vmem:[#allocation14_spill] sm:$0xff] %v7143_v16  ;;  %v7149_v18 = vld [vmem:[%s7044_s5 + $0x79] sm:$0xff]  ;;  %v7156_v20 = vld [vmem:[%s7044_s5 + $0x81] sm:$0xff]  ;;  %v424_v36 = vmul.f32 %v5392_v48, %v7143_v16  ;;  %v425_v60 = vmul.f32 %v5392_v48, %v7146_v17  ;;  %v435_v50 = vadd.f32 %v419_v29, %v365_v54 }
  0x43   : >> { %10965 = vst [vmem:[#allocation15_spill] sm:$0xff] %v7146_v17  ;;  %10966 = vst [vmem:[#allocation16_spill] sm:$0xff] %v7149_v18  ;;  %v7159_v21 = vld [vmem:[%s7044_s5 + $0x91] sm:$0xff]  ;;  %v7162_v22 = vld [vmem:[%s7044_s5 + $0x99] sm:$0xff]  ;;  %v426_v61 = vmul.f32 %v5392_v48, %v7149_v18  ;;  %v427_v4 = vmul.f32 %v5392_v48, %v7156_v20  ;;  %v432_v17 = vadd.f32 %v416_v23, %v362_v47 }
  0x44   : >> { %10967 = vst [vmem:[#allocation17_spill] sm:$0xff] %v7156_v20  ;;  %10968 = vst [vmem:[#allocation18_spill] sm:$0xff] %v7159_v21  ;;  %v7170_v27 = vld [vmem:[%s7044_s5 + $0xa9] sm:$0xff]  ;;  %v7173_v28 = vld [vmem:[%s7044_s5 + $0xb1] sm:$0xff]  ;;  %v428_v9 = vmul.f32 %v5392_v48, %v7159_v21  ;;  %v429_v3 = vmul.f32 %v5392_v48, %v7162_v22  ;;  %v433_v18 = vadd.f32 %v417_v24, %v363_v52 }
  0x45   : >> { %10969 = vst [vmem:[#allocation19_spill] sm:$0xff] %v7162_v22  ;;  %10970 = vst [vmem:[#allocation20_spill] sm:$0xff] %v7170_v27  ;;  %v5393_v10 = vld [vmem:[%s10535_s1 + $0x2] ss:$0 sm:$0xff]  ;;  %v430_v11 = vmul.f32 %v5392_v48, %v7170_v27  ;;  %v431_v16 = vmul.f32 %v5392_v48, %v7173_v28  ;;  %v449_v20 = vld [vmem:[%s7044_s5 + $0xa] sm:$0xff]  ;;  %v436_v21 = vadd.f32 %v420_v30, %v366_v57 }
  0x46   : >> { %10971 = vst [vmem:[#allocation21_spill] sm:$0xff] %v7173_v28  ;;  %v448_v2 = vld [vmem:[%s7044_s5 + $0x2] sm:$0xff]  ;;  %v437_v22 = vadd.f32 %v421_v31, %v367_v58  ;;  %v7198_v49 = vld [vmem:[%s7044_s5 + $0x1a] sm:$0xff]  ;;  %v7204_v27 = vld [vmem:[%s7044_s5 + $0x32] sm:$0xff]  ;;  %v438_v48 = vadd.f32 %v422_v33, %v368_v59  ;;  %v439_v47 = vadd.f32 %v423_v35, %v369_v63  ;;  %v440_v52 = vadd.f32 %v424_v36, %v370_v0 }
  0x47   : >> { %10972 = vst [vmem:[#allocation22_spill] sm:$0xff] %v7198_v49  ;;  %v7201_v46 = vld [vmem:[%s7044_s5 + $0x22] sm:$0xff]  ;;  %10974 = vst [vmem:[#allocation24_spill] sm:$0xff] %v7204_v27  ;;  %v441_v23 = vadd.f32 %v425_v60, %v371_v1  ;;  %v7207_v53 = vld [vmem:[%s7044_s5 + $0x3a] sm:$0xff]  ;;  %v442_v58 = vadd.f32 %v426_v61, %v372_v6  ;;  %v443_v24 = vadd.f32 %v427_v4, %v373_v7 }
  0x48   : >> { %10973 = vst [vmem:[#allocation23_spill] sm:$0xff] %v7201_v46  ;;  %10975 = vst [vmem:[#allocation25_spill] sm:$0xff] %v7207_v53  ;;  %v7210_v54 = vld [vmem:[%s7044_s5 + $0x4a] sm:$0xff]  ;;  %v7213_v57 = vld [vmem:[%s7044_s5 + $0x52] sm:$0xff]  ;;  %v444_v25 = vadd.f32 %v428_v9, %v374_v8  ;;  %v445_v29 = vadd.f32 %v429_v3, %v375_v13  ;;  %v446_v0 = vadd.f32 %v430_v11, %v376_v14 }
  0x49   : >> { %10976 = vst [vmem:[#allocation26_spill] sm:$0xff] %v7210_v54  ;;  %10977 = vst [vmem:[#allocation27_spill] sm:$0xff] %v7213_v57  ;;  %v7216_v30 = vld [vmem:[%s7044_s5 + $0x62] sm:$0xff]  ;;  %v7219_v59 = vld [vmem:[%s7044_s5 + $0x6a] sm:$0xff]  ;;  %v447_v1 = vadd.f32 %v431_v16, %v377_v15  ;;  %v470_v36 = vmul.f32 %v5393_v10, %v448_v2  ;;  %v471_v60 = vmul.f32 %v5393_v10, %v449_v20 }
  0x4a   : >> { %10978 = vst [vmem:[#allocation28_spill] sm:$0xff] %v7216_v30  ;;  %10979 = vst [vmem:[#allocation29_spill] sm:$0xff] %v7219_v59  ;;  %v7222_v63 = vld [vmem:[%s7044_s5 + $0x7a] sm:$0xff]  ;;  %v7225_v31 = vld [vmem:[%s7044_s5 + $0x82] sm:$0xff]  ;;  %v472_v3 = vmul.f32 %v5393_v10, %v7198_v49  ;;  %v473_v7 = vmul.f32 %v5393_v10, %v7201_v46  ;;  %v474_v8 = vmul.f32 %v5393_v10, %v7204_v27 }
  0x4b   : >> { %10980 = vst [vmem:[#allocation30_spill] sm:$0xff] %v7222_v63  ;;  %10981 = vst [vmem:[#allocation31_spill] sm:$0xff] %v7225_v31  ;;  %v7228_v33 = vld [vmem:[%s7044_s5 + $0x92] sm:$0xff]  ;;  %v7231_v35 = vld [vmem:[%s7044_s5 + $0x9a] sm:$0xff]  ;;  %v475_v9 = vmul.f32 %v5393_v10, %v7207_v53  ;;  %v476_v11 = vmul.f32 %v5393_v10, %v7210_v54  ;;  %v477_v13 = vmul.f32 %v5393_v10, %v7213_v57 }
  0x4c   : >> { %10982 = vst [vmem:[#allocation32_spill] sm:$0xff] %v7228_v33  ;;  %10983 = vst [vmem:[#allocation33_spill] sm:$0xff] %v7231_v35  ;;  %v7234_v6 = vld [vmem:[%s7044_s5 + $0xaa] sm:$0xff]  ;;  %v7237_v4 = vld [vmem:[%s7044_s5 + $0xb2] sm:$0xff]  ;;  %v478_v2 = vmul.f32 %v5393_v10, %v7216_v30  ;;  %v479_v14 = vmul.f32 %v5393_v10, %v7219_v59  ;;  %v480_v15 = vmul.f32 %v5393_v10, %v7222_v63 }
  0x4d   : >> { %10984 = vst [vmem:[#allocation34_spill] sm:$0xff] %v7234_v6  ;;  %10985 = vst [vmem:[#allocation35_spill] sm:$0xff] %v7237_v4  ;;  %v481_v16 = vmul.f32 %v5393_v10, %v7225_v31  ;;  %v482_v20 = vmul.f32 %v5393_v10, %v7228_v33  ;;  %v483_v61 = vmul.f32 %v5393_v10, %v7231_v35  ;;  %v5394_v54 = vld [vmem:[%s10535_s1 + $0x3] ss:$0 sm:$0xff]  ;;  %v503_v31 = vld [vmem:[%s7044_s5 + $0xb] sm:$0xff] }
  0x4e   : >> { %v484_v57 = vmul.f32 %v5393_v10, %v7234_v6  ;;  %v485_v30 = vmul.f32 %v5393_v10, %v7237_v4  ;;  %v486_v59 = vadd.f32 %v470_v36, %v432_v17  ;;  %v487_v63 = vadd.f32 %v471_v60, %v433_v18  ;;  %v502_v53 = vld [vmem:[%s7044_s5 + $0x3] sm:$0xff]  ;;  %v7259_v49 = vld [vmem:[%s7044_s5 + $0x1b] sm:$0xff]  ;;  %v7265_v6 = vld [vmem:[%s7044_s5 + $0x33] sm:$0xff] }
  0x4f   : >> { %v488_v27 = vadd.f32 %v472_v3, %v434_v51  ;;  %v489_v46 = vadd.f32 %v473_v7, %v435_v50  ;;  %v490_v33 = vadd.f32 %v474_v8, %v436_v21  ;;  %v491_v35 = vadd.f32 %v475_v9, %v437_v22  ;;  %10986 = vst [vmem:[#allocation36_spill] sm:$0xff] %v7259_v49  ;;  %v7262_v28 = vld [vmem:[%s7044_s5 + $0x23] sm:$0xff]  ;;  %v7268_v51 = vld [vmem:[%s7044_s5 + $0x3b] sm:$0xff]  ;;  %v7271_v50 = vld [vmem:[%s7044_s5 + $0x4b] sm:$0xff] }
  0x50   : >> { %10987 = vst [vmem:[#allocation37_spill] sm:$0xff] %v7262_v28  ;;  %10988 = vst [vmem:[#allocation38_spill] sm:$0xff] %v7265_v6  ;;  %v492_v10 = vadd.f32 %v476_v11, %v438_v48  ;;  %v493_v17 = vadd.f32 %v477_v13, %v439_v47  ;;  %v494_v18 = vadd.f32 %v478_v2, %v440_v52  ;;  %v7274_v21 = vld [vmem:[%s7044_s5 + $0x53] sm:$0xff]  ;;  %v7277_v8 = vld [vmem:[%s7044_s5 + $0x63] sm:$0xff] }
  0x51   : >> { %v495_v36 = vadd.f32 %v479_v14, %v441_v23  ;;  %10989 = vst [vmem:[#allocation39_spill] sm:$0xff] %v7268_v51  ;;  %10990 = vst [vmem:[#allocation40_spill] sm:$0xff] %v7271_v50  ;;  %v496_v22 = vadd.f32 %v480_v15, %v442_v58  ;;  %v497_v60 = vadd.f32 %v481_v16, %v443_v24  ;;  %v7280_v48 = vld [vmem:[%s7044_s5 + $0x6b] sm:$0xff]  ;;  %v7283_v47 = vld [vmem:[%s7044_s5 + $0x7b] sm:$0xff] }
  0x52   : >> { %10991 = vst [vmem:[#allocation41_spill] sm:$0xff] %v7274_v21  ;;  %v498_v3 = vadd.f32 %v482_v20, %v444_v25  ;;  %v499_v7 = vadd.f32 %v483_v61, %v445_v29  ;;  %10992 = vst [vmem:[#allocation42_spill] sm:$0xff] %v7277_v8  ;;  %v500_v52 = vadd.f32 %v484_v57, %v446_v0  ;;  %v7286_v9 = vld [vmem:[%s7044_s5 + $0x83] sm:$0xff]  ;;  %v7289_v11 = vld [vmem:[%s7044_s5 + $0x93] sm:$0xff] }
  0x53   : >> { %10993 = vst [vmem:[#allocation43_spill] sm:$0xff] %v7280_v48  ;;  %10994 = vst [vmem:[#allocation44_spill] sm:$0xff] %v7283_v47  ;;  %v501_v23 = vadd.f32 %v485_v30, %v447_v1  ;;  %v7292_v13 = vld [vmem:[%s7044_s5 + $0x9b] sm:$0xff]  ;;  %v524_v2 = vmul.f32 %v5394_v54, %v502_v53  ;;  %v525_v14 = vmul.f32 %v5394_v54, %v503_v31  ;;  %v7295_v58 = vld [vmem:[%s7044_s5 + $0xab] sm:$0xff] }
  0x54   : >> { %10995 = vst [vmem:[#allocation45_spill] sm:$0xff] %v7286_v9  ;;  %10996 = vst [vmem:[#allocation46_spill] sm:$0xff] %v7289_v11  ;;  %v7298_v24 = vld [vmem:[%s7044_s5 + $0xb3] sm:$0xff]  ;;  %v526_v25 = vmul.f32 %v5394_v54, %v7259_v49  ;;  %v527_v29 = vmul.f32 %v5394_v54, %v7262_v28  ;;  %v528_v57 = vmul.f32 %v5394_v54, %v7265_v6  ;;  %v7320_v49 = vld [vmem:[%s7044_s5 + $0x1c] sm:$0xff] }
  0x55   : >> { %10997 = vst [vmem:[#allocation47_spill] sm:$0xff] %v7292_v13  ;;  %10998 = vst [vmem:[#allocation48_spill] sm:$0xff] %v7295_v58  ;;  %v529_v30 = vmul.f32 %v5394_v54, %v7268_v51  ;;  %v530_v0 = vmul.f32 %v5394_v54, %v7271_v50  ;;  %v531_v1 = vmul.f32 %v5394_v54, %v7274_v21  ;;  %v5395_v50 = vld [vmem:[%s10535_s1 + $0x4] ss:$0 sm:$0xff] }
  0x56   : >> { %10999 = vst [vmem:[#allocation49_spill] sm:$0xff] %v7298_v24  ;;  %v532_v53 = vmul.f32 %v5394_v54, %v7277_v8  ;;  %v533_v31 = vmul.f32 %v5394_v54, %v7280_v48  ;;  %v534_v15 = vmul.f32 %v5394_v54, %v7283_v47  ;;  %v535_v16 = vmul.f32 %v5394_v54, %v7286_v9  ;;  %v556_v51 = vld [vmem:[%s7044_s5 + $0x4] sm:$0xff]  ;;  %v557_v9 = vld [vmem:[%s7044_s5 + $0xc] sm:$0xff] }
  0x57   : >> { %v536_v20 = vmul.f32 %v5394_v54, %v7289_v11  ;;  %v537_v61 = vmul.f32 %v5394_v54, %v7292_v13  ;;  %v538_v21 = vmul.f32 %v5394_v54, %v7295_v58  ;;  %v539_v8 = vmul.f32 %v5394_v54, %v7298_v24  ;;  %11000 = vst [vmem:[#allocation50_spill] sm:$0xff] %v7320_v49  ;;  %v7323_v4 = vld [vmem:[%s7044_s5 + $0x24] sm:$0xff]  ;;  %v7326_v58 = vld [vmem:[%s7044_s5 + $0x34] sm:$0xff] }
  0x58   : >> { %v540_v48 = vadd.f32 %v524_v2, %v486_v59  ;;  %v541_v47 = vadd.f32 %v525_v14, %v487_v63  ;;  %v542_v6 = vadd.f32 %v526_v25, %v488_v27  ;;  %v543_v28 = vadd.f32 %v527_v29, %v489_v46  ;;  %11001 = vst [vmem:[#allocation51_spill] sm:$0xff] %v7323_v4  ;;  %v7329_v27 = vld [vmem:[%s7044_s5 + $0x3c] sm:$0xff]  ;;  %v7332_v46 = vld [vmem:[%s7044_s5 + $0x4c] sm:$0xff] }
  0x59   : >> { %v544_v11 = vadd.f32 %v528_v57, %v490_v33  ;;  %v545_v13 = vadd.f32 %v529_v30, %v491_v35  ;;  %11002 = vst [vmem:[#allocation52_spill] sm:$0xff] %v7326_v58  ;;  %v546_v54 = vadd.f32 %v530_v0, %v492_v10  ;;  %v547_v59 = vadd.f32 %v531_v1, %v493_v17  ;;  %v7335_v33 = vld [vmem:[%s7044_s5 + $0x54] sm:$0xff]  ;;  %v7338_v57 = vld [vmem:[%s7044_s5 + $0x64] sm:$0xff]  ;;  %v7341_v10 = vld [vmem:[%s7044_s5 + $0x6c] sm:$0xff] }
  0x5a   : >> { %v548_v63 = vadd.f32 %v532_v53, %v494_v18  ;;  %v549_v2 = vadd.f32 %v533_v31, %v495_v36  ;;  %11003 = vst [vmem:[#allocation53_spill] sm:$0xff] %v7329_v27  ;;  %11004 = vst [vmem:[#allocation54_spill] sm:$0xff] %v7332_v46  ;;  %v550_v35 = vadd.f32 %v534_v15, %v496_v22  ;;  %v7344_v17 = vld [vmem:[%s7044_s5 + $0x7c] sm:$0xff]  ;;  %v7347_v30 = vld [vmem:[%s7044_s5 + $0x84] sm:$0xff] }
  0x5b   : >> { %11005 = vst [vmem:[#allocation55_spill] sm:$0xff] %v7335_v33  ;;  %v551_v14 = vadd.f32 %v535_v16, %v497_v60  ;;  %v552_v25 = vadd.f32 %v536_v20, %v498_v3  ;;  %v553_v29 = vadd.f32 %v537_v61, %v499_v7  ;;  %11006 = vst [vmem:[#allocation56_spill] sm:$0xff] %v7338_v57  ;;  %v7350_v0 = vld [vmem:[%s7044_s5 + $0x94] sm:$0xff]  ;;  %v7353_v1 = vld [vmem:[%s7044_s5 + $0x9c] sm:$0xff] }
  0x5c   : >> { %11007 = vst [vmem:[#allocation57_spill] sm:$0xff] %v7341_v10  ;;  %11008 = vst [vmem:[#allocation58_spill] sm:$0xff] %v7344_v17  ;;  %v554_v18 = vadd.f32 %v538_v21, %v500_v52  ;;  %v555_v36 = vadd.f32 %v539_v8, %v501_v23  ;;  %v578_v53 = vmul.f32 %v5395_v50, %v556_v51  ;;  %v7356_v22 = vld [vmem:[%s7044_s5 + $0xac] sm:$0xff]  ;;  %v7359_v60 = vld [vmem:[%s7044_s5 + $0xb4] sm:$0xff] }
  0x5d   : >> { %11009 = vst [vmem:[#allocation59_spill] sm:$0xff] %v7347_v30  ;;  %11010 = vst [vmem:[#allocation60_spill] sm:$0xff] %v7350_v0  ;;  %v579_v31 = vmul.f32 %v5395_v50, %v557_v9  ;;  %v580_v3 = vmul.f32 %v5395_v50, %v7320_v49  ;;  %v581_v7 = vmul.f32 %v5395_v50, %v7323_v4  ;;  %v7381_v49 = vld [vmem:[%s7044_s5 + $0x1d] sm:$0xff]  ;;  %v7384_v24 = vld [vmem:[%s7044_s5 + $0x25] sm:$0xff] }
  0x5e   : >> { %11011 = vst [vmem:[#allocation61_spill] sm:$0xff] %v7353_v1  ;;  %11012 = vst [vmem:[#allocation62_spill] sm:$0xff] %v7356_v22  ;;  %v582_v21 = vmul.f32 %v5395_v50, %v7326_v58  ;;  %v583_v8 = vmul.f32 %v5395_v50, %v7329_v27  ;;  %v584_v52 = vmul.f32 %v5395_v50, %v7332_v46  ;;  %v5396_v46 = vld [vmem:[%s10535_s1 + $0x5] ss:$0 sm:$0xff] }
  0x5f   : >> { %11013 = vst [vmem:[#allocation63_spill] sm:$0xff] %v7359_v60  ;;  %v585_v23 = vmul.f32 %v5395_v50, %v7335_v33  ;;  %v586_v51 = vmul.f32 %v5395_v50, %v7338_v57  ;;  %v587_v9 = vmul.f32 %v5395_v50, %v7341_v10  ;;  %v588_v15 = vmul.f32 %v5395_v50, %v7344_v17  ;;  %v610_v27 = vld [vmem:[%s7044_s5 + $0x5] sm:$0xff] }
  0x60   : >> { %v589_v16 = vmul.f32 %v5395_v50, %v7347_v30  ;;  %v590_v20 = vmul.f32 %v5395_v50, %v7350_v0  ;;  %v591_v61 = vmul.f32 %v5395_v50, %v7353_v1  ;;  %v592_v33 = vmul.f32 %v5395_v50, %v7356_v22  ;;  %v611_v30 = vld [vmem:[%s7044_s5 + $0xd] sm:$0xff]  ;;  %11014 = vst [vmem:[#allocation64_spill] sm:$0xff] %v7381_v49  ;;  %v7387_v22 = vld [vmem:[%s7044_s5 + $0x35] sm:$0xff] }
  0x61   : >> { %v593_v57 = vmul.f32 %v5395_v50, %v7359_v60  ;;  %v594_v10 = vadd.f32 %v578_v53, %v540_v48  ;;  %v595_v17 = vadd.f32 %v579_v31, %v541_v47  ;;  %v596_v58 = vadd.f32 %v580_v3, %v542_v6  ;;  %11015 = vst [vmem:[#allocation65_spill] sm:$0xff] %v7384_v24  ;;  %v7390_v6 = vld [vmem:[%s7044_s5 + $0x3d] sm:$0xff]  ;;  %v7445_v60 = vld [vmem:[%s7044_s5 + $0x26] sm:$0xff] }
  0x62   : >> { %v597_v4 = vadd.f32 %v581_v7, %v543_v28  ;;  %v598_v0 = vadd.f32 %v582_v21, %v544_v11  ;;  %v599_v1 = vadd.f32 %v583_v8, %v545_v13  ;;  %11016 = vst [vmem:[#allocation66_spill] sm:$0xff] %v7387_v22  ;;  %v600_v50 = vadd.f32 %v584_v52, %v546_v54  ;;  %v7393_v28 = vld [vmem:[%s7044_s5 + $0x4d] sm:$0xff]  ;;  %v7396_v11 = vld [vmem:[%s7044_s5 + $0x55] sm:$0xff]  ;;  %v7399_v21 = vld [vmem:[%s7044_s5 + $0x65] sm:$0xff] }
  0x63   : >> { %v601_v48 = vadd.f32 %v585_v23, %v547_v59  ;;  %v602_v47 = vadd.f32 %v586_v51, %v548_v63  ;;  %v603_v53 = vadd.f32 %v587_v9, %v549_v2  ;;  %11017 = vst [vmem:[#allocation67_spill] sm:$0xff] %v7390_v6  ;;  %11018 = vst [vmem:[#allocation68_spill] sm:$0xff] %v7393_v28  ;;  %v7402_v54 = vld [vmem:[%s7044_s5 + $0x6d] sm:$0xff]  ;;  %v7405_v59 = vld [vmem:[%s7044_s5 + $0x7d] sm:$0xff] }
  0x64   : >> { %11019 = vst [vmem:[#allocation69_spill] sm:$0xff] %v7396_v11  ;;  %v604_v13 = vadd.f32 %v588_v15, %v550_v35  ;;  %v605_v31 = vadd.f32 %v589_v16, %v551_v14  ;;  %v606_v3 = vadd.f32 %v590_v20, %v552_v25  ;;  %v607_v7 = vadd.f32 %v591_v61, %v553_v29  ;;  %v7408_v8 = vld [vmem:[%s7044_s5 + $0x85] sm:$0xff]  ;;  %v7411_v52 = vld [vmem:[%s7044_s5 + $0x95] sm:$0xff]  ;;  %v7414_v23 = vld [vmem:[%s7044_s5 + $0x9d] sm:$0xff] }
  0x65   : >> { %11020 = vst [vmem:[#allocation70_spill] sm:$0xff] %v7399_v21  ;;  %11021 = vst [vmem:[#allocation71_spill] sm:$0xff] %v7402_v54  ;;  %v608_v63 = vadd.f32 %v592_v33, %v554_v18  ;;  %v609_v2 = vadd.f32 %v593_v57, %v555_v36  ;;  %v632_v51 = vmul.f32 %v5396_v46, %v610_v27  ;;  %v7417_v35 = vld [vmem:[%s7044_s5 + $0xad] sm:$0xff]  ;;  %v7420_v14 = vld [vmem:[%s7044_s5 + $0xb5] sm:$0xff] }
  0x66   : >> { %11022 = vst [vmem:[#allocation72_spill] sm:$0xff] %v7405_v59  ;;  %11023 = vst [vmem:[#allocation73_spill] sm:$0xff] %v7408_v8  ;;  %v633_v9 = vmul.f32 %v5396_v46, %v611_v30  ;;  %v634_v25 = vmul.f32 %v5396_v46, %v7381_v49  ;;  %v635_v29 = vmul.f32 %v5396_v46, %v7384_v24  ;;  %v7442_v49 = vld [vmem:[%s7044_s5 + $0x1e] sm:$0xff] }
  0x67   : >> { %11024 = vst [vmem:[#allocation74_spill] sm:$0xff] %v7411_v52  ;;  %11025 = vst [vmem:[#allocation75_spill] sm:$0xff] %v7414_v23  ;;  %v636_v33 = vmul.f32 %v5396_v46, %v7387_v22  ;;  %v637_v57 = vmul.f32 %v5396_v46, %v7390_v6  ;;  %v638_v18 = vmul.f32 %v5396_v46, %v7393_v28  ;;  %v5397_v28 = vld [vmem:[%s10535_s1 + $0x6] ss:$0 sm:$0xff] }
  0x68   : >> { %11026 = vst [vmem:[#allocation76_spill] sm:$0xff] %v7417_v35  ;;  %11027 = vst [vmem:[#allocation77_spill] sm:$0xff] %v7420_v14  ;;  %v639_v36 = vmul.f32 %v5396_v46, %v7396_v11  ;;  %v640_v27 = vmul.f32 %v5396_v46, %v7399_v21  ;;  %v641_v30 = vmul.f32 %v5396_v46, %v7402_v54  ;;  %v664_v6 = vld [vmem:[%s7044_s5 + $0x6] sm:$0xff] }
  0x69   : >> { %v642_v15 = vmul.f32 %v5396_v46, %v7405_v59  ;;  %v643_v16 = vmul.f32 %v5396_v46, %v7408_v8  ;;  %v644_v20 = vmul.f32 %v5396_v46, %v7411_v52  ;;  %v645_v61 = vmul.f32 %v5396_v46, %v7414_v23  ;;  %v665_v8 = vld [vmem:[%s7044_s5 + $0xe] sm:$0xff]  ;;  %11028 = vst [vmem:[#allocation78_spill] sm:$0xff] %v7442_v49 }
  0x6a   : >> { %v646_v11 = vmul.f32 %v5396_v46, %v7417_v35  ;;  %v647_v21 = vmul.f32 %v5396_v46, %v7420_v14  ;;  %v648_v54 = vadd.f32 %v632_v51, %v594_v10  ;;  %v649_v59 = vadd.f32 %v633_v9, %v595_v17  ;;  %11029 = vst [vmem:[#allocation79_spill] sm:$0xff] %v7445_v60  ;;  %v7448_v35 = vld [vmem:[%s7044_s5 + $0x36] sm:$0xff]  ;;  %v7506_v14 = vld [vmem:[%s7044_s5 + $0x27] sm:$0xff] }
  0x6b   : >> { %v650_v22 = vadd.f32 %v634_v25, %v596_v58  ;;  %v651_v24 = vadd.f32 %v635_v29, %v597_v4  ;;  %v652_v52 = vadd.f32 %v636_v33, %v598_v0  ;;  %v653_v23 = vadd.f32 %v637_v57, %v599_v1  ;;  %11030 = vst [vmem:[#allocation80_spill] sm:$0xff] %v7448_v35  ;;  %v7451_v58 = vld [vmem:[%s7044_s5 + $0x3e] sm:$0xff]  ;;  %v7454_v4 = vld [vmem:[%s7044_s5 + $0x4e] sm:$0xff]  ;;  %v7457_v0 = vld [vmem:[%s7044_s5 + $0x56] sm:$0xff] }
  0x6c   : >> { %v654_v46 = vadd.f32 %v638_v18, %v600_v50  ;;  %v655_v10 = vadd.f32 %v639_v36, %v601_v48  ;;  %v656_v17 = vadd.f32 %v640_v27, %v602_v47  ;;  %v657_v51 = vadd.f32 %v641_v30, %v603_v53  ;;  %11031 = vst [vmem:[#allocation81_spill] sm:$0xff] %v7451_v58  ;;  %v7460_v33 = vld [vmem:[%s7044_s5 + $0x66] sm:$0xff]  ;;  %v7463_v50 = vld [vmem:[%s7044_s5 + $0x6e] sm:$0xff]  ;;  %v7466_v48 = vld [vmem:[%s7044_s5 + $0x7e] sm:$0xff] }
  0x6d   : >> { %11032 = vst [vmem:[#allocation82_spill] sm:$0xff] %v7454_v4  ;;  %11033 = vst [vmem:[#allocation83_spill] sm:$0xff] %v7457_v0  ;;  %v658_v1 = vadd.f32 %v642_v15, %v604_v13  ;;  %v659_v9 = vadd.f32 %v643_v16, %v605_v31  ;;  %v660_v25 = vadd.f32 %v644_v20, %v606_v3  ;;  %v7469_v57 = vld [vmem:[%s7044_s5 + $0x86] sm:$0xff]  ;;  %v7472_v18 = vld [vmem:[%s7044_s5 + $0x96] sm:$0xff] }
  0x6e   : >> { %v661_v29 = vadd.f32 %v645_v61, %v607_v7  ;;  %11034 = vst [vmem:[#allocation84_spill] sm:$0xff] %v7460_v33  ;;  %11035 = vst [vmem:[#allocation85_spill] sm:$0xff] %v7463_v50  ;;  %v662_v47 = vadd.f32 %v646_v11, %v608_v63  ;;  %v663_v53 = vadd.f32 %v647_v21, %v609_v2  ;;  %v7475_v36 = vld [vmem:[%s7044_s5 + $0x9e] sm:$0xff]  ;;  %v7478_v13 = vld [vmem:[%s7044_s5 + $0xae] sm:$0xff] }
  0x6f   : >> { %11036 = vst [vmem:[#allocation86_spill] sm:$0xff] %v7466_v48  ;;  %11037 = vst [vmem:[#allocation87_spill] sm:$0xff] %v7469_v57  ;;  %v686_v27 = vmul.f32 %v5397_v28, %v664_v6  ;;  %v687_v30 = vmul.f32 %v5397_v28, %v665_v8  ;;  %v7481_v31 = vld [vmem:[%s7044_s5 + $0xb6] sm:$0xff]  ;;  %v688_v3 = vmul.f32 %v5397_v28, %v7442_v49  ;;  %v7503_v49 = vld [vmem:[%s7044_s5 + $0x1f] sm:$0xff] }
  0x70   : >> { %11038 = vst [vmem:[#allocation88_spill] sm:$0xff] %v7472_v18  ;;  %11039 = vst [vmem:[#allocation89_spill] sm:$0xff] %v7475_v36  ;;  %v689_v7 = vmul.f32 %v5397_v28, %v7445_v60  ;;  %v690_v11 = vmul.f32 %v5397_v28, %v7448_v35  ;;  %v691_v21 = vmul.f32 %v5397_v28, %v7451_v58  ;;  %v718_v58 = vld [vmem:[%s7044_s5 + $0x7] sm:$0xff] }
  0x71   : >> { %11040 = vst [vmem:[#allocation90_spill] sm:$0xff] %v7478_v13  ;;  %11041 = vst [vmem:[#allocation91_spill] sm:$0xff] %v7481_v31  ;;  %v692_v63 = vmul.f32 %v5397_v28, %v7454_v4  ;;  %v693_v2 = vmul.f32 %v5397_v28, %v7457_v0  ;;  %v694_v6 = vmul.f32 %v5397_v28, %v7460_v33  ;;  %v5398_v4 = vld [vmem:[%s10535_s1 + $0x7] ss:$0 sm:$0xff] }
  0x72   : >> { %v695_v8 = vmul.f32 %v5397_v28, %v7463_v50  ;;  %v696_v15 = vmul.f32 %v5397_v28, %v7466_v48  ;;  %v697_v16 = vmul.f32 %v5397_v28, %v7469_v57  ;;  %v698_v20 = vmul.f32 %v5397_v28, %v7472_v18  ;;  %v719_v57 = vld [vmem:[%s7044_s5 + $0xf] sm:$0xff]  ;;  %11042 = vst [vmem:[#allocation92_spill] sm:$0xff] %v7503_v49 }
  0x73   : >> { %v699_v61 = vmul.f32 %v5397_v28, %v7475_v36  ;;  %v700_v0 = vmul.f32 %v5397_v28, %v7478_v13  ;;  %v701_v33 = vmul.f32 %v5397_v28, %v7481_v31  ;;  %v702_v50 = vadd.f32 %v686_v27, %v648_v54  ;;  %11043 = vst [vmem:[#allocation93_spill] sm:$0xff] %v7506_v14  ;;  %v7509_v13 = vld [vmem:[%s7044_s5 + $0x37] sm:$0xff] }
  0x74   : >> { %v703_v48 = vadd.f32 %v687_v30, %v649_v59  ;;  %v704_v35 = vadd.f32 %v688_v3, %v650_v22  ;;  %v705_v60 = vadd.f32 %v689_v7, %v651_v24  ;;  %v706_v18 = vadd.f32 %v690_v11, %v652_v52  ;;  %11044 = vst [vmem:[#allocation94_spill] sm:$0xff] %v7509_v13  ;;  %v7512_v22 = vld [vmem:[%s7044_s5 + $0x3f] sm:$0xff]  ;;  %v7515_v24 = vld [vmem:[%s7044_s5 + $0x4f] sm:$0xff]  ;;  %v7518_v52 = vld [vmem:[%s7044_s5 + $0x57] sm:$0xff] }
  0x75   : >> { %v707_v36 = vadd.f32 %v691_v21, %v653_v23  ;;  %v708_v28 = vadd.f32 %v692_v63, %v654_v46  ;;  %v709_v54 = vadd.f32 %v693_v2, %v655_v10  ;;  %v710_v59 = vadd.f32 %v694_v6, %v656_v17  ;;  %11045 = vst [vmem:[#allocation95_spill] sm:$0xff] %v7512_v22  ;;  %v7521_v11 = vld [vmem:[%s7044_s5 + $0x67] sm:$0xff]  ;;  %v7524_v46 = vld [vmem:[%s7044_s5 + $0x6f] sm:$0xff]  ;;  %v7527_v10 = vld [vmem:[%s7044_s5 + $0x7f] sm:$0xff] }
  0x76   : >> { %v711_v27 = vadd.f32 %v695_v8, %v657_v51  ;;  %11046 = vst [vmem:[#allocation96_spill] sm:$0xff] %v7515_v24  ;;  %11047 = vst [vmem:[#allocation97_spill] sm:$0xff] %v7518_v52  ;;  %v712_v23 = vadd.f32 %v696_v15, %v658_v1  ;;  %v713_v30 = vadd.f32 %v697_v16, %v659_v9  ;;  %v7530_v21 = vld [vmem:[%s7044_s5 + $0x87] sm:$0xff]  ;;  %v7533_v63 = vld [vmem:[%s7044_s5 + $0x97] sm:$0xff] }
  0x77   : >> { %v714_v3 = vadd.f32 %v698_v20, %v660_v25  ;;  %v715_v7 = vadd.f32 %v699_v61, %v661_v29  ;;  %11048 = vst [vmem:[#allocation98_spill] sm:$0xff] %v7521_v11  ;;  %11049 = vst [vmem:[#allocation99_spill] sm:$0xff] %v7524_v46  ;;  %v716_v17 = vadd.f32 %v700_v0, %v662_v47  ;;  %v7536_v2 = vld [vmem:[%s7044_s5 + $0x9f] sm:$0xff]  ;;  %v7539_v1 = vld [vmem:[%s7044_s5 + $0xaf] sm:$0xff] }
  0x78   : >> { %11050 = vst [vmem:[#allocation100_spill] sm:$0xff] %v7527_v10  ;;  %v717_v51 = vadd.f32 %v701_v33, %v663_v53  ;;  %11051 = vst [vmem:[#allocation101_spill] sm:$0xff] %v7530_v21  ;;  %v740_v6 = vmul.f32 %v5398_v4, %v718_v58  ;;  %v741_v8 = vmul.f32 %v5398_v4, %v719_v57  ;;  %v7542_v9 = vld [vmem:[%s7044_s5 + $0xb7] sm:$0xff] }
  0x79   : >> { %11052 = vst [vmem:[#allocation102_spill] sm:$0xff] %v7533_v63  ;;  %11053 = vst [vmem:[#allocation103_spill] sm:$0xff] %v7536_v2  ;;  %v742_v25 = vmul.f32 %v5398_v4, %v7503_v49  ;;  %v743_v29 = vmul.f32 %v5398_v4, %v7506_v14  ;;  %v744_v0 = vmul.f32 %v5398_v4, %v7509_v13  ;;  %v772_v13 = vld [vmem:[%s7044_s5 + $0x10] sm:$0xff] }
  0x7a   : >> { %11054 = vst [vmem:[#allocation104_spill] sm:$0xff] %v7539_v1  ;;  %11055 = vst [vmem:[#allocation105_spill] sm:$0xff] %v7542_v9  ;;  %v745_v33 = vmul.f32 %v5398_v4, %v7512_v22  ;;  %v746_v47 = vmul.f32 %v5398_v4, %v7515_v24  ;;  %v747_v53 = vmul.f32 %v5398_v4, %v7518_v52 }
  0x7b   : >> { %v748_v58 = vmul.f32 %v5398_v4, %v7521_v11  ;;  %v749_v57 = vmul.f32 %v5398_v4, %v7524_v46  ;;  %v750_v15 = vmul.f32 %v5398_v4, %v7527_v10  ;;  %v751_v16 = vmul.f32 %v5398_v4, %v7530_v21  ;;  %v7560_v46 = vld [vmem:[%s7044_s5 + $0x28] sm:$0xff] }
  0x7c   : >> { %v752_v20 = vmul.f32 %v5398_v4, %v7533_v63  ;;  %v753_v61 = vmul.f32 %v5398_v4, %v7536_v2  ;;  %v754_v22 = vmul.f32 %v5398_v4, %v7539_v1  ;;  %v755_v24 = vmul.f32 %v5398_v4, %v7542_v9  ;;  %v7563_v63 = vld [vmem:[%s7044_s5 + $0x40] sm:$0xff]  ;;  %v7566_v2 = vld [vmem:[%s7044_s5 + $0x58] sm:$0xff]  ;;  %v7569_v9 = vld [vmem:[%s7044_s5 + $0x70] sm:$0xff] }
  0x7d   : >> { %v756_v52 = vadd.f32 %v740_v6, %v702_v50  ;;  %v757_v11 = vadd.f32 %v741_v8, %v703_v48  ;;  %v758_v10 = vadd.f32 %v742_v25, %v704_v35  ;;  %v759_v14 = vadd.f32 %v743_v29, %v705_v60  ;;  %v7572_v50 = vld [vmem:[%s7044_s5 + $0x88] sm:$0xff]  ;;  %v7575_v8 = vld [vmem:[%s7044_s5 + $0xa0] sm:$0xff]  ;;  %v7578_v35 = vld [vmem:[%s7044_s5 + $0xb8] sm:$0xff] }
  0x7e   : >> { %v760_v21 = vadd.f32 %v744_v0, %v706_v18  ;;  %v761_v49 = vadd.f32 %v745_v33, %v707_v36  ;;  %v762_v1 = vadd.f32 %v746_v47, %v708_v28  ;;  %v763_v31 = vadd.f32 %v747_v53, %v709_v54 }
  0x7f   : >> { %v764_v45 = vadd.f32 %v748_v58, %v710_v59  ;;  %v765_v4 = vadd.f32 %v749_v57, %v711_v27  ;;  %v766_v48 = vadd.f32 %v750_v15, %v712_v23  ;;  %v767_v6 = vadd.f32 %v751_v16, %v713_v30  ;;  %v7612_v57 = vld [vmem:[%s7044_s5 + $0xc8] sm:$0xff] }
  0x80   : >> { %v787_v60 = vmul.f32 %v7042_v34, %v772_v13  ;;  %v789_v18 = vmul.f32 %v7042_v34, %v7560_v46  ;;  %v768_v36 = vadd.f32 %v752_v20, %v714_v3  ;;  %v769_v28 = vadd.f32 %v753_v61, %v715_v7  ;;  %v11057_v15 = vld [vmem:[#allocation4_spill] sm:$0xff]  ;;  %v11058_v20 = vld [vmem:[#allocation5_spill] sm:$0xff] }
  0x81   : >> { %v791_v54 = vmul.f32 %v7042_v34, %v7563_v63  ;;  %v793_v59 = vmul.f32 %v7042_v34, %v7566_v2  ;;  %v770_v27 = vadd.f32 %v754_v22, %v716_v17  ;;  %v771_v23 = vadd.f32 %v755_v24, %v717_v51  ;;  %v5427_v51 = vld [vmem:[%s10535_s1 + $0x9] ss:$0 sm:$0xff] }
  0x82   : >> { %v795_v30 = vmul.f32 %v7042_v34, %v7569_v9  ;;  %v797_v25 = vmul.f32 %v7042_v34, %v7572_v50  ;;  %v799_v13 = vmul.f32 %v7042_v34, %v7575_v8  ;;  %v800_v3 = vmul.f32 %v7042_v34, %v7096_v56 }
  0x83   : >> { %v801_v7 = vmul.f32 %v7042_v34, %v7578_v35  ;;  %v802_v29 = vadd.f32 %v7093_v55, %v756_v52  ;;  %v803_v0 = vadd.f32 %v787_v60, %v757_v11  ;;  %v804_v22 = vadd.f32 %v7105_v62, %v758_v10 }
  0x84   : >> { %v805_v24 = vadd.f32 %v789_v18, %v759_v14  ;;  %v806_v17 = vadd.f32 %v7121_v5, %v760_v21  ;;  %v807_v33 = vadd.f32 %v791_v54, %v761_v49  ;;  %v808_v47 = vadd.f32 %v7137_v12, %v762_v1  ;;  %v7609_v21 = vld [vmem:[%s7044_s5 + $0xc0] sm:$0xff] }
  0x85   : >> { %v809_v53 = vadd.f32 %v793_v59, %v763_v31  ;;  %v810_v34 = vadd.f32 %v7153_v19, %v764_v45  ;;  %v811_v58 = vadd.f32 %v795_v30, %v765_v4  ;;  %v812_v55 = vadd.f32 %v7167_v26, %v766_v48  ;;  %v11056_v1 = vld [vmem:[#allocation3_spill] sm:$0xff]  ;;  %v11059_v4 = vld [vmem:[#allocation6_spill] sm:$0xff] }
  0x86   : >> { %v813_v52 = vadd.f32 %v797_v25, %v767_v6  ;;  %v814_v62 = vadd.f32 %v7180_v32, %v768_v36  ;;  %v815_v14 = vadd.f32 %v799_v13, %v769_v28  ;;  %v816_v11 = vadd.f32 %v800_v3, %v770_v27  ;;  %v11060_v48 = vld [vmem:[#allocation7_spill] sm:$0xff] }
  0x87   : >> { %v817_v10 = vadd.f32 %v801_v7, %v771_v23  ;;  %v853_v5 = vmul.f32 %v5427_v51, %v7049_v37  ;;  %v854_v49 = vmul.f32 %v5427_v51, %v7052_v38  ;;  %v855_v12 = vmul.f32 %v5427_v51, %v7055_v39 }
  0x88   : >> { %v856_v45 = vmul.f32 %v5427_v51, %v7058_v40  ;;  %v857_v19 = vmul.f32 %v5427_v51, %v7061_v41  ;;  %v858_v26 = vmul.f32 %v5427_v51, %v7064_v42  ;;  %v859_v32 = vmul.f32 %v5427_v51, %v7067_v43  ;;  %v5444_v43 = vld [vmem:[%s10535_s1 + $0xa] ss:$0 sm:$0xff] }
  0x89   : >> { %v860_v31 = vmul.f32 %v5427_v51, %v7070_v44  ;;  %v861_v37 = vmul.f32 %v5427_v51, %v11056_v1  ;;  %v862_v16 = vmul.f32 %v5427_v51, %v11057_v15  ;;  %v863_v61 = vmul.f32 %v5427_v51, %v11058_v20 }
  0x8a   : >> { %v864_v38 = vmul.f32 %v5427_v51, %v11059_v4  ;;  %v865_v39 = vmul.f32 %v5427_v51, %v11060_v48  ;;  %v866_v40 = vmul.f32 %v5427_v51, %v7096_v56  ;;  %v867_v41 = vmul.f32 %v5427_v51, %v7609_v21  ;;  %v5461_v48 = vld [vmem:[%s10535_s1 + $0xb] ss:$0 sm:$0xff] }
  0x8b   : >> { %v868_v42 = vmul.f32 %v5427_v51, %v7612_v57  ;;  %v869_v6 = vadd.f32 %v853_v5, %v802_v29  ;;  %v870_v44 = vadd.f32 %v854_v49, %v803_v0  ;;  %v871_v60 = vadd.f32 %v855_v12, %v804_v22  ;;  %v11061_v29 = vld [vmem:[#allocation8_spill] sm:$0xff]  ;;  %v11062_v22 = vld [vmem:[#allocation9_spill] sm:$0xff] }
  0x8c   : >> { %v872_v18 = vadd.f32 %v856_v45, %v805_v24  ;;  %v873_v36 = vadd.f32 %v857_v19, %v806_v17  ;;  %v874_v28 = vadd.f32 %v858_v26, %v807_v33  ;;  %v875_v54 = vadd.f32 %v859_v32, %v808_v47  ;;  %v7634_v5 = vld [vmem:[%s7044_s5 + $0xc1] sm:$0xff]  ;;  %v7637_v0 = vld [vmem:[%s7044_s5 + $0xc9] sm:$0xff]  ;;  %v11063_v17 = vld [vmem:[#allocation10_spill] sm:$0xff] }
  0x8d   : >> { %v876_v59 = vadd.f32 %v860_v31, %v809_v53  ;;  %v877_v27 = vadd.f32 %v861_v37, %v810_v34  ;;  %v878_v56 = vadd.f32 %v862_v16, %v811_v58  ;;  %v879_v23 = vadd.f32 %v863_v61, %v812_v55  ;;  %v11064_v47 = vld [vmem:[#allocation11_spill] sm:$0xff]  ;;  %v11065_v34 = vld [vmem:[#allocation12_spill] sm:$0xff]  ;;  %v11066_v55 = vld [vmem:[#allocation13_spill] sm:$0xff] }
  0x8e   : >> { %v880_v30 = vadd.f32 %v864_v38, %v813_v52  ;;  %v881_v25 = vadd.f32 %v865_v39, %v814_v62  ;;  %v882_v13 = vadd.f32 %v866_v40, %v815_v14  ;;  %v883_v3 = vadd.f32 %v867_v41, %v816_v11  ;;  %v11067_v62 = vld [vmem:[#allocation14_spill] sm:$0xff]  ;;  %v11068_v11 = vld [vmem:[#allocation15_spill] sm:$0xff]  ;;  %v11069_v49 = vld [vmem:[#allocation16_spill] sm:$0xff] }
  0x8f   : >> { %v884_v7 = vadd.f32 %v868_v42, %v817_v10  ;;  %v907_v51 = vmul.f32 %v5444_v43, %v11061_v29  ;;  %v908_v24 = vmul.f32 %v5444_v43, %v11062_v22  ;;  %v909_v33 = vmul.f32 %v5444_v43, %v11063_v17  ;;  %v11070_v45 = vld [vmem:[#allocation17_spill] sm:$0xff]  ;;  %v11071_v26 = vld [vmem:[#allocation18_spill] sm:$0xff]  ;;  %v11072_v31 = vld [vmem:[#allocation19_spill] sm:$0xff] }
  0x90   : >> { %v910_v53 = vmul.f32 %v5444_v43, %v11064_v47  ;;  %v911_v58 = vmul.f32 %v5444_v43, %v11065_v34  ;;  %v912_v52 = vmul.f32 %v5444_v43, %v11066_v55  ;;  %v913_v14 = vmul.f32 %v5444_v43, %v11067_v62  ;;  %v11073_v37 = vld [vmem:[#allocation20_spill] sm:$0xff]  ;;  %v11074_v16 = vld [vmem:[#allocation21_spill] sm:$0xff] }
  0x91   : >> { %v914_v10 = vmul.f32 %v5444_v43, %v11068_v11  ;;  %v915_v12 = vmul.f32 %v5444_v43, %v11069_v49  ;;  %v916_v19 = vmul.f32 %v5444_v43, %v11070_v45  ;;  %v917_v32 = vmul.f32 %v5444_v43, %v11071_v26  ;;  %v11075_v49 = vld [vmem:[#allocation22_spill] sm:$0xff]  ;;  %v7659_v26 = vld [vmem:[%s7044_s5 + $0xc2] sm:$0xff] }
  0x92   : >> { %v918_v1 = vmul.f32 %v5444_v43, %v11072_v31  ;;  %v919_v15 = vmul.f32 %v5444_v43, %v11073_v37  ;;  %v920_v20 = vmul.f32 %v5444_v43, %v11074_v16  ;;  %v921_v61 = vmul.f32 %v5444_v43, %v7634_v5  ;;  %v11088_v31 = vld [vmem:[#allocation35_spill] sm:$0xff] }
  0x93   : >> { %v922_v4 = vmul.f32 %v5444_v43, %v7637_v0  ;;  %v923_v38 = vadd.f32 %v907_v51, %v869_v6  ;;  %v924_v39 = vadd.f32 %v908_v24, %v870_v44  ;;  %v925_v40 = vadd.f32 %v909_v33, %v871_v60  ;;  %v7662_v44 = vld [vmem:[%s7044_s5 + $0xca] sm:$0xff]  ;;  %v11076_v60 = vld [vmem:[#allocation23_spill] sm:$0xff]  ;;  %v11083_v24 = vld [vmem:[#allocation30_spill] sm:$0xff] }
  0x94   : >> { %v926_v41 = vadd.f32 %v910_v53, %v872_v18  ;;  %v927_v42 = vadd.f32 %v911_v58, %v873_v36  ;;  %v928_v29 = vadd.f32 %v912_v52, %v874_v28  ;;  %v929_v22 = vadd.f32 %v913_v14, %v875_v54  ;;  %v11077_v36 = vld [vmem:[#allocation24_spill] sm:$0xff]  ;;  %v11078_v54 = vld [vmem:[#allocation25_spill] sm:$0xff]  ;;  %v11084_v53 = vld [vmem:[#allocation31_spill] sm:$0xff] }
  0x95   : >> { %v930_v17 = vadd.f32 %v914_v10, %v876_v59  ;;  %v931_v47 = vadd.f32 %v915_v12, %v877_v27  ;;  %v932_v34 = vadd.f32 %v916_v19, %v878_v56  ;;  %v933_v55 = vadd.f32 %v917_v32, %v879_v23  ;;  %v11079_v27 = vld [vmem:[#allocation26_spill] sm:$0xff]  ;;  %v11080_v23 = vld [vmem:[#allocation27_spill] sm:$0xff]  ;;  %v11085_v52 = vld [vmem:[#allocation32_spill] sm:$0xff] }
  0x96   : >> { %v934_v62 = vadd.f32 %v918_v1, %v880_v30  ;;  %v935_v11 = vadd.f32 %v919_v15, %v881_v25  ;;  %v936_v43 = vadd.f32 %v920_v20, %v882_v13  ;;  %v937_v6 = vadd.f32 %v921_v61, %v883_v3  ;;  %v11081_v25 = vld [vmem:[#allocation28_spill] sm:$0xff]  ;;  %v11082_v3 = vld [vmem:[#allocation29_spill] sm:$0xff]  ;;  %v11087_v19 = vld [vmem:[#allocation34_spill] sm:$0xff] }
  0x97   : >> { %v938_v51 = vadd.f32 %v922_v4, %v884_v7  ;;  %v961_v45 = vmul.f32 %v5461_v48, %v11075_v49  ;;  %v962_v18 = vmul.f32 %v5461_v48, %v11076_v60  ;;  %v963_v28 = vmul.f32 %v5461_v48, %v11077_v36  ;;  %v11086_v10 = vld [vmem:[#allocation33_spill] sm:$0xff]  ;;  %v5478_v20 = vld [vmem:[%s10535_s1 + $0xc] ss:$0 sm:$0xff] }
  0x98   : >> { %v964_v59 = vmul.f32 %v5461_v48, %v11078_v54  ;;  %v965_v56 = vmul.f32 %v5461_v48, %v11079_v27  ;;  %v966_v30 = vmul.f32 %v5461_v48, %v11080_v23  ;;  %v967_v13 = vmul.f32 %v5461_v48, %v11081_v25 }
  0x99   : >> { %v968_v7 = vmul.f32 %v5461_v48, %v11082_v3  ;;  %v969_v33 = vmul.f32 %v5461_v48, %v11083_v24  ;;  %v970_v58 = vmul.f32 %v5461_v48, %v11084_v53  ;;  %v971_v14 = vmul.f32 %v5461_v48, %v11085_v52  ;;  %v11089_v52 = vld [vmem:[#allocation36_spill] sm:$0xff] }
  0x9a   : >> { %v972_v12 = vmul.f32 %v5461_v48, %v11086_v10  ;;  %v973_v32 = vmul.f32 %v5461_v48, %v11087_v19  ;;  %v974_v1 = vmul.f32 %v5461_v48, %v11088_v31  ;;  %v975_v37 = vmul.f32 %v5461_v48, %v7659_v26  ;;  %v7684_v19 = vld [vmem:[%s7044_s5 + $0xc3] sm:$0xff] }
  0x9b   : >> { %v976_v15 = vmul.f32 %v5461_v48, %v7662_v44  ;;  %v977_v16 = vadd.f32 %v961_v45, %v923_v38  ;;  %v978_v61 = vadd.f32 %v962_v18, %v924_v39  ;;  %v979_v4 = vadd.f32 %v963_v28, %v925_v40  ;;  %v7687_v39 = vld [vmem:[%s7044_s5 + $0xcb] sm:$0xff] }
  0x9c   : >> { %v980_v49 = vadd.f32 %v964_v59, %v926_v41  ;;  %v981_v60 = vadd.f32 %v965_v56, %v927_v42  ;;  %v982_v36 = vadd.f32 %v966_v30, %v928_v29  ;;  %v983_v54 = vadd.f32 %v967_v13, %v929_v22  ;;  %11090 = vst [vmem:[#allocation3_spill] sm:$0xff] %v7687_v39  ;;  %v11091_v40 = vld [vmem:[#allocation37_spill] sm:$0xff]  ;;  %v11092_v42 = vld [vmem:[#allocation38_spill] sm:$0xff]  ;;  %v11093_v22 = vld [vmem:[#allocation39_spill] sm:$0xff] }
  0x9d   : >> { %v984_v27 = vadd.f32 %v968_v7, %v930_v17  ;;  %v985_v23 = vadd.f32 %v969_v33, %v931_v47  ;;  %v986_v25 = vadd.f32 %v970_v58, %v932_v34  ;;  %v987_v3 = vadd.f32 %v971_v14, %v933_v55  ;;  %v11094_v47 = vld [vmem:[#allocation40_spill] sm:$0xff]  ;;  %v11095_v55 = vld [vmem:[#allocation41_spill] sm:$0xff]  ;;  %v11100_v30 = vld [vmem:[#allocation46_spill] sm:$0xff] }
  0x9e   : >> { %v988_v24 = vadd.f32 %v972_v12, %v934_v62  ;;  %v989_v53 = vadd.f32 %v973_v32, %v935_v11  ;;  %v990_v48 = vadd.f32 %v974_v1, %v936_v43  ;;  %v991_v38 = vadd.f32 %v975_v37, %v937_v6  ;;  %v11096_v11 = vld [vmem:[#allocation42_spill] sm:$0xff]  ;;  %v11097_v6 = vld [vmem:[#allocation43_spill] sm:$0xff]  ;;  %v11098_v18 = vld [vmem:[#allocation44_spill] sm:$0xff] }
  0x9f   : >> { %v992_v45 = vadd.f32 %v976_v15, %v938_v51  ;;  %v1015_v10 = vmul.f32 %v5478_v20, %v11089_v52  ;;  %v1016_v41 = vmul.f32 %v5478_v20, %v11091_v40  ;;  %v1017_v29 = vmul.f32 %v5478_v20, %v11092_v42  ;;  %v11099_v59 = vld [vmem:[#allocation45_spill] sm:$0xff]  ;;  %v11101_v7 = vld [vmem:[#allocation47_spill] sm:$0xff]  ;;  %v11102_v58 = vld [vmem:[#allocation48_spill] sm:$0xff] }
  0xa0   : >> { %v1018_v17 = vmul.f32 %v5478_v20, %v11093_v22  ;;  %v1019_v34 = vmul.f32 %v5478_v20, %v11094_v47  ;;  %v1020_v62 = vmul.f32 %v5478_v20, %v11095_v55  ;;  %v1021_v43 = vmul.f32 %v5478_v20, %v11096_v11  ;;  %v11103_v12 = vld [vmem:[#allocation49_spill] sm:$0xff]  ;;  %v5495_v15 = vld [vmem:[%s10535_s1 + $0xd] ss:$0 sm:$0xff] }
  0xa1   : >> { %v1022_v51 = vmul.f32 %v5478_v20, %v11097_v6  ;;  %v1023_v28 = vmul.f32 %v5478_v20, %v11098_v18  ;;  %v1024_v56 = vmul.f32 %v5478_v20, %v11099_v59  ;;  %v1025_v13 = vmul.f32 %v5478_v20, %v11100_v30 }
  0xa2   : >> { %v1026_v33 = vmul.f32 %v5478_v20, %v11101_v7  ;;  %v1027_v14 = vmul.f32 %v5478_v20, %v11102_v58  ;;  %v1028_v32 = vmul.f32 %v5478_v20, %v11103_v12  ;;  %v1029_v31 = vmul.f32 %v5478_v20, %v7684_v19  ;;  %v11104_v58 = vld [vmem:[#allocation50_spill] sm:$0xff] }
  0xa3   : >> { %v1030_v1 = vmul.f32 %v5478_v20, %v7687_v39  ;;  %v1031_v37 = vadd.f32 %v1015_v10, %v977_v16  ;;  %v1032_v52 = vadd.f32 %v1016_v41, %v978_v61  ;;  %v1033_v40 = vadd.f32 %v1017_v29, %v979_v4  ;;  %v7709_v39 = vld [vmem:[%s7044_s5 + $0xc4] sm:$0xff]  ;;  %v7712_v61 = vld [vmem:[%s7044_s5 + $0xcc] sm:$0xff]  ;;  %v11114_v41 = vld [vmem:[#allocation58_spill] sm:$0xff] }
  0xa4   : >> { %v1034_v42 = vadd.f32 %v1018_v17, %v980_v49  ;;  %v1035_v22 = vadd.f32 %v1019_v34, %v981_v60  ;;  %v1036_v47 = vadd.f32 %v1020_v62, %v982_v36  ;;  %v1037_v55 = vadd.f32 %v1021_v43, %v983_v54  ;;  %11105 = vst [vmem:[#allocation4_spill] sm:$0xff] %v7709_v39  ;;  %v11107_v4 = vld [vmem:[#allocation51_spill] sm:$0xff]  ;;  %v11108_v60 = vld [vmem:[#allocation52_spill] sm:$0xff]  ;;  %v11109_v54 = vld [vmem:[#allocation53_spill] sm:$0xff] }
  0xa5   : >> { %v1038_v11 = vadd.f32 %v1022_v51, %v984_v27  ;;  %v1039_v6 = vadd.f32 %v1023_v28, %v985_v23  ;;  %v1040_v18 = vadd.f32 %v1024_v56, %v986_v25  ;;  %v1041_v59 = vadd.f32 %v1025_v13, %v987_v3  ;;  %11106 = vst [vmem:[#allocation5_spill] sm:$0xff] %v7712_v61  ;;  %v11110_v23 = vld [vmem:[#allocation54_spill] sm:$0xff]  ;;  %v11111_v3 = vld [vmem:[#allocation55_spill] sm:$0xff]  ;;  %v11116_v62 = vld [vmem:[#allocation60_spill] sm:$0xff] }
  0xa6   : >> { %v1042_v30 = vadd.f32 %v1026_v33, %v988_v24  ;;  %v1043_v7 = vadd.f32 %v1027_v14, %v989_v53  ;;  %v1044_v20 = vadd.f32 %v1028_v32, %v990_v48  ;;  %v1045_v16 = vadd.f32 %v1029_v31, %v991_v38  ;;  %v11112_v53 = vld [vmem:[#allocation56_spill] sm:$0xff]  ;;  %v11113_v38 = vld [vmem:[#allocation57_spill] sm:$0xff]  ;;  %v11115_v17 = vld [vmem:[#allocation59_spill] sm:$0xff] }
  0xa7   : >> { %v1046_v10 = vadd.f32 %v1030_v1, %v992_v45  ;;  %v1069_v12 = vmul.f32 %v5495_v15, %v11104_v58  ;;  %v1070_v49 = vmul.f32 %v5495_v15, %v11107_v4  ;;  %v1071_v36 = vmul.f32 %v5495_v15, %v11108_v60  ;;  %v11117_v51 = vld [vmem:[#allocation61_spill] sm:$0xff]  ;;  %v11118_v56 = vld [vmem:[#allocation62_spill] sm:$0xff]  ;;  %v11119_v33 = vld [vmem:[#allocation63_spill] sm:$0xff] }
  0xa8   : >> { %v1072_v27 = vmul.f32 %v5495_v15, %v11109_v54  ;;  %v1073_v25 = vmul.f32 %v5495_v15, %v11110_v23  ;;  %v1074_v24 = vmul.f32 %v5495_v15, %v11111_v3  ;;  %v1075_v48 = vmul.f32 %v5495_v15, %v11112_v53  ;;  %v5512_v58 = vld [vmem:[%s10535_s1 + $0xe] ss:$0 sm:$0xff] }
  0xa9   : >> { %v1076_v45 = vmul.f32 %v5495_v15, %v11113_v38  ;;  %v1077_v29 = vmul.f32 %v5495_v15, %v11114_v41  ;;  %v1078_v34 = vmul.f32 %v5495_v15, %v11115_v17  ;;  %v1079_v43 = vmul.f32 %v5495_v15, %v11116_v62 }
  0xaa   : >> { %v1080_v28 = vmul.f32 %v5495_v15, %v11117_v51  ;;  %v1081_v13 = vmul.f32 %v5495_v15, %v11118_v56  ;;  %v1082_v14 = vmul.f32 %v5495_v15, %v11119_v33  ;;  %v1083_v32 = vmul.f32 %v5495_v15, %v7709_v39  ;;  %v11120_v33 = vld [vmem:[#allocation64_spill] sm:$0xff] }
  0xab   : >> { %v1084_v31 = vmul.f32 %v5495_v15, %v7712_v61  ;;  %v1085_v1 = vadd.f32 %v1069_v12, %v1031_v37  ;;  %v1086_v4 = vadd.f32 %v1070_v49, %v1032_v52  ;;  %v1087_v60 = vadd.f32 %v1071_v36, %v1033_v40  ;;  %v7734_v39 = vld [vmem:[%s7044_s5 + $0xc5] sm:$0xff]  ;;  %v7737_v52 = vld [vmem:[%s7044_s5 + $0xcd] sm:$0xff] }
  0xac   : >> { %v1088_v54 = vadd.f32 %v1072_v27, %v1034_v42  ;;  %v1089_v23 = vadd.f32 %v1073_v25, %v1035_v22  ;;  %v1090_v3 = vadd.f32 %v1074_v24, %v1036_v47  ;;  %v1091_v53 = vadd.f32 %v1075_v48, %v1037_v55  ;;  %11121 = vst [vmem:[#allocation6_spill] sm:$0xff] %v7734_v39  ;;  %v11123_v40 = vld [vmem:[#allocation65_spill] sm:$0xff]  ;;  %v11124_v22 = vld [vmem:[#allocation66_spill] sm:$0xff]  ;;  %v11125_v55 = vld [vmem:[#allocation67_spill] sm:$0xff] }
  0xad   : >> { %v1092_v38 = vadd.f32 %v1076_v45, %v1038_v11  ;;  %v1093_v41 = vadd.f32 %v1077_v29, %v1039_v6  ;;  %v1094_v17 = vadd.f32 %v1078_v34, %v1040_v18  ;;  %v1095_v62 = vadd.f32 %v1079_v43, %v1041_v59  ;;  %11122 = vst [vmem:[#allocation7_spill] sm:$0xff] %v7737_v52  ;;  %v11126_v6 = vld [vmem:[#allocation68_spill] sm:$0xff]  ;;  %v11127_v59 = vld [vmem:[#allocation69_spill] sm:$0xff]  ;;  %v11132_v24 = vld [vmem:[#allocation74_spill] sm:$0xff] }
  0xae   : >> { %v1096_v51 = vadd.f32 %v1080_v28, %v1042_v30  ;;  %v1097_v56 = vadd.f32 %v1081_v13, %v1043_v7  ;;  %v1098_v15 = vadd.f32 %v1082_v14, %v1044_v20  ;;  %v1099_v37 = vadd.f32 %v1083_v32, %v1045_v16  ;;  %v11128_v7 = vld [vmem:[#allocation70_spill] sm:$0xff]  ;;  %v11129_v16 = vld [vmem:[#allocation71_spill] sm:$0xff]  ;;  %v11130_v49 = vld [vmem:[#allocation72_spill] sm:$0xff] }
  0xaf   : >> { %v1100_v12 = vadd.f32 %v1084_v31, %v1046_v10  ;;  %v1123_v61 = vmul.f32 %v5512_v58, %v11120_v33  ;;  %v1124_v42 = vmul.f32 %v5512_v58, %v11123_v40  ;;  %v1125_v47 = vmul.f32 %v5512_v58, %v11124_v22  ;;  %v11131_v27 = vld [vmem:[#allocation73_spill] sm:$0xff]  ;;  %v11133_v45 = vld [vmem:[#allocation75_spill] sm:$0xff]  ;;  %v11134_v34 = vld [vmem:[#allocation76_spill] sm:$0xff] }
  0xb0   : >> { %v1126_v11 = vmul.f32 %v5512_v58, %v11125_v55  ;;  %v1127_v18 = vmul.f32 %v5512_v58, %v11126_v6  ;;  %v1128_v30 = vmul.f32 %v5512_v58, %v11127_v59  ;;  %v1129_v20 = vmul.f32 %v5512_v58, %v11128_v7  ;;  %v11135_v28 = vld [vmem:[#allocation77_spill] sm:$0xff]  ;;  %v5529_v33 = vld [vmem:[%s10535_s1 + $0xf] ss:$0 sm:$0xff] }
  0xb1   : >> { %v1130_v10 = vmul.f32 %v5512_v58, %v11129_v16  ;;  %v1131_v36 = vmul.f32 %v5512_v58, %v11130_v49  ;;  %v1132_v25 = vmul.f32 %v5512_v58, %v11131_v27  ;;  %v1133_v48 = vmul.f32 %v5512_v58, %v11132_v24 }
  0xb2   : >> { %v1134_v29 = vmul.f32 %v5512_v58, %v11133_v45  ;;  %v1135_v43 = vmul.f32 %v5512_v58, %v11134_v34  ;;  %v1136_v13 = vmul.f32 %v5512_v58, %v11135_v28  ;;  %v1137_v14 = vmul.f32 %v5512_v58, %v7734_v39  ;;  %v11136_v28 = vld [vmem:[#allocation78_spill] sm:$0xff]  ;;  %v7759_v39 = vld [vmem:[%s7044_s5 + $0xc6] sm:$0xff] }
  0xb3   : >> { %v1138_v32 = vmul.f32 %v5512_v58, %v7737_v52  ;;  %v1139_v31 = vadd.f32 %v1123_v61, %v1085_v1  ;;  %v1140_v40 = vadd.f32 %v1124_v42, %v1086_v4  ;;  %v1141_v22 = vadd.f32 %v1125_v47, %v1087_v60  ;;  %11137 = vst [vmem:[#allocation8_spill] sm:$0xff] %v7759_v39  ;;  %v7762_v4 = vld [vmem:[%s7044_s5 + $0xce] sm:$0xff]  ;;  %v11139_v60 = vld [vmem:[#allocation79_spill] sm:$0xff]  ;;  %v11146_v42 = vld [vmem:[#allocation86_spill] sm:$0xff] }
  0xb4   : >> { %v1142_v55 = vadd.f32 %v1126_v11, %v1088_v54  ;;  %v1143_v6 = vadd.f32 %v1127_v18, %v1089_v23  ;;  %v1144_v59 = vadd.f32 %v1128_v30, %v1090_v3  ;;  %v1145_v7 = vadd.f32 %v1129_v20, %v1091_v53  ;;  %11138 = vst [vmem:[#allocation9_spill] sm:$0xff] %v7762_v4  ;;  %v11140_v23 = vld [vmem:[#allocation80_spill] sm:$0xff]  ;;  %v11141_v53 = vld [vmem:[#allocation81_spill] sm:$0xff]  ;;  %v11147_v11 = vld [vmem:[#allocation87_spill] sm:$0xff] }
  0xb5   : >> { %v1146_v16 = vadd.f32 %v1130_v10, %v1092_v38  ;;  %v1147_v49 = vadd.f32 %v1131_v36, %v1093_v41  ;;  %v1148_v27 = vadd.f32 %v1132_v25, %v1094_v17  ;;  %v1149_v24 = vadd.f32 %v1133_v48, %v1095_v62  ;;  %v11142_v41 = vld [vmem:[#allocation82_spill] sm:$0xff]  ;;  %v11143_v62 = vld [vmem:[#allocation83_spill] sm:$0xff]  ;;  %v11148_v30 = vld [vmem:[#allocation88_spill] sm:$0xff] }
  0xb6   : >> { %v1150_v45 = vadd.f32 %v1134_v29, %v1096_v51  ;;  %v1151_v34 = vadd.f32 %v1135_v43, %v1097_v56  ;;  %v1152_v58 = vadd.f32 %v1136_v13, %v1098_v15  ;;  %v1153_v61 = vadd.f32 %v1137_v14, %v1099_v37  ;;  %v11144_v56 = vld [vmem:[#allocation84_spill] sm:$0xff]  ;;  %v11145_v37 = vld [vmem:[#allocation85_spill] sm:$0xff]  ;;  %v11150_v25 = vld [vmem:[#allocation90_spill] sm:$0xff] }
  0xb7   : >> { %v1154_v1 = vadd.f32 %v1138_v32, %v1100_v12  ;;  %v1177_v52 = vmul.f32 %v5529_v33, %v11136_v28  ;;  %v1178_v54 = vmul.f32 %v5529_v33, %v11139_v60  ;;  %v1179_v3 = vmul.f32 %v5529_v33, %v11140_v23  ;;  %v11149_v10 = vld [vmem:[#allocation89_spill] sm:$0xff]  ;;  %v11151_v29 = vld [vmem:[#allocation91_spill] sm:$0xff] }
  0xb8   : >> { %v1180_v38 = vmul.f32 %v5529_v33, %v11141_v53  ;;  %v1181_v17 = vmul.f32 %v5529_v33, %v11142_v41  ;;  %v1182_v51 = vmul.f32 %v5529_v33, %v11143_v62  ;;  %v1183_v15 = vmul.f32 %v5529_v33, %v11144_v56  ;;  %v5546_v28 = vld [vmem:[%s10535_s1 + $0x10] ss:$0 sm:$0xff] }
  0xb9   : >> { %v1184_v12 = vmul.f32 %v5529_v33, %v11145_v37  ;;  %v1185_v47 = vmul.f32 %v5529_v33, %v11146_v42  ;;  %v1186_v18 = vmul.f32 %v5529_v33, %v11147_v11  ;;  %v1187_v20 = vmul.f32 %v5529_v33, %v11148_v30 }
  0xba   : >> { %v1188_v36 = vmul.f32 %v5529_v33, %v11149_v10  ;;  %v1189_v48 = vmul.f32 %v5529_v33, %v11150_v25  ;;  %v1190_v43 = vmul.f32 %v5529_v33, %v11151_v29  ;;  %v1191_v13 = vmul.f32 %v5529_v33, %v7759_v39  ;;  %v11152_v29 = vld [vmem:[#allocation92_spill] sm:$0xff] }
  0xbb   : >> { %v1192_v14 = vmul.f32 %v5529_v33, %v7762_v4  ;;  %v1193_v32 = vadd.f32 %v1177_v52, %v1139_v31  ;;  %v1194_v60 = vadd.f32 %v1178_v54, %v1140_v40  ;;  %v1195_v23 = vadd.f32 %v1179_v3, %v1141_v22  ;;  %v7784_v39 = vld [vmem:[%s7044_s5 + $0xc7] sm:$0xff]  ;;  %v7787_v40 = vld [vmem:[%s7044_s5 + $0xcf] sm:$0xff] }
  0xbc   : >> { %v1196_v53 = vadd.f32 %v1180_v38, %v1142_v55  ;;  %v1197_v41 = vadd.f32 %v1181_v17, %v1143_v6  ;;  %v1198_v62 = vadd.f32 %v1182_v51, %v1144_v59  ;;  %v1199_v56 = vadd.f32 %v1183_v15, %v1145_v7  ;;  %v11153_v22 = vld [vmem:[#allocation93_spill] sm:$0xff]  ;;  %v11154_v6 = vld [vmem:[#allocation94_spill] sm:$0xff]  ;;  %v11155_v7 = vld [vmem:[#allocation95_spill] sm:$0xff] }
  0xbd   : >> { %v1200_v37 = vadd.f32 %v1184_v12, %v1146_v16  ;;  %v1201_v42 = vadd.f32 %v1185_v47, %v1147_v49  ;;  %v1202_v11 = vadd.f32 %v1186_v18, %v1148_v27  ;;  %v1203_v30 = vadd.f32 %v1187_v20, %v1149_v24  ;;  %v11156_v49 = vld [vmem:[#allocation96_spill] sm:$0xff]  ;;  %v11157_v24 = vld [vmem:[#allocation97_spill] sm:$0xff]  ;;  %v11162_v51 = vld [vmem:[#allocation102_spill] sm:$0xff] }
  0xbe   : >> { %v1204_v10 = vadd.f32 %v1188_v36, %v1150_v45  ;;  %v1205_v25 = vadd.f32 %v1189_v48, %v1151_v34  ;;  %v1206_v33 = vadd.f32 %v1190_v43, %v1152_v58  ;;  %v1207_v52 = vadd.f32 %v1191_v13, %v1153_v61  ;;  %v11158_v34 = vld [vmem:[#allocation98_spill] sm:$0xff]  ;;  %v11159_v61 = vld [vmem:[#allocation99_spill] sm:$0xff]  ;;  %v11160_v54 = vld [vmem:[#allocation100_spill] sm:$0xff] }
  0xbf   : >> { %v1208_v31 = vadd.f32 %v1192_v14, %v1154_v1  ;;  %v1231_v4 = vmul.f32 %v5546_v28, %v11152_v29  ;;  %v1232_v55 = vmul.f32 %v5546_v28, %v11153_v22  ;;  %v1233_v59 = vmul.f32 %v5546_v28, %v11154_v6  ;;  %v11161_v38 = vld [vmem:[#allocation101_spill] sm:$0xff]  ;;  %v11163_v12 = vld [vmem:[#allocation103_spill] sm:$0xff]  ;;  %v11164_v18 = vld [vmem:[#allocation104_spill] sm:$0xff] }
  0xc0   : >> { %v1234_v16 = vmul.f32 %v5546_v28, %v11155_v7  ;;  %v1235_v27 = vmul.f32 %v5546_v28, %v11156_v49  ;;  %v1236_v45 = vmul.f32 %v5546_v28, %v11157_v24  ;;  %v1237_v58 = vmul.f32 %v5546_v28, %v11158_v34  ;;  %v11165_v36 = vld [vmem:[#allocation105_spill] sm:$0xff] }
  0xc1   : >> { %v1238_v1 = vmul.f32 %v5546_v28, %v11159_v61  ;;  %v1239_v3 = vmul.f32 %v5546_v28, %v11160_v54  ;;  %v1240_v17 = vmul.f32 %v5546_v28, %v11161_v38  ;;  %v1241_v15 = vmul.f32 %v5546_v28, %v11162_v51  ;;  %v5555_v29 = vld [vmem:[%s10535_s1 + $0x11] ss:$0 sm:$0xff] }
  0xc2   : >> { %v1242_v47 = vmul.f32 %v5546_v28, %v11163_v12  ;;  %v1243_v20 = vmul.f32 %v5546_v28, %v11164_v18  ;;  %v1244_v48 = vmul.f32 %v5546_v28, %v11165_v36  ;;  %v1245_v43 = vmul.f32 %v5546_v28, %v7784_v39 }
  0xc3   : >> { %v1246_v13 = vmul.f32 %v5546_v28, %v7787_v40  ;;  %v1247_v14 = vadd.f32 %v1231_v4, %v1193_v32  ;;  %v1248_v22 = vadd.f32 %v1232_v55, %v1194_v60  ;;  %v1249_v6 = vadd.f32 %v1233_v59, %v1195_v23  ;;  %v6808_v60 = vld [vmem:[%s7044_s5 + $0x20] sm:$0xff] }
  0xc4   : >> { %v1250_v7 = vadd.f32 %v1234_v16, %v1196_v53  ;;  %v1251_v49 = vadd.f32 %v1235_v27, %v1197_v41  ;;  %v1252_v24 = vadd.f32 %v1236_v45, %v1198_v62  ;;  %v1253_v34 = vadd.f32 %v1237_v58, %v1199_v56  ;;  %v7809_v53 = vld [vmem:[%s7044_s5 + $0xd0] sm:$0xff]  ;;  %v6809_v62 = vld [vmem:[%s7044_s5 + $0x38] sm:$0xff] }
  0xc5   : >> { %v1254_v61 = vadd.f32 %v1238_v1, %v1200_v37  ;;  %v1255_v54 = vadd.f32 %v1239_v3, %v1201_v42  ;;  %v1256_v38 = vadd.f32 %v1240_v17, %v1202_v11  ;;  %v1257_v51 = vadd.f32 %v1241_v15, %v1203_v30  ;;  %v6810_v42 = vld [vmem:[%s7044_s5 + $0x50] sm:$0xff] }
  0xc6   : >> { %v1258_v4 = vadd.f32 %v1242_v47, %v1204_v10  ;;  %v1259_v32 = vadd.f32 %v1243_v20, %v1205_v25  ;;  %v1260_v28 = vadd.f32 %v1244_v48, %v1206_v33  ;;  %v1261_v12 = vadd.f32 %v1245_v43, %v1207_v52  ;;  %v6811_v10 = vld [vmem:[%s7044_s5 + $0x68] sm:$0xff]  ;;  %v6812_v52 = vld [vmem:[%s7044_s5 + $0x80] sm:$0xff]  ;;  %v5567_v15 = vld [vmem:[%s7044_s5 + $0x30] sm:$0xff] }
  0xc7   : >> { %v1262_v18 = vadd.f32 %v1246_v13, %v1208_v31  ;;  %v1277_v23 = vmul.f32 %v6808_v60, %v5555_v29  ;;  %v1278_v41 = vmul.f32 %v5555_v29, %v7560_v46  ;;  %v1279_v56 = vmul.f32 %v6809_v62, %v5555_v29  ;;  %v6813_v46 = vld [vmem:[%s7044_s5 + $0x98] sm:$0xff]  ;;  %v7834_v47 = vld [vmem:[%s7044_s5 + $0x48] sm:$0xff]  ;;  %v7837_v13 = vld [vmem:[%s7044_s5 + $0x50] sm:$0xff] }
  0xc8   : >> { %v1280_v37 = vmul.f32 %v5555_v29, %v7563_v63  ;;  %v1281_v11 = vmul.f32 %v6810_v42, %v5555_v29  ;;  %v1282_v30 = vmul.f32 %v5555_v29, %v7566_v2  ;;  %v1283_v25 = vmul.f32 %v6811_v10, %v5555_v29  ;;  %v6814_v63 = vld [vmem:[%s7044_s5 + $0xb0] sm:$0xff]  ;;  %v7846_v60 = vld [vmem:[%s7044_s5 + $0x78] sm:$0xff]  ;;  %v7858_v62 = vld [vmem:[%s7044_s5 + $0xa8] sm:$0xff] }
  0xc9   : >> { %v1284_v33 = vmul.f32 %v5555_v29, %v7569_v9  ;;  %v1285_v31 = vmul.f32 %v6812_v52, %v5555_v29  ;;  %v1286_v55 = vmul.f32 %v5555_v29, %v7572_v50  ;;  %v1287_v59 = vmul.f32 %v6813_v46, %v5555_v29  ;;  %v5583_v50 = vld [vmem:[%s10535_s1 + $0x12] ss:$0 sm:$0xff]  ;;  %11167 = vst [vmem:[#allocation11_spill] sm:$0xff] %v7858_v62 }
  0xca   : >> { %v1288_v16 = vmul.f32 %v5555_v29, %v7575_v8  ;;  %v1289_v27 = vmul.f32 %v6814_v63, %v5555_v29  ;;  %v1290_v45 = vmul.f32 %v5555_v29, %v7578_v35  ;;  %v1291_v2 = vmul.f32 %v5555_v29, %v7612_v57  ;;  %v7831_v35 = vld [vmem:[%s7044_s5 + $0x38] sm:$0xff] }
  0xcb   : >> { %v1292_v9 = vmul.f32 %v5555_v29, %v7809_v53  ;;  %v1293_v58 = vadd.f32 %v1277_v23, %v1247_v14  ;;  %v1294_v1 = vadd.f32 %v1278_v41, %v1248_v22  ;;  %v1295_v3 = vadd.f32 %v1279_v56, %v1249_v6  ;;  %v7840_v14 = vld [vmem:[%s7044_s5 + $0x60] sm:$0xff]  ;;  %v7843_v29 = vld [vmem:[%s7044_s5 + $0x68] sm:$0xff]  ;;  %v7855_v41 = vld [vmem:[%s7044_s5 + $0x98] sm:$0xff] }
  0xcc   : >> { %v1296_v17 = vadd.f32 %v1280_v37, %v1250_v7  ;;  %v1297_v8 = vadd.f32 %v1281_v11, %v1251_v49  ;;  %v1298_v20 = vadd.f32 %v1282_v30, %v1252_v24  ;;  %v1299_v36 = vadd.f32 %v1283_v25, %v1253_v34  ;;  %v7849_v24 = vld [vmem:[%s7044_s5 + $0x80] sm:$0xff]  ;;  %v7852_v34 = vld [vmem:[%s7044_s5 + $0x90] sm:$0xff] }
  0xcd   : >> { %v1300_v48 = vadd.f32 %v1284_v33, %v1254_v61  ;;  %v1301_v43 = vadd.f32 %v1285_v31, %v1255_v54  ;;  %v1302_v22 = vadd.f32 %v1286_v55, %v1256_v38  ;;  %v1303_v6 = vadd.f32 %v1287_v59, %v1257_v51  ;;  %11166 = vst [vmem:[#allocation10_spill] sm:$0xff] %v7852_v34  ;;  %v7861_v56 = vld [vmem:[%s7044_s5 + $0xb0] sm:$0xff]  ;;  %v7864_v38 = vld [vmem:[%s7044_s5 + $0xd8] sm:$0xff]  ;;  %v7867_v51 = vld [vmem:[%s7044_s5 + $0xe0] sm:$0xff] }
  0xce   : >> { %v1304_v7 = vadd.f32 %v1288_v16, %v1258_v4  ;;  %v1305_v49 = vadd.f32 %v1289_v27, %v1259_v32  ;;  %v1306_v61 = vadd.f32 %v1290_v45, %v1260_v28  ;;  %v1307_v54 = vadd.f32 %v1291_v2, %v1261_v12  ;;  %11168 = vst [vmem:[#allocation12_spill] sm:$0xff] %v7864_v38  ;;  %v5600_v31 = vld [vmem:[%s10535_s1 + $0x13] ss:$0 sm:$0xff] }
  0xcf   : >> { %v1308_v23 = vadd.f32 %v1292_v9, %v1262_v18  ;;  %v1344_v37 = vmul.f32 %v5583_v50, %v5567_v15  ;;  %v1345_v4 = vmul.f32 %v5583_v50, %v7831_v35  ;;  %v1346_v32 = vmul.f32 %v5583_v50, %v7834_v47  ;;  %v5585_v9 = vld [vmem:[%s7044_s5 + $0x39] sm:$0xff]  ;;  %v7890_v15 = vld [vmem:[%s7044_s5 + $0x49] sm:$0xff] }
  0xd0   : >> { %v1347_v42 = vmul.f32 %v5583_v50, %v7837_v13  ;;  %v1348_v28 = vmul.f32 %v5583_v50, %v7840_v14  ;;  %v1349_v12 = vmul.f32 %v5583_v50, %v7843_v29  ;;  %v1350_v18 = vmul.f32 %v5583_v50, %v7846_v60 }
  0xd1   : >> { %v1351_v11 = vmul.f32 %v5583_v50, %v7849_v24  ;;  %v1352_v30 = vmul.f32 %v5583_v50, %v7852_v34  ;;  %v1353_v10 = vmul.f32 %v5583_v50, %v7855_v41  ;;  %v1354_v25 = vmul.f32 %v5583_v50, %v7858_v62 }
  0xd2   : >> { %v1355_v33 = vmul.f32 %v5583_v50, %v7861_v56  ;;  %v1356_v52 = vmul.f32 %v5583_v50, %v7609_v21  ;;  %v1357_v55 = vmul.f32 %v5583_v50, %v7612_v57  ;;  %v1358_v46 = vmul.f32 %v5583_v50, %v7864_v38  ;;  %v5584_v21 = vld [vmem:[%s7044_s5 + $0x31] sm:$0xff] }
  0xd3   : >> { %v1359_v59 = vmul.f32 %v5583_v50, %v7867_v51  ;;  %v1360_v16 = vadd.f32 %v1344_v37, %v1293_v58  ;;  %v1361_v63 = vadd.f32 %v1345_v4, %v1294_v1  ;;  %v1362_v27 = vadd.f32 %v1346_v32, %v1295_v3  ;;  %v7893_v50 = vld [vmem:[%s7044_s5 + $0x51] sm:$0xff]  ;;  %v7896_v58 = vld [vmem:[%s7044_s5 + $0x61] sm:$0xff]  ;;  %v7899_v1 = vld [vmem:[%s7044_s5 + $0x69] sm:$0xff] }
  0xd4   : >> { %v1363_v45 = vadd.f32 %v1347_v42, %v1296_v17  ;;  %v1364_v2 = vadd.f32 %v1348_v28, %v1297_v8  ;;  %v1365_v62 = vadd.f32 %v1349_v12, %v1298_v20  ;;  %v1366_v57 = vadd.f32 %v1350_v18, %v1299_v36  ;;  %11169 = vst [vmem:[#allocation13_spill] sm:$0xff] %v7893_v50  ;;  %v7902_v4 = vld [vmem:[%s7044_s5 + $0x79] sm:$0xff]  ;;  %v7905_v20 = vld [vmem:[%s7044_s5 + $0x81] sm:$0xff]  ;;  %v7908_v36 = vld [vmem:[%s7044_s5 + $0x91] sm:$0xff] }
  0xd5   : >> { %v1367_v34 = vadd.f32 %v1351_v11, %v1300_v48  ;;  %v1368_v38 = vadd.f32 %v1352_v30, %v1301_v43  ;;  %11170 = vst [vmem:[#allocation14_spill] sm:$0xff] %v7896_v58  ;;  %11171 = vst [vmem:[#allocation15_spill] sm:$0xff] %v7899_v1  ;;  %v1369_v3 = vadd.f32 %v1353_v10, %v1302_v22  ;;  %v7911_v42 = vld [vmem:[%s7044_s5 + $0x99] sm:$0xff]  ;;  %v7914_v28 = vld [vmem:[%s7044_s5 + $0xa9] sm:$0xff] }
  0xd6   : >> { %v1370_v17 = vadd.f32 %v1354_v25, %v1303_v6  ;;  %v1371_v8 = vadd.f32 %v1355_v33, %v1304_v7  ;;  %v1372_v37 = vadd.f32 %v1356_v52, %v1305_v49  ;;  %11172 = vst [vmem:[#allocation16_spill] sm:$0xff] %v7902_v4  ;;  %11173 = vst [vmem:[#allocation17_spill] sm:$0xff] %v7905_v20  ;;  %v7917_v12 = vld [vmem:[%s7044_s5 + $0xb1] sm:$0xff]  ;;  %v7920_v22 = vld [vmem:[%s7044_s5 + $0xd9] sm:$0xff] }
  0xd7   : >> { %11174 = vst [vmem:[#allocation18_spill] sm:$0xff] %v7908_v36  ;;  %v1373_v48 = vadd.f32 %v1357_v55, %v1306_v61  ;;  %v1374_v43 = vadd.f32 %v1358_v46, %v1307_v54  ;;  %v1375_v32 = vadd.f32 %v1359_v59, %v1308_v23  ;;  %11175 = vst [vmem:[#allocation19_spill] sm:$0xff] %v7911_v42  ;;  %v7923_v6 = vld [vmem:[%s7044_s5 + $0xe1] sm:$0xff]  ;;  %v5617_v46 = vld [vmem:[%s10535_s1 + $0x14] ss:$0 sm:$0xff] }
  0xd8   : >> { %11176 = vst [vmem:[#allocation20_spill] sm:$0xff] %v7914_v28  ;;  %11177 = vst [vmem:[#allocation21_spill] sm:$0xff] %v7917_v12  ;;  %v1398_v18 = vmul.f32 %v5600_v31, %v5584_v21  ;;  %v1399_v7 = vmul.f32 %v5600_v31, %v5585_v9  ;;  %v1400_v49 = vmul.f32 %v5600_v31, %v7890_v15 }
  0xd9   : >> { %11178 = vst [vmem:[#allocation22_spill] sm:$0xff] %v7920_v22  ;;  %v1401_v11 = vmul.f32 %v5600_v31, %v7893_v50  ;;  %v1402_v61 = vmul.f32 %v5600_v31, %v7896_v58  ;;  %v1403_v54 = vmul.f32 %v5600_v31, %v7899_v1  ;;  %v1404_v23 = vmul.f32 %v5600_v31, %v7902_v4  ;;  %v5602_v4 = vld [vmem:[%s7044_s5 + $0x3a] sm:$0xff]  ;;  %v7945_v1 = vld [vmem:[%s7044_s5 + $0x4a] sm:$0xff] }
  0xda   : >> { %v1405_v30 = vmul.f32 %v5600_v31, %v7905_v20  ;;  %v1406_v10 = vmul.f32 %v5600_v31, %v7908_v36  ;;  %v1407_v25 = vmul.f32 %v5600_v31, %v7911_v42  ;;  %v1408_v33 = vmul.f32 %v5600_v31, %v7914_v28 }
  0xdb   : >> { %v1409_v52 = vmul.f32 %v5600_v31, %v7917_v12  ;;  %v1410_v55 = vmul.f32 %v5600_v31, %v7634_v5  ;;  %v1411_v59 = vmul.f32 %v5600_v31, %v7637_v0  ;;  %v1412_v21 = vmul.f32 %v5600_v31, %v7920_v22  ;;  %v5601_v5 = vld [vmem:[%s7044_s5 + $0x32] sm:$0xff] }
  0xdc   : >> { %v1413_v9 = vmul.f32 %v5600_v31, %v7923_v6  ;;  %v1414_v42 = vadd.f32 %v1398_v18, %v1360_v16  ;;  %v1415_v36 = vadd.f32 %v1399_v7, %v1361_v63  ;;  %v1416_v28 = vadd.f32 %v1400_v49, %v1362_v27  ;;  %v7948_v31 = vld [vmem:[%s7044_s5 + $0x52] sm:$0xff]  ;;  %v7951_v16 = vld [vmem:[%s7044_s5 + $0x62] sm:$0xff]  ;;  %v7954_v63 = vld [vmem:[%s7044_s5 + $0x6a] sm:$0xff] }
  0xdd   : >> { %v1417_v20 = vadd.f32 %v1401_v11, %v1363_v45  ;;  %v1418_v12 = vadd.f32 %v1402_v61, %v1364_v2  ;;  %v1419_v58 = vadd.f32 %v1403_v54, %v1365_v62  ;;  %v1420_v0 = vadd.f32 %v1404_v23, %v1366_v57  ;;  %11179 = vst [vmem:[#allocation23_spill] sm:$0xff] %v7948_v31  ;;  %v7957_v7 = vld [vmem:[%s7044_s5 + $0x7a] sm:$0xff]  ;;  %v7960_v62 = vld [vmem:[%s7044_s5 + $0x82] sm:$0xff]  ;;  %v7969_v61 = vld [vmem:[%s7044_s5 + $0xaa] sm:$0xff] }
  0xde   : >> { %v1421_v50 = vadd.f32 %v1405_v30, %v1367_v34  ;;  %v1422_v22 = vadd.f32 %v1406_v10, %v1368_v38  ;;  %11180 = vst [vmem:[#allocation24_spill] sm:$0xff] %v7951_v16  ;;  %11181 = vst [vmem:[#allocation25_spill] sm:$0xff] %v7954_v63  ;;  %v1423_v27 = vadd.f32 %v1407_v25, %v1369_v3  ;;  %v7963_v34 = vld [vmem:[%s7044_s5 + $0x92] sm:$0xff]  ;;  %v7966_v11 = vld [vmem:[%s7044_s5 + $0x9a] sm:$0xff] }
  0xdf   : >> { %v1424_v45 = vadd.f32 %v1408_v33, %v1370_v17  ;;  %v1425_v2 = vadd.f32 %v1409_v52, %v1371_v8  ;;  %v1426_v18 = vadd.f32 %v1410_v55, %v1372_v37  ;;  %11182 = vst [vmem:[#allocation26_spill] sm:$0xff] %v7957_v7  ;;  %11183 = vst [vmem:[#allocation27_spill] sm:$0xff] %v7960_v62  ;;  %v7972_v54 = vld [vmem:[%s7044_s5 + $0xb2] sm:$0xff]  ;;  %v7975_v3 = vld [vmem:[%s7044_s5 + $0xda] sm:$0xff] }
  0xe0   : >> { %11184 = vst [vmem:[#allocation28_spill] sm:$0xff] %v7963_v34  ;;  %v1427_v38 = vadd.f32 %v1411_v59, %v1373_v48  ;;  %v1428_v57 = vadd.f32 %v1412_v21, %v1374_v43  ;;  %v1429_v49 = vadd.f32 %v1413_v9, %v1375_v32  ;;  %11185 = vst [vmem:[#allocation29_spill] sm:$0xff] %v7966_v11  ;;  %v7978_v17 = vld [vmem:[%s7044_s5 + $0xe2] sm:$0xff]  ;;  %v5634_v59 = vld [vmem:[%s10535_s1 + $0x15] ss:$0 sm:$0xff] }
  0xe1   : >> { %11186 = vst [vmem:[#allocation30_spill] sm:$0xff] %v7969_v61  ;;  %11187 = vst [vmem:[#allocation31_spill] sm:$0xff] %v7972_v54  ;;  %v1452_v23 = vmul.f32 %v5617_v46, %v5601_v5  ;;  %v1453_v8 = vmul.f32 %v5617_v46, %v5602_v4  ;;  %v1454_v37 = vmul.f32 %v5617_v46, %v7945_v1 }
  0xe2   : >> { %11188 = vst [vmem:[#allocation32_spill] sm:$0xff] %v7975_v3  ;;  %v1455_v30 = vmul.f32 %v5617_v46, %v7948_v31  ;;  %v1456_v48 = vmul.f32 %v5617_v46, %v7951_v16  ;;  %v1457_v43 = vmul.f32 %v5617_v46, %v7954_v63  ;;  %v1458_v32 = vmul.f32 %v5617_v46, %v7957_v7  ;;  %v5619_v7 = vld [vmem:[%s7044_s5 + $0x3b] sm:$0xff]  ;;  %v8000_v63 = vld [vmem:[%s7044_s5 + $0x4b] sm:$0xff] }
  0xe3   : >> { %v1459_v10 = vmul.f32 %v5617_v46, %v7960_v62  ;;  %v1460_v25 = vmul.f32 %v5617_v46, %v7963_v34  ;;  %v1461_v33 = vmul.f32 %v5617_v46, %v7966_v11  ;;  %v1462_v4 = vmul.f32 %v5617_v46, %v7969_v61  ;;  %11189 = vst [vmem:[#allocation33_spill] sm:$0xff] %v8000_v63 }
  0xe4   : >> { %v1463_v52 = vmul.f32 %v5617_v46, %v7972_v54  ;;  %v1464_v55 = vmul.f32 %v5617_v46, %v7659_v26  ;;  %v1465_v21 = vmul.f32 %v5617_v46, %v7662_v44  ;;  %v1466_v9 = vmul.f32 %v5617_v46, %v7975_v3  ;;  %v5618_v26 = vld [vmem:[%s7044_s5 + $0x33] sm:$0xff] }
  0xe5   : >> { %v1467_v5 = vmul.f32 %v5617_v46, %v7978_v17  ;;  %v1468_v11 = vadd.f32 %v1452_v23, %v1414_v42  ;;  %v1469_v34 = vadd.f32 %v1453_v8, %v1415_v36  ;;  %v1470_v61 = vadd.f32 %v1454_v37, %v1416_v28  ;;  %v8003_v46 = vld [vmem:[%s7044_s5 + $0x53] sm:$0xff]  ;;  %v8006_v36 = vld [vmem:[%s7044_s5 + $0x63] sm:$0xff]  ;;  %v8012_v8 = vld [vmem:[%s7044_s5 + $0x7b] sm:$0xff] }
  0xe6   : >> { %v1471_v62 = vadd.f32 %v1455_v30, %v1417_v20  ;;  %v1472_v54 = vadd.f32 %v1456_v48, %v1418_v12  ;;  %v1473_v16 = vadd.f32 %v1457_v43, %v1419_v58  ;;  %v1474_v44 = vadd.f32 %v1458_v32, %v1420_v0  ;;  %11190 = vst [vmem:[#allocation34_spill] sm:$0xff] %v8003_v46  ;;  %v8009_v20 = vld [vmem:[%s7044_s5 + $0x6b] sm:$0xff]  ;;  %v8015_v58 = vld [vmem:[%s7044_s5 + $0x83] sm:$0xff]  ;;  %v8021_v30 = vld [vmem:[%s7044_s5 + $0x9b] sm:$0xff] }
  0xe7   : >> { %v1475_v31 = vadd.f32 %v1459_v10, %v1421_v50  ;;  %v1476_v3 = vadd.f32 %v1460_v25, %v1422_v22  ;;  %11191 = vst [vmem:[#allocation35_spill] sm:$0xff] %v8006_v36  ;;  %11192 = vst [vmem:[#allocation36_spill] sm:$0xff] %v8009_v20  ;;  %v1477_v42 = vadd.f32 %v1461_v33, %v1423_v27  ;;  %v8018_v50 = vld [vmem:[%s7044_s5 + $0x93] sm:$0xff]  ;;  %v8024_v48 = vld [vmem:[%s7044_s5 + $0xab] sm:$0xff] }
  0xe8   : >> { %v1478_v28 = vadd.f32 %v1462_v4, %v1424_v45  ;;  %v1479_v12 = vadd.f32 %v1463_v52, %v1425_v2  ;;  %v1480_v23 = vadd.f32 %v1464_v55, %v1426_v18  ;;  %11193 = vst [vmem:[#allocation37_spill] sm:$0xff] %v8012_v8  ;;  %11194 = vst [vmem:[#allocation38_spill] sm:$0xff] %v8015_v58  ;;  %v8027_v43 = vld [vmem:[%s7044_s5 + $0xb3] sm:$0xff]  ;;  %v8030_v27 = vld [vmem:[%s7044_s5 + $0xdb] sm:$0xff] }
  0xe9   : >> { %11195 = vst [vmem:[#allocation39_spill] sm:$0xff] %v8018_v50  ;;  %v1481_v22 = vadd.f32 %v1465_v21, %v1427_v38  ;;  %v1482_v0 = vadd.f32 %v1466_v9, %v1428_v57  ;;  %v1483_v37 = vadd.f32 %v1467_v5, %v1429_v49  ;;  %11196 = vst [vmem:[#allocation40_spill] sm:$0xff] %v8021_v30  ;;  %v8033_v45 = vld [vmem:[%s7044_s5 + $0xe3] sm:$0xff]  ;;  %v5651_v21 = vld [vmem:[%s10535_s1 + $0x16] ss:$0 sm:$0xff] }
  0xea   : >> { %11197 = vst [vmem:[#allocation41_spill] sm:$0xff] %v8024_v48  ;;  %11198 = vst [vmem:[#allocation42_spill] sm:$0xff] %v8027_v43  ;;  %v1506_v32 = vmul.f32 %v5634_v59, %v5618_v26  ;;  %v1507_v2 = vmul.f32 %v5634_v59, %v5619_v7  ;;  %v1508_v18 = vmul.f32 %v5634_v59, %v8000_v63  ;;  %v11201_v9 = vld [vmem:[#allocation3_spill] sm:$0xff] }
  0xeb   : >> { %11199 = vst [vmem:[#allocation43_spill] sm:$0xff] %v8030_v27  ;;  %11200 = vst [vmem:[#allocation44_spill] sm:$0xff] %v8033_v45  ;;  %v1509_v10 = vmul.f32 %v5634_v59, %v8003_v46  ;;  %v1510_v38 = vmul.f32 %v5634_v59, %v8006_v36  ;;  %v1511_v57 = vmul.f32 %v5634_v59, %v8009_v20  ;;  %v5636_v20 = vld [vmem:[%s7044_s5 + $0x3c] sm:$0xff]  ;;  %v8055_v36 = vld [vmem:[%s7044_s5 + $0x4c] sm:$0xff] }
  0xec   : >> { %v1512_v49 = vmul.f32 %v5634_v59, %v8012_v8  ;;  %v1513_v25 = vmul.f32 %v5634_v59, %v8015_v58  ;;  %v1514_v33 = vmul.f32 %v5634_v59, %v8018_v50  ;;  %v1515_v4 = vmul.f32 %v5634_v59, %v8021_v30  ;;  %11202 = vst [vmem:[#allocation45_spill] sm:$0xff] %v8055_v36 }
  0xed   : >> { %v1516_v7 = vmul.f32 %v5634_v59, %v8024_v48  ;;  %v1517_v52 = vmul.f32 %v5634_v59, %v8027_v43  ;;  %v1518_v55 = vmul.f32 %v5634_v59, %v7684_v19  ;;  %v1519_v5 = vmul.f32 %v5634_v59, %v11201_v9  ;;  %v5635_v19 = vld [vmem:[%s7044_s5 + $0x34] sm:$0xff] }
  0xee   : >> { %v1520_v26 = vmul.f32 %v5634_v59, %v8030_v27  ;;  %v1521_v50 = vmul.f32 %v5634_v59, %v8033_v45  ;;  %v1522_v30 = vadd.f32 %v1506_v32, %v1468_v11  ;;  %v1523_v58 = vadd.f32 %v1507_v2, %v1469_v34  ;;  %v8058_v59 = vld [vmem:[%s7044_s5 + $0x54] sm:$0xff]  ;;  %v8061_v34 = vld [vmem:[%s7044_s5 + $0x64] sm:$0xff]  ;;  %v8067_v2 = vld [vmem:[%s7044_s5 + $0x7c] sm:$0xff] }
  0xef   : >> { %v1524_v48 = vadd.f32 %v1508_v18, %v1470_v61  ;;  %v1525_v8 = vadd.f32 %v1509_v10, %v1471_v62  ;;  %v1526_v43 = vadd.f32 %v1510_v38, %v1472_v54  ;;  %v1527_v46 = vadd.f32 %v1511_v57, %v1473_v16  ;;  %11203 = vst [vmem:[#allocation46_spill] sm:$0xff] %v8058_v59  ;;  %v8064_v62 = vld [vmem:[%s7044_s5 + $0x6c] sm:$0xff]  ;;  %v8070_v16 = vld [vmem:[%s7044_s5 + $0x84] sm:$0xff]  ;;  %v8076_v10 = vld [vmem:[%s7044_s5 + $0x9c] sm:$0xff] }
  0xf0   : >> { %v1528_v9 = vadd.f32 %v1512_v49, %v1474_v44  ;;  %v1529_v63 = vadd.f32 %v1513_v25, %v1475_v31  ;;  %v1530_v27 = vadd.f32 %v1514_v33, %v1476_v3  ;;  %11204 = vst [vmem:[#allocation47_spill] sm:$0xff] %v8061_v34  ;;  %11205 = vst [vmem:[#allocation48_spill] sm:$0xff] %v8064_v62  ;;  %v8073_v31 = vld [vmem:[%s7044_s5 + $0x94] sm:$0xff]  ;;  %v8079_v38 = vld [vmem:[%s7044_s5 + $0xac] sm:$0xff] }
  0xf1   : >> { %v1531_v11 = vadd.f32 %v1515_v4, %v1477_v42  ;;  %v1532_v61 = vadd.f32 %v1516_v7, %v1478_v28  ;;  %v1533_v54 = vadd.f32 %v1517_v52, %v1479_v12  ;;  %v1534_v32 = vadd.f32 %v1518_v55, %v1480_v23  ;;  %11206 = vst [vmem:[#allocation49_spill] sm:$0xff] %v8067_v2  ;;  %v8082_v57 = vld [vmem:[%s7044_s5 + $0xb4] sm:$0xff]  ;;  %v8085_v42 = vld [vmem:[%s7044_s5 + $0xdc] sm:$0xff]  ;;  %v8088_v28 = vld [vmem:[%s7044_s5 + $0xe4] sm:$0xff] }
  0xf2   : >> { %11207 = vst [vmem:[#allocation50_spill] sm:$0xff] %v8070_v16  ;;  %11208 = vst [vmem:[#allocation51_spill] sm:$0xff] %v8073_v31  ;;  %v1535_v3 = vadd.f32 %v1519_v5, %v1481_v22  ;;  %v1536_v44 = vadd.f32 %v1520_v26, %v1482_v0  ;;  %v1537_v18 = vadd.f32 %v1521_v50, %v1483_v37  ;;  %v11214_v52 = vld [vmem:[#allocation4_spill] sm:$0xff]  ;;  %v5668_v5 = vld [vmem:[%s10535_s1 + $0x17] ss:$0 sm:$0xff] }
  0xf3   : >> { %11209 = vst [vmem:[#allocation52_spill] sm:$0xff] %v8076_v10  ;;  %11210 = vst [vmem:[#allocation53_spill] sm:$0xff] %v8079_v38  ;;  %v1560_v49 = vmul.f32 %v5651_v21, %v5635_v19  ;;  %v1561_v12 = vmul.f32 %v5651_v21, %v5636_v20  ;;  %v1562_v23 = vmul.f32 %v5651_v21, %v8055_v36  ;;  %v11215_v26 = vld [vmem:[#allocation5_spill] sm:$0xff] }
  0xf4   : >> { %11211 = vst [vmem:[#allocation54_spill] sm:$0xff] %v8082_v57  ;;  %11212 = vst [vmem:[#allocation55_spill] sm:$0xff] %v8085_v42  ;;  %v1563_v25 = vmul.f32 %v5651_v21, %v8058_v59  ;;  %v1564_v22 = vmul.f32 %v5651_v21, %v8061_v34  ;;  %v1565_v50 = vmul.f32 %v5651_v21, %v8064_v62  ;;  %v5653_v34 = vld [vmem:[%s7044_s5 + $0x3d] sm:$0xff]  ;;  %v8110_v59 = vld [vmem:[%s7044_s5 + $0x4d] sm:$0xff] }
  0xf5   : >> { %11213 = vst [vmem:[#allocation56_spill] sm:$0xff] %v8088_v28  ;;  %v1566_v0 = vmul.f32 %v5651_v21, %v8067_v2  ;;  %v1567_v37 = vmul.f32 %v5651_v21, %v8070_v16  ;;  %v1568_v33 = vmul.f32 %v5651_v21, %v8073_v31  ;;  %v1569_v4 = vmul.f32 %v5651_v21, %v8076_v10 }
  0xf6   : >> { %v1570_v20 = vmul.f32 %v5651_v21, %v8079_v38  ;;  %v1571_v7 = vmul.f32 %v5651_v21, %v8082_v57  ;;  %v1572_v55 = vmul.f32 %v5651_v21, %v11214_v52  ;;  %v1573_v19 = vmul.f32 %v5651_v21, %v11215_v26  ;;  %v5652_v52 = vld [vmem:[%s7044_s5 + $0x35] sm:$0xff]  ;;  %11216 = vst [vmem:[#allocation57_spill] sm:$0xff] %v8110_v59 }
  0xf7   : >> { %v1574_v16 = vmul.f32 %v5651_v21, %v8085_v42  ;;  %v1575_v31 = vmul.f32 %v5651_v21, %v8088_v28  ;;  %v1576_v10 = vadd.f32 %v1560_v49, %v1522_v30  ;;  %v1577_v2 = vadd.f32 %v1561_v12, %v1523_v58  ;;  %v8113_v21 = vld [vmem:[%s7044_s5 + $0x55] sm:$0xff]  ;;  %v8116_v58 = vld [vmem:[%s7044_s5 + $0x65] sm:$0xff]  ;;  %v8122_v12 = vld [vmem:[%s7044_s5 + $0x7d] sm:$0xff] }
  0xf8   : >> { %v1578_v38 = vadd.f32 %v1562_v23, %v1524_v48  ;;  %v1579_v62 = vadd.f32 %v1563_v25, %v1525_v8  ;;  %v1580_v57 = vadd.f32 %v1564_v22, %v1526_v43  ;;  %v1581_v36 = vadd.f32 %v1565_v50, %v1527_v46  ;;  %11217 = vst [vmem:[#allocation58_spill] sm:$0xff] %v8113_v21  ;;  %v8119_v8 = vld [vmem:[%s7044_s5 + $0x6d] sm:$0xff]  ;;  %v8125_v46 = vld [vmem:[%s7044_s5 + $0x85] sm:$0xff]  ;;  %v8131_v25 = vld [vmem:[%s7044_s5 + $0x9d] sm:$0xff] }
  0xf9   : >> { %v1582_v26 = vadd.f32 %v1566_v0, %v1528_v9  ;;  %v1583_v45 = vadd.f32 %v1567_v37, %v1529_v63  ;;  %v1584_v42 = vadd.f32 %v1568_v33, %v1530_v27  ;;  %11218 = vst [vmem:[#allocation59_spill] sm:$0xff] %v8116_v58  ;;  %11219 = vst [vmem:[#allocation60_spill] sm:$0xff] %v8119_v8  ;;  %v8128_v63 = vld [vmem:[%s7044_s5 + $0x95] sm:$0xff]  ;;  %v8134_v22 = vld [vmem:[%s7044_s5 + $0xad] sm:$0xff] }
  0xfa   : >> { %v1585_v30 = vadd.f32 %v1569_v4, %v1531_v11  ;;  %v1586_v48 = vadd.f32 %v1570_v20, %v1532_v61  ;;  %v1587_v43 = vadd.f32 %v1571_v7, %v1533_v54  ;;  %v1588_v49 = vadd.f32 %v1572_v55, %v1534_v32  ;;  %11220 = vst [vmem:[#allocation61_spill] sm:$0xff] %v8122_v12  ;;  %v8137_v50 = vld [vmem:[%s7044_s5 + $0xb5] sm:$0xff]  ;;  %v8140_v11 = vld [vmem:[%s7044_s5 + $0xdd] sm:$0xff]  ;;  %v8143_v61 = vld [vmem:[%s7044_s5 + $0xe5] sm:$0xff] }
  0xfb   : >> { %11221 = vst [vmem:[#allocation62_spill] sm:$0xff] %v8125_v46  ;;  %11222 = vst [vmem:[#allocation63_spill] sm:$0xff] %v8128_v63  ;;  %v1589_v27 = vadd.f32 %v1573_v19, %v1535_v3  ;;  %v1590_v9 = vadd.f32 %v1574_v16, %v1536_v44  ;;  %v1591_v23 = vadd.f32 %v1575_v31, %v1537_v18  ;;  %v11228_v20 = vld [vmem:[#allocation6_spill] sm:$0xff]  ;;  %v11229_v19 = vld [vmem:[#allocation7_spill] sm:$0xff] }
  0xfc   : >> { %11223 = vst [vmem:[#allocation64_spill] sm:$0xff] %v8131_v25  ;;  %11224 = vst [vmem:[#allocation65_spill] sm:$0xff] %v8134_v22  ;;  %v1614_v0 = vmul.f32 %v5668_v5, %v5652_v52  ;;  %v1615_v54 = vmul.f32 %v5668_v5, %v5653_v34  ;;  %v1616_v32 = vmul.f32 %v5668_v5, %v8110_v59  ;;  %v5685_v55 = vld [vmem:[%s10535_s1 + $0x18] ss:$0 sm:$0xff] }
  0xfd   : >> { %11225 = vst [vmem:[#allocation66_spill] sm:$0xff] %v8137_v50  ;;  %11226 = vst [vmem:[#allocation67_spill] sm:$0xff] %v8140_v11  ;;  %v1617_v37 = vmul.f32 %v5668_v5, %v8113_v21  ;;  %v1618_v3 = vmul.f32 %v5668_v5, %v8116_v58  ;;  %v1619_v16 = vmul.f32 %v5668_v5, %v8119_v8  ;;  %v5670_v58 = vld [vmem:[%s7044_s5 + $0x3e] sm:$0xff]  ;;  %v8165_v21 = vld [vmem:[%s7044_s5 + $0x4e] sm:$0xff] }
  0xfe   : >> { %11227 = vst [vmem:[#allocation68_spill] sm:$0xff] %v8143_v61  ;;  %v1620_v31 = vmul.f32 %v5668_v5, %v8122_v12  ;;  %v1621_v44 = vmul.f32 %v5668_v5, %v8125_v46  ;;  %v1622_v18 = vmul.f32 %v5668_v5, %v8128_v63  ;;  %v1623_v33 = vmul.f32 %v5668_v5, %v8131_v25 }
  0xff   : >> { %v1624_v34 = vmul.f32 %v5668_v5, %v8134_v22  ;;  %v1625_v4 = vmul.f32 %v5668_v5, %v8137_v50  ;;  %v1626_v7 = vmul.f32 %v5668_v5, %v11228_v20  ;;  %v1627_v52 = vmul.f32 %v5668_v5, %v11229_v19  ;;  %v5669_v20 = vld [vmem:[%s7044_s5 + $0x36] sm:$0xff]  ;;  %11230 = vst [vmem:[#allocation69_spill] sm:$0xff] %v8165_v21 }
 0x100   : >> { %v1628_v46 = vmul.f32 %v5668_v5, %v8140_v11  ;;  %v1629_v63 = vmul.f32 %v5668_v5, %v8143_v61  ;;  %v1630_v25 = vadd.f32 %v1614_v0, %v1576_v10  ;;  %v1631_v12 = vadd.f32 %v1615_v54, %v1577_v2  ;;  %v8168_v5 = vld [vmem:[%s7044_s5 + $0x56] sm:$0xff]  ;;  %v8171_v2 = vld [vmem:[%s7044_s5 + $0x66] sm:$0xff]  ;;  %v8177_v54 = vld [vmem:[%s7044_s5 + $0x7e] sm:$0xff] }
 0x101   : >> { %v1632_v22 = vadd.f32 %v1616_v32, %v1578_v38  ;;  %v1633_v8 = vadd.f32 %v1617_v37, %v1579_v62  ;;  %v1634_v50 = vadd.f32 %v1618_v3, %v1580_v57  ;;  %v1635_v59 = vadd.f32 %v1619_v16, %v1581_v36  ;;  %11231 = vst [vmem:[#allocation70_spill] sm:$0xff] %v8168_v5  ;;  %v8174_v62 = vld [vmem:[%s7044_s5 + $0x6e] sm:$0xff]  ;;  %v8180_v36 = vld [vmem:[%s7044_s5 + $0x86] sm:$0xff]  ;;  %v8186_v37 = vld [vmem:[%s7044_s5 + $0x9e] sm:$0xff] }
 0x102   : >> { %v1636_v19 = vadd.f32 %v1620_v31, %v1582_v26  ;;  %v1637_v28 = vadd.f32 %v1621_v44, %v1583_v45  ;;  %v1638_v11 = vadd.f32 %v1622_v18, %v1584_v42  ;;  %11232 = vst [vmem:[#allocation71_spill] sm:$0xff] %v8171_v2  ;;  %11233 = vst [vmem:[#allocation72_spill] sm:$0xff] %v8174_v62  ;;  %v8183_v45 = vld [vmem:[%s7044_s5 + $0x96] sm:$0xff]  ;;  %v8189_v3 = vld [vmem:[%s7044_s5 + $0xae] sm:$0xff] }
 0x103   : >> { %v1639_v10 = vadd.f32 %v1623_v33, %v1585_v30  ;;  %v1640_v38 = vadd.f32 %v1624_v34, %v1586_v48  ;;  %v1641_v57 = vadd.f32 %v1625_v4, %v1587_v43  ;;  %v1642_v0 = vadd.f32 %v1626_v7, %v1588_v49  ;;  %11234 = vst [vmem:[#allocation73_spill] sm:$0xff] %v8177_v54  ;;  %v8192_v16 = vld [vmem:[%s7044_s5 + $0xb6] sm:$0xff]  ;;  %v8195_v30 = vld [vmem:[%s7044_s5 + $0xde] sm:$0xff]  ;;  %v8198_v48 = vld [vmem:[%s7044_s5 + $0xe6] sm:$0xff] }
 0x104   : >> { %11235 = vst [vmem:[#allocation74_spill] sm:$0xff] %v8180_v36  ;;  %11236 = vst [vmem:[#allocation75_spill] sm:$0xff] %v8183_v45  ;;  %v1643_v42 = vadd.f32 %v1627_v52, %v1589_v27  ;;  %v1644_v26 = vadd.f32 %v1628_v46, %v1590_v9  ;;  %v1645_v32 = vadd.f32 %v1629_v63, %v1591_v23  ;;  %v11241_v34 = vld [vmem:[#allocation8_spill] sm:$0xff]  ;;  %v5702_v7 = vld [vmem:[%s10535_s1 + $0x19] ss:$0 sm:$0xff] }
 0x105   : >> { %11237 = vst [vmem:[#allocation76_spill] sm:$0xff] %v8186_v37  ;;  %11238 = vst [vmem:[#allocation77_spill] sm:$0xff] %v8189_v3  ;;  %v1668_v31 = vmul.f32 %v5685_v55, %v5669_v20  ;;  %v1669_v43 = vmul.f32 %v5685_v55, %v5670_v58  ;;  %v1670_v49 = vmul.f32 %v5685_v55, %v8165_v21  ;;  %v11242_v52 = vld [vmem:[#allocation9_spill] sm:$0xff] }
 0x106   : >> { %11239 = vst [vmem:[#allocation78_spill] sm:$0xff] %v8192_v16  ;;  %11240 = vst [vmem:[#allocation79_spill] sm:$0xff] %v8195_v30  ;;  %v1671_v44 = vmul.f32 %v5685_v55, %v8168_v5  ;;  %v1672_v27 = vmul.f32 %v5685_v55, %v8171_v2  ;;  %v1673_v46 = vmul.f32 %v5685_v55, %v8174_v62  ;;  %v5687_v2 = vld [vmem:[%s7044_s5 + $0x3f] sm:$0xff]  ;;  %v8220_v5 = vld [vmem:[%s7044_s5 + $0x4f] sm:$0xff] }
 0x107   : >> { %v1674_v63 = vmul.f32 %v5685_v55, %v8177_v54  ;;  %v1675_v9 = vmul.f32 %v5685_v55, %v8180_v36  ;;  %v1676_v23 = vmul.f32 %v5685_v55, %v8183_v45  ;;  %v1677_v18 = vmul.f32 %v5685_v55, %v8186_v37 }
 0x108   : >> { %v1678_v58 = vmul.f32 %v5685_v55, %v8189_v3  ;;  %v1679_v33 = vmul.f32 %v5685_v55, %v8192_v16  ;;  %v1680_v4 = vmul.f32 %v5685_v55, %v11241_v34  ;;  %v1681_v20 = vmul.f32 %v5685_v55, %v11242_v52  ;;  %v5686_v34 = vld [vmem:[%s7044_s5 + $0x37] sm:$0xff] }
 0x109   : >> { %v1682_v36 = vmul.f32 %v5685_v55, %v8195_v30  ;;  %v1683_v45 = vmul.f32 %v5685_v55, %v8198_v48  ;;  %v1684_v37 = vadd.f32 %v1668_v31, %v1630_v25  ;;  %v1685_v54 = vadd.f32 %v1669_v43, %v1631_v12  ;;  %v8223_v55 = vld [vmem:[%s7044_s5 + $0x57] sm:$0xff]  ;;  %v8226_v12 = vld [vmem:[%s7044_s5 + $0x67] sm:$0xff]  ;;  %v8232_v43 = vld [vmem:[%s7044_s5 + $0x7f] sm:$0xff] }
 0x10a   : >> { %v1686_v3 = vadd.f32 %v1670_v49, %v1632_v22  ;;  %v1687_v62 = vadd.f32 %v1671_v44, %v1633_v8  ;;  %v1688_v16 = vadd.f32 %v1672_v27, %v1634_v50  ;;  %v1689_v21 = vadd.f32 %v1673_v46, %v1635_v59  ;;  %11243 = vst [vmem:[#allocation80_spill] sm:$0xff] %v8223_v55  ;;  %v8229_v8 = vld [vmem:[%s7044_s5 + $0x6f] sm:$0xff]  ;;  %v8235_v59 = vld [vmem:[%s7044_s5 + $0x87] sm:$0xff]  ;;  %v8241_v44 = vld [vmem:[%s7044_s5 + $0x9f] sm:$0xff] }
 0x10b   : >> { %v1690_v52 = vadd.f32 %v1674_v63, %v1636_v19  ;;  %v1691_v61 = vadd.f32 %v1675_v9, %v1637_v28  ;;  %v1692_v30 = vadd.f32 %v1676_v23, %v1638_v11  ;;  %11244 = vst [vmem:[#allocation81_spill] sm:$0xff] %v8226_v12  ;;  %11245 = vst [vmem:[#allocation82_spill] sm:$0xff] %v8229_v8  ;;  %v8238_v28 = vld [vmem:[%s7044_s5 + $0x97] sm:$0xff]  ;;  %v8244_v27 = vld [vmem:[%s7044_s5 + $0xaf] sm:$0xff] }
 0x10c   : >> { %v1693_v25 = vadd.f32 %v1677_v18, %v1639_v10  ;;  %v1694_v22 = vadd.f32 %v1678_v58, %v1640_v38  ;;  %v1695_v50 = vadd.f32 %v1679_v33, %v1641_v57  ;;  %v1696_v31 = vadd.f32 %v1680_v4, %v1642_v0  ;;  %11246 = vst [vmem:[#allocation83_spill] sm:$0xff] %v8232_v43  ;;  %v8247_v46 = vld [vmem:[%s7044_s5 + $0xb7] sm:$0xff]  ;;  %v8250_v10 = vld [vmem:[%s7044_s5 + $0xdf] sm:$0xff]  ;;  %v8253_v38 = vld [vmem:[%s7044_s5 + $0xe7] sm:$0xff] }
 0x10d   : >> { %11247 = vst [vmem:[#allocation84_spill] sm:$0xff] %v8235_v59  ;;  %11248 = vst [vmem:[#allocation85_spill] sm:$0xff] %v8238_v28  ;;  %v1697_v11 = vadd.f32 %v1681_v20, %v1643_v42  ;;  %v1698_v19 = vadd.f32 %v1682_v36, %v1644_v26  ;;  %v1699_v49 = vadd.f32 %v1683_v45, %v1645_v32 }
 0x10e   : >> { %11249 = vst [vmem:[#allocation86_spill] sm:$0xff] %v8241_v44  ;;  %11250 = vst [vmem:[#allocation87_spill] sm:$0xff] %v8244_v27  ;;  %v1722_v63 = vmul.f32 %v5702_v7, %v5686_v34  ;;  %v1723_v57 = vmul.f32 %v5702_v7, %v5687_v2  ;;  %v1724_v0 = vmul.f32 %v5702_v7, %v8220_v5 }
 0x10f   : >> { %11251 = vst [vmem:[#allocation88_spill] sm:$0xff] %v8247_v46  ;;  %11252 = vst [vmem:[#allocation89_spill] sm:$0xff] %v8250_v10  ;;  %v1725_v9 = vmul.f32 %v5702_v7, %v8223_v55  ;;  %v1726_v42 = vmul.f32 %v5702_v7, %v8226_v12  ;;  %v1727_v36 = vmul.f32 %v5702_v7, %v8229_v8  ;;  %v5703_v8 = vld [vmem:[%s7044_s5 + $0x40] sm:$0xff]  ;;  %v8277_v55 = vld [vmem:[%s7044_s5 + $0x70] sm:$0xff] }
 0x110   : >> { %11253 = vst [vmem:[#allocation90_spill] sm:$0xff] %v8253_v38  ;;  %v1728_v45 = vmul.f32 %v5702_v7, %v8232_v43  ;;  %v1729_v26 = vmul.f32 %v5702_v7, %v8235_v59  ;;  %v1730_v32 = vmul.f32 %v5702_v7, %v8238_v28  ;;  %v1731_v23 = vmul.f32 %v5702_v7, %v8241_v44  ;;  %v5711_v44 = vld [vmem:[%s10535_s1 + $0x1a] ss:$0 sm:$0xff] }
 0x111   : >> { %v1732_v18 = vmul.f32 %v5702_v7, %v8244_v27  ;;  %v1733_v2 = vmul.f32 %v5702_v7, %v8247_v46  ;;  %v1734_v58 = vmul.f32 %v5702_v7, %v7784_v39  ;;  %v1735_v33 = vmul.f32 %v5702_v7, %v7787_v40 }
 0x112   : >> { %v1736_v4 = vmul.f32 %v5702_v7, %v8250_v10  ;;  %v1737_v20 = vmul.f32 %v5702_v7, %v8253_v38  ;;  %v1738_v34 = vadd.f32 %v1722_v63, %v1684_v37  ;;  %v1739_v27 = vadd.f32 %v1723_v57, %v1685_v54  ;;  %v8274_v7 = vld [vmem:[%s7044_s5 + $0x58] sm:$0xff]  ;;  %v8280_v54 = vld [vmem:[%s7044_s5 + $0x88] sm:$0xff] }
 0x113   : >> { %v1740_v28 = vadd.f32 %v1724_v0, %v1686_v3  ;;  %v1741_v59 = vadd.f32 %v1725_v9, %v1687_v62  ;;  %v1742_v46 = vadd.f32 %v1726_v42, %v1688_v16  ;;  %v1743_v43 = vadd.f32 %v1727_v36, %v1689_v21  ;;  %v8283_v21 = vld [vmem:[%s7044_s5 + $0xa0] sm:$0xff]  ;;  %v6815_v9 = vld [vmem:[%s7044_s5 + $0xc8] sm:$0xff] }
 0x114   : >> { %v1744_v39 = vadd.f32 %v1728_v45, %v1690_v52  ;;  %v1745_v40 = vadd.f32 %v1729_v26, %v1691_v61  ;;  %v1746_v10 = vadd.f32 %v1730_v32, %v1692_v30  ;;  %v1747_v37 = vadd.f32 %v1731_v23, %v1693_v25  ;;  %11254 = vst [vmem:[#allocation91_spill] sm:$0xff] %v8283_v21  ;;  %v8286_v61 = vld [vmem:[%s7044_s5 + $0xb8] sm:$0xff]  ;;  %v8290_v52 = vld [vmem:[%s7044_s5 + $0xe8] sm:$0xff] }
 0x115   : >> { %v1748_v63 = vadd.f32 %v1732_v18, %v1694_v22  ;;  %v1749_v38 = vadd.f32 %v1733_v2, %v1695_v50  ;;  %v1750_v12 = vadd.f32 %v1734_v58, %v1696_v31  ;;  %v1751_v62 = vadd.f32 %v1735_v33, %v1697_v11  ;;  %11255 = vst [vmem:[#allocation92_spill] sm:$0xff] %v8286_v61  ;;  %v5739_v33 = vld [vmem:[%s10535_s1 + $0x1b] ss:$0 sm:$0xff] }
 0x116   : >> { %v1752_v3 = vadd.f32 %v1736_v4, %v1698_v19  ;;  %v1753_v16 = vadd.f32 %v1737_v20, %v1699_v49  ;;  %v1768_v30 = vmul.f32 %v5711_v44, %v7831_v35  ;;  %v1769_v25 = vmul.f32 %v5711_v44, %v5703_v8 }
 0x117   : >> { %v1770_v22 = vmul.f32 %v5711_v44, %v7837_v13  ;;  %v1771_v50 = vmul.f32 %v5711_v44, %v8274_v7  ;;  %v1772_v31 = vmul.f32 %v5711_v44, %v7843_v29  ;;  %v1773_v11 = vmul.f32 %v5711_v44, %v8277_v55 }
 0x118   : >> { %v1774_v19 = vmul.f32 %v5711_v44, %v7849_v24  ;;  %v1775_v49 = vmul.f32 %v5711_v44, %v8280_v54  ;;  %v1776_v57 = vmul.f32 %v5711_v44, %v7855_v41  ;;  %v1777_v0 = vmul.f32 %v5711_v44, %v8283_v21 }
 0x119   : >> { %v1778_v35 = vmul.f32 %v5711_v44, %v7861_v56  ;;  %v1779_v8 = vmul.f32 %v5711_v44, %v8286_v61  ;;  %v1780_v42 = vmul.f32 %v6815_v9, %v5711_v44  ;;  %v1781_v36 = vmul.f32 %v5711_v44, %v7809_v53 }
 0x11a   : >> { %v1782_v45 = vmul.f32 %v5711_v44, %v7867_v51  ;;  %v1783_v26 = vmul.f32 %v5711_v44, %v8290_v52  ;;  %v1784_v32 = vadd.f32 %v1768_v30, %v1738_v34  ;;  %v1785_v23 = vadd.f32 %v1769_v25, %v1739_v27  ;;  %v8310_v25 = vld [vmem:[%s7044_s5 + $0xc0] sm:$0xff] }
 0x11b   : >> { %v1786_v18 = vadd.f32 %v1770_v22, %v1740_v28  ;;  %v1787_v2 = vadd.f32 %v1771_v50, %v1741_v59  ;;  %v1788_v58 = vadd.f32 %v1772_v31, %v1742_v46  ;;  %v1789_v4 = vadd.f32 %v1773_v11, %v1743_v43  ;;  %v8313_v59 = vld [vmem:[%s7044_s5 + $0xc8] sm:$0xff]  ;;  %v8317_v22 = vld [vmem:[%s7044_s5 + $0xf0] sm:$0xff]  ;;  %v8320_v50 = vld [vmem:[%s7044_s5 + $0xf8] sm:$0xff] }
 0x11c   : >> { %v1790_v20 = vadd.f32 %v1774_v19, %v1744_v39  ;;  %v1791_v53 = vadd.f32 %v1775_v49, %v1745_v40  ;;  %v1792_v9 = vadd.f32 %v1776_v57, %v1746_v10  ;;  %v1793_v61 = vadd.f32 %v1777_v0, %v1747_v37  ;;  %v11256_v40 = vld [vmem:[#allocation10_spill] sm:$0xff]  ;;  %v11258_v31 = vld [vmem:[#allocation12_spill] sm:$0xff] }
 0x11d   : >> { %v1794_v21 = vadd.f32 %v1778_v35, %v1748_v63  ;;  %v1795_v44 = vadd.f32 %v1779_v8, %v1749_v38  ;;  %v1796_v34 = vadd.f32 %v1780_v42, %v1750_v12  ;;  %v1797_v27 = vadd.f32 %v1781_v36, %v1751_v62  ;;  %v11257_v62 = vld [vmem:[#allocation11_spill] sm:$0xff] }
 0x11e   : >> { %v1798_v30 = vadd.f32 %v1782_v45, %v1752_v3  ;;  %v1799_v28 = vadd.f32 %v1783_v26, %v1753_v16  ;;  %v1835_v46 = vmul.f32 %v5739_v33, %v7834_v47  ;;  %v1836_v43 = vmul.f32 %v5739_v33, %v7837_v13 }
 0x11f   : >> { %v1837_v10 = vmul.f32 %v5739_v33, %v7840_v14  ;;  %v1838_v38 = vmul.f32 %v5739_v33, %v7843_v29  ;;  %v1839_v12 = vmul.f32 %v5739_v33, %v7846_v60  ;;  %v1840_v39 = vmul.f32 %v5739_v33, %v7849_v24 }
 0x120   : >> { %v1841_v37 = vmul.f32 %v5739_v33, %v11256_v40  ;;  %v1842_v63 = vmul.f32 %v5739_v33, %v7855_v41  ;;  %v1843_v47 = vmul.f32 %v5739_v33, %v11257_v62  ;;  %v1844_v3 = vmul.f32 %v5739_v33, %v7861_v56  ;;  %v5756_v41 = vld [vmem:[%s10535_s1 + $0x1c] ss:$0 sm:$0xff]  ;;  %v8341_v40 = vld [vmem:[%s7044_s5 + $0xc1] sm:$0xff] }
 0x121   : >> { %v1845_v16 = vmul.f32 %v5739_v33, %v8310_v25  ;;  %v1846_v13 = vmul.f32 %v5739_v33, %v8313_v59  ;;  %v1847_v14 = vmul.f32 %v5739_v33, %v11258_v31  ;;  %v1848_v29 = vmul.f32 %v5739_v33, %v7867_v51 }
 0x122   : >> { %v1849_v60 = vmul.f32 %v5739_v33, %v8317_v22  ;;  %v1850_v24 = vmul.f32 %v5739_v33, %v8320_v50  ;;  %v1851_v11 = vadd.f32 %v1835_v46, %v1784_v32  ;;  %v1852_v19 = vadd.f32 %v1836_v43, %v1785_v23  ;;  %v8344_v23 = vld [vmem:[%s7044_s5 + $0xc9] sm:$0xff] }
 0x123   : >> { %v1853_v56 = vadd.f32 %v1837_v10, %v1786_v18  ;;  %v1854_v49 = vadd.f32 %v1838_v38, %v1787_v2  ;;  %v1855_v57 = vadd.f32 %v1839_v12, %v1788_v58  ;;  %v1856_v0 = vadd.f32 %v1840_v39, %v1789_v4  ;;  %v8348_v2 = vld [vmem:[%s7044_s5 + $0xf1] sm:$0xff]  ;;  %v8351_v58 = vld [vmem:[%s7044_s5 + $0xf9] sm:$0xff]  ;;  %v11266_v12 = vld [vmem:[#allocation20_spill] sm:$0xff] }
 0x124   : >> { %v1857_v35 = vadd.f32 %v1841_v37, %v1790_v20  ;;  %v1858_v51 = vadd.f32 %v1842_v63, %v1791_v53  ;;  %v1859_v8 = vadd.f32 %v1843_v47, %v1792_v9  ;;  %v1860_v42 = vadd.f32 %v1844_v3, %v1793_v61  ;;  %v11259_v4 = vld [vmem:[#allocation13_spill] sm:$0xff]  ;;  %v11260_v53 = vld [vmem:[#allocation14_spill] sm:$0xff]  ;;  %v11265_v10 = vld [vmem:[#allocation19_spill] sm:$0xff] }
 0x125   : >> { %v1861_v36 = vadd.f32 %v1845_v16, %v1794_v21  ;;  %v1862_v45 = vadd.f32 %v1846_v13, %v1795_v44  ;;  %v1863_v26 = vadd.f32 %v1847_v14, %v1796_v34  ;;  %v1864_v32 = vadd.f32 %v1848_v29, %v1797_v27  ;;  %v11261_v21 = vld [vmem:[#allocation15_spill] sm:$0xff]  ;;  %v11262_v44 = vld [vmem:[#allocation16_spill] sm:$0xff]  ;;  %v11263_v27 = vld [vmem:[#allocation17_spill] sm:$0xff] }
 0x126   : >> { %v1865_v33 = vadd.f32 %v1849_v60, %v1798_v30  ;;  %v1866_v46 = vadd.f32 %v1850_v24, %v1799_v28  ;;  %v1889_v18 = vmul.f32 %v5756_v41, %v7890_v15  ;;  %v1890_v20 = vmul.f32 %v5756_v41, %v11259_v4  ;;  %v11264_v28 = vld [vmem:[#allocation18_spill] sm:$0xff]  ;;  %v11267_v39 = vld [vmem:[#allocation21_spill] sm:$0xff] }
 0x127   : >> { %v1891_v61 = vmul.f32 %v5756_v41, %v11260_v53  ;;  %v1892_v9 = vmul.f32 %v5756_v41, %v11261_v21  ;;  %v1893_v34 = vmul.f32 %v5756_v41, %v11262_v44  ;;  %v1894_v30 = vmul.f32 %v5756_v41, %v11263_v27  ;;  %v11268_v47 = vld [vmem:[#allocation22_spill] sm:$0xff] }
 0x128   : >> { %v1895_v43 = vmul.f32 %v5756_v41, %v11264_v28  ;;  %v1896_v38 = vmul.f32 %v5756_v41, %v11265_v10  ;;  %v1897_v15 = vmul.f32 %v5756_v41, %v11266_v12  ;;  %v1898_v37 = vmul.f32 %v5756_v41, %v11267_v39  ;;  %v5773_v29 = vld [vmem:[%s10535_s1 + $0x1d] ss:$0 sm:$0xff] }
 0x129   : >> { %v1899_v63 = vmul.f32 %v5756_v41, %v8341_v40  ;;  %v1900_v62 = vmul.f32 %v5756_v41, %v8344_v23  ;;  %v1901_v3 = vmul.f32 %v5756_v41, %v11268_v47  ;;  %v1902_v16 = vmul.f32 %v5756_v41, %v7923_v6  ;;  %v8372_v47 = vld [vmem:[%s7044_s5 + $0xc2] sm:$0xff] }
 0x12a   : >> { %v1903_v13 = vmul.f32 %v5756_v41, %v8348_v2  ;;  %v1904_v31 = vmul.f32 %v5756_v41, %v8351_v58  ;;  %v1905_v14 = vadd.f32 %v1889_v18, %v1851_v11  ;;  %v1906_v60 = vadd.f32 %v1890_v20, %v1852_v19  ;;  %v8375_v19 = vld [vmem:[%s7044_s5 + $0xca] sm:$0xff] }
 0x12b   : >> { %v1907_v24 = vadd.f32 %v1891_v61, %v1853_v56  ;;  %v1908_v4 = vadd.f32 %v1892_v9, %v1854_v49  ;;  %v1909_v53 = vadd.f32 %v1893_v34, %v1855_v57  ;;  %v1910_v21 = vadd.f32 %v1894_v30, %v1856_v0  ;;  %v8379_v49 = vld [vmem:[%s7044_s5 + $0xf2] sm:$0xff]  ;;  %v8382_v57 = vld [vmem:[%s7044_s5 + $0xfa] sm:$0xff] }
 0x12c   : >> { %v1911_v44 = vadd.f32 %v1895_v43, %v1857_v35  ;;  %v1912_v6 = vadd.f32 %v1896_v38, %v1858_v51  ;;  %v1913_v27 = vadd.f32 %v1897_v15, %v1859_v8  ;;  %v1914_v28 = vadd.f32 %v1898_v37, %v1860_v42  ;;  %11269 = vst [vmem:[#allocation93_spill] sm:$0xff] %v8379_v49  ;;  %v11271_v0 = vld [vmem:[#allocation23_spill] sm:$0xff]  ;;  %v11272_v51 = vld [vmem:[#allocation24_spill] sm:$0xff]  ;;  %v11273_v42 = vld [vmem:[#allocation25_spill] sm:$0xff] }
 0x12d   : >> { %v1915_v10 = vadd.f32 %v1899_v63, %v1861_v36  ;;  %v1916_v41 = vadd.f32 %v1900_v62, %v1862_v45  ;;  %v1917_v11 = vadd.f32 %v1901_v3, %v1863_v26  ;;  %v1918_v18 = vadd.f32 %v1902_v16, %v1864_v32  ;;  %11270 = vst [vmem:[#allocation94_spill] sm:$0xff] %v8382_v57  ;;  %v11274_v45 = vld [vmem:[#allocation26_spill] sm:$0xff]  ;;  %v11275_v32 = vld [vmem:[#allocation27_spill] sm:$0xff]  ;;  %v11277_v61 = vld [vmem:[#allocation29_spill] sm:$0xff] }
 0x12e   : >> { %v1919_v12 = vadd.f32 %v1903_v13, %v1865_v33  ;;  %v1920_v39 = vadd.f32 %v1904_v31, %v1866_v46  ;;  %v1943_v56 = vmul.f32 %v5773_v29, %v7945_v1  ;;  %v1944_v35 = vmul.f32 %v5773_v29, %v11271_v0  ;;  %v11276_v46 = vld [vmem:[#allocation28_spill] sm:$0xff]  ;;  %v11278_v34 = vld [vmem:[#allocation30_spill] sm:$0xff]  ;;  %v11279_v30 = vld [vmem:[#allocation31_spill] sm:$0xff] }
 0x12f   : >> { %v1945_v8 = vmul.f32 %v5773_v29, %v11272_v51  ;;  %v1946_v36 = vmul.f32 %v5773_v29, %v11273_v42  ;;  %v1947_v26 = vmul.f32 %v5773_v29, %v11274_v45  ;;  %v1948_v33 = vmul.f32 %v5773_v29, %v11275_v32  ;;  %v11280_v37 = vld [vmem:[#allocation32_spill] sm:$0xff]  ;;  %v5790_v31 = vld [vmem:[%s10535_s1 + $0x1e] ss:$0 sm:$0xff] }
 0x130   : >> { %v1949_v20 = vmul.f32 %v5773_v29, %v11276_v46  ;;  %v1950_v9 = vmul.f32 %v5773_v29, %v11277_v61  ;;  %v1951_v1 = vmul.f32 %v5773_v29, %v11278_v34  ;;  %v1952_v43 = vmul.f32 %v5773_v29, %v11279_v30 }
 0x131   : >> { %v1953_v38 = vmul.f32 %v5773_v29, %v8372_v47  ;;  %v1954_v15 = vmul.f32 %v5773_v29, %v8375_v19  ;;  %v1955_v63 = vmul.f32 %v5773_v29, %v11280_v37  ;;  %v1956_v62 = vmul.f32 %v5773_v29, %v7978_v17 }
 0x132   : >> { %v1957_v3 = vmul.f32 %v5773_v29, %v8379_v49  ;;  %v1958_v16 = vmul.f32 %v5773_v29, %v8382_v57  ;;  %v1959_v13 = vadd.f32 %v1943_v56, %v1905_v14  ;;  %v1960_v0 = vadd.f32 %v1944_v35, %v1906_v60  ;;  %v8403_v49 = vld [vmem:[%s7044_s5 + $0xc3] sm:$0xff]  ;;  %v8406_v60 = vld [vmem:[%s7044_s5 + $0xcb] sm:$0xff]  ;;  %v8410_v35 = vld [vmem:[%s7044_s5 + $0xf3] sm:$0xff] }
 0x133   : >> { %v1961_v51 = vadd.f32 %v1945_v8, %v1907_v24  ;;  %v1962_v42 = vadd.f32 %v1946_v36, %v1908_v4  ;;  %v1963_v45 = vadd.f32 %v1947_v26, %v1909_v53  ;;  %v1964_v32 = vadd.f32 %v1948_v33, %v1910_v21  ;;  %11281 = vst [vmem:[#allocation95_spill] sm:$0xff] %v8403_v49  ;;  %v11283_v24 = vld [vmem:[#allocation33_spill] sm:$0xff]  ;;  %v8413_v53 = vld [vmem:[%s7044_s5 + $0xfb] sm:$0xff]  ;;  %v11292_v36 = vld [vmem:[#allocation40_spill] sm:$0xff] }
 0x134   : >> { %v1965_v46 = vadd.f32 %v1949_v20, %v1911_v44  ;;  %v1966_v17 = vadd.f32 %v1950_v9, %v1912_v6  ;;  %v1967_v61 = vadd.f32 %v1951_v1, %v1913_v27  ;;  %v1968_v34 = vadd.f32 %v1952_v43, %v1914_v28  ;;  %11282 = vst [vmem:[#allocation96_spill] sm:$0xff] %v8406_v60  ;;  %v11286_v21 = vld [vmem:[#allocation34_spill] sm:$0xff]  ;;  %v11287_v6 = vld [vmem:[#allocation35_spill] sm:$0xff]  ;;  %v11288_v28 = vld [vmem:[#allocation36_spill] sm:$0xff] }
 0x135   : >> { %v1969_v30 = vadd.f32 %v1953_v38, %v1915_v10  ;;  %v1970_v29 = vadd.f32 %v1954_v15, %v1916_v41  ;;  %v1971_v14 = vadd.f32 %v1955_v63, %v1917_v11  ;;  %v1972_v56 = vadd.f32 %v1956_v62, %v1918_v18  ;;  %11284 = vst [vmem:[#allocation97_spill] sm:$0xff] %v8410_v35  ;;  %v11289_v41 = vld [vmem:[#allocation37_spill] sm:$0xff]  ;;  %v11290_v18 = vld [vmem:[#allocation38_spill] sm:$0xff]  ;;  %v11295_v15 = vld [vmem:[#allocation43_spill] sm:$0xff] }
 0x136   : >> { %v1973_v37 = vadd.f32 %v1957_v3, %v1919_v12  ;;  %v1974_v57 = vadd.f32 %v1958_v16, %v1920_v39  ;;  %v1997_v4 = vmul.f32 %v5790_v31, %v11283_v24  ;;  %11285 = vst [vmem:[#allocation98_spill] sm:$0xff] %v8413_v53  ;;  %v1998_v44 = vmul.f32 %v5790_v31, %v11286_v21  ;;  %v11291_v39 = vld [vmem:[#allocation39_spill] sm:$0xff]  ;;  %v11293_v33 = vld [vmem:[#allocation41_spill] sm:$0xff]  ;;  %v11294_v9 = vld [vmem:[#allocation42_spill] sm:$0xff] }
 0x137   : >> { %v1999_v27 = vmul.f32 %v5790_v31, %v11287_v6  ;;  %v2000_v10 = vmul.f32 %v5790_v31, %v11288_v28  ;;  %v2001_v11 = vmul.f32 %v5790_v31, %v11289_v41  ;;  %v2002_v12 = vmul.f32 %v5790_v31, %v11290_v18  ;;  %v11296_v62 = vld [vmem:[#allocation44_spill] sm:$0xff]  ;;  %v5807_v6 = vld [vmem:[%s10535_s1 + $0x1f] ss:$0 sm:$0xff] }
 0x138   : >> { %v2003_v8 = vmul.f32 %v5790_v31, %v11291_v39  ;;  %v2004_v26 = vmul.f32 %v5790_v31, %v11292_v36  ;;  %v2005_v20 = vmul.f32 %v5790_v31, %v11293_v33  ;;  %v2006_v1 = vmul.f32 %v5790_v31, %v11294_v9 }
 0x139   : >> { %v2007_v43 = vmul.f32 %v5790_v31, %v8403_v49  ;;  %v2008_v38 = vmul.f32 %v5790_v31, %v8406_v60  ;;  %v2009_v63 = vmul.f32 %v5790_v31, %v11295_v15  ;;  %v2010_v3 = vmul.f32 %v5790_v31, %v11296_v62  ;;  %v8434_v49 = vld [vmem:[%s7044_s5 + $0xc4] sm:$0xff] }
 0x13a   : >> { %v2011_v16 = vmul.f32 %v5790_v31, %v8410_v35  ;;  %v2012_v24 = vmul.f32 %v5790_v31, %v8413_v53  ;;  %v2013_v21 = vadd.f32 %v1997_v4, %v1959_v13  ;;  %v2014_v28 = vadd.f32 %v1998_v44, %v1960_v0  ;;  %11297 = vst [vmem:[#allocation99_spill] sm:$0xff] %v8434_v49  ;;  %v8437_v0 = vld [vmem:[%s7044_s5 + $0xcc] sm:$0xff]  ;;  %v8441_v44 = vld [vmem:[%s7044_s5 + $0xf4] sm:$0xff] }
 0x13b   : >> { %v2015_v41 = vadd.f32 %v1999_v27, %v1961_v51  ;;  %v2016_v18 = vadd.f32 %v2000_v10, %v1962_v42  ;;  %v2017_v39 = vadd.f32 %v2001_v11, %v1963_v45  ;;  %v2018_v36 = vadd.f32 %v2002_v12, %v1964_v32  ;;  %11298 = vst [vmem:[#allocation100_spill] sm:$0xff] %v8437_v0  ;;  %v11299_v51 = vld [vmem:[#allocation45_spill] sm:$0xff]  ;;  %v8444_v45 = vld [vmem:[%s7044_s5 + $0xfc] sm:$0xff]  ;;  %v11308_v10 = vld [vmem:[#allocation52_spill] sm:$0xff] }
 0x13c   : >> { %v2019_v33 = vadd.f32 %v2003_v8, %v1965_v46  ;;  %v2020_v9 = vadd.f32 %v2004_v26, %v1966_v17  ;;  %v2021_v15 = vadd.f32 %v2005_v20, %v1967_v61  ;;  %v2022_v62 = vadd.f32 %v2006_v1, %v1968_v34  ;;  %11300 = vst [vmem:[#allocation101_spill] sm:$0xff] %v8441_v44  ;;  %v11302_v32 = vld [vmem:[#allocation46_spill] sm:$0xff]  ;;  %v11303_v17 = vld [vmem:[#allocation47_spill] sm:$0xff]  ;;  %v11304_v34 = vld [vmem:[#allocation48_spill] sm:$0xff] }
 0x13d   : >> { %v2023_v35 = vadd.f32 %v2007_v43, %v1969_v30  ;;  %v2024_v31 = vadd.f32 %v2008_v38, %v1970_v29  ;;  %v2025_v13 = vadd.f32 %v2009_v63, %v1971_v14  ;;  %v2026_v4 = vadd.f32 %v2010_v3, %v1972_v56  ;;  %11301 = vst [vmem:[#allocation102_spill] sm:$0xff] %v8444_v45  ;;  %v11305_v29 = vld [vmem:[#allocation49_spill] sm:$0xff]  ;;  %v11306_v56 = vld [vmem:[#allocation50_spill] sm:$0xff]  ;;  %v11311_v38 = vld [vmem:[#allocation55_spill] sm:$0xff] }
 0x13e   : >> { %v2027_v53 = vadd.f32 %v2011_v16, %v1973_v37  ;;  %v2028_v60 = vadd.f32 %v2012_v24, %v1974_v57  ;;  %v2051_v42 = vmul.f32 %v5807_v6, %v11299_v51  ;;  %v2052_v46 = vmul.f32 %v5807_v6, %v11302_v32  ;;  %v11307_v37 = vld [vmem:[#allocation51_spill] sm:$0xff]  ;;  %v11309_v12 = vld [vmem:[#allocation53_spill] sm:$0xff]  ;;  %v11310_v26 = vld [vmem:[#allocation54_spill] sm:$0xff] }
 0x13f   : >> { %v2053_v61 = vmul.f32 %v5807_v6, %v11303_v17  ;;  %v2054_v30 = vmul.f32 %v5807_v6, %v11304_v34  ;;  %v2055_v14 = vmul.f32 %v5807_v6, %v11305_v29  ;;  %v2056_v57 = vmul.f32 %v5807_v6, %v11306_v56  ;;  %v11312_v3 = vld [vmem:[#allocation56_spill] sm:$0xff]  ;;  %v5824_v17 = vld [vmem:[%s10535_s1 + $0x20] ss:$0 sm:$0xff] }
 0x140   : >> { %v2057_v27 = vmul.f32 %v5807_v6, %v11307_v37  ;;  %v2058_v11 = vmul.f32 %v5807_v6, %v11308_v10  ;;  %v2059_v8 = vmul.f32 %v5807_v6, %v11309_v12  ;;  %v2060_v20 = vmul.f32 %v5807_v6, %v11310_v26 }
 0x141   : >> { %v2061_v1 = vmul.f32 %v5807_v6, %v8434_v49  ;;  %v2062_v43 = vmul.f32 %v5807_v6, %v8437_v0  ;;  %v2063_v63 = vmul.f32 %v5807_v6, %v11311_v38  ;;  %v2064_v16 = vmul.f32 %v5807_v6, %v11312_v3  ;;  %v8465_v49 = vld [vmem:[%s7044_s5 + $0xc5] sm:$0xff] }
 0x142   : >> { %v2065_v24 = vmul.f32 %v5807_v6, %v8441_v44  ;;  %v2066_v51 = vmul.f32 %v5807_v6, %v8444_v45  ;;  %v2067_v32 = vadd.f32 %v2051_v42, %v2013_v21  ;;  %v2068_v34 = vadd.f32 %v2052_v46, %v2014_v28  ;;  %11313 = vst [vmem:[#allocation103_spill] sm:$0xff] %v8465_v49  ;;  %v8468_v28 = vld [vmem:[%s7044_s5 + $0xcd] sm:$0xff]  ;;  %v8472_v46 = vld [vmem:[%s7044_s5 + $0xf5] sm:$0xff] }
 0x143   : >> { %v2069_v29 = vadd.f32 %v2053_v61, %v2015_v41  ;;  %v2070_v56 = vadd.f32 %v2054_v30, %v2016_v18  ;;  %v2071_v37 = vadd.f32 %v2055_v14, %v2017_v39  ;;  %v2072_v10 = vadd.f32 %v2056_v57, %v2018_v36  ;;  %11314 = vst [vmem:[#allocation104_spill] sm:$0xff] %v8468_v28  ;;  %v11315_v41 = vld [vmem:[#allocation57_spill] sm:$0xff]  ;;  %v8475_v39 = vld [vmem:[%s7044_s5 + $0xfd] sm:$0xff]  ;;  %v11324_v30 = vld [vmem:[#allocation64_spill] sm:$0xff] }
 0x144   : >> { %v2073_v12 = vadd.f32 %v2057_v27, %v2019_v33  ;;  %v2074_v26 = vadd.f32 %v2058_v11, %v2020_v9  ;;  %v2075_v38 = vadd.f32 %v2059_v8, %v2021_v15  ;;  %v2076_v3 = vadd.f32 %v2060_v20, %v2022_v62  ;;  %11316 = vst [vmem:[#allocation105_spill] sm:$0xff] %v8472_v46  ;;  %v11318_v36 = vld [vmem:[#allocation58_spill] sm:$0xff]  ;;  %v11319_v9 = vld [vmem:[#allocation59_spill] sm:$0xff]  ;;  %v11325_v57 = vld [vmem:[#allocation65_spill] sm:$0xff] }
 0x145   : >> { %v2077_v44 = vadd.f32 %v2061_v1, %v2023_v35  ;;  %v2078_v6 = vadd.f32 %v2062_v43, %v2024_v31  ;;  %v2079_v21 = vadd.f32 %v2063_v63, %v2025_v13  ;;  %v2080_v42 = vadd.f32 %v2064_v16, %v2026_v4  ;;  %11317 = vst [vmem:[#allocation3_spill] sm:$0xff] %v8475_v39  ;;  %v11320_v35 = vld [vmem:[#allocation60_spill] sm:$0xff]  ;;  %v11321_v31 = vld [vmem:[#allocation61_spill] sm:$0xff]  ;;  %v11323_v4 = vld [vmem:[#allocation63_spill] sm:$0xff] }
 0x146   : >> { %v2081_v45 = vadd.f32 %v2065_v24, %v2027_v53  ;;  %v2082_v0 = vadd.f32 %v2066_v51, %v2028_v60  ;;  %v2105_v18 = vmul.f32 %v5824_v17, %v11315_v41  ;;  %v2106_v33 = vmul.f32 %v5824_v17, %v11318_v36  ;;  %v11322_v53 = vld [vmem:[#allocation62_spill] sm:$0xff]  ;;  %v11327_v43 = vld [vmem:[#allocation67_spill] sm:$0xff]  ;;  %v11328_v16 = vld [vmem:[#allocation68_spill] sm:$0xff] }
 0x147   : >> { %v2107_v15 = vmul.f32 %v5824_v17, %v11319_v9  ;;  %v2108_v62 = vmul.f32 %v5824_v17, %v11320_v35  ;;  %v2109_v13 = vmul.f32 %v5824_v17, %v11321_v31  ;;  %v2110_v60 = vmul.f32 %v5824_v17, %v11322_v53  ;;  %v11326_v11 = vld [vmem:[#allocation66_spill] sm:$0xff]  ;;  %v5841_v9 = vld [vmem:[%s10535_s1 + $0x21] ss:$0 sm:$0xff] }
 0x148   : >> { %v2111_v61 = vmul.f32 %v5824_v17, %v11323_v4  ;;  %v2112_v14 = vmul.f32 %v5824_v17, %v11324_v30  ;;  %v2113_v27 = vmul.f32 %v5824_v17, %v11325_v57  ;;  %v2114_v8 = vmul.f32 %v5824_v17, %v11326_v11 }
 0x149   : >> { %v2115_v20 = vmul.f32 %v5824_v17, %v8465_v49  ;;  %v2116_v1 = vmul.f32 %v5824_v17, %v8468_v28  ;;  %v2117_v63 = vmul.f32 %v5824_v17, %v11327_v43  ;;  %v2118_v24 = vmul.f32 %v5824_v17, %v11328_v16  ;;  %v8496_v49 = vld [vmem:[%s7044_s5 + $0xc6] sm:$0xff] }
 0x14a   : >> { %v2119_v51 = vmul.f32 %v5824_v17, %v8472_v46  ;;  %v2120_v41 = vmul.f32 %v5824_v17, %v8475_v39  ;;  %v2121_v36 = vadd.f32 %v2105_v18, %v2067_v32  ;;  %v2122_v35 = vadd.f32 %v2106_v33, %v2068_v34  ;;  %v8499_v34 = vld [vmem:[%s7044_s5 + $0xce] sm:$0xff]  ;;  %v8503_v33 = vld [vmem:[%s7044_s5 + $0xf6] sm:$0xff] }
 0x14b   : >> { %v2123_v31 = vadd.f32 %v2107_v15, %v2069_v29  ;;  %v2124_v53 = vadd.f32 %v2108_v62, %v2070_v56  ;;  %v2125_v4 = vadd.f32 %v2109_v13, %v2071_v37  ;;  %v2126_v30 = vadd.f32 %v2110_v60, %v2072_v10  ;;  %11329 = vst [vmem:[#allocation4_spill] sm:$0xff] %v8499_v34  ;;  %v11330_v29 = vld [vmem:[#allocation69_spill] sm:$0xff]  ;;  %v8506_v37 = vld [vmem:[%s7044_s5 + $0xfe] sm:$0xff]  ;;  %v11339_v62 = vld [vmem:[#allocation76_spill] sm:$0xff] }
 0x14c   : >> { %v2127_v57 = vadd.f32 %v2111_v61, %v2073_v12  ;;  %v2128_v11 = vadd.f32 %v2112_v14, %v2074_v26  ;;  %v2129_v43 = vadd.f32 %v2113_v27, %v2075_v38  ;;  %v2130_v16 = vadd.f32 %v2114_v8, %v2076_v3  ;;  %11331 = vst [vmem:[#allocation5_spill] sm:$0xff] %v8503_v33  ;;  %v11333_v10 = vld [vmem:[#allocation70_spill] sm:$0xff]  ;;  %v11334_v26 = vld [vmem:[#allocation71_spill] sm:$0xff]  ;;  %v11340_v60 = vld [vmem:[#allocation77_spill] sm:$0xff] }
 0x14d   : >> { %v2131_v46 = vadd.f32 %v2115_v20, %v2077_v44  ;;  %v2132_v17 = vadd.f32 %v2116_v1, %v2078_v6  ;;  %v2133_v32 = vadd.f32 %v2117_v63, %v2079_v21  ;;  %v2134_v18 = vadd.f32 %v2118_v24, %v2080_v42  ;;  %11332 = vst [vmem:[#allocation6_spill] sm:$0xff] %v8506_v37  ;;  %v11335_v44 = vld [vmem:[#allocation72_spill] sm:$0xff]  ;;  %v11336_v6 = vld [vmem:[#allocation73_spill] sm:$0xff]  ;;  %v11338_v42 = vld [vmem:[#allocation75_spill] sm:$0xff] }
 0x14e   : >> { %v2135_v39 = vadd.f32 %v2119_v51, %v2081_v45  ;;  %v2136_v28 = vadd.f32 %v2120_v41, %v2082_v0  ;;  %v2159_v56 = vmul.f32 %v5841_v9, %v11330_v29  ;;  %v2160_v12 = vmul.f32 %v5841_v9, %v11333_v10  ;;  %v11337_v45 = vld [vmem:[#allocation74_spill] sm:$0xff]  ;;  %v11342_v1 = vld [vmem:[#allocation79_spill] sm:$0xff] }
 0x14f   : >> { %v2161_v38 = vmul.f32 %v5841_v9, %v11334_v26  ;;  %v2162_v3 = vmul.f32 %v5841_v9, %v11335_v44  ;;  %v2163_v21 = vmul.f32 %v5841_v9, %v11336_v6  ;;  %v2164_v0 = vmul.f32 %v5841_v9, %v11337_v45  ;;  %v11341_v14 = vld [vmem:[#allocation78_spill] sm:$0xff]  ;;  %v5858_v10 = vld [vmem:[%s10535_s1 + $0x22] ss:$0 sm:$0xff] }
 0x150   : >> { %v2165_v15 = vmul.f32 %v5841_v9, %v11338_v42  ;;  %v2166_v13 = vmul.f32 %v5841_v9, %v11339_v62  ;;  %v2167_v61 = vmul.f32 %v5841_v9, %v11340_v60  ;;  %v2168_v27 = vmul.f32 %v5841_v9, %v11341_v14 }
 0x151   : >> { %v2169_v8 = vmul.f32 %v5841_v9, %v8496_v49  ;;  %v2170_v20 = vmul.f32 %v5841_v9, %v8499_v34  ;;  %v2171_v63 = vmul.f32 %v5841_v9, %v11342_v1  ;;  %v2172_v24 = vmul.f32 %v5841_v9, %v8198_v48  ;;  %v8527_v34 = vld [vmem:[%s7044_s5 + $0xc7] sm:$0xff] }
 0x152   : >> { %v2173_v51 = vmul.f32 %v5841_v9, %v8503_v33  ;;  %v2174_v41 = vmul.f32 %v5841_v9, %v8506_v37  ;;  %v2175_v29 = vadd.f32 %v2159_v56, %v2121_v36  ;;  %v2176_v26 = vadd.f32 %v2160_v12, %v2122_v35  ;;  %v8530_v35 = vld [vmem:[%s7044_s5 + $0xcf] sm:$0xff] }
 0x153   : >> { %v2177_v44 = vadd.f32 %v2161_v38, %v2123_v31  ;;  %v2178_v6 = vadd.f32 %v2162_v3, %v2124_v53  ;;  %v2179_v45 = vadd.f32 %v2163_v21, %v2125_v4  ;;  %v2180_v42 = vadd.f32 %v2164_v0, %v2126_v30  ;;  %v8534_v53 = vld [vmem:[%s7044_s5 + $0xf7] sm:$0xff]  ;;  %v8537_v4 = vld [vmem:[%s7044_s5 + $0xff] sm:$0xff]  ;;  %v11344_v30 = vld [vmem:[#allocation80_spill] sm:$0xff] }
 0x154   : >> { %v2181_v62 = vadd.f32 %v2165_v15, %v2127_v57  ;;  %v2182_v48 = vadd.f32 %v2166_v13, %v2128_v11  ;;  %v2183_v60 = vadd.f32 %v2167_v61, %v2129_v43  ;;  %v2184_v14 = vadd.f32 %v2168_v27, %v2130_v16  ;;  %11343 = vst [vmem:[#allocation7_spill] sm:$0xff] %v8537_v4  ;;  %v11345_v11 = vld [vmem:[#allocation81_spill] sm:$0xff]  ;;  %v11350_v38 = vld [vmem:[#allocation86_spill] sm:$0xff]  ;;  %v11351_v21 = vld [vmem:[#allocation87_spill] sm:$0xff] }
 0x155   : >> { %v2185_v1 = vadd.f32 %v2169_v8, %v2131_v46  ;;  %v2186_v9 = vadd.f32 %v2170_v20, %v2132_v17  ;;  %v2187_v36 = vadd.f32 %v2171_v63, %v2133_v32  ;;  %v2188_v56 = vadd.f32 %v2172_v24, %v2134_v18  ;;  %v11346_v46 = vld [vmem:[#allocation82_spill] sm:$0xff]  ;;  %v11347_v17 = vld [vmem:[#allocation83_spill] sm:$0xff]  ;;  %v11349_v18 = vld [vmem:[#allocation85_spill] sm:$0xff] }
 0x156   : >> { %v2189_v37 = vadd.f32 %v2173_v51, %v2135_v39  ;;  %v2190_v33 = vadd.f32 %v2174_v41, %v2136_v28  ;;  %v2213_v31 = vmul.f32 %v5858_v10, %v8220_v5  ;;  %v2214_v57 = vmul.f32 %v5858_v10, %v11344_v30  ;;  %v11348_v39 = vld [vmem:[#allocation84_spill] sm:$0xff]  ;;  %v11353_v27 = vld [vmem:[#allocation89_spill] sm:$0xff]  ;;  %v11354_v20 = vld [vmem:[#allocation90_spill] sm:$0xff] }
 0x157   : >> { %v2215_v43 = vmul.f32 %v5858_v10, %v11345_v11  ;;  %v2216_v16 = vmul.f32 %v5858_v10, %v11346_v46  ;;  %v2217_v32 = vmul.f32 %v5858_v10, %v11347_v17  ;;  %v2218_v28 = vmul.f32 %v5858_v10, %v11348_v39  ;;  %v11352_v0 = vld [vmem:[#allocation88_spill] sm:$0xff]  ;;  %v5867_v30 = vld [vmem:[%s10535_s1 + $0x23] ss:$0 sm:$0xff] }
 0x158   : >> { %v2219_v12 = vmul.f32 %v5858_v10, %v11349_v18  ;;  %v2220_v3 = vmul.f32 %v5858_v10, %v11350_v38  ;;  %v2221_v5 = vmul.f32 %v5858_v10, %v11351_v21  ;;  %v2222_v15 = vmul.f32 %v5858_v10, %v11352_v0 }
 0x159   : >> { %v2223_v13 = vmul.f32 %v5858_v10, %v8527_v34  ;;  %v2224_v61 = vmul.f32 %v5858_v10, %v8530_v35  ;;  %v2225_v8 = vmul.f32 %v5858_v10, %v11353_v27  ;;  %v2226_v63 = vmul.f32 %v5858_v10, %v11354_v20 }
 0x15a   : >> { %v2227_v24 = vmul.f32 %v5858_v10, %v8534_v53  ;;  %v2228_v51 = vmul.f32 %v5858_v10, %v8537_v4  ;;  %v2229_v41 = vadd.f32 %v2213_v31, %v2175_v29  ;;  %v2230_v11 = vadd.f32 %v2214_v57, %v2176_v26  ;;  %v8558_v57 = vld [vmem:[%s7044_s5 + $0xd0] sm:$0xff] }
 0x15b   : >> { %v2231_v46 = vadd.f32 %v2215_v43, %v2177_v44  ;;  %v2232_v17 = vadd.f32 %v2216_v16, %v2178_v6  ;;  %v2233_v39 = vadd.f32 %v2217_v32, %v2179_v45  ;;  %v2234_v18 = vadd.f32 %v2218_v28, %v2180_v42  ;;  %v6816_v44 = vld [vmem:[%s7044_s5 + $0x50] sm:$0xff]  ;;  %v8562_v45 = vld [vmem:[%s7044_s5 + $0x100] sm:$0xff]  ;;  %v11356_v32 = vld [vmem:[#allocation92_spill] sm:$0xff] }
 0x15c   : >> { %v2235_v38 = vadd.f32 %v2219_v12, %v2181_v62  ;;  %v2236_v21 = vadd.f32 %v2220_v3, %v2182_v48  ;;  %v2237_v0 = vadd.f32 %v2221_v5, %v2183_v60  ;;  %v2238_v27 = vadd.f32 %v2222_v15, %v2184_v14  ;;  %v6817_v62 = vld [vmem:[%s7044_s5 + $0x68] sm:$0xff]  ;;  %v6818_v14 = vld [vmem:[%s7044_s5 + $0x80] sm:$0xff]  ;;  %v6820_v43 = vld [vmem:[%s7044_s5 + $0xb0] sm:$0xff] }
 0x15d   : >> { %v2239_v10 = vadd.f32 %v2223_v13, %v2185_v1  ;;  %v2240_v29 = vadd.f32 %v2224_v61, %v2186_v9  ;;  %v2241_v31 = vadd.f32 %v2225_v8, %v2187_v36  ;;  %v2242_v20 = vadd.f32 %v2226_v63, %v2188_v56  ;;  %v6821_v3 = vld [vmem:[%s7044_s5 + $0xe0] sm:$0xff] }
 0x15e   : >> { %v2243_v4 = vadd.f32 %v2227_v24, %v2189_v37  ;;  %v2244_v26 = vadd.f32 %v2228_v51, %v2190_v33  ;;  %v2259_v6 = vmul.f32 %v6816_v44, %v5867_v30  ;;  %v2260_v42 = vmul.f32 %v5867_v30, %v8274_v7  ;;  %v6819_v37 = vld [vmem:[%s7044_s5 + $0x98] sm:$0xff]  ;;  %v11355_v33 = vld [vmem:[#allocation91_spill] sm:$0xff] }
 0x15f   : >> { %v2261_v48 = vmul.f32 %v6817_v62, %v5867_v30  ;;  %v2262_v60 = vmul.f32 %v5867_v30, %v8277_v55  ;;  %v2263_v1 = vmul.f32 %v6818_v14, %v5867_v30  ;;  %v2264_v9 = vmul.f32 %v5867_v30, %v8280_v54  ;;  %v5895_v51 = vld [vmem:[%s10535_s1 + $0x24] ss:$0 sm:$0xff] }
 0x160   : >> { %v2265_v36 = vmul.f32 %v6819_v37, %v5867_v30  ;;  %v2266_v56 = vmul.f32 %v5867_v30, %v11355_v33  ;;  %v2267_v16 = vmul.f32 %v6820_v43, %v5867_v30  ;;  %v2268_v28 = vmul.f32 %v5867_v30, %v11356_v32  ;;  %v5879_v44 = vld [vmem:[%s7044_s5 + $0x60] sm:$0xff]  ;;  %v8611_v33 = vld [vmem:[%s7044_s5 + $0x108] sm:$0xff] }
 0x161   : >> { %v2269_v7 = vmul.f32 %v5867_v30, %v8313_v59  ;;  %v2270_v12 = vmul.f32 %v5867_v30, %v8558_v57  ;;  %v2271_v55 = vmul.f32 %v6821_v3, %v5867_v30  ;;  %v2272_v5 = vmul.f32 %v5867_v30, %v8290_v52  ;;  %v8584_v52 = vld [vmem:[%s7044_s5 + $0x68] sm:$0xff]  ;;  %11359 = vst [vmem:[#allocation10_spill] sm:$0xff] %v8611_v33 }
 0x162   : >> { %v2273_v54 = vmul.f32 %v5867_v30, %v8320_v50  ;;  %v2274_v15 = vmul.f32 %v5867_v30, %v8562_v45  ;;  %v2275_v13 = vadd.f32 %v2259_v6, %v2229_v41  ;;  %v2276_v61 = vadd.f32 %v2260_v42, %v2230_v11  ;;  %v8587_v30 = vld [vmem:[%s7044_s5 + $0x78] sm:$0xff]  ;;  %v8590_v11 = vld [vmem:[%s7044_s5 + $0x80] sm:$0xff] }
 0x163   : >> { %v2277_v8 = vadd.f32 %v2261_v48, %v2231_v46  ;;  %v2278_v63 = vadd.f32 %v2262_v60, %v2232_v17  ;;  %v2279_v24 = vadd.f32 %v2263_v1, %v2233_v39  ;;  %v2280_v62 = vadd.f32 %v2264_v9, %v2234_v18  ;;  %v8593_v46 = vld [vmem:[%s7044_s5 + $0x90] sm:$0xff]  ;;  %v8596_v48 = vld [vmem:[%s7044_s5 + $0x98] sm:$0xff]  ;;  %v8599_v18 = vld [vmem:[%s7044_s5 + $0xa8] sm:$0xff] }
 0x164   : >> { %v2281_v14 = vadd.f32 %v2265_v36, %v2235_v38  ;;  %v2282_v37 = vadd.f32 %v2266_v56, %v2236_v21  ;;  %v2283_v41 = vadd.f32 %v2267_v16, %v2237_v0  ;;  %v2284_v17 = vadd.f32 %v2268_v28, %v2238_v27  ;;  %11357 = vst [vmem:[#allocation8_spill] sm:$0xff] %v8599_v18  ;;  %v8602_v38 = vld [vmem:[%s7044_s5 + $0xb0] sm:$0xff]  ;;  %v8605_v1 = vld [vmem:[%s7044_s5 + $0xd8] sm:$0xff]  ;;  %v8608_v9 = vld [vmem:[%s7044_s5 + $0xe0] sm:$0xff] }
 0x165   : >> { %v2285_v39 = vadd.f32 %v2269_v7, %v2239_v10  ;;  %v2286_v6 = vadd.f32 %v2270_v12, %v2240_v29  ;;  %v2287_v42 = vadd.f32 %v2271_v55, %v2241_v31  ;;  %v2288_v21 = vadd.f32 %v2272_v5, %v2242_v20  ;;  %11358 = vst [vmem:[#allocation9_spill] sm:$0xff] %v8605_v1  ;;  %v8614_v27 = vld [vmem:[%s7044_s5 + $0x110] sm:$0xff] }
 0x166   : >> { %v2289_v0 = vadd.f32 %v2273_v54, %v2243_v4  ;;  %v2290_v60 = vadd.f32 %v2274_v15, %v2244_v26  ;;  %v2326_v36 = vmul.f32 %v5895_v51, %v5879_v44  ;;  %v2327_v10 = vmul.f32 %v5895_v51, %v8584_v52  ;;  %v5896_v44 = vld [vmem:[%s7044_s5 + $0x61] sm:$0xff] }
 0x167   : >> { %v2328_v29 = vmul.f32 %v5895_v51, %v8587_v30  ;;  %v2329_v31 = vmul.f32 %v5895_v51, %v8590_v11  ;;  %v2330_v56 = vmul.f32 %v5895_v51, %v8593_v46  ;;  %v2331_v4 = vmul.f32 %v5895_v51, %v8596_v48 }
 0x168   : >> { %v2332_v20 = vmul.f32 %v5895_v51, %v8599_v18  ;;  %v2333_v26 = vmul.f32 %v5895_v51, %v8602_v38  ;;  %v2334_v43 = vmul.f32 %v5895_v51, %v8310_v25  ;;  %v2335_v16 = vmul.f32 %v5895_v51, %v8313_v59  ;;  %v5912_v25 = vld [vmem:[%s10535_s1 + $0x25] ss:$0 sm:$0xff] }
 0x169   : >> { %v2336_v32 = vmul.f32 %v5895_v51, %v8605_v1  ;;  %v2337_v28 = vmul.f32 %v5895_v51, %v8608_v9  ;;  %v2338_v7 = vmul.f32 %v5895_v51, %v8317_v22  ;;  %v2339_v12 = vmul.f32 %v5895_v51, %v8320_v50  ;;  %v5897_v50 = vld [vmem:[%s7044_s5 + $0x69] sm:$0xff] }
 0x16a   : >> { %v2340_v3 = vmul.f32 %v5895_v51, %v8611_v33  ;;  %v2341_v55 = vmul.f32 %v5895_v51, %v8614_v27  ;;  %v2342_v5 = vadd.f32 %v2326_v36, %v2275_v13  ;;  %v2343_v59 = vadd.f32 %v2327_v10, %v2276_v61  ;;  %v8637_v13 = vld [vmem:[%s7044_s5 + $0x79] sm:$0xff]  ;;  %v8640_v36 = vld [vmem:[%s7044_s5 + $0x81] sm:$0xff]  ;;  %v8643_v61 = vld [vmem:[%s7044_s5 + $0x91] sm:$0xff] }
 0x16b   : >> { %v2344_v54 = vadd.f32 %v2328_v29, %v2277_v8  ;;  %v2345_v15 = vadd.f32 %v2329_v31, %v2278_v63  ;;  %v2346_v22 = vadd.f32 %v2330_v56, %v2279_v24  ;;  %v2347_v1 = vadd.f32 %v2331_v4, %v2280_v62  ;;  %v8646_v29 = vld [vmem:[%s7044_s5 + $0x99] sm:$0xff]  ;;  %v8649_v62 = vld [vmem:[%s7044_s5 + $0xa9] sm:$0xff]  ;;  %v8658_v4 = vld [vmem:[%s7044_s5 + $0xe1] sm:$0xff] }
 0x16c   : >> { %v2348_v18 = vadd.f32 %v2332_v20, %v2281_v14  ;;  %v2349_v33 = vadd.f32 %v2333_v26, %v2282_v37  ;;  %v2350_v51 = vadd.f32 %v2334_v43, %v2283_v41  ;;  %v2351_v8 = vadd.f32 %v2335_v16, %v2284_v17  ;;  %11360 = vst [vmem:[#allocation11_spill] sm:$0xff] %v8646_v29  ;;  %v8652_v14 = vld [vmem:[%s7044_s5 + $0xb1] sm:$0xff]  ;;  %v8655_v56 = vld [vmem:[%s7044_s5 + $0xd9] sm:$0xff]  ;;  %v8661_v26 = vld [vmem:[%s7044_s5 + $0x109] sm:$0xff] }
 0x16d   : >> { %v2352_v63 = vadd.f32 %v2336_v32, %v2285_v39  ;;  %v2353_v24 = vadd.f32 %v2337_v28, %v2286_v6  ;;  %v2354_v10 = vadd.f32 %v2338_v7, %v2287_v42  ;;  %11361 = vst [vmem:[#allocation12_spill] sm:$0xff] %v8649_v62  ;;  %11362 = vst [vmem:[#allocation13_spill] sm:$0xff] %v8652_v14  ;;  %v8664_v17 = vld [vmem:[%s7044_s5 + $0x111] sm:$0xff] }
 0x16e   : >> { %v2355_v37 = vadd.f32 %v2339_v12, %v2288_v21  ;;  %v2356_v41 = vadd.f32 %v2340_v3, %v2289_v0  ;;  %v2357_v31 = vadd.f32 %v2341_v55, %v2290_v60  ;;  %11363 = vst [vmem:[#allocation14_spill] sm:$0xff] %v8655_v56  ;;  %11364 = vst [vmem:[#allocation15_spill] sm:$0xff] %v8658_v4 }
 0x16f   : >> { %v2380_v20 = vmul.f32 %v5912_v25, %v5896_v44  ;;  %11365 = vst [vmem:[#allocation16_spill] sm:$0xff] %v8661_v26  ;;  %v2381_v39 = vmul.f32 %v5912_v25, %v5897_v50  ;;  %v2382_v6 = vmul.f32 %v5912_v25, %v8637_v13  ;;  %v2383_v42 = vmul.f32 %v5912_v25, %v8640_v36 }
 0x170   : >> { %v2384_v43 = vmul.f32 %v5912_v25, %v8643_v61  ;;  %v2385_v21 = vmul.f32 %v5912_v25, %v8646_v29  ;;  %v2386_v0 = vmul.f32 %v5912_v25, %v8649_v62  ;;  %v2387_v60 = vmul.f32 %v5912_v25, %v8652_v14  ;;  %v5913_v14 = vld [vmem:[%s7044_s5 + $0x62] sm:$0xff] }
 0x171   : >> { %v2388_v16 = vmul.f32 %v5912_v25, %v8341_v40  ;;  %v2389_v32 = vmul.f32 %v5912_v25, %v8344_v23  ;;  %v2390_v28 = vmul.f32 %v5912_v25, %v8655_v56  ;;  %v2391_v7 = vmul.f32 %v5912_v25, %v8658_v4  ;;  %v5929_v40 = vld [vmem:[%s10535_s1 + $0x26] ss:$0 sm:$0xff] }
 0x172   : >> { %v2392_v12 = vmul.f32 %v5912_v25, %v8348_v2  ;;  %v2393_v3 = vmul.f32 %v5912_v25, %v8351_v58  ;;  %v2394_v55 = vmul.f32 %v5912_v25, %v8661_v26  ;;  %v2395_v44 = vmul.f32 %v5912_v25, %v8664_v17  ;;  %v5914_v58 = vld [vmem:[%s7044_s5 + $0x6a] sm:$0xff] }
 0x173   : >> { %v2396_v50 = vadd.f32 %v2380_v20, %v2342_v5  ;;  %v2397_v23 = vadd.f32 %v2381_v39, %v2343_v59  ;;  %v2398_v56 = vadd.f32 %v2382_v6, %v2344_v54  ;;  %v2399_v4 = vadd.f32 %v2383_v42, %v2345_v15  ;;  %v8686_v5 = vld [vmem:[%s7044_s5 + $0x7a] sm:$0xff]  ;;  %v8689_v20 = vld [vmem:[%s7044_s5 + $0x82] sm:$0xff]  ;;  %v8692_v59 = vld [vmem:[%s7044_s5 + $0x92] sm:$0xff] }
 0x174   : >> { %v2400_v2 = vadd.f32 %v2384_v43, %v2346_v22  ;;  %v2401_v62 = vadd.f32 %v2385_v21, %v2347_v1  ;;  %v2402_v29 = vadd.f32 %v2386_v0, %v2348_v18  ;;  %v2403_v26 = vadd.f32 %v2387_v60, %v2349_v33  ;;  %11366 = vst [vmem:[#allocation17_spill] sm:$0xff] %v8689_v20  ;;  %v8695_v6 = vld [vmem:[%s7044_s5 + $0x9a] sm:$0xff]  ;;  %v8698_v1 = vld [vmem:[%s7044_s5 + $0xaa] sm:$0xff]  ;;  %v8701_v18 = vld [vmem:[%s7044_s5 + $0xb2] sm:$0xff] }
 0x175   : >> { %v2404_v25 = vadd.f32 %v2388_v16, %v2350_v51  ;;  %11367 = vst [vmem:[#allocation18_spill] sm:$0xff] %v8692_v59  ;;  %v2405_v54 = vadd.f32 %v2389_v32, %v2351_v8  ;;  %v2406_v15 = vadd.f32 %v2390_v28, %v2352_v63  ;;  %v2407_v22 = vadd.f32 %v2391_v7, %v2353_v24  ;;  %v8704_v43 = vld [vmem:[%s7044_s5 + $0xda] sm:$0xff]  ;;  %v8707_v21 = vld [vmem:[%s7044_s5 + $0xe2] sm:$0xff]  ;;  %v8710_v60 = vld [vmem:[%s7044_s5 + $0x10a] sm:$0xff] }
 0x176   : >> { %v2408_v39 = vadd.f32 %v2392_v12, %v2354_v10  ;;  %11368 = vst [vmem:[#allocation19_spill] sm:$0xff] %v8695_v6  ;;  %11369 = vst [vmem:[#allocation20_spill] sm:$0xff] %v8698_v1  ;;  %v2409_v33 = vadd.f32 %v2393_v3, %v2355_v37  ;;  %v2410_v51 = vadd.f32 %v2394_v55, %v2356_v41  ;;  %v8713_v8 = vld [vmem:[%s7044_s5 + $0x112] sm:$0xff] }
 0x177   : >> { %11370 = vst [vmem:[#allocation21_spill] sm:$0xff] %v8701_v18  ;;  %v2411_v42 = vadd.f32 %v2395_v44, %v2357_v31  ;;  %11371 = vst [vmem:[#allocation22_spill] sm:$0xff] %v8704_v43  ;;  %v2434_v0 = vmul.f32 %v5929_v40, %v5913_v14  ;;  %v2435_v63 = vmul.f32 %v5929_v40, %v5914_v58  ;;  %v11375_v12 = vld [vmem:[#allocation93_spill] sm:$0xff]  ;;  %v11376_v55 = vld [vmem:[#allocation94_spill] sm:$0xff] }
 0x178   : >> { %11372 = vst [vmem:[#allocation23_spill] sm:$0xff] %v8707_v21  ;;  %11373 = vst [vmem:[#allocation24_spill] sm:$0xff] %v8710_v60  ;;  %v2436_v24 = vmul.f32 %v5929_v40, %v8686_v5  ;;  %v2437_v10 = vmul.f32 %v5929_v40, %v8689_v20  ;;  %v2438_v16 = vmul.f32 %v5929_v40, %v8692_v59 }
 0x179   : >> { %11374 = vst [vmem:[#allocation25_spill] sm:$0xff] %v8713_v8  ;;  %v2439_v37 = vmul.f32 %v5929_v40, %v8695_v6  ;;  %v2440_v41 = vmul.f32 %v5929_v40, %v8698_v1  ;;  %v2441_v31 = vmul.f32 %v5929_v40, %v8701_v18  ;;  %v2442_v14 = vmul.f32 %v5929_v40, %v8372_v47  ;;  %v5946_v47 = vld [vmem:[%s10535_s1 + $0x27] ss:$0 sm:$0xff] }
 0x17a   : >> { %v2443_v32 = vmul.f32 %v5929_v40, %v8375_v19  ;;  %v2444_v28 = vmul.f32 %v5929_v40, %v8704_v43  ;;  %v2445_v7 = vmul.f32 %v5929_v40, %v8707_v21  ;;  %v2446_v3 = vmul.f32 %v5929_v40, %v11375_v12  ;;  %v5930_v6 = vld [vmem:[%s7044_s5 + $0x63] sm:$0xff] }
 0x17b   : >> { %v2447_v44 = vmul.f32 %v5929_v40, %v11376_v55  ;;  %v2448_v58 = vmul.f32 %v5929_v40, %v8710_v60  ;;  %v2449_v18 = vmul.f32 %v5929_v40, %v8713_v8  ;;  %v2450_v1 = vadd.f32 %v2434_v0, %v2396_v50  ;;  %v5931_v55 = vld [vmem:[%s7044_s5 + $0x6b] sm:$0xff]  ;;  %v8735_v50 = vld [vmem:[%s7044_s5 + $0x7b] sm:$0xff]  ;;  %v8738_v0 = vld [vmem:[%s7044_s5 + $0x83] sm:$0xff] }
 0x17c   : >> { %v2451_v19 = vadd.f32 %v2435_v63, %v2397_v23  ;;  %v2452_v43 = vadd.f32 %v2436_v24, %v2398_v56  ;;  %v2453_v21 = vadd.f32 %v2437_v10, %v2399_v4  ;;  %v2454_v12 = vadd.f32 %v2438_v16, %v2400_v2  ;;  %11377 = vst [vmem:[#allocation26_spill] sm:$0xff] %v8735_v50  ;;  %v8741_v56 = vld [vmem:[%s7044_s5 + $0x93] sm:$0xff]  ;;  %v8744_v24 = vld [vmem:[%s7044_s5 + $0x9b] sm:$0xff] }
 0x17d   : >> { %v2455_v59 = vadd.f32 %v2439_v37, %v2401_v62  ;;  %v2456_v20 = vadd.f32 %v2440_v41, %v2402_v29  ;;  %v2457_v60 = vadd.f32 %v2441_v31, %v2403_v26  ;;  %v2458_v40 = vadd.f32 %v2442_v14, %v2404_v25  ;;  %11378 = vst [vmem:[#allocation27_spill] sm:$0xff] %v8738_v0  ;;  %v8747_v62 = vld [vmem:[%s7044_s5 + $0xab] sm:$0xff]  ;;  %v8750_v29 = vld [vmem:[%s7044_s5 + $0xb3] sm:$0xff]  ;;  %v8753_v16 = vld [vmem:[%s7044_s5 + $0xdb] sm:$0xff] }
 0x17e   : >> { %11379 = vst [vmem:[#allocation28_spill] sm:$0xff] %v8741_v56  ;;  %v2459_v4 = vadd.f32 %v2443_v32, %v2405_v54  ;;  %v2460_v23 = vadd.f32 %v2444_v28, %v2406_v15  ;;  %v2461_v2 = vadd.f32 %v2445_v7, %v2407_v22  ;;  %v2462_v63 = vadd.f32 %v2446_v3, %v2408_v39  ;;  %v8756_v37 = vld [vmem:[%s7044_s5 + $0xe3] sm:$0xff]  ;;  %v8759_v31 = vld [vmem:[%s7044_s5 + $0x10b] sm:$0xff]  ;;  %v8762_v54 = vld [vmem:[%s7044_s5 + $0x113] sm:$0xff] }
 0x17f   : >> { %11380 = vst [vmem:[#allocation29_spill] sm:$0xff] %v8744_v24  ;;  %11381 = vst [vmem:[#allocation30_spill] sm:$0xff] %v8747_v62  ;;  %v2463_v26 = vadd.f32 %v2447_v44, %v2409_v33  ;;  %v2464_v25 = vadd.f32 %v2448_v58, %v2410_v51  ;;  %v2465_v10 = vadd.f32 %v2449_v18, %v2411_v42  ;;  %v11387_v42 = vld [vmem:[#allocation95_spill] sm:$0xff]  ;;  %v11388_v32 = vld [vmem:[#allocation96_spill] sm:$0xff] }
 0x180   : >> { %11382 = vst [vmem:[#allocation31_spill] sm:$0xff] %v8750_v29  ;;  %11383 = vst [vmem:[#allocation32_spill] sm:$0xff] %v8753_v16  ;;  %v2488_v41 = vmul.f32 %v5946_v47, %v5930_v6  ;;  %v2489_v15 = vmul.f32 %v5946_v47, %v5931_v55  ;;  %v2490_v22 = vmul.f32 %v5946_v47, %v8735_v50  ;;  %v11389_v44 = vld [vmem:[#allocation97_spill] sm:$0xff]  ;;  %v11390_v55 = vld [vmem:[#allocation98_spill] sm:$0xff] }
 0x181   : >> { %11384 = vst [vmem:[#allocation33_spill] sm:$0xff] %v8756_v37  ;;  %11385 = vst [vmem:[#allocation34_spill] sm:$0xff] %v8759_v31  ;;  %v2491_v39 = vmul.f32 %v5946_v47, %v8738_v0  ;;  %v2492_v14 = vmul.f32 %v5946_v47, %v8741_v56  ;;  %v2493_v33 = vmul.f32 %v5946_v47, %v8744_v24  ;;  %v5947_v0 = vld [vmem:[%s7044_s5 + $0x64] sm:$0xff] }
 0x182   : >> { %11386 = vst [vmem:[#allocation35_spill] sm:$0xff] %v8762_v54  ;;  %v2494_v18 = vmul.f32 %v5946_v47, %v8747_v62  ;;  %v2495_v51 = vmul.f32 %v5946_v47, %v8750_v29  ;;  %v2496_v6 = vmul.f32 %v5946_v47, %v11387_v42  ;;  %v2497_v28 = vmul.f32 %v5946_v47, %v11388_v32  ;;  %v5963_v42 = vld [vmem:[%s10535_s1 + $0x28] ss:$0 sm:$0xff] }
 0x183   : >> { %v2498_v7 = vmul.f32 %v5946_v47, %v8753_v16  ;;  %v2499_v3 = vmul.f32 %v5946_v47, %v8756_v37  ;;  %v2500_v58 = vmul.f32 %v5946_v47, %v11389_v44  ;;  %v2501_v56 = vmul.f32 %v5946_v47, %v11390_v55  ;;  %v5948_v55 = vld [vmem:[%s7044_s5 + $0x6c] sm:$0xff] }
 0x184   : >> { %v2502_v62 = vmul.f32 %v5946_v47, %v8759_v31  ;;  %v2503_v29 = vmul.f32 %v5946_v47, %v8762_v54  ;;  %v2504_v24 = vadd.f32 %v2488_v41, %v2450_v1  ;;  %v2505_v32 = vadd.f32 %v2489_v15, %v2451_v19  ;;  %v8784_v1 = vld [vmem:[%s7044_s5 + $0x7c] sm:$0xff]  ;;  %v8787_v41 = vld [vmem:[%s7044_s5 + $0x84] sm:$0xff] }
 0x185   : >> { %v2506_v16 = vadd.f32 %v2490_v22, %v2452_v43  ;;  %v2507_v37 = vadd.f32 %v2491_v39, %v2453_v21  ;;  %v2508_v44 = vadd.f32 %v2492_v14, %v2454_v12  ;;  %v2509_v50 = vadd.f32 %v2493_v33, %v2455_v59  ;;  %11391 = vst [vmem:[#allocation36_spill] sm:$0xff] %v8784_v1  ;;  %v8790_v43 = vld [vmem:[%s7044_s5 + $0x94] sm:$0xff]  ;;  %v8793_v22 = vld [vmem:[%s7044_s5 + $0x9c] sm:$0xff]  ;;  %v8796_v59 = vld [vmem:[%s7044_s5 + $0xac] sm:$0xff] }
 0x186   : >> { %v2510_v8 = vadd.f32 %v2494_v18, %v2456_v20  ;;  %v2511_v31 = vadd.f32 %v2495_v51, %v2457_v60  ;;  %v2512_v47 = vadd.f32 %v2496_v6, %v2458_v40  ;;  %11392 = vst [vmem:[#allocation37_spill] sm:$0xff] %v8787_v41  ;;  %11393 = vst [vmem:[#allocation38_spill] sm:$0xff] %v8790_v43  ;;  %v8799_v20 = vld [vmem:[%s7044_s5 + $0xb4] sm:$0xff]  ;;  %v8802_v14 = vld [vmem:[%s7044_s5 + $0xdc] sm:$0xff] }
 0x187   : >> { %v2513_v21 = vadd.f32 %v2497_v28, %v2459_v4  ;;  %v2514_v19 = vadd.f32 %v2498_v7, %v2460_v23  ;;  %v2515_v12 = vadd.f32 %v2499_v3, %v2461_v2  ;;  %v2516_v15 = vadd.f32 %v2500_v58, %v2462_v63  ;;  %11394 = vst [vmem:[#allocation39_spill] sm:$0xff] %v8793_v22  ;;  %v8805_v33 = vld [vmem:[%s7044_s5 + $0xe4] sm:$0xff]  ;;  %v8808_v51 = vld [vmem:[%s7044_s5 + $0x10c] sm:$0xff]  ;;  %v8811_v4 = vld [vmem:[%s7044_s5 + $0x114] sm:$0xff] }
 0x188   : >> { %11395 = vst [vmem:[#allocation40_spill] sm:$0xff] %v8796_v59  ;;  %11396 = vst [vmem:[#allocation41_spill] sm:$0xff] %v8799_v20  ;;  %v2517_v60 = vadd.f32 %v2501_v56, %v2463_v26  ;;  %v2518_v40 = vadd.f32 %v2502_v62, %v2464_v25  ;;  %v2519_v39 = vadd.f32 %v2503_v29, %v2465_v10  ;;  %v11401_v26 = vld [vmem:[#allocation99_spill] sm:$0xff]  ;;  %v11402_v25 = vld [vmem:[#allocation100_spill] sm:$0xff] }
 0x189   : >> { %11397 = vst [vmem:[#allocation42_spill] sm:$0xff] %v8802_v14  ;;  %11398 = vst [vmem:[#allocation43_spill] sm:$0xff] %v8805_v33  ;;  %v2542_v18 = vmul.f32 %v5963_v42, %v5947_v0  ;;  %v2543_v23 = vmul.f32 %v5963_v42, %v5948_v55  ;;  %v2544_v2 = vmul.f32 %v5963_v42, %v8784_v1  ;;  %v11403_v3 = vld [vmem:[#allocation101_spill] sm:$0xff]  ;;  %v11404_v55 = vld [vmem:[#allocation102_spill] sm:$0xff] }
 0x18a   : >> { %11399 = vst [vmem:[#allocation44_spill] sm:$0xff] %v8808_v51  ;;  %11400 = vst [vmem:[#allocation45_spill] sm:$0xff] %v8811_v4  ;;  %v2545_v63 = vmul.f32 %v5963_v42, %v8787_v41  ;;  %v2546_v6 = vmul.f32 %v5963_v42, %v8790_v43  ;;  %v2547_v56 = vmul.f32 %v5963_v42, %v8793_v22  ;;  %v5964_v41 = vld [vmem:[%s7044_s5 + $0x65] sm:$0xff] }
 0x18b   : >> { %v2548_v62 = vmul.f32 %v5963_v42, %v8796_v59  ;;  %v2549_v29 = vmul.f32 %v5963_v42, %v8799_v20  ;;  %v2550_v0 = vmul.f32 %v5963_v42, %v11401_v26  ;;  %v2551_v10 = vmul.f32 %v5963_v42, %v11402_v25  ;;  %v5980_v26 = vld [vmem:[%s10535_s1 + $0x29] ss:$0 sm:$0xff] }
 0x18c   : >> { %v2552_v28 = vmul.f32 %v5963_v42, %v8802_v14  ;;  %v2553_v7 = vmul.f32 %v5963_v42, %v8805_v33  ;;  %v2554_v58 = vmul.f32 %v5963_v42, %v11403_v3  ;;  %v2555_v43 = vmul.f32 %v5963_v42, %v11404_v55  ;;  %v5965_v55 = vld [vmem:[%s7044_s5 + $0x6d] sm:$0xff] }
 0x18d   : >> { %v2556_v59 = vmul.f32 %v5963_v42, %v8808_v51  ;;  %v2557_v20 = vmul.f32 %v5963_v42, %v8811_v4  ;;  %v2558_v22 = vadd.f32 %v2542_v18, %v2504_v24  ;;  %v2559_v25 = vadd.f32 %v2543_v23, %v2505_v32  ;;  %v8833_v24 = vld [vmem:[%s7044_s5 + $0x7d] sm:$0xff]  ;;  %v8836_v18 = vld [vmem:[%s7044_s5 + $0x85] sm:$0xff] }
 0x18e   : >> { %v2560_v14 = vadd.f32 %v2544_v2, %v2506_v16  ;;  %v2561_v33 = vadd.f32 %v2545_v63, %v2507_v37  ;;  %v2562_v3 = vadd.f32 %v2546_v6, %v2508_v44  ;;  %v2563_v1 = vadd.f32 %v2547_v56, %v2509_v50  ;;  %11405 = vst [vmem:[#allocation46_spill] sm:$0xff] %v8833_v24  ;;  %v8839_v16 = vld [vmem:[%s7044_s5 + $0x95] sm:$0xff]  ;;  %v8842_v2 = vld [vmem:[%s7044_s5 + $0x9d] sm:$0xff]  ;;  %v8845_v50 = vld [vmem:[%s7044_s5 + $0xad] sm:$0xff] }
 0x18f   : >> { %v2564_v54 = vadd.f32 %v2548_v62, %v2510_v8  ;;  %v2565_v51 = vadd.f32 %v2549_v29, %v2511_v31  ;;  %v2566_v42 = vadd.f32 %v2550_v0, %v2512_v47  ;;  %11406 = vst [vmem:[#allocation47_spill] sm:$0xff] %v8836_v18  ;;  %11407 = vst [vmem:[#allocation48_spill] sm:$0xff] %v8839_v16  ;;  %v8848_v8 = vld [vmem:[%s7044_s5 + $0xb5] sm:$0xff]  ;;  %v8851_v6 = vld [vmem:[%s7044_s5 + $0xdd] sm:$0xff] }
 0x190   : >> { %v2567_v37 = vadd.f32 %v2551_v10, %v2513_v21  ;;  %v2568_v32 = vadd.f32 %v2552_v28, %v2514_v19  ;;  %v2569_v44 = vadd.f32 %v2553_v7, %v2515_v12  ;;  %v2570_v23 = vadd.f32 %v2554_v58, %v2516_v15  ;;  %11408 = vst [vmem:[#allocation49_spill] sm:$0xff] %v8842_v2  ;;  %v8854_v56 = vld [vmem:[%s7044_s5 + $0xe5] sm:$0xff]  ;;  %v8857_v29 = vld [vmem:[%s7044_s5 + $0x10d] sm:$0xff]  ;;  %v8860_v21 = vld [vmem:[%s7044_s5 + $0x115] sm:$0xff] }
 0x191   : >> { %11409 = vst [vmem:[#allocation50_spill] sm:$0xff] %v8845_v50  ;;  %11410 = vst [vmem:[#allocation51_spill] sm:$0xff] %v8848_v8  ;;  %v2571_v31 = vadd.f32 %v2555_v43, %v2517_v60  ;;  %v2572_v47 = vadd.f32 %v2556_v59, %v2518_v40  ;;  %v2573_v63 = vadd.f32 %v2557_v20, %v2519_v39  ;;  %v11414_v60 = vld [vmem:[#allocation103_spill] sm:$0xff]  ;;  %v11415_v40 = vld [vmem:[#allocation104_spill] sm:$0xff] }
 0x192   : >> { %11411 = vst [vmem:[#allocation52_spill] sm:$0xff] %v8851_v6  ;;  %11412 = vst [vmem:[#allocation53_spill] sm:$0xff] %v8854_v56  ;;  %v2596_v62 = vmul.f32 %v5980_v26, %v5964_v41  ;;  %v2597_v19 = vmul.f32 %v5980_v26, %v5965_v55  ;;  %v2598_v12 = vmul.f32 %v5980_v26, %v8833_v24  ;;  %v11416_v7 = vld [vmem:[#allocation105_spill] sm:$0xff]  ;;  %v11417_v55 = vld [vmem:[#allocation3_spill] sm:$0xff] }
 0x193   : >> { %11413 = vst [vmem:[#allocation54_spill] sm:$0xff] %v8857_v29  ;;  %v2599_v15 = vmul.f32 %v5980_v26, %v8836_v18  ;;  %v2600_v0 = vmul.f32 %v5980_v26, %v8839_v16  ;;  %v2601_v43 = vmul.f32 %v5980_v26, %v8842_v2  ;;  %v2602_v59 = vmul.f32 %v5980_v26, %v8845_v50  ;;  %v5981_v18 = vld [vmem:[%s7044_s5 + $0x66] sm:$0xff] }
 0x194   : >> { %v2603_v20 = vmul.f32 %v5980_v26, %v8848_v8  ;;  %v2604_v41 = vmul.f32 %v5980_v26, %v11414_v60  ;;  %v2605_v39 = vmul.f32 %v5980_v26, %v11415_v40  ;;  %v2606_v10 = vmul.f32 %v5980_v26, %v8851_v6  ;;  %v5997_v60 = vld [vmem:[%s10535_s1 + $0x2a] ss:$0 sm:$0xff] }
 0x195   : >> { %v2607_v28 = vmul.f32 %v5980_v26, %v8854_v56  ;;  %v2608_v58 = vmul.f32 %v5980_v26, %v11416_v7  ;;  %v2609_v16 = vmul.f32 %v5980_v26, %v11417_v55  ;;  %v2610_v50 = vmul.f32 %v5980_v26, %v8857_v29  ;;  %v5982_v55 = vld [vmem:[%s7044_s5 + $0x6e] sm:$0xff] }
 0x196   : >> { %v2611_v8 = vmul.f32 %v5980_v26, %v8860_v21  ;;  %v2612_v2 = vadd.f32 %v2596_v62, %v2558_v22  ;;  %v2613_v40 = vadd.f32 %v2597_v19, %v2559_v25  ;;  %v2614_v6 = vadd.f32 %v2598_v12, %v2560_v14  ;;  %v8882_v22 = vld [vmem:[%s7044_s5 + $0x7e] sm:$0xff]  ;;  %v8885_v62 = vld [vmem:[%s7044_s5 + $0x86] sm:$0xff]  ;;  %v8888_v14 = vld [vmem:[%s7044_s5 + $0x96] sm:$0xff] }
 0x197   : >> { %v2615_v56 = vadd.f32 %v2599_v15, %v2561_v33  ;;  %v2616_v7 = vadd.f32 %v2600_v0, %v2562_v3  ;;  %v2617_v24 = vadd.f32 %v2601_v43, %v2563_v1  ;;  %v2618_v4 = vadd.f32 %v2602_v59, %v2564_v54  ;;  %11418 = vst [vmem:[#allocation55_spill] sm:$0xff] %v8882_v22  ;;  %v8891_v12 = vld [vmem:[%s7044_s5 + $0x9e] sm:$0xff]  ;;  %v8894_v1 = vld [vmem:[%s7044_s5 + $0xae] sm:$0xff]  ;;  %v8897_v54 = vld [vmem:[%s7044_s5 + $0xb6] sm:$0xff] }
 0x198   : >> { %v2619_v29 = vadd.f32 %v2603_v20, %v2565_v51  ;;  %v2620_v26 = vadd.f32 %v2604_v41, %v2566_v42  ;;  %11419 = vst [vmem:[#allocation56_spill] sm:$0xff] %v8885_v62  ;;  %11420 = vst [vmem:[#allocation57_spill] sm:$0xff] %v8888_v14  ;;  %v2621_v33 = vadd.f32 %v2605_v39, %v2567_v37  ;;  %v8900_v0 = vld [vmem:[%s7044_s5 + $0xde] sm:$0xff]  ;;  %v8903_v43 = vld [vmem:[%s7044_s5 + $0xe6] sm:$0xff] }
 0x199   : >> { %v2622_v25 = vadd.f32 %v2606_v10, %v2568_v32  ;;  %v2623_v3 = vadd.f32 %v2607_v28, %v2569_v44  ;;  %v2624_v19 = vadd.f32 %v2608_v58, %v2570_v23  ;;  %11421 = vst [vmem:[#allocation58_spill] sm:$0xff] %v8891_v12  ;;  %11422 = vst [vmem:[#allocation59_spill] sm:$0xff] %v8894_v1  ;;  %v8906_v20 = vld [vmem:[%s7044_s5 + $0x10e] sm:$0xff]  ;;  %v8909_v37 = vld [vmem:[%s7044_s5 + $0x116] sm:$0xff] }
 0x19a   : >> { %11423 = vst [vmem:[#allocation60_spill] sm:$0xff] %v8897_v54  ;;  %v2625_v51 = vadd.f32 %v2609_v16, %v2571_v31  ;;  %v2626_v42 = vadd.f32 %v2610_v50, %v2572_v47  ;;  %v2627_v15 = vadd.f32 %v2611_v8, %v2573_v63  ;;  %11424 = vst [vmem:[#allocation61_spill] sm:$0xff] %v8900_v0  ;;  %v11427_v31 = vld [vmem:[#allocation4_spill] sm:$0xff]  ;;  %v11428_v10 = vld [vmem:[#allocation5_spill] sm:$0xff] }
 0x19b   : >> { %11425 = vst [vmem:[#allocation62_spill] sm:$0xff] %v8903_v43  ;;  %v2650_v59 = vmul.f32 %v5997_v60, %v5981_v18  ;;  %11426 = vst [vmem:[#allocation63_spill] sm:$0xff] %v8906_v20  ;;  %v2651_v32 = vmul.f32 %v5997_v60, %v5982_v55  ;;  %v2652_v44 = vmul.f32 %v5997_v60, %v8882_v22  ;;  %v11429_v58 = vld [vmem:[#allocation6_spill] sm:$0xff] }
 0x19c   : >> { %v2653_v23 = vmul.f32 %v5997_v60, %v8885_v62  ;;  %v2654_v41 = vmul.f32 %v5997_v60, %v8888_v14  ;;  %v2655_v16 = vmul.f32 %v5997_v60, %v8891_v12  ;;  %v2656_v50 = vmul.f32 %v5997_v60, %v8894_v1  ;;  %v5998_v14 = vld [vmem:[%s7044_s5 + $0x67] sm:$0xff] }
 0x19d   : >> { %v2657_v8 = vmul.f32 %v5997_v60, %v8897_v54  ;;  %v2658_v18 = vmul.f32 %v5997_v60, %v8496_v49  ;;  %v2659_v47 = vmul.f32 %v5997_v60, %v11427_v31  ;;  %v2660_v63 = vmul.f32 %v5997_v60, %v8900_v0  ;;  %v6014_v49 = vld [vmem:[%s10535_s1 + $0x2b] ss:$0 sm:$0xff] }
 0x19e   : >> { %v2661_v39 = vmul.f32 %v5997_v60, %v8903_v43  ;;  %v2662_v28 = vmul.f32 %v5997_v60, %v11428_v10  ;;  %v2663_v55 = vmul.f32 %v5997_v60, %v11429_v58  ;;  %v2664_v1 = vmul.f32 %v5997_v60, %v8906_v20  ;;  %v5999_v58 = vld [vmem:[%s7044_s5 + $0x6f] sm:$0xff] }
 0x19f   : >> { %v2665_v54 = vmul.f32 %v5997_v60, %v8909_v37  ;;  %v2666_v12 = vadd.f32 %v2650_v59, %v2612_v2  ;;  %v2667_v31 = vadd.f32 %v2651_v32, %v2613_v40  ;;  %v2668_v0 = vadd.f32 %v2652_v44, %v2614_v6  ;;  %v8931_v2 = vld [vmem:[%s7044_s5 + $0x7f] sm:$0xff]  ;;  %v8934_v59 = vld [vmem:[%s7044_s5 + $0x87] sm:$0xff]  ;;  %v8937_v6 = vld [vmem:[%s7044_s5 + $0x97] sm:$0xff] }
 0x1a0   : >> { %v2669_v43 = vadd.f32 %v2653_v23, %v2615_v56  ;;  %v2670_v10 = vadd.f32 %v2654_v41, %v2616_v7  ;;  %v2671_v62 = vadd.f32 %v2655_v16, %v2617_v24  ;;  %v2672_v22 = vadd.f32 %v2656_v50, %v2618_v4  ;;  %11430 = vst [vmem:[#allocation64_spill] sm:$0xff] %v8931_v2  ;;  %v8940_v44 = vld [vmem:[%s7044_s5 + $0x9f] sm:$0xff]  ;;  %v8943_v24 = vld [vmem:[%s7044_s5 + $0xaf] sm:$0xff]  ;;  %v8946_v4 = vld [vmem:[%s7044_s5 + $0xb7] sm:$0xff] }
 0x1a1   : >> { %v2673_v20 = vadd.f32 %v2657_v8, %v2619_v29  ;;  %v2674_v60 = vadd.f32 %v2658_v18, %v2620_v26  ;;  %11431 = vst [vmem:[#allocation65_spill] sm:$0xff] %v8934_v59  ;;  %11432 = vst [vmem:[#allocation66_spill] sm:$0xff] %v8937_v6  ;;  %v2675_v56 = vadd.f32 %v2659_v47, %v2621_v33  ;;  %v8949_v41 = vld [vmem:[%s7044_s5 + $0xdf] sm:$0xff]  ;;  %v8952_v16 = vld [vmem:[%s7044_s5 + $0xe7] sm:$0xff] }
 0x1a2   : >> { %v2676_v40 = vadd.f32 %v2660_v63, %v2622_v25  ;;  %v2677_v7 = vadd.f32 %v2661_v39, %v2623_v3  ;;  %v2678_v32 = vadd.f32 %v2662_v28, %v2624_v19  ;;  %11433 = vst [vmem:[#allocation67_spill] sm:$0xff] %v8940_v44  ;;  %11434 = vst [vmem:[#allocation68_spill] sm:$0xff] %v8943_v24  ;;  %v8955_v8 = vld [vmem:[%s7044_s5 + $0x10f] sm:$0xff]  ;;  %v8958_v33 = vld [vmem:[%s7044_s5 + $0x117] sm:$0xff] }
 0x1a3   : >> { %11435 = vst [vmem:[#allocation69_spill] sm:$0xff] %v8946_v4  ;;  %v2679_v29 = vadd.f32 %v2663_v55, %v2625_v51  ;;  %v2680_v26 = vadd.f32 %v2664_v1, %v2626_v42  ;;  %v2681_v23 = vadd.f32 %v2665_v54, %v2627_v15  ;;  %11436 = vst [vmem:[#allocation70_spill] sm:$0xff] %v8949_v41  ;;  %v11440_v39 = vld [vmem:[#allocation7_spill] sm:$0xff] }
 0x1a4   : >> { %11437 = vst [vmem:[#allocation71_spill] sm:$0xff] %v8952_v16  ;;  %v2704_v50 = vmul.f32 %v6014_v49, %v5998_v14  ;;  %11438 = vst [vmem:[#allocation72_spill] sm:$0xff] %v8955_v8  ;;  %v2705_v25 = vmul.f32 %v6014_v49, %v5999_v58  ;;  %v2706_v3 = vmul.f32 %v6014_v49, %v8931_v2  ;;  %v8982_v2 = vld [vmem:[%s7044_s5 + $0xa0] sm:$0xff] }
 0x1a5   : >> { %11439 = vst [vmem:[#allocation73_spill] sm:$0xff] %v8958_v33  ;;  %v2707_v19 = vmul.f32 %v6014_v49, %v8934_v59  ;;  %v2708_v18 = vmul.f32 %v6014_v49, %v8937_v6  ;;  %v2709_v51 = vmul.f32 %v6014_v49, %v8940_v44  ;;  %v2710_v1 = vmul.f32 %v6014_v49, %v8943_v24  ;;  %v8979_v59 = vld [vmem:[%s7044_s5 + $0x88] sm:$0xff] }
 0x1a6   : >> { %v2711_v54 = vmul.f32 %v6014_v49, %v8946_v4  ;;  %v2712_v42 = vmul.f32 %v6014_v49, %v8527_v34  ;;  %v2713_v14 = vmul.f32 %v6014_v49, %v8530_v35  ;;  %v2714_v15 = vmul.f32 %v6014_v49, %v8949_v41  ;;  %v6023_v34 = vld [vmem:[%s10535_s1 + $0x2c] ss:$0 sm:$0xff] }
 0x1a7   : >> { %v2715_v47 = vmul.f32 %v6014_v49, %v8952_v16  ;;  %v2716_v63 = vmul.f32 %v6014_v49, %v8534_v53  ;;  %v2717_v28 = vmul.f32 %v6014_v49, %v11440_v39  ;;  %v2718_v55 = vmul.f32 %v6014_v49, %v8955_v8  ;;  %v6015_v8 = vld [vmem:[%s7044_s5 + $0x70] sm:$0xff] }
 0x1a8   : >> { %v2719_v58 = vmul.f32 %v6014_v49, %v8958_v33  ;;  %v2720_v24 = vadd.f32 %v2704_v50, %v2666_v12  ;;  %v2721_v35 = vadd.f32 %v2705_v25, %v2667_v31  ;;  %v2722_v41 = vadd.f32 %v2706_v3, %v2668_v0  ;;  %v8985_v31 = vld [vmem:[%s7044_s5 + $0xb8] sm:$0xff] }
 0x1a9   : >> { %v2723_v4 = vadd.f32 %v2707_v19, %v2669_v43  ;;  %v2724_v16 = vadd.f32 %v2708_v18, %v2670_v10  ;;  %v2725_v44 = vadd.f32 %v2709_v51, %v2671_v62  ;;  %v2726_v53 = vadd.f32 %v2710_v1, %v2672_v22  ;;  %v8988_v22 = vld [vmem:[%s7044_s5 + $0xe8] sm:$0xff]  ;;  %v6823_v19 = vld [vmem:[%s7044_s5 + $0xf8] sm:$0xff] }
 0x1aa   : >> { %v2727_v39 = vadd.f32 %v2711_v54, %v2673_v20  ;;  %v2728_v6 = vadd.f32 %v2712_v42, %v2674_v60  ;;  %v2729_v12 = vadd.f32 %v2713_v14, %v2675_v56  ;;  %v2730_v49 = vadd.f32 %v2714_v15, %v2676_v40  ;;  %v8992_v20 = vld [vmem:[%s7044_s5 + $0x118] sm:$0xff] }
 0x1ab   : >> { %v2731_v50 = vadd.f32 %v2715_v47, %v2677_v7  ;;  %v2732_v33 = vadd.f32 %v2716_v63, %v2678_v32  ;;  %v2733_v0 = vadd.f32 %v2717_v28, %v2679_v29  ;;  %v2734_v43 = vadd.f32 %v2718_v55, %v2680_v26  ;;  %v6051_v63 = vld [vmem:[%s10535_s1 + $0x2d] ss:$0 sm:$0xff] }
 0x1ac   : >> { %v2735_v10 = vadd.f32 %v2719_v58, %v2681_v23  ;;  %v2750_v62 = vmul.f32 %v6023_v34, %v8584_v52  ;;  %v2751_v60 = vmul.f32 %v6023_v34, %v6015_v8  ;;  %v2752_v56 = vmul.f32 %v6023_v34, %v8590_v11  ;;  %v6822_v23 = vld [vmem:[%s7044_s5 + $0xc8] sm:$0xff] }
 0x1ad   : >> { %v2753_v40 = vmul.f32 %v6023_v34, %v8979_v59  ;;  %v2754_v7 = vmul.f32 %v6023_v34, %v8596_v48  ;;  %v2755_v32 = vmul.f32 %v6023_v34, %v8982_v2  ;;  %v2756_v29 = vmul.f32 %v6023_v34, %v8602_v38 }
 0x1ae   : >> { %v2757_v26 = vmul.f32 %v6023_v34, %v8985_v31  ;;  %v2758_v25 = vmul.f32 %v6822_v23, %v6023_v34  ;;  %v2759_v3 = vmul.f32 %v6023_v34, %v8558_v57  ;;  %v2760_v52 = vmul.f32 %v6023_v34, %v8608_v9 }
 0x1af   : >> { %v2761_v8 = vmul.f32 %v6023_v34, %v8988_v22  ;;  %v2762_v18 = vmul.f32 %v6823_v19, %v6023_v34  ;;  %v2763_v51 = vmul.f32 %v6023_v34, %v8562_v45  ;;  %v2764_v1 = vmul.f32 %v6023_v34, %v8614_v27 }
 0x1b0   : >> { %v2765_v54 = vmul.f32 %v6023_v34, %v8992_v20  ;;  %v2766_v42 = vadd.f32 %v2750_v62, %v2720_v24  ;;  %v2767_v14 = vadd.f32 %v2751_v60, %v2721_v35  ;;  %v2768_v15 = vadd.f32 %v2752_v56, %v2722_v41  ;;  %v9012_v35 = vld [vmem:[%s7044_s5 + $0xc0] sm:$0xff]  ;;  %v9018_v60 = vld [vmem:[%s7044_s5 + $0xf0] sm:$0xff]  ;;  %v9021_v56 = vld [vmem:[%s7044_s5 + $0xf8] sm:$0xff] }
 0x1b1   : >> { %v2769_v47 = vadd.f32 %v2753_v40, %v2723_v4  ;;  %v2770_v57 = vadd.f32 %v2754_v7, %v2724_v16  ;;  %v2771_v28 = vadd.f32 %v2755_v32, %v2725_v44  ;;  %v2772_v45 = vadd.f32 %v2756_v29, %v2726_v53  ;;  %v9015_v4 = vld [vmem:[%s7044_s5 + $0xc8] sm:$0xff]  ;;  %v9025_v53 = vld [vmem:[%s7044_s5 + $0x120] sm:$0xff]  ;;  %v11442_v40 = vld [vmem:[#allocation9_spill] sm:$0xff] }
 0x1b2   : >> { %v2773_v55 = vadd.f32 %v2757_v26, %v2727_v39  ;;  %v2774_v58 = vadd.f32 %v2758_v25, %v2728_v6  ;;  %v2775_v23 = vadd.f32 %v2759_v3, %v2729_v12  ;;  %v2776_v34 = vadd.f32 %v2760_v52, %v2730_v49  ;;  %v9028_v6 = vld [vmem:[%s7044_s5 + $0x128] sm:$0xff]  ;;  %v11443_v29 = vld [vmem:[#allocation10_spill] sm:$0xff] }
 0x1b3   : >> { %v2777_v19 = vadd.f32 %v2761_v8, %v2731_v50  ;;  %v2778_v24 = vadd.f32 %v2762_v18, %v2732_v33  ;;  %v2779_v41 = vadd.f32 %v2763_v51, %v2733_v0  ;;  %v2780_v16 = vadd.f32 %v2764_v1, %v2734_v43  ;;  %v11441_v49 = vld [vmem:[#allocation8_spill] sm:$0xff] }
 0x1b4   : >> { %v2781_v62 = vadd.f32 %v2765_v54, %v2735_v10  ;;  %v2817_v44 = vmul.f32 %v6051_v63, %v8587_v30  ;;  %v2818_v39 = vmul.f32 %v6051_v63, %v8590_v11  ;;  %v2819_v33 = vmul.f32 %v6051_v63, %v8593_v46  ;;  %v6068_v3 = vld [vmem:[%s10535_s1 + $0x2e] ss:$0 sm:$0xff] }
 0x1b5   : >> { %v2820_v12 = vmul.f32 %v6051_v63, %v8596_v48  ;;  %v2821_v50 = vmul.f32 %v6051_v63, %v11441_v49  ;;  %v2822_v0 = vmul.f32 %v6051_v63, %v8602_v38  ;;  %v2823_v43 = vmul.f32 %v6051_v63, %v9012_v35 }
 0x1b6   : >> { %v2824_v10 = vmul.f32 %v6051_v63, %v9015_v4  ;;  %v2825_v30 = vmul.f32 %v6051_v63, %v11442_v40  ;;  %v2826_v7 = vmul.f32 %v6051_v63, %v8608_v9  ;;  %v2827_v32 = vmul.f32 %v6051_v63, %v9018_v60 }
 0x1b7   : >> { %v2828_v11 = vmul.f32 %v6051_v63, %v9021_v56  ;;  %v2829_v46 = vmul.f32 %v6051_v63, %v11443_v29  ;;  %v2830_v48 = vmul.f32 %v6051_v63, %v8614_v27  ;;  %v2831_v26 = vmul.f32 %v6051_v63, %v9025_v53  ;;  %v9052_v29 = vld [vmem:[%s7044_s5 + $0xc9] sm:$0xff] }
 0x1b8   : >> { %v2832_v38 = vmul.f32 %v6051_v63, %v9028_v6  ;;  %v2833_v25 = vadd.f32 %v2817_v44, %v2766_v42  ;;  %v2834_v9 = vadd.f32 %v2818_v39, %v2767_v14  ;;  %v2835_v52 = vadd.f32 %v2819_v33, %v2768_v15  ;;  %v9049_v44 = vld [vmem:[%s7044_s5 + $0xc1] sm:$0xff] }
 0x1b9   : >> { %v2836_v8 = vadd.f32 %v2820_v12, %v2769_v47  ;;  %v2837_v18 = vadd.f32 %v2821_v50, %v2770_v57  ;;  %v2838_v51 = vadd.f32 %v2822_v0, %v2771_v28  ;;  %v2839_v27 = vadd.f32 %v2823_v43, %v2772_v45  ;;  %v9055_v47 = vld [vmem:[%s7044_s5 + $0xf1] sm:$0xff]  ;;  %v9058_v57 = vld [vmem:[%s7044_s5 + $0xf9] sm:$0xff]  ;;  %v9062_v45 = vld [vmem:[%s7044_s5 + $0x121] sm:$0xff] }
 0x1ba   : >> { %v2840_v1 = vadd.f32 %v2824_v10, %v2773_v55  ;;  %v2841_v54 = vadd.f32 %v2825_v30, %v2774_v58  ;;  %v2842_v49 = vadd.f32 %v2826_v7, %v2775_v23  ;;  %v2843_v63 = vadd.f32 %v2827_v32, %v2776_v34  ;;  %11444 = vst [vmem:[#allocation74_spill] sm:$0xff] %v9062_v45  ;;  %v9065_v55 = vld [vmem:[%s7044_s5 + $0x129] sm:$0xff]  ;;  %v11446_v34 = vld [vmem:[#allocation11_spill] sm:$0xff]  ;;  %v11449_v50 = vld [vmem:[#allocation14_spill] sm:$0xff] }
 0x1bb   : >> { %v2844_v40 = vadd.f32 %v2828_v11, %v2777_v19  ;;  %v2845_v42 = vadd.f32 %v2829_v46, %v2778_v24  ;;  %v2846_v14 = vadd.f32 %v2830_v48, %v2779_v41  ;;  %v2847_v15 = vadd.f32 %v2831_v26, %v2780_v16  ;;  %11445 = vst [vmem:[#allocation75_spill] sm:$0xff] %v9065_v55  ;;  %v11447_v24 = vld [vmem:[#allocation12_spill] sm:$0xff]  ;;  %v11448_v16 = vld [vmem:[#allocation13_spill] sm:$0xff]  ;;  %v11450_v0 = vld [vmem:[#allocation15_spill] sm:$0xff] }
 0x1bc   : >> { %v2848_v39 = vadd.f32 %v2832_v38, %v2781_v62  ;;  %v2871_v28 = vmul.f32 %v6068_v3, %v8637_v13  ;;  %v2872_v58 = vmul.f32 %v6068_v3, %v8640_v36  ;;  %v2873_v23 = vmul.f32 %v6068_v3, %v8643_v61  ;;  %v11451_v30 = vld [vmem:[#allocation16_spill] sm:$0xff] }
 0x1bd   : >> { %v2874_v19 = vmul.f32 %v6068_v3, %v11446_v34  ;;  %v2875_v41 = vmul.f32 %v6068_v3, %v11447_v24  ;;  %v2876_v62 = vmul.f32 %v6068_v3, %v11448_v16  ;;  %v2877_v33 = vmul.f32 %v6068_v3, %v9049_v44  ;;  %v6085_v48 = vld [vmem:[%s10535_s1 + $0x2f] ss:$0 sm:$0xff] }
 0x1be   : >> { %v2878_v12 = vmul.f32 %v6068_v3, %v9052_v29  ;;  %v2879_v13 = vmul.f32 %v6068_v3, %v11449_v50  ;;  %v2880_v43 = vmul.f32 %v6068_v3, %v11450_v0  ;;  %v2881_v10 = vmul.f32 %v6068_v3, %v9055_v47 }
 0x1bf   : >> { %v2882_v36 = vmul.f32 %v6068_v3, %v9058_v57  ;;  %v2883_v61 = vmul.f32 %v6068_v3, %v11451_v30  ;;  %v2884_v7 = vmul.f32 %v6068_v3, %v8664_v17  ;;  %v2885_v32 = vmul.f32 %v6068_v3, %v9062_v45  ;;  %v9089_v45 = vld [vmem:[%s7044_s5 + $0xca] sm:$0xff] }
 0x1c0   : >> { %v2886_v11 = vmul.f32 %v6068_v3, %v9065_v55  ;;  %v2887_v46 = vadd.f32 %v2871_v28, %v2833_v25  ;;  %v2888_v26 = vadd.f32 %v2872_v58, %v2834_v9  ;;  %v2889_v38 = vadd.f32 %v2873_v23, %v2835_v52  ;;  %v9086_v28 = vld [vmem:[%s7044_s5 + $0xc2] sm:$0xff]  ;;  %11452 = vst [vmem:[#allocation76_spill] sm:$0xff] %v9089_v45 }
 0x1c1   : >> { %v2890_v34 = vadd.f32 %v2874_v19, %v2836_v8  ;;  %v2891_v24 = vadd.f32 %v2875_v41, %v2837_v18  ;;  %v2892_v16 = vadd.f32 %v2876_v62, %v2838_v51  ;;  %v2893_v17 = vadd.f32 %v2877_v33, %v2839_v27  ;;  %v9092_v8 = vld [vmem:[%s7044_s5 + $0xf2] sm:$0xff]  ;;  %v9095_v18 = vld [vmem:[%s7044_s5 + $0xfa] sm:$0xff]  ;;  %v9099_v27 = vld [vmem:[%s7044_s5 + $0x122] sm:$0xff] }
 0x1c2   : >> { %v2894_v50 = vadd.f32 %v2878_v12, %v2840_v1  ;;  %v2895_v0 = vadd.f32 %v2879_v13, %v2841_v54  ;;  %v2896_v30 = vadd.f32 %v2880_v43, %v2842_v49  ;;  %v2897_v3 = vadd.f32 %v2881_v10, %v2843_v63  ;;  %11453 = vst [vmem:[#allocation77_spill] sm:$0xff] %v9092_v8  ;;  %v9102_v1 = vld [vmem:[%s7044_s5 + $0x12a] sm:$0xff]  ;;  %v11458_v63 = vld [vmem:[#allocation18_spill] sm:$0xff]  ;;  %v11463_v12 = vld [vmem:[#allocation23_spill] sm:$0xff] }
 0x1c3   : >> { %v2898_v55 = vadd.f32 %v2882_v36, %v2844_v40  ;;  %v2899_v25 = vadd.f32 %v2883_v61, %v2845_v42  ;;  %v2900_v9 = vadd.f32 %v2884_v7, %v2846_v14  ;;  %v2901_v52 = vadd.f32 %v2885_v32, %v2847_v15  ;;  %11454 = vst [vmem:[#allocation78_spill] sm:$0xff] %v9095_v18  ;;  %v11457_v54 = vld [vmem:[#allocation17_spill] sm:$0xff]  ;;  %v11459_v42 = vld [vmem:[#allocation19_spill] sm:$0xff]  ;;  %v11460_v19 = vld [vmem:[#allocation20_spill] sm:$0xff] }
 0x1c4   : >> { %v2902_v58 = vadd.f32 %v2886_v11, %v2848_v39  ;;  %v2925_v51 = vmul.f32 %v6085_v48, %v8686_v5  ;;  %11455 = vst [vmem:[#allocation79_spill] sm:$0xff] %v9099_v27  ;;  %11456 = vst [vmem:[#allocation80_spill] sm:$0xff] %v9102_v1  ;;  %v2926_v49 = vmul.f32 %v6085_v48, %v11457_v54  ;;  %v11461_v15 = vld [vmem:[#allocation21_spill] sm:$0xff]  ;;  %v11462_v33 = vld [vmem:[#allocation22_spill] sm:$0xff] }
 0x1c5   : >> { %v2927_v40 = vmul.f32 %v6085_v48, %v11458_v63  ;;  %v2928_v23 = vmul.f32 %v6085_v48, %v11459_v42  ;;  %v2929_v14 = vmul.f32 %v6085_v48, %v11460_v19  ;;  %v2930_v39 = vmul.f32 %v6085_v48, %v11461_v15  ;;  %v11464_v36 = vld [vmem:[#allocation24_spill] sm:$0xff]  ;;  %v11465_v7 = vld [vmem:[#allocation25_spill] sm:$0xff] }
 0x1c6   : >> { %v2931_v41 = vmul.f32 %v6085_v48, %v9086_v28  ;;  %v2932_v62 = vmul.f32 %v6085_v48, %v9089_v45  ;;  %v2933_v5 = vmul.f32 %v6085_v48, %v11462_v33  ;;  %v2934_v13 = vmul.f32 %v6085_v48, %v11463_v12  ;;  %v6102_v42 = vld [vmem:[%s10535_s1 + $0x30] ss:$0 sm:$0xff] }
 0x1c7   : >> { %v2935_v43 = vmul.f32 %v6085_v48, %v9092_v8  ;;  %v2936_v10 = vmul.f32 %v6085_v48, %v9095_v18  ;;  %v2937_v61 = vmul.f32 %v6085_v48, %v11464_v36  ;;  %v2938_v32 = vmul.f32 %v6085_v48, %v11465_v7  ;;  %v9126_v45 = vld [vmem:[%s7044_s5 + $0xcb] sm:$0xff] }
 0x1c8   : >> { %v2939_v11 = vmul.f32 %v6085_v48, %v9099_v27  ;;  %v2940_v54 = vmul.f32 %v6085_v48, %v9102_v1  ;;  %v2941_v63 = vadd.f32 %v2925_v51, %v2887_v46  ;;  %v2942_v19 = vadd.f32 %v2926_v49, %v2888_v26  ;;  %v9123_v51 = vld [vmem:[%s7044_s5 + $0xc3] sm:$0xff]  ;;  %11467 = vst [vmem:[#allocation82_spill] sm:$0xff] %v9126_v45 }
 0x1c9   : >> { %v2943_v15 = vadd.f32 %v2927_v40, %v2889_v38  ;;  %v2944_v33 = vadd.f32 %v2928_v23, %v2890_v34  ;;  %v2945_v12 = vadd.f32 %v2929_v14, %v2891_v24  ;;  %v2946_v36 = vadd.f32 %v2930_v39, %v2892_v16  ;;  %11466 = vst [vmem:[#allocation81_spill] sm:$0xff] %v9123_v51  ;;  %v9129_v34 = vld [vmem:[%s7044_s5 + $0xf3] sm:$0xff]  ;;  %v9132_v24 = vld [vmem:[%s7044_s5 + $0xfb] sm:$0xff]  ;;  %v9136_v40 = vld [vmem:[%s7044_s5 + $0x123] sm:$0xff] }
 0x1ca   : >> { %v2947_v7 = vadd.f32 %v2931_v41, %v2893_v17  ;;  %v2948_v27 = vadd.f32 %v2932_v62, %v2894_v50  ;;  %v2949_v18 = vadd.f32 %v2933_v5, %v2895_v0  ;;  %v2950_v8 = vadd.f32 %v2934_v13, %v2896_v30  ;;  %11468 = vst [vmem:[#allocation83_spill] sm:$0xff] %v9129_v34  ;;  %v11470_v16 = vld [vmem:[#allocation26_spill] sm:$0xff]  ;;  %v9139_v50 = vld [vmem:[%s7044_s5 + $0x12b] sm:$0xff]  ;;  %v11473_v0 = vld [vmem:[#allocation27_spill] sm:$0xff] }
 0x1cb   : >> { %v2951_v48 = vadd.f32 %v2935_v43, %v2897_v3  ;;  %v2952_v1 = vadd.f32 %v2936_v10, %v2898_v55  ;;  %v2953_v46 = vadd.f32 %v2937_v61, %v2899_v25  ;;  %v2954_v26 = vadd.f32 %v2938_v32, %v2900_v9  ;;  %11469 = vst [vmem:[#allocation84_spill] sm:$0xff] %v9132_v24  ;;  %v11474_v30 = vld [vmem:[#allocation28_spill] sm:$0xff]  ;;  %v11475_v25 = vld [vmem:[#allocation29_spill] sm:$0xff]  ;;  %v11476_v14 = vld [vmem:[#allocation30_spill] sm:$0xff] }
 0x1cc   : >> { %v2955_v38 = vadd.f32 %v2939_v11, %v2901_v52  ;;  %v2956_v49 = vadd.f32 %v2940_v54, %v2902_v58  ;;  %v2979_v17 = vmul.f32 %v6102_v42, %v11470_v16  ;;  %11471 = vst [vmem:[#allocation85_spill] sm:$0xff] %v9136_v40  ;;  %11472 = vst [vmem:[#allocation86_spill] sm:$0xff] %v9139_v50  ;;  %v11477_v52 = vld [vmem:[#allocation31_spill] sm:$0xff]  ;;  %v11478_v62 = vld [vmem:[#allocation32_spill] sm:$0xff] }
 0x1cd   : >> { %v2980_v55 = vmul.f32 %v6102_v42, %v11473_v0  ;;  %v2981_v3 = vmul.f32 %v6102_v42, %v11474_v30  ;;  %v2982_v23 = vmul.f32 %v6102_v42, %v11475_v25  ;;  %v2983_v9 = vmul.f32 %v6102_v42, %v11476_v14  ;;  %v11479_v13 = vld [vmem:[#allocation33_spill] sm:$0xff]  ;;  %v11480_v32 = vld [vmem:[#allocation34_spill] sm:$0xff]  ;;  %v11481_v54 = vld [vmem:[#allocation35_spill] sm:$0xff] }
 0x1ce   : >> { %v2984_v58 = vmul.f32 %v6102_v42, %v11477_v52  ;;  %v2985_v39 = vmul.f32 %v6102_v42, %v9123_v51  ;;  %v2986_v41 = vmul.f32 %v6102_v42, %v9126_v45  ;;  %v2987_v5 = vmul.f32 %v6102_v42, %v11478_v62  ;;  %v6119_v14 = vld [vmem:[%s10535_s1 + $0x31] ss:$0 sm:$0xff] }
 0x1cf   : >> { %v2988_v43 = vmul.f32 %v6102_v42, %v11479_v13  ;;  %v2989_v10 = vmul.f32 %v6102_v42, %v9129_v34  ;;  %v2990_v61 = vmul.f32 %v6102_v42, %v9132_v24  ;;  %v2991_v11 = vmul.f32 %v6102_v42, %v11480_v32  ;;  %v9163_v51 = vld [vmem:[%s7044_s5 + $0xcc] sm:$0xff] }
 0x1d0   : >> { %v2992_v16 = vmul.f32 %v6102_v42, %v11481_v54  ;;  %v2993_v0 = vmul.f32 %v6102_v42, %v9136_v40  ;;  %v2994_v30 = vmul.f32 %v6102_v42, %v9139_v50  ;;  %v2995_v25 = vadd.f32 %v2979_v17, %v2941_v63  ;;  %v9160_v17 = vld [vmem:[%s7044_s5 + $0xc4] sm:$0xff]  ;;  %11483 = vst [vmem:[#allocation88_spill] sm:$0xff] %v9163_v51 }
 0x1d1   : >> { %v2996_v52 = vadd.f32 %v2980_v55, %v2942_v19  ;;  %v2997_v62 = vadd.f32 %v2981_v3, %v2943_v15  ;;  %v2998_v13 = vadd.f32 %v2982_v23, %v2944_v33  ;;  %v2999_v24 = vadd.f32 %v2983_v9, %v2945_v12  ;;  %11482 = vst [vmem:[#allocation87_spill] sm:$0xff] %v9160_v17  ;;  %v9166_v33 = vld [vmem:[%s7044_s5 + $0xf4] sm:$0xff]  ;;  %v9169_v12 = vld [vmem:[%s7044_s5 + $0xfc] sm:$0xff]  ;;  %v9173_v3 = vld [vmem:[%s7044_s5 + $0x124] sm:$0xff] }
 0x1d2   : >> { %v3000_v32 = vadd.f32 %v2984_v58, %v2946_v36  ;;  %v3001_v54 = vadd.f32 %v2985_v39, %v2947_v7  ;;  %v3002_v40 = vadd.f32 %v2986_v41, %v2948_v27  ;;  %v3003_v34 = vadd.f32 %v2987_v5, %v2949_v18  ;;  %11484 = vst [vmem:[#allocation89_spill] sm:$0xff] %v9166_v33  ;;  %v11486_v36 = vld [vmem:[#allocation36_spill] sm:$0xff]  ;;  %v11494_v41 = vld [vmem:[#allocation42_spill] sm:$0xff] }
 0x1d3   : >> { %v3004_v45 = vadd.f32 %v2988_v43, %v2950_v8  ;;  %v3005_v42 = vadd.f32 %v2989_v10, %v2951_v48  ;;  %v3006_v50 = vadd.f32 %v2990_v61, %v2952_v1  ;;  %v3007_v63 = vadd.f32 %v2991_v11, %v2953_v46  ;;  %11485 = vst [vmem:[#allocation90_spill] sm:$0xff] %v9169_v12  ;;  %v9176_v18 = vld [vmem:[%s7044_s5 + $0x12c] sm:$0xff]  ;;  %v11490_v1 = vld [vmem:[#allocation38_spill] sm:$0xff]  ;;  %v11491_v46 = vld [vmem:[#allocation39_spill] sm:$0xff] }
 0x1d4   : >> { %v3008_v19 = vadd.f32 %v2992_v16, %v2954_v26  ;;  %v3009_v15 = vadd.f32 %v2993_v0, %v2955_v38  ;;  %v3010_v55 = vadd.f32 %v2994_v30, %v2956_v49  ;;  %v3033_v7 = vmul.f32 %v6119_v14, %v11486_v36  ;;  %11487 = vst [vmem:[#allocation91_spill] sm:$0xff] %v9173_v3  ;;  %v11489_v8 = vld [vmem:[#allocation37_spill] sm:$0xff]  ;;  %v11492_v9 = vld [vmem:[#allocation40_spill] sm:$0xff]  ;;  %v11495_v43 = vld [vmem:[#allocation43_spill] sm:$0xff] }
 0x1d5   : >> { %11488 = vst [vmem:[#allocation92_spill] sm:$0xff] %v9176_v18  ;;  %v3034_v27 = vmul.f32 %v6119_v14, %v11489_v8  ;;  %v3035_v48 = vmul.f32 %v6119_v14, %v11490_v1  ;;  %v3036_v23 = vmul.f32 %v6119_v14, %v11491_v46  ;;  %v3037_v26 = vmul.f32 %v6119_v14, %v11492_v9  ;;  %v11493_v38 = vld [vmem:[#allocation41_spill] sm:$0xff]  ;;  %v11496_v16 = vld [vmem:[#allocation44_spill] sm:$0xff] }
 0x1d6   : >> { %v3038_v49 = vmul.f32 %v6119_v14, %v11493_v38  ;;  %v3039_v58 = vmul.f32 %v6119_v14, %v9160_v17  ;;  %v3040_v39 = vmul.f32 %v6119_v14, %v9163_v51  ;;  %v3041_v5 = vmul.f32 %v6119_v14, %v11494_v41  ;;  %v11497_v30 = vld [vmem:[#allocation45_spill] sm:$0xff] }
 0x1d7   : >> { %v3042_v10 = vmul.f32 %v6119_v14, %v11495_v43  ;;  %v3043_v61 = vmul.f32 %v6119_v14, %v9166_v33  ;;  %v3044_v11 = vmul.f32 %v6119_v14, %v9169_v12  ;;  %v3045_v0 = vmul.f32 %v6119_v14, %v11496_v16  ;;  %v6136_v9 = vld [vmem:[%s10535_s1 + $0x32] ss:$0 sm:$0xff] }
 0x1d8   : >> { %v3046_v36 = vmul.f32 %v6119_v14, %v11497_v30  ;;  %v3047_v8 = vmul.f32 %v6119_v14, %v9173_v3  ;;  %v3048_v1 = vmul.f32 %v6119_v14, %v9176_v18  ;;  %v3049_v46 = vadd.f32 %v3033_v7, %v2995_v25  ;;  %v9197_v7 = vld [vmem:[%s7044_s5 + $0xc5] sm:$0xff]  ;;  %v9200_v17 = vld [vmem:[%s7044_s5 + $0xcd] sm:$0xff] }
 0x1d9   : >> { %v3050_v38 = vadd.f32 %v3034_v27, %v2996_v52  ;;  %v3051_v41 = vadd.f32 %v3035_v48, %v2997_v62  ;;  %v3052_v43 = vadd.f32 %v3036_v23, %v2998_v13  ;;  %v3053_v12 = vadd.f32 %v3037_v26, %v2999_v24  ;;  %11498 = vst [vmem:[#allocation93_spill] sm:$0xff] %v9200_v17  ;;  %v9203_v13 = vld [vmem:[%s7044_s5 + $0xf5] sm:$0xff]  ;;  %v9206_v24 = vld [vmem:[%s7044_s5 + $0xfd] sm:$0xff]  ;;  %v9210_v48 = vld [vmem:[%s7044_s5 + $0x125] sm:$0xff] }
 0x1da   : >> { %v3054_v16 = vadd.f32 %v3038_v49, %v3000_v32  ;;  %v3055_v30 = vadd.f32 %v3039_v58, %v3001_v54  ;;  %v3056_v3 = vadd.f32 %v3040_v39, %v3002_v40  ;;  %v3057_v33 = vadd.f32 %v3041_v5, %v3003_v34  ;;  %11499 = vst [vmem:[#allocation94_spill] sm:$0xff] %v9203_v13  ;;  %v11501_v32 = vld [vmem:[#allocation46_spill] sm:$0xff]  ;;  %v9213_v34 = vld [vmem:[%s7044_s5 + $0x12d] sm:$0xff] }
 0x1db   : >> { %v3058_v51 = vadd.f32 %v3042_v10, %v3004_v45  ;;  %v3059_v14 = vadd.f32 %v3043_v61, %v3005_v42  ;;  %v3060_v18 = vadd.f32 %v3044_v11, %v3006_v50  ;;  %v3061_v25 = vadd.f32 %v3045_v0, %v3007_v63  ;;  %11500 = vst [vmem:[#allocation95_spill] sm:$0xff] %v9206_v24  ;;  %v11504_v45 = vld [vmem:[#allocation47_spill] sm:$0xff]  ;;  %v11505_v50 = vld [vmem:[#allocation48_spill] sm:$0xff]  ;;  %v11506_v63 = vld [vmem:[#allocation49_spill] sm:$0xff] }
 0x1dc   : >> { %v3062_v52 = vadd.f32 %v3046_v36, %v3008_v19  ;;  %v3063_v62 = vadd.f32 %v3047_v8, %v3009_v15  ;;  %v3064_v27 = vadd.f32 %v3048_v1, %v3010_v55  ;;  %v3087_v54 = vmul.f32 %v6136_v9, %v11501_v32  ;;  %11502 = vst [vmem:[#allocation96_spill] sm:$0xff] %v9210_v48  ;;  %v11507_v26 = vld [vmem:[#allocation50_spill] sm:$0xff]  ;;  %v11508_v15 = vld [vmem:[#allocation51_spill] sm:$0xff]  ;;  %v11509_v39 = vld [vmem:[#allocation52_spill] sm:$0xff] }
 0x1dd   : >> { %11503 = vst [vmem:[#allocation97_spill] sm:$0xff] %v9213_v34  ;;  %v3088_v40 = vmul.f32 %v6136_v9, %v11504_v45  ;;  %v3089_v42 = vmul.f32 %v6136_v9, %v11505_v50  ;;  %v3090_v23 = vmul.f32 %v6136_v9, %v11506_v63  ;;  %v3091_v19 = vmul.f32 %v6136_v9, %v11507_v26  ;;  %v11510_v10 = vld [vmem:[#allocation53_spill] sm:$0xff]  ;;  %v11511_v36 = vld [vmem:[#allocation54_spill] sm:$0xff] }
 0x1de   : >> { %v3092_v55 = vmul.f32 %v6136_v9, %v11508_v15  ;;  %v3093_v49 = vmul.f32 %v6136_v9, %v9197_v7  ;;  %v3094_v58 = vmul.f32 %v6136_v9, %v9200_v17  ;;  %v3095_v5 = vmul.f32 %v6136_v9, %v11509_v39  ;;  %v6153_v63 = vld [vmem:[%s10535_s1 + $0x33] ss:$0 sm:$0xff] }
 0x1df   : >> { %v3096_v61 = vmul.f32 %v6136_v9, %v11510_v10  ;;  %v3097_v11 = vmul.f32 %v6136_v9, %v9203_v13  ;;  %v3098_v0 = vmul.f32 %v6136_v9, %v9206_v24  ;;  %v3099_v8 = vmul.f32 %v6136_v9, %v11511_v36  ;;  %v9237_v17 = vld [vmem:[%s7044_s5 + $0xce] sm:$0xff] }
 0x1e0   : >> { %v3100_v1 = vmul.f32 %v6136_v9, %v8860_v21  ;;  %v3101_v32 = vmul.f32 %v6136_v9, %v9210_v48  ;;  %v3102_v45 = vmul.f32 %v6136_v9, %v9213_v34  ;;  %v3103_v50 = vadd.f32 %v3087_v54, %v3049_v46  ;;  %v9234_v54 = vld [vmem:[%s7044_s5 + $0xc6] sm:$0xff]  ;;  %11512 = vst [vmem:[#allocation98_spill] sm:$0xff] %v9237_v17 }
 0x1e1   : >> { %v3104_v26 = vadd.f32 %v3088_v40, %v3050_v38  ;;  %v3105_v15 = vadd.f32 %v3089_v42, %v3051_v41  ;;  %v3106_v39 = vadd.f32 %v3090_v23, %v3052_v43  ;;  %v3107_v10 = vadd.f32 %v3091_v19, %v3053_v12  ;;  %v9240_v43 = vld [vmem:[%s7044_s5 + $0xf6] sm:$0xff]  ;;  %v9243_v12 = vld [vmem:[%s7044_s5 + $0xfe] sm:$0xff]  ;;  %v9247_v42 = vld [vmem:[%s7044_s5 + $0x126] sm:$0xff] }
 0x1e2   : >> { %v3108_v36 = vadd.f32 %v3092_v55, %v3054_v16  ;;  %v3109_v21 = vadd.f32 %v3093_v49, %v3055_v30  ;;  %v3110_v48 = vadd.f32 %v3094_v58, %v3056_v3  ;;  %v3111_v24 = vadd.f32 %v3095_v5, %v3057_v33  ;;  %11513 = vst [vmem:[#allocation99_spill] sm:$0xff] %v9240_v43  ;;  %v11515_v16 = vld [vmem:[#allocation55_spill] sm:$0xff]  ;;  %v9250_v33 = vld [vmem:[%s7044_s5 + $0x12e] sm:$0xff] }
 0x1e3   : >> { %v3112_v13 = vadd.f32 %v3096_v61, %v3058_v51  ;;  %v3113_v9 = vadd.f32 %v3097_v11, %v3059_v14  ;;  %v3114_v34 = vadd.f32 %v3098_v0, %v3060_v18  ;;  %v3115_v46 = vadd.f32 %v3099_v8, %v3061_v25  ;;  %11514 = vst [vmem:[#allocation100_spill] sm:$0xff] %v9243_v12  ;;  %v11518_v51 = vld [vmem:[#allocation56_spill] sm:$0xff]  ;;  %v11519_v18 = vld [vmem:[#allocation57_spill] sm:$0xff]  ;;  %v11520_v25 = vld [vmem:[#allocation58_spill] sm:$0xff] }
 0x1e4   : >> { %v3116_v38 = vadd.f32 %v3100_v1, %v3062_v52  ;;  %v3117_v41 = vadd.f32 %v3101_v32, %v3063_v62  ;;  %v3118_v40 = vadd.f32 %v3102_v45, %v3064_v27  ;;  %v3141_v30 = vmul.f32 %v6153_v63, %v11515_v16  ;;  %11516 = vst [vmem:[#allocation101_spill] sm:$0xff] %v9247_v42  ;;  %v11521_v19 = vld [vmem:[#allocation59_spill] sm:$0xff]  ;;  %v11522_v62 = vld [vmem:[#allocation60_spill] sm:$0xff]  ;;  %v11523_v58 = vld [vmem:[#allocation61_spill] sm:$0xff] }
 0x1e5   : >> { %11517 = vst [vmem:[#allocation102_spill] sm:$0xff] %v9250_v33  ;;  %v3142_v3 = vmul.f32 %v6153_v63, %v11518_v51  ;;  %v3143_v14 = vmul.f32 %v6153_v63, %v11519_v18  ;;  %v3144_v23 = vmul.f32 %v6153_v63, %v11520_v25  ;;  %v3145_v52 = vmul.f32 %v6153_v63, %v11521_v19  ;;  %v11524_v61 = vld [vmem:[#allocation62_spill] sm:$0xff]  ;;  %v11525_v1 = vld [vmem:[#allocation63_spill] sm:$0xff]  ;;  %v6170_v25 = vld [vmem:[%s10535_s1 + $0x34] ss:$0 sm:$0xff] }
 0x1e6   : >> { %v3146_v27 = vmul.f32 %v6153_v63, %v11522_v62  ;;  %v3147_v55 = vmul.f32 %v6153_v63, %v9234_v54  ;;  %v3148_v49 = vmul.f32 %v6153_v63, %v9237_v17  ;;  %v3149_v5 = vmul.f32 %v6153_v63, %v11523_v58  ;;  %v9274_v17 = vld [vmem:[%s7044_s5 + $0xcf] sm:$0xff] }
 0x1e7   : >> { %v3150_v11 = vmul.f32 %v6153_v63, %v11524_v61  ;;  %v3151_v0 = vmul.f32 %v6153_v63, %v9240_v43  ;;  %v3152_v8 = vmul.f32 %v6153_v63, %v9243_v12  ;;  %v3153_v32 = vmul.f32 %v6153_v63, %v11525_v1  ;;  %11527 = vst [vmem:[#allocation104_spill] sm:$0xff] %v9274_v17 }
 0x1e8   : >> { %v3154_v45 = vmul.f32 %v6153_v63, %v8909_v37  ;;  %v3155_v16 = vmul.f32 %v6153_v63, %v9247_v42  ;;  %v3156_v51 = vmul.f32 %v6153_v63, %v9250_v33  ;;  %v3157_v18 = vadd.f32 %v3141_v30, %v3103_v50  ;;  %v9271_v30 = vld [vmem:[%s7044_s5 + $0xc7] sm:$0xff] }
 0x1e9   : >> { %v3158_v19 = vadd.f32 %v3142_v3, %v3104_v26  ;;  %v3159_v62 = vadd.f32 %v3143_v14, %v3105_v15  ;;  %v3160_v58 = vadd.f32 %v3144_v23, %v3106_v39  ;;  %v3161_v61 = vadd.f32 %v3145_v52, %v3107_v10  ;;  %11526 = vst [vmem:[#allocation103_spill] sm:$0xff] %v9271_v30  ;;  %v9277_v39 = vld [vmem:[%s7044_s5 + $0xf7] sm:$0xff]  ;;  %v9280_v10 = vld [vmem:[%s7044_s5 + $0xff] sm:$0xff]  ;;  %v9284_v14 = vld [vmem:[%s7044_s5 + $0x127] sm:$0xff] }
 0x1ea   : >> { %v3162_v1 = vadd.f32 %v3146_v27, %v3108_v36  ;;  %v3163_v37 = vadd.f32 %v3147_v55, %v3109_v21  ;;  %v3164_v42 = vadd.f32 %v3148_v49, %v3110_v48  ;;  %v3165_v12 = vadd.f32 %v3149_v5, %v3111_v24  ;;  %11528 = vst [vmem:[#allocation105_spill] sm:$0xff] %v9277_v39  ;;  %v11530_v36 = vld [vmem:[#allocation64_spill] sm:$0xff]  ;;  %v11538_v49 = vld [vmem:[#allocation70_spill] sm:$0xff] }
 0x1eb   : >> { %v3166_v43 = vadd.f32 %v3150_v11, %v3112_v13  ;;  %v3167_v63 = vadd.f32 %v3151_v0, %v3113_v9  ;;  %v3168_v33 = vadd.f32 %v3152_v8, %v3114_v34  ;;  %v3169_v50 = vadd.f32 %v3153_v32, %v3115_v46  ;;  %11529 = vst [vmem:[#allocation3_spill] sm:$0xff] %v9280_v10  ;;  %v9287_v24 = vld [vmem:[%s7044_s5 + $0x12f] sm:$0xff]  ;;  %v11534_v34 = vld [vmem:[#allocation66_spill] sm:$0xff]  ;;  %v11535_v46 = vld [vmem:[#allocation67_spill] sm:$0xff] }
 0x1ec   : >> { %v3170_v26 = vadd.f32 %v3154_v45, %v3116_v38  ;;  %v3171_v15 = vadd.f32 %v3155_v16, %v3117_v41  ;;  %v3172_v3 = vadd.f32 %v3156_v51, %v3118_v40  ;;  %v3195_v21 = vmul.f32 %v6170_v25, %v11530_v36  ;;  %11531 = vst [vmem:[#allocation4_spill] sm:$0xff] %v9284_v14  ;;  %v11533_v13 = vld [vmem:[#allocation65_spill] sm:$0xff]  ;;  %v11536_v52 = vld [vmem:[#allocation68_spill] sm:$0xff]  ;;  %v11539_v11 = vld [vmem:[#allocation71_spill] sm:$0xff] }
 0x1ed   : >> { %11532 = vst [vmem:[#allocation5_spill] sm:$0xff] %v9287_v24  ;;  %v3196_v48 = vmul.f32 %v6170_v25, %v11533_v13  ;;  %v3197_v9 = vmul.f32 %v6170_v25, %v11534_v34  ;;  %v3198_v23 = vmul.f32 %v6170_v25, %v11535_v46  ;;  %v3199_v38 = vmul.f32 %v6170_v25, %v11536_v52  ;;  %v11537_v41 = vld [vmem:[#allocation69_spill] sm:$0xff]  ;;  %v11540_v45 = vld [vmem:[#allocation72_spill] sm:$0xff] }
 0x1ee   : >> { %v3200_v40 = vmul.f32 %v6170_v25, %v11537_v41  ;;  %v3201_v27 = vmul.f32 %v6170_v25, %v9271_v30  ;;  %v3202_v55 = vmul.f32 %v6170_v25, %v9274_v17  ;;  %v3203_v5 = vmul.f32 %v6170_v25, %v11538_v49  ;;  %v11541_v51 = vld [vmem:[#allocation73_spill] sm:$0xff] }
 0x1ef   : >> { %v3204_v0 = vmul.f32 %v6170_v25, %v11539_v11  ;;  %v3205_v8 = vmul.f32 %v6170_v25, %v9277_v39  ;;  %v3206_v32 = vmul.f32 %v6170_v25, %v9280_v10  ;;  %v3207_v16 = vmul.f32 %v6170_v25, %v11540_v45  ;;  %v6179_v52 = vld [vmem:[%s10535_s1 + $0x35] ss:$0 sm:$0xff] }
 0x1f0   : >> { %v3208_v36 = vmul.f32 %v6170_v25, %v11541_v51  ;;  %v3209_v13 = vmul.f32 %v6170_v25, %v9284_v14  ;;  %v3210_v34 = vmul.f32 %v6170_v25, %v9287_v24  ;;  %v3211_v46 = vadd.f32 %v3195_v21, %v3157_v18  ;;  %v9308_v24 = vld [vmem:[%s7044_s5 + $0xd0] sm:$0xff] }
 0x1f1   : >> { %v3212_v41 = vadd.f32 %v3196_v48, %v3158_v19  ;;  %v3213_v49 = vadd.f32 %v3197_v9, %v3159_v62  ;;  %v3214_v11 = vadd.f32 %v3198_v23, %v3160_v58  ;;  %v3215_v10 = vadd.f32 %v3199_v38, %v3161_v61  ;;  %v9311_v48 = vld [vmem:[%s7044_s5 + $0x100] sm:$0xff] }
 0x1f2   : >> { %v3216_v45 = vadd.f32 %v3200_v40, %v3162_v1  ;;  %v3217_v39 = vadd.f32 %v3201_v27, %v3163_v37  ;;  %v3218_v51 = vadd.f32 %v3202_v55, %v3164_v42  ;;  %v3219_v14 = vadd.f32 %v3203_v5, %v3165_v12  ;;  %v6824_v58 = vld [vmem:[%s7044_s5 + $0x80] sm:$0xff]  ;;  %v9315_v1 = vld [vmem:[%s7044_s5 + $0x130] sm:$0xff] }
 0x1f3   : >> { %v3220_v17 = vadd.f32 %v3204_v0, %v3166_v43  ;;  %v3221_v25 = vadd.f32 %v3205_v8, %v3167_v63  ;;  %v3222_v18 = vadd.f32 %v3206_v32, %v3168_v33  ;;  %v3223_v21 = vadd.f32 %v3207_v16, %v3169_v50  ;;  %v6825_v43 = vld [vmem:[%s7044_s5 + $0x98] sm:$0xff]  ;;  %v6826_v37 = vld [vmem:[%s7044_s5 + $0xb0] sm:$0xff] }
 0x1f4   : >> { %v3224_v30 = vadd.f32 %v3208_v36, %v3170_v26  ;;  %v3225_v19 = vadd.f32 %v3209_v13, %v3171_v15  ;;  %v3226_v62 = vadd.f32 %v3210_v34, %v3172_v3  ;;  %v3241_v61 = vmul.f32 %v6824_v58, %v6179_v52  ;;  %v6827_v3 = vld [vmem:[%s7044_s5 + $0xe0] sm:$0xff]  ;;  %v6828_v40 = vld [vmem:[%s7044_s5 + $0x110] sm:$0xff] }
 0x1f5   : >> { %v3242_v12 = vmul.f32 %v6179_v52, %v8979_v59  ;;  %v3243_v42 = vmul.f32 %v6825_v43, %v6179_v52  ;;  %v3244_v33 = vmul.f32 %v6179_v52, %v8982_v2  ;;  %v3245_v63 = vmul.f32 %v6826_v37, %v6179_v52  ;;  %v6207_v16 = vld [vmem:[%s10535_s1 + $0x36] ss:$0 sm:$0xff]  ;;  %v9358_v37 = vld [vmem:[%s7044_s5 + $0x138] sm:$0xff] }
 0x1f6   : >> { %v3246_v50 = vmul.f32 %v6179_v52, %v8985_v31  ;;  %v3247_v26 = vmul.f32 %v6179_v52, %v9015_v4  ;;  %v3248_v15 = vmul.f32 %v6179_v52, %v9308_v24  ;;  %v3249_v9 = vmul.f32 %v6827_v3, %v6179_v52  ;;  %v6191_v36 = vld [vmem:[%s7044_s5 + $0x90] sm:$0xff] }
 0x1f7   : >> { %v3250_v23 = vmul.f32 %v6179_v52, %v8988_v22  ;;  %v3251_v38 = vmul.f32 %v6179_v52, %v9021_v56  ;;  %v3252_v59 = vmul.f32 %v6179_v52, %v9311_v48  ;;  %v3253_v2 = vmul.f32 %v6828_v40, %v6179_v52 }
 0x1f8   : >> { %v3254_v27 = vmul.f32 %v6179_v52, %v8992_v20  ;;  %v3255_v31 = vmul.f32 %v6179_v52, %v9028_v6  ;;  %v3256_v55 = vmul.f32 %v6179_v52, %v9315_v1  ;;  %v3257_v5 = vadd.f32 %v3241_v61, %v3211_v46  ;;  %v9337_v52 = vld [vmem:[%s7044_s5 + $0x98] sm:$0xff]  ;;  %v9340_v46 = vld [vmem:[%s7044_s5 + $0xa8] sm:$0xff] }
 0x1f9   : >> { %v3258_v0 = vadd.f32 %v3242_v12, %v3212_v41  ;;  %v3259_v8 = vadd.f32 %v3243_v42, %v3213_v49  ;;  %v3260_v22 = vadd.f32 %v3244_v33, %v3214_v11  ;;  %v3261_v32 = vadd.f32 %v3245_v63, %v3215_v10  ;;  %v9343_v41 = vld [vmem:[%s7044_s5 + $0xb0] sm:$0xff]  ;;  %v9346_v12 = vld [vmem:[%s7044_s5 + $0xd8] sm:$0xff]  ;;  %v9361_v63 = vld [vmem:[%s7044_s5 + $0x140] sm:$0xff] }
 0x1fa   : >> { %v3262_v13 = vadd.f32 %v3246_v50, %v3216_v45  ;;  %v3263_v20 = vadd.f32 %v3247_v26, %v3217_v39  ;;  %v3264_v34 = vadd.f32 %v3248_v15, %v3218_v51  ;;  %v3265_v58 = vadd.f32 %v3249_v9, %v3219_v14  ;;  %v9349_v45 = vld [vmem:[%s7044_s5 + $0xe0] sm:$0xff]  ;;  %v9352_v14 = vld [vmem:[%s7044_s5 + $0x108] sm:$0xff]  ;;  %v9355_v42 = vld [vmem:[%s7044_s5 + $0x110] sm:$0xff] }
 0x1fb   : >> { %v3266_v10 = vadd.f32 %v3250_v23, %v3220_v17  ;;  %v3267_v49 = vadd.f32 %v3251_v38, %v3221_v25  ;;  %v3268_v11 = vadd.f32 %v3252_v59, %v3222_v18  ;;  %v3269_v61 = vadd.f32 %v3253_v2, %v3223_v21 }
 0x1fc   : >> { %v3270_v39 = vadd.f32 %v3254_v27, %v3224_v30  ;;  %v3271_v43 = vadd.f32 %v3255_v31, %v3225_v19  ;;  %v3272_v51 = vadd.f32 %v3256_v55, %v3226_v62  ;;  %v3308_v33 = vmul.f32 %v6207_v16, %v6191_v36  ;;  %v9387_v36 = vld [vmem:[%s7044_s5 + $0xb1] sm:$0xff] }
 0x1fd   : >> { %v3309_v17 = vmul.f32 %v6207_v16, %v9337_v52  ;;  %v3310_v25 = vmul.f32 %v6207_v16, %v9340_v46  ;;  %v3311_v18 = vmul.f32 %v6207_v16, %v9343_v41  ;;  %v3312_v21 = vmul.f32 %v6207_v16, %v9012_v35 }
 0x1fe   : >> { %v3313_v30 = vmul.f32 %v6207_v16, %v9015_v4  ;;  %v3314_v19 = vmul.f32 %v6207_v16, %v9346_v12  ;;  %v3315_v62 = vmul.f32 %v6207_v16, %v9349_v45  ;;  %v3316_v50 = vmul.f32 %v6207_v16, %v9018_v60  ;;  %v6224_v60 = vld [vmem:[%s10535_s1 + $0x37] ss:$0 sm:$0xff] }
 0x1ff   : >> { %v3317_v26 = vmul.f32 %v6207_v16, %v9021_v56  ;;  %v3318_v15 = vmul.f32 %v6207_v16, %v9352_v14  ;;  %v3319_v3 = vmul.f32 %v6207_v16, %v9355_v42  ;;  %v3320_v9 = vmul.f32 %v6207_v16, %v9025_v53  ;;  %v6208_v53 = vld [vmem:[%s7044_s5 + $0x91] sm:$0xff] }
 0x200   : >> { %v3321_v35 = vmul.f32 %v6207_v16, %v9028_v6  ;;  %v3322_v4 = vmul.f32 %v6207_v16, %v9358_v37  ;;  %v3323_v23 = vmul.f32 %v6207_v16, %v9361_v63  ;;  %v3324_v38 = vadd.f32 %v3308_v33, %v3257_v5  ;;  %v6209_v16 = vld [vmem:[%s7044_s5 + $0x99] sm:$0xff]  ;;  %v9384_v5 = vld [vmem:[%s7044_s5 + $0xa9] sm:$0xff] }
 0x201   : >> { %v3325_v56 = vadd.f32 %v3309_v17, %v3258_v0  ;;  %v3326_v59 = vadd.f32 %v3310_v25, %v3259_v8  ;;  %v3327_v40 = vadd.f32 %v3311_v18, %v3260_v22  ;;  %v3328_v2 = vadd.f32 %v3312_v21, %v3261_v32  ;;  %v9390_v22 = vld [vmem:[%s7044_s5 + $0xd9] sm:$0xff]  ;;  %v9393_v32 = vld [vmem:[%s7044_s5 + $0xe1] sm:$0xff] }
 0x202   : >> { %v3329_v27 = vadd.f32 %v3313_v30, %v3262_v13  ;;  %v3330_v6 = vadd.f32 %v3314_v19, %v3263_v20  ;;  %v3331_v31 = vadd.f32 %v3315_v62, %v3264_v34  ;;  %v3332_v55 = vadd.f32 %v3316_v50, %v3265_v58  ;;  %v9396_v34 = vld [vmem:[%s7044_s5 + $0x109] sm:$0xff]  ;;  %v9399_v58 = vld [vmem:[%s7044_s5 + $0x111] sm:$0xff]  ;;  %v9402_v21 = vld [vmem:[%s7044_s5 + $0x139] sm:$0xff] }
 0x203   : >> { %v3333_v0 = vadd.f32 %v3317_v26, %v3266_v10  ;;  %v3334_v33 = vadd.f32 %v3318_v15, %v3267_v49  ;;  %v3335_v8 = vadd.f32 %v3319_v3, %v3268_v11  ;;  %v3336_v17 = vadd.f32 %v3320_v9, %v3269_v61  ;;  %11542 = vst [vmem:[#allocation6_spill] sm:$0xff] %v9396_v34  ;;  %v9405_v30 = vld [vmem:[%s7044_s5 + $0x141] sm:$0xff]  ;;  %v11545_v15 = vld [vmem:[#allocation74_spill] sm:$0xff] }
 0x204   : >> { %v3337_v13 = vadd.f32 %v3321_v35, %v3270_v39  ;;  %v3338_v20 = vadd.f32 %v3322_v4, %v3271_v43  ;;  %v3339_v25 = vadd.f32 %v3323_v23, %v3272_v51  ;;  %11543 = vst [vmem:[#allocation7_spill] sm:$0xff] %v9399_v58  ;;  %v3362_v18 = vmul.f32 %v6224_v60, %v6208_v53  ;;  %v11546_v9 = vld [vmem:[#allocation75_spill] sm:$0xff] }
 0x205   : >> { %11544 = vst [vmem:[#allocation8_spill] sm:$0xff] %v9402_v21  ;;  %v3363_v10 = vmul.f32 %v6224_v60, %v6209_v16  ;;  %v3364_v49 = vmul.f32 %v6224_v60, %v9384_v5  ;;  %v3365_v11 = vmul.f32 %v6224_v60, %v9387_v36  ;;  %v3366_v61 = vmul.f32 %v6224_v60, %v9049_v44 }
 0x206   : >> { %v3367_v39 = vmul.f32 %v6224_v60, %v9052_v29  ;;  %v3368_v43 = vmul.f32 %v6224_v60, %v9390_v22  ;;  %v3369_v51 = vmul.f32 %v6224_v60, %v9393_v32  ;;  %v3370_v19 = vmul.f32 %v6224_v60, %v9055_v47  ;;  %v6241_v47 = vld [vmem:[%s10535_s1 + $0x38] ss:$0 sm:$0xff] }
 0x207   : >> { %v3371_v62 = vmul.f32 %v6224_v60, %v9058_v57  ;;  %v3372_v50 = vmul.f32 %v6224_v60, %v9396_v34  ;;  %v3373_v26 = vmul.f32 %v6224_v60, %v9399_v58  ;;  %v3374_v3 = vmul.f32 %v6224_v60, %v11545_v15  ;;  %v6225_v15 = vld [vmem:[%s7044_s5 + $0x92] sm:$0xff] }
 0x208   : >> { %v3375_v44 = vmul.f32 %v6224_v60, %v11546_v9  ;;  %v3376_v29 = vmul.f32 %v6224_v60, %v9402_v21  ;;  %v3377_v35 = vmul.f32 %v6224_v60, %v9405_v30  ;;  %v3378_v4 = vadd.f32 %v3362_v18, %v3324_v38  ;;  %v6226_v60 = vld [vmem:[%s7044_s5 + $0x9a] sm:$0xff]  ;;  %v9427_v38 = vld [vmem:[%s7044_s5 + $0xaa] sm:$0xff]  ;;  %v9430_v18 = vld [vmem:[%s7044_s5 + $0xb2] sm:$0xff] }
 0x209   : >> { %v3379_v57 = vadd.f32 %v3363_v10, %v3325_v56  ;;  %v3380_v23 = vadd.f32 %v3364_v49, %v3326_v59  ;;  %v3381_v53 = vadd.f32 %v3365_v11, %v3327_v40  ;;  %v3382_v16 = vadd.f32 %v3366_v61, %v3328_v2  ;;  %11547 = vst [vmem:[#allocation9_spill] sm:$0xff] %v9427_v38  ;;  %v9433_v40 = vld [vmem:[%s7044_s5 + $0xda] sm:$0xff]  ;;  %v9436_v2 = vld [vmem:[%s7044_s5 + $0xe2] sm:$0xff] }
 0x20a   : >> { %v3383_v58 = vadd.f32 %v3367_v39, %v3329_v27  ;;  %v3384_v9 = vadd.f32 %v3368_v43, %v3330_v6  ;;  %v3385_v34 = vadd.f32 %v3369_v51, %v3331_v31  ;;  %v3386_v21 = vadd.f32 %v3370_v19, %v3332_v55  ;;  %11548 = vst [vmem:[#allocation10_spill] sm:$0xff] %v9430_v18  ;;  %v9439_v31 = vld [vmem:[%s7044_s5 + $0x10a] sm:$0xff]  ;;  %v9442_v55 = vld [vmem:[%s7044_s5 + $0x112] sm:$0xff]  ;;  %v9445_v39 = vld [vmem:[%s7044_s5 + $0x13a] sm:$0xff] }
 0x20b   : >> { %v3387_v56 = vadd.f32 %v3371_v62, %v3333_v0  ;;  %v3388_v10 = vadd.f32 %v3372_v50, %v3334_v33  ;;  %v3389_v59 = vadd.f32 %v3373_v26, %v3335_v8  ;;  %v3390_v49 = vadd.f32 %v3374_v3, %v3336_v17  ;;  %11549 = vst [vmem:[#allocation11_spill] sm:$0xff] %v9433_v40  ;;  %v9448_v43 = vld [vmem:[%s7044_s5 + $0x142] sm:$0xff]  ;;  %v11556_v19 = vld [vmem:[#allocation77_spill] sm:$0xff]  ;;  %v11557_v50 = vld [vmem:[#allocation78_spill] sm:$0xff] }
 0x20c   : >> { %11550 = vst [vmem:[#allocation12_spill] sm:$0xff] %v9436_v2  ;;  %v3391_v27 = vadd.f32 %v3375_v44, %v3337_v13  ;;  %v3392_v6 = vadd.f32 %v3376_v29, %v3338_v20  ;;  %v3393_v11 = vadd.f32 %v3377_v35, %v3339_v25  ;;  %11551 = vst [vmem:[#allocation13_spill] sm:$0xff] %v9439_v31  ;;  %v11555_v51 = vld [vmem:[#allocation76_spill] sm:$0xff]  ;;  %v11558_v29 = vld [vmem:[#allocation79_spill] sm:$0xff] }
 0x20d   : >> { %11552 = vst [vmem:[#allocation14_spill] sm:$0xff] %v9442_v55  ;;  %v3416_v61 = vmul.f32 %v6241_v47, %v6225_v15  ;;  %11553 = vst [vmem:[#allocation15_spill] sm:$0xff] %v9445_v39  ;;  %v3417_v0 = vmul.f32 %v6241_v47, %v6226_v60  ;;  %v3418_v33 = vmul.f32 %v6241_v47, %v9427_v38  ;;  %v11559_v15 = vld [vmem:[#allocation80_spill] sm:$0xff] }
 0x20e   : >> { %11554 = vst [vmem:[#allocation16_spill] sm:$0xff] %v9448_v43  ;;  %v3419_v8 = vmul.f32 %v6241_v47, %v9430_v18  ;;  %v3420_v17 = vmul.f32 %v6241_v47, %v9086_v28  ;;  %v3421_v13 = vmul.f32 %v6241_v47, %v11555_v51  ;;  %v3422_v20 = vmul.f32 %v6241_v47, %v9433_v40 }
 0x20f   : >> { %v3423_v25 = vmul.f32 %v6241_v47, %v9436_v2  ;;  %v3424_v62 = vmul.f32 %v6241_v47, %v11556_v19  ;;  %v3425_v26 = vmul.f32 %v6241_v47, %v11557_v50  ;;  %v3426_v3 = vmul.f32 %v6241_v47, %v9439_v31  ;;  %v6258_v19 = vld [vmem:[%s10535_s1 + $0x39] ss:$0 sm:$0xff] }
 0x210   : >> { %v3427_v44 = vmul.f32 %v6241_v47, %v9442_v55  ;;  %v3428_v35 = vmul.f32 %v6241_v47, %v11558_v29  ;;  %v3429_v28 = vmul.f32 %v6241_v47, %v11559_v15  ;;  %v3430_v60 = vmul.f32 %v6241_v47, %v9445_v39  ;;  %v6242_v29 = vld [vmem:[%s7044_s5 + $0x93] sm:$0xff] }
 0x211   : >> { %v3431_v51 = vmul.f32 %v6241_v47, %v9448_v43  ;;  %v3432_v2 = vadd.f32 %v3416_v61, %v3378_v4  ;;  %v3433_v50 = vadd.f32 %v3417_v0, %v3379_v57  ;;  %v3434_v31 = vadd.f32 %v3418_v33, %v3380_v23  ;;  %v6243_v47 = vld [vmem:[%s7044_s5 + $0x9b] sm:$0xff]  ;;  %v9470_v4 = vld [vmem:[%s7044_s5 + $0xab] sm:$0xff]  ;;  %v9473_v61 = vld [vmem:[%s7044_s5 + $0xb3] sm:$0xff] }
 0x212   : >> { %v3435_v55 = vadd.f32 %v3419_v8, %v3381_v53  ;;  %v3436_v40 = vadd.f32 %v3420_v17, %v3382_v16  ;;  %v3437_v18 = vadd.f32 %v3421_v13, %v3383_v58  ;;  %v3438_v15 = vadd.f32 %v3422_v20, %v3384_v9  ;;  %11560 = vst [vmem:[#allocation17_spill] sm:$0xff] %v9470_v4  ;;  %v9476_v53 = vld [vmem:[%s7044_s5 + $0xdb] sm:$0xff]  ;;  %v9479_v16 = vld [vmem:[%s7044_s5 + $0xe3] sm:$0xff] }
 0x213   : >> { %v3439_v38 = vadd.f32 %v3423_v25, %v3385_v34  ;;  %v3440_v39 = vadd.f32 %v3424_v62, %v3386_v21  ;;  %11561 = vst [vmem:[#allocation18_spill] sm:$0xff] %v9473_v61  ;;  %v3441_v57 = vadd.f32 %v3425_v26, %v3387_v56  ;;  %v3442_v0 = vadd.f32 %v3426_v3, %v3388_v10  ;;  %v9482_v34 = vld [vmem:[%s7044_s5 + $0x10b] sm:$0xff]  ;;  %v9485_v21 = vld [vmem:[%s7044_s5 + $0x113] sm:$0xff]  ;;  %v9488_v13 = vld [vmem:[%s7044_s5 + $0x13b] sm:$0xff] }
 0x214   : >> { %v3443_v23 = vadd.f32 %v3427_v44, %v3389_v59  ;;  %v3444_v33 = vadd.f32 %v3428_v35, %v3390_v49  ;;  %11562 = vst [vmem:[#allocation19_spill] sm:$0xff] %v9476_v53  ;;  %11563 = vst [vmem:[#allocation20_spill] sm:$0xff] %v9479_v16  ;;  %v3445_v58 = vadd.f32 %v3429_v28, %v3391_v27  ;;  %v9491_v20 = vld [vmem:[%s7044_s5 + $0x143] sm:$0xff]  ;;  %v11568_v49 = vld [vmem:[#allocation81_spill] sm:$0xff] }
 0x215   : >> { %v3446_v9 = vadd.f32 %v3430_v60, %v3392_v6  ;;  %v3447_v8 = vadd.f32 %v3431_v51, %v3393_v11  ;;  %11564 = vst [vmem:[#allocation21_spill] sm:$0xff] %v9482_v34  ;;  %11565 = vst [vmem:[#allocation22_spill] sm:$0xff] %v9485_v21  ;;  %v3470_v17 = vmul.f32 %v6258_v19, %v6242_v29  ;;  %v11569_v62 = vld [vmem:[#allocation82_spill] sm:$0xff]  ;;  %v11570_v26 = vld [vmem:[#allocation83_spill] sm:$0xff] }
 0x216   : >> { %11566 = vst [vmem:[#allocation23_spill] sm:$0xff] %v9488_v13  ;;  %11567 = vst [vmem:[#allocation24_spill] sm:$0xff] %v9491_v20  ;;  %v3471_v56 = vmul.f32 %v6258_v19, %v6243_v47  ;;  %v3472_v10 = vmul.f32 %v6258_v19, %v9470_v4  ;;  %v3473_v59 = vmul.f32 %v6258_v19, %v9473_v61  ;;  %v11571_v44 = vld [vmem:[#allocation84_spill] sm:$0xff]  ;;  %v11572_v51 = vld [vmem:[#allocation85_spill] sm:$0xff] }
 0x217   : >> { %v3474_v25 = vmul.f32 %v6258_v19, %v11568_v49  ;;  %v3475_v27 = vmul.f32 %v6258_v19, %v11569_v62  ;;  %v3476_v6 = vmul.f32 %v6258_v19, %v9476_v53  ;;  %v3477_v11 = vmul.f32 %v6258_v19, %v9479_v16  ;;  %v11573_v47 = vld [vmem:[#allocation86_spill] sm:$0xff] }
 0x218   : >> { %v3478_v3 = vmul.f32 %v6258_v19, %v11570_v26  ;;  %v3479_v35 = vmul.f32 %v6258_v19, %v11571_v44  ;;  %v3480_v28 = vmul.f32 %v6258_v19, %v9482_v34  ;;  %v3481_v60 = vmul.f32 %v6258_v19, %v9485_v21  ;;  %v6275_v26 = vld [vmem:[%s10535_s1 + $0x3a] ss:$0 sm:$0xff] }
 0x219   : >> { %v3482_v29 = vmul.f32 %v6258_v19, %v11572_v51  ;;  %v3483_v49 = vmul.f32 %v6258_v19, %v11573_v47  ;;  %v3484_v62 = vmul.f32 %v6258_v19, %v9488_v13  ;;  %v3485_v53 = vmul.f32 %v6258_v19, %v9491_v20  ;;  %v6259_v51 = vld [vmem:[%s7044_s5 + $0x94] sm:$0xff]  ;;  %v6260_v19 = vld [vmem:[%s7044_s5 + $0x9c] sm:$0xff] }
 0x21a   : >> { %v3486_v16 = vadd.f32 %v3470_v17, %v3432_v2  ;;  %v3487_v44 = vadd.f32 %v3471_v56, %v3433_v50  ;;  %v3488_v34 = vadd.f32 %v3472_v10, %v3434_v31  ;;  %v3489_v21 = vadd.f32 %v3473_v59, %v3435_v55  ;;  %v9513_v2 = vld [vmem:[%s7044_s5 + $0xac] sm:$0xff]  ;;  %v9516_v17 = vld [vmem:[%s7044_s5 + $0xb4] sm:$0xff]  ;;  %v9519_v55 = vld [vmem:[%s7044_s5 + $0xdc] sm:$0xff] }
 0x21b   : >> { %v3490_v61 = vadd.f32 %v3474_v25, %v3436_v40  ;;  %v3491_v4 = vadd.f32 %v3475_v27, %v3437_v18  ;;  %v3492_v47 = vadd.f32 %v3476_v6, %v3438_v15  ;;  %v3493_v43 = vadd.f32 %v3477_v11, %v3439_v38  ;;  %11574 = vst [vmem:[#allocation25_spill] sm:$0xff] %v9513_v2  ;;  %v9522_v40 = vld [vmem:[%s7044_s5 + $0xe4] sm:$0xff]  ;;  %v9525_v38 = vld [vmem:[%s7044_s5 + $0x10c] sm:$0xff]  ;;  %v9531_v27 = vld [vmem:[%s7044_s5 + $0x13c] sm:$0xff] }
 0x21c   : >> { %v3494_v13 = vadd.f32 %v3478_v3, %v3440_v39  ;;  %11575 = vst [vmem:[#allocation26_spill] sm:$0xff] %v9516_v17  ;;  %v3495_v50 = vadd.f32 %v3479_v35, %v3441_v57  ;;  %v3496_v56 = vadd.f32 %v3480_v28, %v3442_v0  ;;  %v3497_v31 = vadd.f32 %v3481_v60, %v3443_v23  ;;  %v9528_v39 = vld [vmem:[%s7044_s5 + $0x114] sm:$0xff]  ;;  %v9534_v6 = vld [vmem:[%s7044_s5 + $0x144] sm:$0xff] }
 0x21d   : >> { %v3498_v10 = vadd.f32 %v3482_v29, %v3444_v33  ;;  %11576 = vst [vmem:[#allocation27_spill] sm:$0xff] %v9519_v55  ;;  %11577 = vst [vmem:[#allocation28_spill] sm:$0xff] %v9522_v40  ;;  %v3499_v18 = vadd.f32 %v3483_v49, %v3445_v58  ;;  %v3500_v15 = vadd.f32 %v3484_v62, %v3446_v9  ;;  %v11582_v33 = vld [vmem:[#allocation87_spill] sm:$0xff]  ;;  %v11583_v3 = vld [vmem:[#allocation88_spill] sm:$0xff] }
 0x21e   : >> { %v3501_v59 = vadd.f32 %v3485_v53, %v3447_v8  ;;  %11578 = vst [vmem:[#allocation29_spill] sm:$0xff] %v9525_v38  ;;  %11579 = vst [vmem:[#allocation30_spill] sm:$0xff] %v9528_v39  ;;  %v3524_v25 = vmul.f32 %v6275_v26, %v6259_v51  ;;  %v3525_v57 = vmul.f32 %v6275_v26, %v6260_v19  ;;  %v11584_v8 = vld [vmem:[#allocation89_spill] sm:$0xff]  ;;  %v11585_v28 = vld [vmem:[#allocation90_spill] sm:$0xff] }
 0x21f   : >> { %11580 = vst [vmem:[#allocation31_spill] sm:$0xff] %v9531_v27  ;;  %11581 = vst [vmem:[#allocation32_spill] sm:$0xff] %v9534_v6  ;;  %v3526_v0 = vmul.f32 %v6275_v26, %v9513_v2  ;;  %v3527_v23 = vmul.f32 %v6275_v26, %v9516_v17  ;;  %v3528_v11 = vmul.f32 %v6275_v26, %v11582_v33  ;;  %v11586_v62 = vld [vmem:[#allocation91_spill] sm:$0xff]  ;;  %v11587_v19 = vld [vmem:[#allocation92_spill] sm:$0xff] }
 0x220   : >> { %v3529_v58 = vmul.f32 %v6275_v26, %v11583_v3  ;;  %v3530_v53 = vmul.f32 %v6275_v26, %v9519_v55  ;;  %v3531_v9 = vmul.f32 %v6275_v26, %v9522_v40  ;;  %v3532_v35 = vmul.f32 %v6275_v26, %v11584_v8  ;;  %v6292_v8 = vld [vmem:[%s10535_s1 + $0x3b] ss:$0 sm:$0xff] }
 0x221   : >> { %v3533_v60 = vmul.f32 %v6275_v26, %v11585_v28  ;;  %v3534_v29 = vmul.f32 %v6275_v26, %v9525_v38  ;;  %v3535_v49 = vmul.f32 %v6275_v26, %v9528_v39  ;;  %v3536_v51 = vmul.f32 %v6275_v26, %v11586_v62  ;;  %v6276_v62 = vld [vmem:[%s7044_s5 + $0x95] sm:$0xff] }
 0x222   : >> { %v3537_v33 = vmul.f32 %v6275_v26, %v11587_v19  ;;  %v3538_v3 = vmul.f32 %v6275_v26, %v9531_v27  ;;  %v3539_v55 = vmul.f32 %v6275_v26, %v9534_v6  ;;  %v3540_v40 = vadd.f32 %v3524_v25, %v3486_v16  ;;  %v6277_v26 = vld [vmem:[%s7044_s5 + $0x9d] sm:$0xff]  ;;  %v9556_v16 = vld [vmem:[%s7044_s5 + $0xad] sm:$0xff]  ;;  %v9559_v25 = vld [vmem:[%s7044_s5 + $0xb5] sm:$0xff] }
 0x223   : >> { %v3541_v28 = vadd.f32 %v3525_v57, %v3487_v44  ;;  %v3542_v38 = vadd.f32 %v3526_v0, %v3488_v34  ;;  %v3543_v39 = vadd.f32 %v3527_v23, %v3489_v21  ;;  %v3544_v17 = vadd.f32 %v3528_v11, %v3490_v61  ;;  %11588 = vst [vmem:[#allocation33_spill] sm:$0xff] %v9556_v16  ;;  %v9562_v21 = vld [vmem:[%s7044_s5 + $0xdd] sm:$0xff]  ;;  %v9565_v61 = vld [vmem:[%s7044_s5 + $0xe5] sm:$0xff] }
 0x224   : >> { %v3545_v2 = vadd.f32 %v3529_v58, %v3491_v4  ;;  %v3546_v19 = vadd.f32 %v3530_v53, %v3492_v47  ;;  %v3547_v20 = vadd.f32 %v3531_v9, %v3493_v43  ;;  %v3548_v27 = vadd.f32 %v3532_v35, %v3494_v13  ;;  %11589 = vst [vmem:[#allocation34_spill] sm:$0xff] %v9559_v25  ;;  %v9568_v43 = vld [vmem:[%s7044_s5 + $0x10d] sm:$0xff]  ;;  %v9571_v13 = vld [vmem:[%s7044_s5 + $0x115] sm:$0xff]  ;;  %v9574_v58 = vld [vmem:[%s7044_s5 + $0x13d] sm:$0xff] }
 0x225   : >> { %v3549_v44 = vadd.f32 %v3533_v60, %v3495_v50  ;;  %v3550_v57 = vadd.f32 %v3534_v29, %v3496_v56  ;;  %v3551_v34 = vadd.f32 %v3535_v49, %v3497_v31  ;;  %v3552_v0 = vadd.f32 %v3536_v51, %v3498_v10  ;;  %11590 = vst [vmem:[#allocation35_spill] sm:$0xff] %v9562_v21  ;;  %v9577_v53 = vld [vmem:[%s7044_s5 + $0x145] sm:$0xff]  ;;  %v11596_v9 = vld [vmem:[#allocation93_spill] sm:$0xff] }
 0x226   : >> { %11591 = vst [vmem:[#allocation36_spill] sm:$0xff] %v9565_v61  ;;  %v3553_v4 = vadd.f32 %v3537_v33, %v3499_v18  ;;  %v3554_v47 = vadd.f32 %v3538_v3, %v3500_v15  ;;  %v3555_v23 = vadd.f32 %v3539_v55, %v3501_v59  ;;  %11592 = vst [vmem:[#allocation37_spill] sm:$0xff] %v9568_v43  ;;  %v11597_v59 = vld [vmem:[#allocation94_spill] sm:$0xff]  ;;  %v11598_v60 = vld [vmem:[#allocation95_spill] sm:$0xff] }
 0x227   : >> { %11593 = vst [vmem:[#allocation38_spill] sm:$0xff] %v9571_v13  ;;  %v3578_v11 = vmul.f32 %v6292_v8, %v6276_v62  ;;  %11594 = vst [vmem:[#allocation39_spill] sm:$0xff] %v9574_v58  ;;  %v3579_v50 = vmul.f32 %v6292_v8, %v6277_v26  ;;  %v3580_v56 = vmul.f32 %v6292_v8, %v9556_v16  ;;  %v11599_v33 = vld [vmem:[#allocation96_spill] sm:$0xff]  ;;  %v11600_v62 = vld [vmem:[#allocation97_spill] sm:$0xff] }
 0x228   : >> { %11595 = vst [vmem:[#allocation40_spill] sm:$0xff] %v9577_v53  ;;  %v3581_v31 = vmul.f32 %v6292_v8, %v9559_v25  ;;  %v3582_v10 = vmul.f32 %v6292_v8, %v9197_v7  ;;  %v3583_v18 = vmul.f32 %v6292_v8, %v11596_v9  ;;  %v3584_v55 = vmul.f32 %v6292_v8, %v9562_v21  ;;  %v9687_v6 = vld [vmem:[%s7044_s5 + $0xe8] sm:$0xff] }
 0x229   : >> { %v3585_v15 = vmul.f32 %v6292_v8, %v9565_v61  ;;  %v3586_v35 = vmul.f32 %v6292_v8, %v11597_v59  ;;  %v3587_v29 = vmul.f32 %v6292_v8, %v11598_v60  ;;  %v3588_v49 = vmul.f32 %v6292_v8, %v9568_v43  ;;  %v6309_v59 = vld [vmem:[%s10535_s1 + $0x3c] ss:$0 sm:$0xff] }
 0x22a   : >> { %v3589_v51 = vmul.f32 %v6292_v8, %v9571_v13  ;;  %v3590_v3 = vmul.f32 %v6292_v8, %v11599_v33  ;;  %v3591_v7 = vmul.f32 %v6292_v8, %v11600_v62  ;;  %v3592_v26 = vmul.f32 %v6292_v8, %v9574_v58  ;;  %v6293_v33 = vld [vmem:[%s7044_s5 + $0x96] sm:$0xff] }
 0x22b   : >> { %v3593_v9 = vmul.f32 %v6292_v8, %v9577_v53  ;;  %v3594_v61 = vadd.f32 %v3578_v11, %v3540_v40  ;;  %v3595_v60 = vadd.f32 %v3579_v50, %v3541_v28  ;;  %v3596_v43 = vadd.f32 %v3580_v56, %v3542_v38  ;;  %v6294_v8 = vld [vmem:[%s7044_s5 + $0x9e] sm:$0xff]  ;;  %v9599_v40 = vld [vmem:[%s7044_s5 + $0xae] sm:$0xff]  ;;  %v9602_v11 = vld [vmem:[%s7044_s5 + $0xb6] sm:$0xff] }
 0x22c   : >> { %v3597_v13 = vadd.f32 %v3581_v31, %v3543_v39  ;;  %v3598_v21 = vadd.f32 %v3582_v10, %v3544_v17  ;;  %v3599_v25 = vadd.f32 %v3583_v18, %v3545_v2  ;;  %v3600_v62 = vadd.f32 %v3584_v55, %v3546_v19  ;;  %11601 = vst [vmem:[#allocation41_spill] sm:$0xff] %v9599_v40  ;;  %v9605_v39 = vld [vmem:[%s7044_s5 + $0xde] sm:$0xff]  ;;  %v9608_v17 = vld [vmem:[%s7044_s5 + $0xe6] sm:$0xff] }
 0x22d   : >> { %v3601_v16 = vadd.f32 %v3585_v15, %v3547_v20  ;;  %v3602_v58 = vadd.f32 %v3586_v35, %v3548_v27  ;;  %11602 = vst [vmem:[#allocation42_spill] sm:$0xff] %v9602_v11  ;;  %v3603_v28 = vadd.f32 %v3587_v29, %v3549_v44  ;;  %v3604_v50 = vadd.f32 %v3588_v49, %v3550_v57  ;;  %v9611_v20 = vld [vmem:[%s7044_s5 + $0x10e] sm:$0xff]  ;;  %v9614_v27 = vld [vmem:[%s7044_s5 + $0x116] sm:$0xff]  ;;  %v9617_v18 = vld [vmem:[%s7044_s5 + $0x13e] sm:$0xff] }
 0x22e   : >> { %v3605_v38 = vadd.f32 %v3589_v51, %v3551_v34  ;;  %v3606_v56 = vadd.f32 %v3590_v3, %v3552_v0  ;;  %11603 = vst [vmem:[#allocation43_spill] sm:$0xff] %v9605_v39  ;;  %11604 = vst [vmem:[#allocation44_spill] sm:$0xff] %v9608_v17  ;;  %v3607_v2 = vadd.f32 %v3591_v7, %v3553_v4  ;;  %v9620_v55 = vld [vmem:[%s7044_s5 + $0x146] sm:$0xff]  ;;  %v11609_v15 = vld [vmem:[#allocation98_spill] sm:$0xff] }
 0x22f   : >> { %v3608_v19 = vadd.f32 %v3592_v26, %v3554_v47  ;;  %v3609_v31 = vadd.f32 %v3593_v9, %v3555_v23  ;;  %11605 = vst [vmem:[#allocation45_spill] sm:$0xff] %v9611_v20  ;;  %11606 = vst [vmem:[#allocation46_spill] sm:$0xff] %v9614_v27  ;;  %v3632_v10 = vmul.f32 %v6309_v59, %v6293_v33  ;;  %v11610_v35 = vld [vmem:[#allocation99_spill] sm:$0xff]  ;;  %v11611_v49 = vld [vmem:[#allocation100_spill] sm:$0xff] }
 0x230   : >> { %11607 = vst [vmem:[#allocation47_spill] sm:$0xff] %v9617_v18  ;;  %11608 = vst [vmem:[#allocation48_spill] sm:$0xff] %v9620_v55  ;;  %v3633_v44 = vmul.f32 %v6309_v59, %v6294_v8  ;;  %v3634_v57 = vmul.f32 %v6309_v59, %v9599_v40  ;;  %v3635_v34 = vmul.f32 %v6309_v59, %v9602_v11  ;;  %v11612_v26 = vld [vmem:[#allocation101_spill] sm:$0xff]  ;;  %v11613_v33 = vld [vmem:[#allocation102_spill] sm:$0xff] }
 0x231   : >> { %v3636_v0 = vmul.f32 %v6309_v59, %v9234_v54  ;;  %v3637_v4 = vmul.f32 %v6309_v59, %v11609_v15  ;;  %v3638_v47 = vmul.f32 %v6309_v59, %v9605_v39  ;;  %v3639_v23 = vmul.f32 %v6309_v59, %v9608_v17  ;;  %v6327_v53 = vld [vmem:[%s7044_s5 + $0xa0] sm:$0xff] }
 0x232   : >> { %v3640_v29 = vmul.f32 %v6309_v59, %v11610_v35  ;;  %v3641_v51 = vmul.f32 %v6309_v59, %v11611_v49  ;;  %v3642_v3 = vmul.f32 %v6309_v59, %v9611_v20  ;;  %v3643_v7 = vmul.f32 %v6309_v59, %v9614_v27  ;;  %v6326_v35 = vld [vmem:[%s10535_s1 + $0x3d] ss:$0 sm:$0xff] }
 0x233   : >> { %v3644_v9 = vmul.f32 %v6309_v59, %v11612_v26  ;;  %v3645_v54 = vmul.f32 %v6309_v59, %v11613_v33  ;;  %v3646_v8 = vmul.f32 %v6309_v59, %v9617_v18  ;;  %v3647_v15 = vmul.f32 %v6309_v59, %v9620_v55  ;;  %v6310_v26 = vld [vmem:[%s7044_s5 + $0x97] sm:$0xff]  ;;  %v6311_v59 = vld [vmem:[%s7044_s5 + $0x9f] sm:$0xff] }
 0x234   : >> { %v3648_v17 = vadd.f32 %v3632_v10, %v3594_v61  ;;  %v3649_v49 = vadd.f32 %v3633_v44, %v3595_v60  ;;  %v3650_v20 = vadd.f32 %v3634_v57, %v3596_v43  ;;  %v3651_v27 = vadd.f32 %v3635_v34, %v3597_v13  ;;  %v9642_v61 = vld [vmem:[%s7044_s5 + $0xaf] sm:$0xff]  ;;  %v9645_v10 = vld [vmem:[%s7044_s5 + $0xb7] sm:$0xff]  ;;  %v9648_v13 = vld [vmem:[%s7044_s5 + $0xdf] sm:$0xff] }
 0x235   : >> { %v3652_v39 = vadd.f32 %v3636_v0, %v3598_v21  ;;  %v3653_v11 = vadd.f32 %v3637_v4, %v3599_v25  ;;  %v3654_v33 = vadd.f32 %v3638_v47, %v3600_v62  ;;  %v3655_v40 = vadd.f32 %v3639_v23, %v3601_v16  ;;  %11614 = vst [vmem:[#allocation49_spill] sm:$0xff] %v9642_v61  ;;  %v9651_v21 = vld [vmem:[%s7044_s5 + $0xe7] sm:$0xff]  ;;  %v9654_v16 = vld [vmem:[%s7044_s5 + $0x10f] sm:$0xff]  ;;  %v9660_v4 = vld [vmem:[%s7044_s5 + $0x13f] sm:$0xff] }
 0x236   : >> { %v3656_v18 = vadd.f32 %v3640_v29, %v3602_v58  ;;  %11615 = vst [vmem:[#allocation50_spill] sm:$0xff] %v9645_v10  ;;  %v3657_v60 = vadd.f32 %v3641_v51, %v3603_v28  ;;  %v3658_v44 = vadd.f32 %v3642_v3, %v3604_v50  ;;  %v3659_v43 = vadd.f32 %v3643_v7, %v3605_v38  ;;  %v9657_v58 = vld [vmem:[%s7044_s5 + $0x117] sm:$0xff]  ;;  %v9663_v47 = vld [vmem:[%s7044_s5 + $0x147] sm:$0xff] }
 0x237   : >> { %v3660_v57 = vadd.f32 %v3644_v9, %v3606_v56  ;;  %11616 = vst [vmem:[#allocation51_spill] sm:$0xff] %v9648_v13  ;;  %11617 = vst [vmem:[#allocation52_spill] sm:$0xff] %v9651_v21  ;;  %v3661_v25 = vadd.f32 %v3645_v54, %v3607_v2  ;;  %v3662_v62 = vadd.f32 %v3646_v8, %v3608_v19  ;;  %v11622_v56 = vld [vmem:[#allocation103_spill] sm:$0xff]  ;;  %v11623_v29 = vld [vmem:[#allocation104_spill] sm:$0xff] }
 0x238   : >> { %v3663_v34 = vadd.f32 %v3647_v15, %v3609_v31  ;;  %11618 = vst [vmem:[#allocation53_spill] sm:$0xff] %v9654_v16  ;;  %11619 = vst [vmem:[#allocation54_spill] sm:$0xff] %v9657_v58  ;;  %v3686_v0 = vmul.f32 %v6326_v35, %v6310_v26  ;;  %v3687_v28 = vmul.f32 %v6326_v35, %v6311_v59  ;;  %v11624_v51 = vld [vmem:[#allocation105_spill] sm:$0xff]  ;;  %v11625_v7 = vld [vmem:[#allocation3_spill] sm:$0xff] }
 0x239   : >> { %11620 = vst [vmem:[#allocation55_spill] sm:$0xff] %v9660_v4  ;;  %11621 = vst [vmem:[#allocation56_spill] sm:$0xff] %v9663_v47  ;;  %v3688_v50 = vmul.f32 %v6326_v35, %v9642_v61  ;;  %v3689_v38 = vmul.f32 %v6326_v35, %v9645_v10  ;;  %v3690_v23 = vmul.f32 %v6326_v35, %v11622_v56  ;;  %v11626_v15 = vld [vmem:[#allocation4_spill] sm:$0xff]  ;;  %v11627_v59 = vld [vmem:[#allocation5_spill] sm:$0xff] }
 0x23a   : >> { %v3691_v2 = vmul.f32 %v6326_v35, %v11623_v29  ;;  %v3692_v19 = vmul.f32 %v6326_v35, %v9648_v13  ;;  %v3693_v31 = vmul.f32 %v6326_v35, %v9651_v21  ;;  %v3694_v3 = vmul.f32 %v6326_v35, %v11624_v51  ;;  %v6335_v51 = vld [vmem:[%s10535_s1 + $0x3e] ss:$0 sm:$0xff] }
 0x23b   : >> { %v3695_v9 = vmul.f32 %v6326_v35, %v11625_v7  ;;  %v3696_v54 = vmul.f32 %v6326_v35, %v9654_v16  ;;  %v3697_v8 = vmul.f32 %v6326_v35, %v9657_v58  ;;  %v3698_v26 = vmul.f32 %v6326_v35, %v11626_v15 }
 0x23c   : >> { %v3699_v56 = vmul.f32 %v6326_v35, %v11627_v59  ;;  %v3700_v29 = vmul.f32 %v6326_v35, %v9660_v4  ;;  %v3701_v13 = vmul.f32 %v6326_v35, %v9663_v47  ;;  %v3702_v10 = vadd.f32 %v3686_v0, %v3648_v17  ;;  %v9684_v4 = vld [vmem:[%s7044_s5 + $0xb8] sm:$0xff] }
 0x23d   : >> { %v3703_v7 = vadd.f32 %v3687_v28, %v3649_v49  ;;  %v3704_v16 = vadd.f32 %v3688_v50, %v3650_v20  ;;  %v3705_v21 = vadd.f32 %v3689_v38, %v3651_v27  ;;  %v3706_v58 = vadd.f32 %v3690_v23, %v3652_v39  ;;  %v9690_v39 = vld [vmem:[%s7044_s5 + $0x118] sm:$0xff]  ;;  %v6831_v50 = vld [vmem:[%s7044_s5 + $0x128] sm:$0xff] }
 0x23e   : >> { %v3707_v61 = vadd.f32 %v3691_v2, %v3653_v11  ;;  %v3708_v15 = vadd.f32 %v3692_v19, %v3654_v33  ;;  %v3709_v55 = vadd.f32 %v3693_v31, %v3655_v40  ;;  %v3710_v59 = vadd.f32 %v3694_v3, %v3656_v18  ;;  %v9694_v11 = vld [vmem:[%s7044_s5 + $0x148] sm:$0xff] }
 0x23f   : >> { %v3711_v17 = vadd.f32 %v3695_v9, %v3657_v60  ;;  %v3712_v35 = vadd.f32 %v3696_v54, %v3658_v44  ;;  %v3713_v0 = vadd.f32 %v3697_v8, %v3659_v43  ;;  %v3714_v47 = vadd.f32 %v3698_v26, %v3660_v57  ;;  %v6829_v44 = vld [vmem:[%s7044_s5 + $0xc8] sm:$0xff]  ;;  %v6363_v54 = vld [vmem:[%s10535_s1 + $0x3f] ss:$0 sm:$0xff] }
 0x240   : >> { %v3715_v20 = vadd.f32 %v3699_v56, %v3661_v25  ;;  %v3716_v27 = vadd.f32 %v3700_v29, %v3662_v62  ;;  %v3717_v49 = vadd.f32 %v3701_v13, %v3663_v34  ;;  %v3732_v40 = vmul.f32 %v6335_v51, %v9337_v52  ;;  %v6830_v62 = vld [vmem:[%s7044_s5 + $0xf8] sm:$0xff]  ;;  %v9714_v29 = vld [vmem:[%s7044_s5 + $0xc0] sm:$0xff] }
 0x241   : >> { %v3733_v18 = vmul.f32 %v6335_v51, %v6327_v53  ;;  %v3734_v33 = vmul.f32 %v6335_v51, %v9343_v41  ;;  %v3735_v60 = vmul.f32 %v6335_v51, %v9684_v4  ;;  %v3736_v43 = vmul.f32 %v6829_v44, %v6335_v51  ;;  %v9736_v44 = vld [vmem:[%s7044_s5 + $0x158] sm:$0xff] }
 0x242   : >> { %v3737_v57 = vmul.f32 %v6335_v51, %v9308_v24  ;;  %v3738_v25 = vmul.f32 %v6335_v51, %v9349_v45  ;;  %v3739_v13 = vmul.f32 %v6335_v51, %v9687_v6  ;;  %v3740_v34 = vmul.f32 %v6830_v62, %v6335_v51 }
 0x243   : >> { %v3741_v28 = vmul.f32 %v6335_v51, %v9311_v48  ;;  %v3742_v52 = vmul.f32 %v6335_v51, %v9355_v42  ;;  %v3743_v53 = vmul.f32 %v6335_v51, %v9690_v39  ;;  %v3744_v38 = vmul.f32 %v6831_v50, %v6335_v51 }
 0x244   : >> { %v3745_v23 = vmul.f32 %v6335_v51, %v9315_v1  ;;  %v3746_v24 = vmul.f32 %v6335_v51, %v9361_v63  ;;  %v3747_v2 = vmul.f32 %v6335_v51, %v9694_v11  ;;  %v3748_v19 = vadd.f32 %v3732_v40, %v3702_v10  ;;  %v9717_v10 = vld [vmem:[%s7044_s5 + $0xc8] sm:$0xff]  ;;  %v9723_v40 = vld [vmem:[%s7044_s5 + $0xf8] sm:$0xff] }
 0x245   : >> { %v3749_v31 = vadd.f32 %v3733_v18, %v3703_v7  ;;  %v3750_v3 = vadd.f32 %v3734_v33, %v3704_v16  ;;  %v3751_v48 = vadd.f32 %v3735_v60, %v3705_v21  ;;  %v3752_v9 = vadd.f32 %v3736_v43, %v3706_v58  ;;  %v9720_v7 = vld [vmem:[%s7044_s5 + $0xf0] sm:$0xff] }
 0x246   : >> { %v3753_v8 = vadd.f32 %v3737_v57, %v3707_v61  ;;  %v3754_v26 = vadd.f32 %v3738_v25, %v3708_v15  ;;  %v3755_v1 = vadd.f32 %v3739_v13, %v3709_v55  ;;  %v3756_v56 = vadd.f32 %v3740_v34, %v3710_v59  ;;  %v9726_v15 = vld [vmem:[%s7044_s5 + $0x120] sm:$0xff]  ;;  %v9729_v55 = vld [vmem:[%s7044_s5 + $0x128] sm:$0xff]  ;;  %v9733_v60 = vld [vmem:[%s7044_s5 + $0x150] sm:$0xff] }
 0x247   : >> { %v3757_v51 = vadd.f32 %v3741_v28, %v3711_v17  ;;  %v3758_v16 = vadd.f32 %v3742_v52, %v3712_v35  ;;  %v3759_v21 = vadd.f32 %v3743_v53, %v3713_v0  ;;  %v3760_v58 = vadd.f32 %v3744_v38, %v3714_v47  ;;  %v9757_v38 = vld [vmem:[%s7044_s5 + $0xc1] sm:$0xff] }
 0x248   : >> { %v3761_v18 = vadd.f32 %v3745_v23, %v3715_v20  ;;  %v3762_v61 = vadd.f32 %v3746_v24, %v3716_v27  ;;  %v3763_v33 = vadd.f32 %v3747_v2, %v3717_v49  ;;  %v3799_v59 = vmul.f32 %v6363_v54, %v9340_v46  ;;  %v9760_v23 = vld [vmem:[%s7044_s5 + $0xc9] sm:$0xff] }
 0x249   : >> { %v3800_v17 = vmul.f32 %v6363_v54, %v9343_v41  ;;  %v3801_v47 = vmul.f32 %v6363_v54, %v9714_v29  ;;  %v3802_v35 = vmul.f32 %v6363_v54, %v9717_v10  ;;  %v3803_v0 = vmul.f32 %v6363_v54, %v9346_v12 }
 0x24a   : >> { %v3804_v20 = vmul.f32 %v6363_v54, %v9349_v45  ;;  %v3805_v27 = vmul.f32 %v6363_v54, %v9720_v7  ;;  %v3806_v49 = vmul.f32 %v6363_v54, %v9723_v40  ;;  %v3807_v46 = vmul.f32 %v6363_v54, %v9352_v14  ;;  %v6380_v14 = vld [vmem:[%s10535_s1 + $0x40] ss:$0 sm:$0xff] }
 0x24b   : >> { %v3808_v43 = vmul.f32 %v6363_v54, %v9355_v42  ;;  %v3809_v57 = vmul.f32 %v6363_v54, %v9726_v15  ;;  %v3810_v41 = vmul.f32 %v6363_v54, %v9729_v55  ;;  %v3811_v25 = vmul.f32 %v6363_v54, %v9358_v37 }
 0x24c   : >> { %v3812_v12 = vmul.f32 %v6363_v54, %v9361_v63  ;;  %v3813_v45 = vmul.f32 %v6363_v54, %v9733_v60  ;;  %v3814_v13 = vmul.f32 %v6363_v54, %v9736_v44  ;;  %v3815_v62 = vadd.f32 %v3799_v59, %v3748_v19  ;;  %v9776_v59 = vld [vmem:[%s7044_s5 + $0x151] sm:$0xff] }
 0x24d   : >> { %v3816_v42 = vadd.f32 %v3800_v17, %v3749_v31  ;;  %v3817_v34 = vadd.f32 %v3801_v47, %v3750_v3  ;;  %v3818_v28 = vadd.f32 %v3802_v35, %v3751_v48  ;;  %v3819_v52 = vadd.f32 %v3803_v0, %v3752_v9  ;;  %v9763_v31 = vld [vmem:[%s7044_s5 + $0xf1] sm:$0xff]  ;;  %v9766_v3 = vld [vmem:[%s7044_s5 + $0xf9] sm:$0xff]  ;;  %11628 = vst [vmem:[#allocation57_spill] sm:$0xff] %v9776_v59 }
 0x24e   : >> { %v3820_v53 = vadd.f32 %v3804_v20, %v3753_v8  ;;  %v3821_v37 = vadd.f32 %v3805_v27, %v3754_v26  ;;  %v3822_v63 = vadd.f32 %v3806_v49, %v3755_v1  ;;  %v3823_v50 = vadd.f32 %v3807_v46, %v3756_v56  ;;  %v9769_v26 = vld [vmem:[%s7044_s5 + $0x121] sm:$0xff]  ;;  %v9772_v1 = vld [vmem:[%s7044_s5 + $0x129] sm:$0xff]  ;;  %v9779_v17 = vld [vmem:[%s7044_s5 + $0x159] sm:$0xff] }
 0x24f   : >> { %v3824_v24 = vadd.f32 %v3808_v43, %v3757_v51  ;;  %v3825_v2 = vadd.f32 %v3809_v57, %v3758_v16  ;;  %v3826_v19 = vadd.f32 %v3810_v41, %v3759_v21  ;;  %v3827_v54 = vadd.f32 %v3811_v25, %v3760_v58  ;;  %11629 = vst [vmem:[#allocation58_spill] sm:$0xff] %v9779_v17  ;;  %v11630_v47 = vld [vmem:[#allocation6_spill] sm:$0xff]  ;;  %v11631_v35 = vld [vmem:[#allocation7_spill] sm:$0xff]  ;;  %v11632_v27 = vld [vmem:[#allocation8_spill] sm:$0xff] }
 0x250   : >> { %v3828_v48 = vadd.f32 %v3812_v12, %v3761_v18  ;;  %v3829_v9 = vadd.f32 %v3813_v45, %v3762_v61  ;;  %v3830_v8 = vadd.f32 %v3814_v13, %v3763_v33  ;;  %v3853_v56 = vmul.f32 %v6380_v14, %v9384_v5  ;;  %v6397_v57 = vld [vmem:[%s10535_s1 + $0x41] ss:$0 sm:$0xff] }
 0x251   : >> { %v3854_v51 = vmul.f32 %v6380_v14, %v9387_v36  ;;  %v3855_v16 = vmul.f32 %v6380_v14, %v9757_v38  ;;  %v3856_v21 = vmul.f32 %v6380_v14, %v9760_v23  ;;  %v3857_v58 = vmul.f32 %v6380_v14, %v9390_v22 }
 0x252   : >> { %v3858_v18 = vmul.f32 %v6380_v14, %v9393_v32  ;;  %v3859_v61 = vmul.f32 %v6380_v14, %v9763_v31  ;;  %v3860_v33 = vmul.f32 %v6380_v14, %v9766_v3  ;;  %v3861_v5 = vmul.f32 %v6380_v14, %v11630_v47 }
 0x253   : >> { %v3862_v0 = vmul.f32 %v6380_v14, %v11631_v35  ;;  %v3863_v20 = vmul.f32 %v6380_v14, %v9769_v26  ;;  %v3864_v36 = vmul.f32 %v6380_v14, %v9772_v1  ;;  %v3865_v49 = vmul.f32 %v6380_v14, %v11632_v27 }
 0x254   : >> { %v3866_v22 = vmul.f32 %v6380_v14, %v9405_v30  ;;  %v3867_v32 = vmul.f32 %v6380_v14, %v9776_v59  ;;  %v3868_v46 = vmul.f32 %v6380_v14, %v9779_v17  ;;  %v3869_v43 = vadd.f32 %v3853_v56, %v3815_v62  ;;  %v9800_v14 = vld [vmem:[%s7044_s5 + $0xc2] sm:$0xff]  ;;  %v9803_v62 = vld [vmem:[%s7044_s5 + $0xca] sm:$0xff] }
 0x255   : >> { %v3870_v41 = vadd.f32 %v3854_v51, %v3816_v42  ;;  %v3871_v25 = vadd.f32 %v3855_v16, %v3817_v34  ;;  %v3872_v12 = vadd.f32 %v3856_v21, %v3818_v28  ;;  %v3873_v45 = vadd.f32 %v3857_v58, %v3819_v52  ;;  %11633 = vst [vmem:[#allocation59_spill] sm:$0xff] %v9800_v14  ;;  %v9806_v42 = vld [vmem:[%s7044_s5 + $0xf2] sm:$0xff]  ;;  %v9809_v34 = vld [vmem:[%s7044_s5 + $0xfa] sm:$0xff] }
 0x256   : >> { %v3874_v13 = vadd.f32 %v3858_v18, %v3820_v53  ;;  %v3875_v47 = vadd.f32 %v3859_v61, %v3821_v37  ;;  %v3876_v30 = vadd.f32 %v3860_v33, %v3822_v63  ;;  %v3877_v35 = vadd.f32 %v3861_v5, %v3823_v50  ;;  %11634 = vst [vmem:[#allocation60_spill] sm:$0xff] %v9803_v62  ;;  %v9812_v37 = vld [vmem:[%s7044_s5 + $0x122] sm:$0xff]  ;;  %v9815_v63 = vld [vmem:[%s7044_s5 + $0x12a] sm:$0xff]  ;;  %v9819_v16 = vld [vmem:[%s7044_s5 + $0x152] sm:$0xff] }
 0x257   : >> { %v3878_v56 = vadd.f32 %v3862_v0, %v3824_v24  ;;  %v3879_v27 = vadd.f32 %v3863_v20, %v3825_v2  ;;  %v3880_v17 = vadd.f32 %v3864_v36, %v3826_v19  ;;  %v3881_v59 = vadd.f32 %v3865_v49, %v3827_v54  ;;  %11635 = vst [vmem:[#allocation61_spill] sm:$0xff] %v9806_v42  ;;  %v11639_v50 = vld [vmem:[#allocation9_spill] sm:$0xff]  ;;  %v9822_v21 = vld [vmem:[%s7044_s5 + $0x15a] sm:$0xff] }
 0x258   : >> { %11636 = vst [vmem:[#allocation62_spill] sm:$0xff] %v9809_v34  ;;  %v3882_v28 = vadd.f32 %v3866_v22, %v3828_v48  ;;  %v3883_v52 = vadd.f32 %v3867_v32, %v3829_v9  ;;  %v3884_v53 = vadd.f32 %v3868_v46, %v3830_v8  ;;  %11637 = vst [vmem:[#allocation63_spill] sm:$0xff] %v9812_v37  ;;  %v11642_v24 = vld [vmem:[#allocation10_spill] sm:$0xff]  ;;  %v11643_v58 = vld [vmem:[#allocation11_spill] sm:$0xff] }
 0x259   : >> { %11638 = vst [vmem:[#allocation64_spill] sm:$0xff] %v9815_v63  ;;  %v3907_v51 = vmul.f32 %v6397_v57, %v11639_v50  ;;  %11640 = vst [vmem:[#allocation65_spill] sm:$0xff] %v9819_v16  ;;  %v3908_v2 = vmul.f32 %v6397_v57, %v11642_v24  ;;  %v3909_v19 = vmul.f32 %v6397_v57, %v9800_v14  ;;  %v11644_v9 = vld [vmem:[#allocation12_spill] sm:$0xff]  ;;  %v11645_v33 = vld [vmem:[#allocation13_spill] sm:$0xff] }
 0x25a   : >> { %11641 = vst [vmem:[#allocation66_spill] sm:$0xff] %v9822_v21  ;;  %v3910_v54 = vmul.f32 %v6397_v57, %v9803_v62  ;;  %v3911_v48 = vmul.f32 %v6397_v57, %v11643_v58  ;;  %v3912_v8 = vmul.f32 %v6397_v57, %v11644_v9  ;;  %v3913_v18 = vmul.f32 %v6397_v57, %v9806_v42  ;;  %v11646_v0 = vld [vmem:[#allocation14_spill] sm:$0xff]  ;;  %v11647_v22 = vld [vmem:[#allocation15_spill] sm:$0xff]  ;;  %v11648_v46 = vld [vmem:[#allocation16_spill] sm:$0xff] }
 0x25b   : >> { %v3914_v61 = vmul.f32 %v6397_v57, %v9809_v34  ;;  %v3915_v5 = vmul.f32 %v6397_v57, %v11645_v33  ;;  %v3916_v20 = vmul.f32 %v6397_v57, %v11646_v0  ;;  %v3917_v36 = vmul.f32 %v6397_v57, %v9812_v37  ;;  %v6414_v33 = vld [vmem:[%s10535_s1 + $0x42] ss:$0 sm:$0xff] }
 0x25c   : >> { %v3918_v49 = vmul.f32 %v6397_v57, %v9815_v63  ;;  %v3919_v32 = vmul.f32 %v6397_v57, %v11647_v22  ;;  %v3920_v50 = vmul.f32 %v6397_v57, %v11648_v46  ;;  %v3921_v24 = vmul.f32 %v6397_v57, %v9819_v16 }
 0x25d   : >> { %v3922_v58 = vmul.f32 %v6397_v57, %v9822_v21  ;;  %v3923_v9 = vadd.f32 %v3907_v51, %v3869_v43  ;;  %v3924_v0 = vadd.f32 %v3908_v2, %v3870_v41  ;;  %v3925_v37 = vadd.f32 %v3909_v19, %v3871_v25  ;;  %v9843_v57 = vld [vmem:[%s7044_s5 + $0xc3] sm:$0xff]  ;;  %v9846_v43 = vld [vmem:[%s7044_s5 + $0xcb] sm:$0xff]  ;;  %v9849_v41 = vld [vmem:[%s7044_s5 + $0xf3] sm:$0xff] }
 0x25e   : >> { %v3926_v34 = vadd.f32 %v3910_v54, %v3872_v12  ;;  %v3927_v63 = vadd.f32 %v3911_v48, %v3873_v45  ;;  %v3928_v42 = vadd.f32 %v3912_v8, %v3874_v13  ;;  %v3929_v22 = vadd.f32 %v3913_v18, %v3875_v47  ;;  %11649 = vst [vmem:[#allocation67_spill] sm:$0xff] %v9843_v57  ;;  %v9852_v25 = vld [vmem:[%s7044_s5 + $0xfb] sm:$0xff]  ;;  %v9855_v47 = vld [vmem:[%s7044_s5 + $0x123] sm:$0xff]  ;;  %v9862_v19 = vld [vmem:[%s7044_s5 + $0x153] sm:$0xff] }
 0x25f   : >> { %v3930_v46 = vadd.f32 %v3914_v61, %v3876_v30  ;;  %v3931_v16 = vadd.f32 %v3915_v5, %v3877_v35  ;;  %11650 = vst [vmem:[#allocation68_spill] sm:$0xff] %v9846_v43  ;;  %v3932_v51 = vadd.f32 %v3916_v20, %v3878_v56  ;;  %v3933_v21 = vadd.f32 %v3917_v36, %v3879_v27  ;;  %v9858_v30 = vld [vmem:[%s7044_s5 + $0x12b] sm:$0xff]  ;;  %v9865_v54 = vld [vmem:[%s7044_s5 + $0x15b] sm:$0xff] }
 0x260   : >> { %v3934_v62 = vadd.f32 %v3918_v49, %v3880_v17  ;;  %v3935_v14 = vadd.f32 %v3919_v32, %v3881_v59  ;;  %11651 = vst [vmem:[#allocation69_spill] sm:$0xff] %v9849_v41  ;;  %11652 = vst [vmem:[#allocation70_spill] sm:$0xff] %v9852_v25  ;;  %v3936_v12 = vadd.f32 %v3920_v50, %v3882_v28  ;;  %v11655_v35 = vld [vmem:[#allocation17_spill] sm:$0xff]  ;;  %v11658_v56 = vld [vmem:[#allocation18_spill] sm:$0xff] }
 0x261   : >> { %v3937_v45 = vadd.f32 %v3921_v24, %v3883_v52  ;;  %v3938_v13 = vadd.f32 %v3922_v58, %v3884_v53  ;;  %11653 = vst [vmem:[#allocation71_spill] sm:$0xff] %v9855_v47  ;;  %11654 = vst [vmem:[#allocation72_spill] sm:$0xff] %v9858_v30  ;;  %v3961_v2 = vmul.f32 %v6414_v33, %v11655_v35  ;;  %v11659_v48 = vld [vmem:[#allocation19_spill] sm:$0xff]  ;;  %v11660_v52 = vld [vmem:[#allocation20_spill] sm:$0xff] }
 0x262   : >> { %11656 = vst [vmem:[#allocation73_spill] sm:$0xff] %v9862_v19  ;;  %11657 = vst [vmem:[#allocation74_spill] sm:$0xff] %v9865_v54  ;;  %v3962_v17 = vmul.f32 %v6414_v33, %v11658_v56  ;;  %v3963_v59 = vmul.f32 %v6414_v33, %v9843_v57  ;;  %v3964_v27 = vmul.f32 %v6414_v33, %v9846_v43  ;;  %v11661_v61 = vld [vmem:[#allocation21_spill] sm:$0xff]  ;;  %v11662_v20 = vld [vmem:[#allocation22_spill] sm:$0xff] }
 0x263   : >> { %v3965_v28 = vmul.f32 %v6414_v33, %v11659_v48  ;;  %v3966_v53 = vmul.f32 %v6414_v33, %v11660_v52  ;;  %v3967_v8 = vmul.f32 %v6414_v33, %v9849_v41  ;;  %v3968_v18 = vmul.f32 %v6414_v33, %v9852_v25  ;;  %v11663_v50 = vld [vmem:[#allocation23_spill] sm:$0xff]  ;;  %v11664_v58 = vld [vmem:[#allocation24_spill] sm:$0xff] }
 0x264   : >> { %v3969_v5 = vmul.f32 %v6414_v33, %v11661_v61  ;;  %v3970_v36 = vmul.f32 %v6414_v33, %v11662_v20  ;;  %v3971_v49 = vmul.f32 %v6414_v33, %v9855_v47  ;;  %v3972_v32 = vmul.f32 %v6414_v33, %v9858_v30  ;;  %v6431_v61 = vld [vmem:[%s10535_s1 + $0x43] ss:$0 sm:$0xff] }
 0x265   : >> { %v3973_v24 = vmul.f32 %v6414_v33, %v11663_v50  ;;  %v3974_v35 = vmul.f32 %v6414_v33, %v11664_v58  ;;  %v3975_v56 = vmul.f32 %v6414_v33, %v9862_v19  ;;  %v3976_v48 = vmul.f32 %v6414_v33, %v9865_v54  ;;  %v9886_v33 = vld [vmem:[%s7044_s5 + $0xc4] sm:$0xff] }
 0x266   : >> { %v3977_v52 = vadd.f32 %v3961_v2, %v3923_v9  ;;  %v3978_v20 = vadd.f32 %v3962_v17, %v3924_v0  ;;  %v3979_v47 = vadd.f32 %v3963_v59, %v3925_v37  ;;  %v3980_v25 = vadd.f32 %v3964_v27, %v3926_v34  ;;  %11665 = vst [vmem:[#allocation75_spill] sm:$0xff] %v9886_v33  ;;  %v9889_v9 = vld [vmem:[%s7044_s5 + $0xcc] sm:$0xff]  ;;  %v9892_v0 = vld [vmem:[%s7044_s5 + $0xf4] sm:$0xff]  ;;  %v9895_v34 = vld [vmem:[%s7044_s5 + $0xfc] sm:$0xff] }
 0x267   : >> { %v3981_v30 = vadd.f32 %v3965_v28, %v3927_v63  ;;  %v3982_v41 = vadd.f32 %v3966_v53, %v3928_v42  ;;  %v3983_v50 = vadd.f32 %v3967_v8, %v3929_v22  ;;  %v3984_v58 = vadd.f32 %v3968_v18, %v3930_v46  ;;  %11666 = vst [vmem:[#allocation76_spill] sm:$0xff] %v9889_v9  ;;  %v9898_v22 = vld [vmem:[%s7044_s5 + $0x124] sm:$0xff]  ;;  %v9901_v46 = vld [vmem:[%s7044_s5 + $0x12c] sm:$0xff]  ;;  %v9905_v59 = vld [vmem:[%s7044_s5 + $0x154] sm:$0xff] }
 0x268   : >> { %v3985_v19 = vadd.f32 %v3969_v5, %v3931_v16  ;;  %v3986_v2 = vadd.f32 %v3970_v36, %v3932_v51  ;;  %v3987_v54 = vadd.f32 %v3971_v49, %v3933_v21  ;;  %v3988_v43 = vadd.f32 %v3972_v32, %v3934_v62  ;;  %11667 = vst [vmem:[#allocation77_spill] sm:$0xff] %v9892_v0  ;;  %v11671_v16 = vld [vmem:[#allocation25_spill] sm:$0xff]  ;;  %v9908_v27 = vld [vmem:[%s7044_s5 + $0x15c] sm:$0xff] }
 0x269   : >> { %v3989_v57 = vadd.f32 %v3973_v24, %v3935_v14  ;;  %11668 = vst [vmem:[#allocation78_spill] sm:$0xff] %v9895_v34  ;;  %v3990_v37 = vadd.f32 %v3974_v35, %v3936_v12  ;;  %v3991_v42 = vadd.f32 %v3975_v56, %v3937_v45  ;;  %v3992_v63 = vadd.f32 %v3976_v48, %v3938_v13  ;;  %v11674_v21 = vld [vmem:[#allocation26_spill] sm:$0xff]  ;;  %v11675_v28 = vld [vmem:[#allocation27_spill] sm:$0xff]  ;;  %v11676_v45 = vld [vmem:[#allocation28_spill] sm:$0xff] }
 0x26a   : >> { %11669 = vst [vmem:[#allocation79_spill] sm:$0xff] %v9898_v22  ;;  %11670 = vst [vmem:[#allocation80_spill] sm:$0xff] %v9901_v46  ;;  %v4015_v17 = vmul.f32 %v6431_v61, %v11671_v16  ;;  %v4016_v62 = vmul.f32 %v6431_v61, %v11674_v21  ;;  %v4017_v14 = vmul.f32 %v6431_v61, %v9886_v33  ;;  %v11677_v18 = vld [vmem:[#allocation29_spill] sm:$0xff]  ;;  %v11678_v36 = vld [vmem:[#allocation30_spill] sm:$0xff] }
 0x26b   : >> { %11672 = vst [vmem:[#allocation81_spill] sm:$0xff] %v9905_v59  ;;  %11673 = vst [vmem:[#allocation82_spill] sm:$0xff] %v9908_v27  ;;  %v4018_v51 = vmul.f32 %v6431_v61, %v9889_v9  ;;  %v4019_v12 = vmul.f32 %v6431_v61, %v11675_v28  ;;  %v4020_v13 = vmul.f32 %v6431_v61, %v11676_v45  ;;  %v11679_v35 = vld [vmem:[#allocation31_spill] sm:$0xff]  ;;  %v11680_v48 = vld [vmem:[#allocation32_spill] sm:$0xff] }
 0x26c   : >> { %v4021_v53 = vmul.f32 %v6431_v61, %v9892_v0  ;;  %v4022_v8 = vmul.f32 %v6431_v61, %v9895_v34  ;;  %v4023_v5 = vmul.f32 %v6431_v61, %v11677_v18  ;;  %v4024_v49 = vmul.f32 %v6431_v61, %v11678_v36  ;;  %v6448_v18 = vld [vmem:[%s10535_s1 + $0x44] ss:$0 sm:$0xff] }
 0x26d   : >> { %v4025_v32 = vmul.f32 %v6431_v61, %v9898_v22  ;;  %v4026_v24 = vmul.f32 %v6431_v61, %v9901_v46  ;;  %v4027_v56 = vmul.f32 %v6431_v61, %v11679_v35  ;;  %v4028_v16 = vmul.f32 %v6431_v61, %v11680_v48 }
 0x26e   : >> { %v4029_v21 = vmul.f32 %v6431_v61, %v9905_v59  ;;  %v4030_v28 = vmul.f32 %v6431_v61, %v9908_v27  ;;  %v4031_v45 = vadd.f32 %v4015_v17, %v3977_v52  ;;  %v4032_v36 = vadd.f32 %v4016_v62, %v3978_v20  ;;  %v9929_v61 = vld [vmem:[%s7044_s5 + $0xc5] sm:$0xff]  ;;  %v9932_v52 = vld [vmem:[%s7044_s5 + $0xcd] sm:$0xff]  ;;  %v9935_v20 = vld [vmem:[%s7044_s5 + $0xf5] sm:$0xff] }
 0x26f   : >> { %v4033_v22 = vadd.f32 %v4017_v14, %v3979_v47  ;;  %v4034_v34 = vadd.f32 %v4018_v51, %v3980_v25  ;;  %v4035_v46 = vadd.f32 %v4019_v12, %v3981_v30  ;;  %v4036_v0 = vadd.f32 %v4020_v13, %v3982_v41  ;;  %11681 = vst [vmem:[#allocation83_spill] sm:$0xff] %v9929_v61  ;;  %v9938_v25 = vld [vmem:[%s7044_s5 + $0xfd] sm:$0xff]  ;;  %v9948_v14 = vld [vmem:[%s7044_s5 + $0x155] sm:$0xff] }
 0x270   : >> { %v4037_v35 = vadd.f32 %v4021_v53, %v3983_v50  ;;  %v4038_v48 = vadd.f32 %v4022_v8, %v3984_v58  ;;  %v4039_v59 = vadd.f32 %v4023_v5, %v3985_v19  ;;  %11682 = vst [vmem:[#allocation84_spill] sm:$0xff] %v9932_v52  ;;  %v4040_v17 = vadd.f32 %v4024_v49, %v3986_v2  ;;  %v9941_v50 = vld [vmem:[%s7044_s5 + $0x125] sm:$0xff]  ;;  %v9944_v58 = vld [vmem:[%s7044_s5 + $0x12d] sm:$0xff]  ;;  %v9951_v51 = vld [vmem:[%s7044_s5 + $0x15d] sm:$0xff] }
 0x271   : >> { %v4041_v27 = vadd.f32 %v4025_v32, %v3987_v54  ;;  %v4042_v9 = vadd.f32 %v4026_v24, %v3988_v43  ;;  %v4043_v33 = vadd.f32 %v4027_v56, %v3989_v57  ;;  %11683 = vst [vmem:[#allocation85_spill] sm:$0xff] %v9935_v20  ;;  %11684 = vst [vmem:[#allocation86_spill] sm:$0xff] %v9938_v25  ;;  %v11687_v19 = vld [vmem:[#allocation33_spill] sm:$0xff]  ;;  %v11690_v54 = vld [vmem:[#allocation34_spill] sm:$0xff] }
 0x272   : >> { %v4044_v47 = vadd.f32 %v4028_v16, %v3990_v37  ;;  %v4045_v41 = vadd.f32 %v4029_v21, %v3991_v42  ;;  %v4046_v30 = vadd.f32 %v4030_v28, %v3992_v63  ;;  %11685 = vst [vmem:[#allocation87_spill] sm:$0xff] %v9941_v50  ;;  %11686 = vst [vmem:[#allocation88_spill] sm:$0xff] %v9944_v58  ;;  %v11691_v12 = vld [vmem:[#allocation35_spill] sm:$0xff]  ;;  %v11692_v42 = vld [vmem:[#allocation36_spill] sm:$0xff] }
 0x273   : >> { %v4069_v62 = vmul.f32 %v6448_v18, %v11687_v19  ;;  %11688 = vst [vmem:[#allocation89_spill] sm:$0xff] %v9948_v14  ;;  %11689 = vst [vmem:[#allocation90_spill] sm:$0xff] %v9951_v51  ;;  %v4070_v43 = vmul.f32 %v6448_v18, %v11690_v54  ;;  %v4071_v57 = vmul.f32 %v6448_v18, %v9929_v61  ;;  %v11693_v8 = vld [vmem:[#allocation37_spill] sm:$0xff]  ;;  %v11694_v49 = vld [vmem:[#allocation38_spill] sm:$0xff] }
 0x274   : >> { %v4072_v2 = vmul.f32 %v6448_v18, %v9932_v52  ;;  %v4073_v37 = vmul.f32 %v6448_v18, %v11691_v12  ;;  %v4074_v63 = vmul.f32 %v6448_v18, %v11692_v42  ;;  %v4075_v13 = vmul.f32 %v6448_v18, %v9935_v20  ;;  %v11695_v16 = vld [vmem:[#allocation39_spill] sm:$0xff]  ;;  %v11696_v28 = vld [vmem:[#allocation40_spill] sm:$0xff] }
 0x275   : >> { %v4076_v53 = vmul.f32 %v6448_v18, %v9938_v25  ;;  %v4077_v5 = vmul.f32 %v6448_v18, %v11693_v8  ;;  %v4078_v32 = vmul.f32 %v6448_v18, %v11694_v49  ;;  %v4079_v24 = vmul.f32 %v6448_v18, %v9941_v50  ;;  %v6465_v8 = vld [vmem:[%s10535_s1 + $0x45] ss:$0 sm:$0xff] }
 0x276   : >> { %v4080_v56 = vmul.f32 %v6448_v18, %v9944_v58  ;;  %v4081_v21 = vmul.f32 %v6448_v18, %v11695_v16  ;;  %v4082_v19 = vmul.f32 %v6448_v18, %v11696_v28  ;;  %v4083_v54 = vmul.f32 %v6448_v18, %v9948_v14 }
 0x277   : >> { %v4084_v12 = vmul.f32 %v6448_v18, %v9951_v51  ;;  %v4085_v42 = vadd.f32 %v4069_v62, %v4031_v45  ;;  %v4086_v49 = vadd.f32 %v4070_v43, %v4032_v36  ;;  %v4087_v50 = vadd.f32 %v4071_v57, %v4033_v22  ;;  %v9972_v18 = vld [vmem:[%s7044_s5 + $0xc6] sm:$0xff]  ;;  %v9975_v45 = vld [vmem:[%s7044_s5 + $0xce] sm:$0xff]  ;;  %v9978_v36 = vld [vmem:[%s7044_s5 + $0xf6] sm:$0xff] }
 0x278   : >> { %v4088_v25 = vadd.f32 %v4072_v2, %v4034_v34  ;;  %v4089_v58 = vadd.f32 %v4073_v37, %v4035_v46  ;;  %v4090_v20 = vadd.f32 %v4074_v63, %v4036_v0  ;;  %v4091_v16 = vadd.f32 %v4075_v13, %v4037_v35  ;;  %11697 = vst [vmem:[#allocation91_spill] sm:$0xff] %v9972_v18  ;;  %v9981_v34 = vld [vmem:[%s7044_s5 + $0xfe] sm:$0xff]  ;;  %v9984_v35 = vld [vmem:[%s7044_s5 + $0x126] sm:$0xff]  ;;  %v9991_v57 = vld [vmem:[%s7044_s5 + $0x156] sm:$0xff] }
 0x279   : >> { %v4092_v28 = vadd.f32 %v4076_v53, %v4038_v48  ;;  %v4093_v14 = vadd.f32 %v4077_v5, %v4039_v59  ;;  %11698 = vst [vmem:[#allocation92_spill] sm:$0xff] %v9975_v45  ;;  %v4094_v62 = vadd.f32 %v4078_v32, %v4040_v17  ;;  %v4095_v51 = vadd.f32 %v4079_v24, %v4041_v27  ;;  %v9987_v48 = vld [vmem:[%s7044_s5 + $0x12e] sm:$0xff]  ;;  %v9994_v2 = vld [vmem:[%s7044_s5 + $0x15e] sm:$0xff] }
 0x27a   : >> { %v4096_v52 = vadd.f32 %v4080_v56, %v4042_v9  ;;  %v4097_v61 = vadd.f32 %v4081_v21, %v4043_v33  ;;  %11699 = vst [vmem:[#allocation93_spill] sm:$0xff] %v9978_v36  ;;  %11700 = vst [vmem:[#allocation94_spill] sm:$0xff] %v9981_v34  ;;  %v4098_v22 = vadd.f32 %v4082_v19, %v4044_v47  ;;  %v11703_v59 = vld [vmem:[#allocation41_spill] sm:$0xff]  ;;  %v11706_v27 = vld [vmem:[#allocation42_spill] sm:$0xff] }
 0x27b   : >> { %v4099_v0 = vadd.f32 %v4083_v54, %v4045_v41  ;;  %v4100_v46 = vadd.f32 %v4084_v12, %v4046_v30  ;;  %11701 = vst [vmem:[#allocation95_spill] sm:$0xff] %v9984_v35  ;;  %11702 = vst [vmem:[#allocation96_spill] sm:$0xff] %v9987_v48  ;;  %v4123_v43 = vmul.f32 %v6465_v8, %v11703_v59  ;;  %v11707_v37 = vld [vmem:[#allocation43_spill] sm:$0xff]  ;;  %v11708_v41 = vld [vmem:[#allocation44_spill] sm:$0xff] }
 0x27c   : >> { %11704 = vst [vmem:[#allocation97_spill] sm:$0xff] %v9991_v57  ;;  %11705 = vst [vmem:[#allocation98_spill] sm:$0xff] %v9994_v2  ;;  %v4124_v9 = vmul.f32 %v6465_v8, %v11706_v27  ;;  %v4125_v33 = vmul.f32 %v6465_v8, %v9972_v18  ;;  %v4126_v17 = vmul.f32 %v6465_v8, %v9975_v45  ;;  %v11709_v53 = vld [vmem:[#allocation45_spill] sm:$0xff]  ;;  %v11710_v32 = vld [vmem:[#allocation46_spill] sm:$0xff] }
 0x27d   : >> { %v4127_v47 = vmul.f32 %v6465_v8, %v11707_v37  ;;  %v4128_v30 = vmul.f32 %v6465_v8, %v11708_v41  ;;  %v4129_v63 = vmul.f32 %v6465_v8, %v9978_v36  ;;  %v4130_v13 = vmul.f32 %v6465_v8, %v9981_v34  ;;  %v11711_v19 = vld [vmem:[#allocation47_spill] sm:$0xff]  ;;  %v11712_v12 = vld [vmem:[#allocation48_spill] sm:$0xff] }
 0x27e   : >> { %v4131_v5 = vmul.f32 %v6465_v8, %v11709_v53  ;;  %v4132_v24 = vmul.f32 %v6465_v8, %v11710_v32  ;;  %v4133_v56 = vmul.f32 %v6465_v8, %v9984_v35  ;;  %v4134_v21 = vmul.f32 %v6465_v8, %v9987_v48  ;;  %v6482_v53 = vld [vmem:[%s10535_s1 + $0x46] ss:$0 sm:$0xff] }
 0x27f   : >> { %v4135_v54 = vmul.f32 %v6465_v8, %v11711_v19  ;;  %v4136_v59 = vmul.f32 %v6465_v8, %v11712_v12  ;;  %v4137_v27 = vmul.f32 %v6465_v8, %v9991_v57  ;;  %v4138_v37 = vmul.f32 %v6465_v8, %v9994_v2  ;;  %v10015_v8 = vld [vmem:[%s7044_s5 + $0xc7] sm:$0xff] }
 0x280   : >> { %v4139_v41 = vadd.f32 %v4123_v43, %v4085_v42  ;;  %v4140_v32 = vadd.f32 %v4124_v9, %v4086_v49  ;;  %v4141_v35 = vadd.f32 %v4125_v33, %v4087_v50  ;;  %v4142_v34 = vadd.f32 %v4126_v17, %v4088_v25  ;;  %11713 = vst [vmem:[#allocation99_spill] sm:$0xff] %v10015_v8  ;;  %v10018_v42 = vld [vmem:[%s7044_s5 + $0xcf] sm:$0xff]  ;;  %v10021_v49 = vld [vmem:[%s7044_s5 + $0xf7] sm:$0xff]  ;;  %v10024_v25 = vld [vmem:[%s7044_s5 + $0xff] sm:$0xff] }
 0x281   : >> { %v4143_v48 = vadd.f32 %v4127_v47, %v4089_v58  ;;  %v4144_v36 = vadd.f32 %v4128_v30, %v4090_v20  ;;  %v4145_v19 = vadd.f32 %v4129_v63, %v4091_v16  ;;  %v4146_v12 = vadd.f32 %v4130_v13, %v4092_v28  ;;  %11714 = vst [vmem:[#allocation100_spill] sm:$0xff] %v10018_v42  ;;  %v10027_v16 = vld [vmem:[%s7044_s5 + $0x127] sm:$0xff]  ;;  %v10030_v28 = vld [vmem:[%s7044_s5 + $0x12f] sm:$0xff]  ;;  %v10034_v33 = vld [vmem:[%s7044_s5 + $0x157] sm:$0xff] }
 0x282   : >> { %v4147_v57 = vadd.f32 %v4131_v5, %v4093_v14  ;;  %v4148_v43 = vadd.f32 %v4132_v24, %v4094_v62  ;;  %v4149_v2 = vadd.f32 %v4133_v56, %v4095_v51  ;;  %v4150_v45 = vadd.f32 %v4134_v21, %v4096_v52  ;;  %11715 = vst [vmem:[#allocation101_spill] sm:$0xff] %v10021_v49  ;;  %v11719_v14 = vld [vmem:[#allocation49_spill] sm:$0xff]  ;;  %v10037_v17 = vld [vmem:[%s7044_s5 + $0x15f] sm:$0xff] }
 0x283   : >> { %v4151_v18 = vadd.f32 %v4135_v54, %v4097_v61  ;;  %11716 = vst [vmem:[#allocation102_spill] sm:$0xff] %v10024_v25  ;;  %v4152_v50 = vadd.f32 %v4136_v59, %v4098_v22  ;;  %v4153_v20 = vadd.f32 %v4137_v27, %v4099_v0  ;;  %v4154_v58 = vadd.f32 %v4138_v37, %v4100_v46  ;;  %v11722_v51 = vld [vmem:[#allocation50_spill] sm:$0xff]  ;;  %v11723_v47 = vld [vmem:[#allocation51_spill] sm:$0xff]  ;;  %v11724_v0 = vld [vmem:[#allocation52_spill] sm:$0xff] }
 0x284   : >> { %11717 = vst [vmem:[#allocation103_spill] sm:$0xff] %v10027_v16  ;;  %11718 = vst [vmem:[#allocation104_spill] sm:$0xff] %v10030_v28  ;;  %v4177_v9 = vmul.f32 %v6482_v53, %v11719_v14  ;;  %v4178_v52 = vmul.f32 %v6482_v53, %v11722_v51  ;;  %v4179_v61 = vmul.f32 %v6482_v53, %v10015_v8  ;;  %v11725_v13 = vld [vmem:[#allocation53_spill] sm:$0xff]  ;;  %v11726_v24 = vld [vmem:[#allocation54_spill] sm:$0xff] }
 0x285   : >> { %11720 = vst [vmem:[#allocation105_spill] sm:$0xff] %v10034_v33  ;;  %11721 = vst [vmem:[#allocation3_spill] sm:$0xff] %v10037_v17  ;;  %v4180_v62 = vmul.f32 %v6482_v53, %v10018_v42  ;;  %v4181_v22 = vmul.f32 %v6482_v53, %v11723_v47  ;;  %v4182_v46 = vmul.f32 %v6482_v53, %v11724_v0  ;;  %v11727_v59 = vld [vmem:[#allocation55_spill] sm:$0xff]  ;;  %v11728_v37 = vld [vmem:[#allocation56_spill] sm:$0xff] }
 0x286   : >> { %v4183_v30 = vmul.f32 %v6482_v53, %v10021_v49  ;;  %v4184_v63 = vmul.f32 %v6482_v53, %v10024_v25  ;;  %v4185_v5 = vmul.f32 %v6482_v53, %v11725_v13  ;;  %v4186_v56 = vmul.f32 %v6482_v53, %v11726_v24  ;;  %v6491_v13 = vld [vmem:[%s10535_s1 + $0x47] ss:$0 sm:$0xff] }
 0x287   : >> { %v4187_v21 = vmul.f32 %v6482_v53, %v10027_v16  ;;  %v4188_v54 = vmul.f32 %v6482_v53, %v10030_v28  ;;  %v4189_v27 = vmul.f32 %v6482_v53, %v11727_v59  ;;  %v4190_v14 = vmul.f32 %v6482_v53, %v11728_v37  ;;  %v10061_v8 = vld [vmem:[%s7044_s5 + $0x100] sm:$0xff] }
 0x288   : >> { %v4191_v51 = vmul.f32 %v6482_v53, %v10034_v33  ;;  %v4192_v47 = vmul.f32 %v6482_v53, %v10037_v17  ;;  %v4193_v0 = vadd.f32 %v4177_v9, %v4139_v41  ;;  %v4194_v24 = vadd.f32 %v4178_v52, %v4140_v32  ;;  %v10058_v33 = vld [vmem:[%s7044_s5 + $0xd0] sm:$0xff] }
 0x289   : >> { %v4195_v25 = vadd.f32 %v4179_v61, %v4141_v35  ;;  %v4196_v16 = vadd.f32 %v4180_v62, %v4142_v34  ;;  %v4197_v28 = vadd.f32 %v4181_v22, %v4143_v48  ;;  %v4198_v49 = vadd.f32 %v4182_v46, %v4144_v36  ;;  %v10064_v52 = vld [vmem:[%s7044_s5 + $0x130] sm:$0xff]  ;;  %v6835_v46 = vld [vmem:[%s7044_s5 + $0x140] sm:$0xff] }
 0x28a   : >> { %v4199_v59 = vadd.f32 %v4183_v30, %v4145_v19  ;;  %v4200_v37 = vadd.f32 %v4184_v63, %v4146_v12  ;;  %v4201_v42 = vadd.f32 %v4185_v5, %v4147_v57  ;;  %v4202_v53 = vadd.f32 %v4186_v56, %v4148_v43  ;;  %v6832_v36 = vld [vmem:[%s7044_s5 + $0xb0] sm:$0xff]  ;;  %v10068_v19 = vld [vmem:[%s7044_s5 + $0x160] sm:$0xff] }
 0x28b   : >> { %v4203_v41 = vadd.f32 %v4187_v21, %v4149_v2  ;;  %v4204_v9 = vadd.f32 %v4188_v54, %v4150_v45  ;;  %v4205_v17 = vadd.f32 %v4189_v27, %v4151_v18  ;;  %v4206_v35 = vadd.f32 %v4190_v14, %v4152_v50  ;;  %v6833_v18 = vld [vmem:[%s7044_s5 + $0xe0] sm:$0xff]  ;;  %v6519_v14 = vld [vmem:[%s10535_s1 + $0x48] ss:$0 sm:$0xff] }
 0x28c   : >> { %v4207_v32 = vadd.f32 %v4191_v51, %v4153_v20  ;;  %v4208_v34 = vadd.f32 %v4192_v47, %v4154_v58  ;;  %v4223_v48 = vmul.f32 %v6832_v36, %v6491_v13  ;;  %v4224_v57 = vmul.f32 %v6491_v13, %v9684_v4  ;;  %v6834_v58 = vld [vmem:[%s7044_s5 + $0x110] sm:$0xff] }
 0x28d   : >> { %v4225_v12 = vmul.f32 %v6491_v13, %v9717_v10  ;;  %v4226_v45 = vmul.f32 %v6491_v13, %v10058_v33  ;;  %v4227_v2 = vmul.f32 %v6833_v18, %v6491_v13  ;;  %v4228_v43 = vmul.f32 %v6491_v13, %v9687_v6 }
 0x28e   : >> { %v4229_v50 = vmul.f32 %v6491_v13, %v9723_v40  ;;  %v4230_v20 = vmul.f32 %v6491_v13, %v10061_v8  ;;  %v4231_v61 = vmul.f32 %v6834_v58, %v6491_v13  ;;  %v4232_v62 = vmul.f32 %v6491_v13, %v9690_v39 }
 0x28f   : >> { %v4233_v22 = vmul.f32 %v6491_v13, %v9729_v55  ;;  %v4234_v4 = vmul.f32 %v6491_v13, %v10064_v52  ;;  %v4235_v30 = vmul.f32 %v6835_v46, %v6491_v13  ;;  %v4236_v63 = vmul.f32 %v6491_v13, %v9694_v11 }
 0x290   : >> { %v4237_v6 = vmul.f32 %v6491_v13, %v9736_v44  ;;  %v4238_v5 = vmul.f32 %v6491_v13, %v10068_v19  ;;  %v4239_v56 = vadd.f32 %v4223_v48, %v4193_v0  ;;  %v4240_v21 = vadd.f32 %v4224_v57, %v4194_v24  ;;  %v6505_v13 = vld [vmem:[%s7044_s5 + $0xd8] sm:$0xff]  ;;  %v10090_v0 = vld [vmem:[%s7044_s5 + $0xe0] sm:$0xff]  ;;  %v10094_v57 = vld [vmem:[%s7044_s5 + $0x110] sm:$0xff] }
 0x291   : >> { %v4241_v54 = vadd.f32 %v4225_v12, %v4195_v25  ;;  %v4242_v39 = vadd.f32 %v4226_v45, %v4196_v16  ;;  %v4243_v27 = vadd.f32 %v4227_v2, %v4197_v28  ;;  %v4244_v51 = vadd.f32 %v4228_v43, %v4198_v49  ;;  %v6509_v28 = vld [vmem:[%s7044_s5 + $0x108] sm:$0xff]  ;;  %v6513_v49 = vld [vmem:[%s7044_s5 + $0x138] sm:$0xff]  ;;  %v10098_v2 = vld [vmem:[%s7044_s5 + $0x140] sm:$0xff] }
 0x292   : >> { %v4245_v47 = vadd.f32 %v4229_v50, %v4199_v59  ;;  %v4246_v11 = vadd.f32 %v4230_v20, %v4200_v37  ;;  %v4247_v36 = vadd.f32 %v4231_v61, %v4201_v42  ;;  %v4248_v24 = vadd.f32 %v4232_v62, %v4202_v53  ;;  %v6517_v42 = vld [vmem:[%s7044_s5 + $0x168] sm:$0xff]  ;;  %v10103_v37 = vld [vmem:[%s7044_s5 + $0x170] sm:$0xff] }
 0x293   : >> { %v4249_v48 = vadd.f32 %v4233_v22, %v4203_v41  ;;  %v4250_v25 = vadd.f32 %v4234_v4, %v4204_v9  ;;  %v4251_v16 = vadd.f32 %v4235_v30, %v4205_v17  ;;  %v4252_v12 = vadd.f32 %v4236_v63, %v4206_v35  ;;  %v6522_v63 = vld [vmem:[%s7044_s5 + $0xd9] sm:$0xff] }
 0x294   : >> { %v4253_v45 = vadd.f32 %v4237_v6, %v4207_v32  ;;  %v4254_v18 = vadd.f32 %v4238_v5, %v4208_v34  ;;  %v4290_v59 = vmul.f32 %v6519_v14, %v9714_v29  ;;  %v4291_v43 = vmul.f32 %v6519_v14, %v9717_v10  ;;  %v6523_v6 = vld [vmem:[%s7044_s5 + $0xe1] sm:$0xff] }
 0x295   : >> { %v4292_v53 = vmul.f32 %v6519_v14, %v6505_v13  ;;  %v4293_v41 = vmul.f32 %v6519_v14, %v10090_v0  ;;  %v4294_v17 = vmul.f32 %v6519_v14, %v9720_v7  ;;  %v4295_v9 = vmul.f32 %v6519_v14, %v9723_v40 }
 0x296   : >> { %v4296_v35 = vmul.f32 %v6519_v14, %v6509_v28  ;;  %v4297_v32 = vmul.f32 %v6519_v14, %v10094_v57  ;;  %v4298_v34 = vmul.f32 %v6519_v14, %v9726_v15  ;;  %v4299_v50 = vmul.f32 %v6519_v14, %v9729_v55  ;;  %v6536_v15 = vld [vmem:[%s10535_s1 + $0x49] ss:$0 sm:$0xff] }
 0x297   : >> { %v4300_v29 = vmul.f32 %v6519_v14, %v6513_v49  ;;  %v4301_v20 = vmul.f32 %v6519_v14, %v10098_v2  ;;  %v4302_v10 = vmul.f32 %v6519_v14, %v9733_v60  ;;  %v4303_v58 = vmul.f32 %v6519_v14, %v9736_v44  ;;  %v6526_v28 = vld [vmem:[%s7044_s5 + $0x109] sm:$0xff]  ;;  %v6527_v49 = vld [vmem:[%s7044_s5 + $0x111] sm:$0xff] }
 0x298   : >> { %v4304_v61 = vmul.f32 %v6519_v14, %v6517_v42  ;;  %v4305_v7 = vmul.f32 %v6519_v14, %v10103_v37  ;;  %v4306_v40 = vadd.f32 %v4290_v59, %v4239_v56  ;;  %v4307_v55 = vadd.f32 %v4291_v43, %v4240_v21  ;;  %v6531_v59 = vld [vmem:[%s7044_s5 + $0x141] sm:$0xff] }
 0x299   : >> { %v4308_v62 = vadd.f32 %v4292_v53, %v4241_v54  ;;  %v4309_v22 = vadd.f32 %v4293_v41, %v4242_v39  ;;  %v4310_v4 = vadd.f32 %v4294_v17, %v4243_v27  ;;  %v4311_v46 = vadd.f32 %v4295_v9, %v4244_v51  ;;  %v6530_v27 = vld [vmem:[%s7044_s5 + $0x139] sm:$0xff] }
 0x29a   : >> { %v4312_v60 = vadd.f32 %v4296_v35, %v4245_v47  ;;  %v4313_v30 = vadd.f32 %v4297_v32, %v4246_v11  ;;  %v4314_v44 = vadd.f32 %v4298_v34, %v4247_v36  ;;  %v4315_v5 = vadd.f32 %v4299_v50, %v4248_v24  ;;  %v6534_v47 = vld [vmem:[%s7044_s5 + $0x169] sm:$0xff]  ;;  %v6535_v11 = vld [vmem:[%s7044_s5 + $0x171] sm:$0xff] }
 0x29b   : >> { %v4316_v56 = vadd.f32 %v4300_v29, %v4249_v48  ;;  %v4317_v14 = vadd.f32 %v4301_v20, %v4250_v25  ;;  %v4318_v13 = vadd.f32 %v4302_v10, %v4251_v16  ;;  %v4319_v21 = vadd.f32 %v4303_v58, %v4252_v12  ;;  %v11730_v17 = vld [vmem:[#allocation58_spill] sm:$0xff] }
 0x29c   : >> { %v4320_v54 = vadd.f32 %v4304_v61, %v4253_v45  ;;  %v4321_v39 = vadd.f32 %v4305_v7, %v4254_v18  ;;  %v4344_v51 = vmul.f32 %v6536_v15, %v9757_v38  ;;  %v4345_v36 = vmul.f32 %v6536_v15, %v9760_v23  ;;  %v11729_v38 = vld [vmem:[#allocation57_spill] sm:$0xff]  ;;  %v6539_v58 = vld [vmem:[%s7044_s5 + $0xda] sm:$0xff]  ;;  %v6540_v61 = vld [vmem:[%s7044_s5 + $0xe2] sm:$0xff] }
 0x29d   : >> { %v4346_v42 = vmul.f32 %v6536_v15, %v6522_v63  ;;  %v4347_v43 = vmul.f32 %v6536_v15, %v6523_v6  ;;  %v4348_v24 = vmul.f32 %v6536_v15, %v9763_v31  ;;  %v4349_v48 = vmul.f32 %v6536_v15, %v9766_v3  ;;  %v6553_v31 = vld [vmem:[%s10535_s1 + $0x4a] ss:$0 sm:$0xff] }
 0x29e   : >> { %v4350_v25 = vmul.f32 %v6536_v15, %v6526_v28  ;;  %v4351_v16 = vmul.f32 %v6536_v15, %v6527_v49  ;;  %v4352_v12 = vmul.f32 %v6536_v15, %v9769_v26  ;;  %v4353_v45 = vmul.f32 %v6536_v15, %v9772_v1  ;;  %v6543_v6 = vld [vmem:[%s7044_s5 + $0x10a] sm:$0xff]  ;;  %v6544_v28 = vld [vmem:[%s7044_s5 + $0x112] sm:$0xff]  ;;  %v6548_v49 = vld [vmem:[%s7044_s5 + $0x142] sm:$0xff] }
 0x29f   : >> { %v4354_v18 = vmul.f32 %v6536_v15, %v6530_v27  ;;  %v4355_v53 = vmul.f32 %v6536_v15, %v6531_v59  ;;  %v4356_v41 = vmul.f32 %v6536_v15, %v11729_v38  ;;  %v4357_v23 = vmul.f32 %v6536_v15, %v11730_v17  ;;  %v11732_v59 = vld [vmem:[#allocation60_spill] sm:$0xff] }
 0x2a0   : >> { %v4358_v9 = vmul.f32 %v6536_v15, %v6534_v47  ;;  %v4359_v35 = vmul.f32 %v6536_v15, %v6535_v11  ;;  %v4360_v32 = vadd.f32 %v4344_v51, %v4306_v40  ;;  %v4361_v3 = vadd.f32 %v4345_v36, %v4307_v55  ;;  %v11733_v11 = vld [vmem:[#allocation61_spill] sm:$0xff]  ;;  %v6570_v38 = vld [vmem:[%s10535_s1 + $0x4b] ss:$0 sm:$0xff] }
 0x2a1   : >> { %v4362_v26 = vadd.f32 %v4346_v42, %v4308_v62  ;;  %v4363_v1 = vadd.f32 %v4347_v43, %v4309_v22  ;;  %v4364_v34 = vadd.f32 %v4348_v24, %v4310_v4  ;;  %v4365_v50 = vadd.f32 %v4349_v48, %v4311_v46  ;;  %v6547_v4 = vld [vmem:[%s7044_s5 + $0x13a] sm:$0xff]  ;;  %v11737_v48 = vld [vmem:[#allocation65_spill] sm:$0xff] }
 0x2a2   : >> { %v4366_v29 = vadd.f32 %v4350_v25, %v4312_v60  ;;  %v4367_v20 = vadd.f32 %v4351_v16, %v4313_v30  ;;  %v4368_v10 = vadd.f32 %v4352_v12, %v4314_v44  ;;  %v4369_v7 = vadd.f32 %v4353_v45, %v4315_v5  ;;  %v11731_v46 = vld [vmem:[#allocation59_spill] sm:$0xff]  ;;  %v6551_v60 = vld [vmem:[%s7044_s5 + $0x16a] sm:$0xff]  ;;  %v6552_v30 = vld [vmem:[%s7044_s5 + $0x172] sm:$0xff] }
 0x2a3   : >> { %v4370_v40 = vadd.f32 %v4354_v18, %v4316_v56  ;;  %v4371_v15 = vadd.f32 %v4355_v53, %v4317_v14  ;;  %v4372_v63 = vadd.f32 %v4356_v41, %v4318_v13  ;;  %v4373_v55 = vadd.f32 %v4357_v23, %v4319_v21  ;;  %v11734_v56 = vld [vmem:[#allocation62_spill] sm:$0xff]  ;;  %v11735_v42 = vld [vmem:[#allocation63_spill] sm:$0xff] }
 0x2a4   : >> { %v4374_v62 = vadd.f32 %v4358_v9, %v4320_v54  ;;  %v4375_v22 = vadd.f32 %v4359_v35, %v4321_v39  ;;  %v4398_v27 = vmul.f32 %v6553_v31, %v11731_v46  ;;  %v4399_v44 = vmul.f32 %v6553_v31, %v11732_v59  ;;  %v11736_v54 = vld [vmem:[#allocation64_spill] sm:$0xff]  ;;  %v11738_v16 = vld [vmem:[#allocation66_spill] sm:$0xff] }
 0x2a5   : >> { %v4400_v51 = vmul.f32 %v6553_v31, %v6539_v58  ;;  %v4401_v47 = vmul.f32 %v6553_v31, %v6540_v61  ;;  %v4402_v5 = vmul.f32 %v6553_v31, %v11733_v11  ;;  %v4403_v14 = vmul.f32 %v6553_v31, %v11734_v56  ;;  %v11741_v11 = vld [vmem:[#allocation69_spill] sm:$0xff]  ;;  %v11743_v56 = vld [vmem:[#allocation71_spill] sm:$0xff] }
 0x2a6   : >> { %v4404_v13 = vmul.f32 %v6553_v31, %v6543_v6  ;;  %v4405_v36 = vmul.f32 %v6553_v31, %v6544_v28  ;;  %v4406_v21 = vmul.f32 %v6553_v31, %v11735_v42  ;;  %v4407_v39 = vmul.f32 %v6553_v31, %v11736_v54 }
 0x2a7   : >> { %v4408_v43 = vmul.f32 %v6553_v31, %v6547_v4  ;;  %v4409_v24 = vmul.f32 %v6553_v31, %v6548_v49  ;;  %v4410_v25 = vmul.f32 %v6553_v31, %v11737_v48  ;;  %v4411_v12 = vmul.f32 %v6553_v31, %v11738_v16  ;;  %v6587_v48 = vld [vmem:[%s10535_s1 + $0x4c] ss:$0 sm:$0xff] }
 0x2a8   : >> { %v4412_v45 = vmul.f32 %v6553_v31, %v6551_v60  ;;  %v4413_v18 = vmul.f32 %v6553_v31, %v6552_v30  ;;  %v4414_v53 = vadd.f32 %v4398_v27, %v4360_v32  ;;  %v4415_v41 = vadd.f32 %v4399_v44, %v4361_v3  ;;  %v6556_v31 = vld [vmem:[%s7044_s5 + $0xdb] sm:$0xff]  ;;  %v6557_v32 = vld [vmem:[%s7044_s5 + $0xe3] sm:$0xff]  ;;  %v6560_v27 = vld [vmem:[%s7044_s5 + $0x10b] sm:$0xff] }
 0x2a9   : >> { %v4416_v17 = vadd.f32 %v4400_v51, %v4362_v26  ;;  %v4417_v23 = vadd.f32 %v4401_v47, %v4363_v1  ;;  %v4418_v9 = vadd.f32 %v4402_v5, %v4364_v34  ;;  %v4419_v35 = vadd.f32 %v4403_v14, %v4365_v50  ;;  %v6561_v60 = vld [vmem:[%s7044_s5 + $0x113] sm:$0xff]  ;;  %v6564_v34 = vld [vmem:[%s7044_s5 + $0x13b] sm:$0xff]  ;;  %v6565_v30 = vld [vmem:[%s7044_s5 + $0x143] sm:$0xff] }
 0x2aa   : >> { %v4420_v58 = vadd.f32 %v4404_v13, %v4366_v29  ;;  %v4421_v61 = vadd.f32 %v4405_v36, %v4367_v20  ;;  %v4422_v6 = vadd.f32 %v4406_v21, %v4368_v10  ;;  %v4423_v28 = vadd.f32 %v4407_v39, %v4369_v7  ;;  %v11739_v50 = vld [vmem:[#allocation67_spill] sm:$0xff]  ;;  %v6568_v29 = vld [vmem:[%s7044_s5 + $0x16b] sm:$0xff]  ;;  %v6569_v20 = vld [vmem:[%s7044_s5 + $0x173] sm:$0xff] }
 0x2ab   : >> { %v4424_v4 = vadd.f32 %v4408_v43, %v4370_v40  ;;  %v4425_v49 = vadd.f32 %v4409_v24, %v4371_v15  ;;  %v4426_v46 = vadd.f32 %v4410_v25, %v4372_v63  ;;  %v4427_v3 = vadd.f32 %v4411_v12, %v4373_v55  ;;  %v11740_v44 = vld [vmem:[#allocation68_spill] sm:$0xff]  ;;  %v11742_v40 = vld [vmem:[#allocation70_spill] sm:$0xff]  ;;  %v11745_v36 = vld [vmem:[#allocation73_spill] sm:$0xff] }
 0x2ac   : >> { %v4428_v26 = vadd.f32 %v4412_v45, %v4374_v62  ;;  %v4429_v1 = vadd.f32 %v4413_v18, %v4375_v22  ;;  %v4452_v59 = vmul.f32 %v6570_v38, %v11739_v50  ;;  %v4453_v10 = vmul.f32 %v6570_v38, %v11740_v44  ;;  %v11744_v62 = vld [vmem:[#allocation72_spill] sm:$0xff]  ;;  %v11746_v21 = vld [vmem:[#allocation74_spill] sm:$0xff] }
 0x2ad   : >> { %v4454_v51 = vmul.f32 %v6570_v38, %v6556_v31  ;;  %v4455_v47 = vmul.f32 %v6570_v38, %v6557_v32  ;;  %v4456_v7 = vmul.f32 %v6570_v38, %v11741_v11  ;;  %v4457_v15 = vmul.f32 %v6570_v38, %v11742_v40  ;;  %v11749_v11 = vld [vmem:[#allocation77_spill] sm:$0xff]  ;;  %v11751_v40 = vld [vmem:[#allocation79_spill] sm:$0xff] }
 0x2ae   : >> { %v4458_v63 = vmul.f32 %v6570_v38, %v6560_v27  ;;  %v4459_v5 = vmul.f32 %v6570_v38, %v6561_v60  ;;  %v4460_v55 = vmul.f32 %v6570_v38, %v11743_v56  ;;  %v4461_v22 = vmul.f32 %v6570_v38, %v11744_v62 }
 0x2af   : >> { %v4462_v14 = vmul.f32 %v6570_v38, %v6564_v34  ;;  %v4463_v13 = vmul.f32 %v6570_v38, %v6565_v30  ;;  %v4464_v42 = vmul.f32 %v6570_v38, %v11745_v36  ;;  %v4465_v54 = vmul.f32 %v6570_v38, %v11746_v21  ;;  %v6604_v36 = vld [vmem:[%s10535_s1 + $0x4d] ss:$0 sm:$0xff] }
 0x2b0   : >> { %v4466_v39 = vmul.f32 %v6570_v38, %v6568_v29  ;;  %v4467_v43 = vmul.f32 %v6570_v38, %v6569_v20  ;;  %v4468_v24 = vadd.f32 %v4452_v59, %v4414_v53  ;;  %v4469_v25 = vadd.f32 %v4453_v10, %v4415_v41  ;;  %v6573_v38 = vld [vmem:[%s7044_s5 + $0xdc] sm:$0xff]  ;;  %v6574_v53 = vld [vmem:[%s7044_s5 + $0xe4] sm:$0xff]  ;;  %v6577_v59 = vld [vmem:[%s7044_s5 + $0x10c] sm:$0xff] }
 0x2b1   : >> { %v4470_v16 = vadd.f32 %v4454_v51, %v4416_v17  ;;  %v4471_v12 = vadd.f32 %v4455_v47, %v4417_v23  ;;  %v4472_v45 = vadd.f32 %v4456_v7, %v4418_v9  ;;  %v4473_v18 = vadd.f32 %v4457_v15, %v4419_v35  ;;  %v6578_v29 = vld [vmem:[%s7044_s5 + $0x114] sm:$0xff]  ;;  %v6581_v9 = vld [vmem:[%s7044_s5 + $0x13c] sm:$0xff]  ;;  %v6582_v20 = vld [vmem:[%s7044_s5 + $0x144] sm:$0xff] }
 0x2b2   : >> { %v4474_v31 = vadd.f32 %v4458_v63, %v4420_v58  ;;  %v4475_v32 = vadd.f32 %v4459_v5, %v4421_v61  ;;  %v4476_v27 = vadd.f32 %v4460_v55, %v4422_v6  ;;  %v4477_v60 = vadd.f32 %v4461_v22, %v4423_v28  ;;  %v11747_v35 = vld [vmem:[#allocation75_spill] sm:$0xff]  ;;  %v6585_v58 = vld [vmem:[%s7044_s5 + $0x16c] sm:$0xff]  ;;  %v6586_v61 = vld [vmem:[%s7044_s5 + $0x174] sm:$0xff] }
 0x2b3   : >> { %v4478_v34 = vadd.f32 %v4462_v14, %v4424_v4  ;;  %v4479_v30 = vadd.f32 %v4463_v13, %v4425_v49  ;;  %v4480_v50 = vadd.f32 %v4464_v42, %v4426_v46  ;;  %v4481_v41 = vadd.f32 %v4465_v54, %v4427_v3  ;;  %v11748_v10 = vld [vmem:[#allocation76_spill] sm:$0xff]  ;;  %v11750_v4 = vld [vmem:[#allocation78_spill] sm:$0xff]  ;;  %v11753_v5 = vld [vmem:[#allocation81_spill] sm:$0xff] }
 0x2b4   : >> { %v4482_v17 = vadd.f32 %v4466_v39, %v4428_v26  ;;  %v4483_v23 = vadd.f32 %v4467_v43, %v4429_v1  ;;  %v4506_v44 = vmul.f32 %v6587_v48, %v11747_v35  ;;  %v4507_v6 = vmul.f32 %v6587_v48, %v11748_v10  ;;  %v11752_v26 = vld [vmem:[#allocation80_spill] sm:$0xff]  ;;  %v11754_v55 = vld [vmem:[#allocation82_spill] sm:$0xff] }
 0x2b5   : >> { %v4508_v51 = vmul.f32 %v6587_v48, %v6573_v38  ;;  %v4509_v47 = vmul.f32 %v6587_v48, %v6574_v53  ;;  %v4510_v28 = vmul.f32 %v6587_v48, %v11749_v11  ;;  %v4511_v49 = vmul.f32 %v6587_v48, %v11750_v4  ;;  %v11757_v11 = vld [vmem:[#allocation85_spill] sm:$0xff]  ;;  %v11759_v4 = vld [vmem:[#allocation87_spill] sm:$0xff] }
 0x2b6   : >> { %v4512_v46 = vmul.f32 %v6587_v48, %v6577_v59  ;;  %v4513_v7 = vmul.f32 %v6587_v48, %v6578_v29  ;;  %v4514_v3 = vmul.f32 %v6587_v48, %v11751_v40  ;;  %v4515_v1 = vmul.f32 %v6587_v48, %v11752_v26 }
 0x2b7   : >> { %v4516_v15 = vmul.f32 %v6587_v48, %v6581_v9  ;;  %v4517_v63 = vmul.f32 %v6587_v48, %v6582_v20  ;;  %v4518_v56 = vmul.f32 %v6587_v48, %v11753_v5  ;;  %v4519_v62 = vmul.f32 %v6587_v48, %v11754_v55  ;;  %v6621_v5 = vld [vmem:[%s10535_s1 + $0x4e] ss:$0 sm:$0xff] }
 0x2b8   : >> { %v4520_v22 = vmul.f32 %v6587_v48, %v6585_v58  ;;  %v4521_v14 = vmul.f32 %v6587_v48, %v6586_v61  ;;  %v4522_v13 = vadd.f32 %v4506_v44, %v4468_v24  ;;  %v4523_v42 = vadd.f32 %v4507_v6, %v4469_v25  ;;  %v6590_v48 = vld [vmem:[%s7044_s5 + $0xdd] sm:$0xff]  ;;  %v6591_v24 = vld [vmem:[%s7044_s5 + $0xe5] sm:$0xff]  ;;  %v6594_v44 = vld [vmem:[%s7044_s5 + $0x10d] sm:$0xff] }
 0x2b9   : >> { %v4524_v21 = vadd.f32 %v4508_v51, %v4470_v16  ;;  %v4525_v54 = vadd.f32 %v4509_v47, %v4471_v12  ;;  %v4526_v39 = vadd.f32 %v4510_v28, %v4472_v45  ;;  %v4527_v43 = vadd.f32 %v4511_v49, %v4473_v18  ;;  %v6595_v58 = vld [vmem:[%s7044_s5 + $0x115] sm:$0xff]  ;;  %v6598_v45 = vld [vmem:[%s7044_s5 + $0x13d] sm:$0xff]  ;;  %v6599_v61 = vld [vmem:[%s7044_s5 + $0x145] sm:$0xff] }
 0x2ba   : >> { %v4528_v38 = vadd.f32 %v4512_v46, %v4474_v31  ;;  %v4529_v53 = vadd.f32 %v4513_v7, %v4475_v32  ;;  %v4530_v59 = vadd.f32 %v4514_v3, %v4476_v27  ;;  %v4531_v29 = vadd.f32 %v4515_v1, %v4477_v60  ;;  %v11755_v18 = vld [vmem:[#allocation83_spill] sm:$0xff]  ;;  %v6602_v31 = vld [vmem:[%s7044_s5 + $0x16d] sm:$0xff]  ;;  %v6603_v32 = vld [vmem:[%s7044_s5 + $0x175] sm:$0xff] }
 0x2bb   : >> { %v4532_v9 = vadd.f32 %v4516_v15, %v4478_v34  ;;  %v4533_v20 = vadd.f32 %v4517_v63, %v4479_v30  ;;  %v4534_v35 = vadd.f32 %v4518_v56, %v4480_v50  ;;  %v4535_v25 = vadd.f32 %v4519_v62, %v4481_v41  ;;  %v11756_v6 = vld [vmem:[#allocation84_spill] sm:$0xff]  ;;  %v11758_v34 = vld [vmem:[#allocation86_spill] sm:$0xff]  ;;  %v11761_v7 = vld [vmem:[#allocation89_spill] sm:$0xff] }
 0x2bc   : >> { %v4536_v16 = vadd.f32 %v4520_v22, %v4482_v17  ;;  %v4537_v12 = vadd.f32 %v4521_v14, %v4483_v23  ;;  %v4560_v10 = vmul.f32 %v6604_v36, %v11755_v18  ;;  %v4561_v27 = vmul.f32 %v6604_v36, %v11756_v6  ;;  %v11760_v17 = vld [vmem:[#allocation88_spill] sm:$0xff]  ;;  %v11762_v3 = vld [vmem:[#allocation90_spill] sm:$0xff] }
 0x2bd   : >> { %v4562_v51 = vmul.f32 %v6604_v36, %v6590_v48  ;;  %v4563_v47 = vmul.f32 %v6604_v36, %v6591_v24  ;;  %v4564_v60 = vmul.f32 %v6604_v36, %v11757_v11  ;;  %v4565_v30 = vmul.f32 %v6604_v36, %v11758_v34  ;;  %v11765_v11 = vld [vmem:[#allocation93_spill] sm:$0xff]  ;;  %v11767_v34 = vld [vmem:[#allocation95_spill] sm:$0xff] }
 0x2be   : >> { %v4566_v50 = vmul.f32 %v6604_v36, %v6594_v44  ;;  %v4567_v28 = vmul.f32 %v6604_v36, %v6595_v58  ;;  %v4568_v41 = vmul.f32 %v6604_v36, %v11759_v4  ;;  %v4569_v23 = vmul.f32 %v6604_v36, %v11760_v17 }
 0x2bf   : >> { %v4570_v49 = vmul.f32 %v6604_v36, %v6598_v45  ;;  %v4571_v46 = vmul.f32 %v6604_v36, %v6599_v61  ;;  %v4572_v40 = vmul.f32 %v6604_v36, %v11761_v7  ;;  %v4573_v26 = vmul.f32 %v6604_v36, %v11762_v3  ;;  %v6638_v7 = vld [vmem:[%s10535_s1 + $0x4f] ss:$0 sm:$0xff] }
 0x2c0   : >> { %v4574_v1 = vmul.f32 %v6604_v36, %v6602_v31  ;;  %v4575_v15 = vmul.f32 %v6604_v36, %v6603_v32  ;;  %v4576_v63 = vadd.f32 %v4560_v10, %v4522_v13  ;;  %v4577_v56 = vadd.f32 %v4561_v27, %v4523_v42  ;;  %v6607_v36 = vld [vmem:[%s7044_s5 + $0xde] sm:$0xff]  ;;  %v6608_v13 = vld [vmem:[%s7044_s5 + $0xe6] sm:$0xff]  ;;  %v6611_v10 = vld [vmem:[%s7044_s5 + $0x10e] sm:$0xff] }
 0x2c1   : >> { %v4578_v55 = vadd.f32 %v4562_v51, %v4524_v21  ;;  %v4579_v62 = vadd.f32 %v4563_v47, %v4525_v54  ;;  %v4580_v22 = vadd.f32 %v4564_v60, %v4526_v39  ;;  %v4581_v14 = vadd.f32 %v4565_v30, %v4527_v43  ;;  %v6612_v31 = vld [vmem:[%s7044_s5 + $0x116] sm:$0xff]  ;;  %v6615_v39 = vld [vmem:[%s7044_s5 + $0x13e] sm:$0xff]  ;;  %v6616_v32 = vld [vmem:[%s7044_s5 + $0x146] sm:$0xff] }
 0x2c2   : >> { %v4582_v48 = vadd.f32 %v4566_v50, %v4528_v38  ;;  %v4583_v24 = vadd.f32 %v4567_v28, %v4529_v53  ;;  %v4584_v44 = vadd.f32 %v4568_v41, %v4530_v59  ;;  %v4585_v58 = vadd.f32 %v4569_v23, %v4531_v29  ;;  %v11763_v43 = vld [vmem:[#allocation91_spill] sm:$0xff]  ;;  %v6619_v38 = vld [vmem:[%s7044_s5 + $0x16e] sm:$0xff]  ;;  %v6620_v53 = vld [vmem:[%s7044_s5 + $0x176] sm:$0xff] }
 0x2c3   : >> { %v4586_v45 = vadd.f32 %v4570_v49, %v4532_v9  ;;  %v4587_v61 = vadd.f32 %v4571_v46, %v4533_v20  ;;  %v4588_v18 = vadd.f32 %v4572_v40, %v4534_v35  ;;  %v4589_v42 = vadd.f32 %v4573_v26, %v4535_v25  ;;  %v11764_v27 = vld [vmem:[#allocation92_spill] sm:$0xff]  ;;  %v11766_v9 = vld [vmem:[#allocation94_spill] sm:$0xff]  ;;  %v11769_v28 = vld [vmem:[#allocation97_spill] sm:$0xff] }
 0x2c4   : >> { %v4590_v21 = vadd.f32 %v4574_v1, %v4536_v16  ;;  %v4591_v54 = vadd.f32 %v4575_v15, %v4537_v12  ;;  %v4614_v6 = vmul.f32 %v6621_v5, %v11763_v43  ;;  %v4615_v59 = vmul.f32 %v6621_v5, %v11764_v27  ;;  %v11768_v16 = vld [vmem:[#allocation96_spill] sm:$0xff]  ;;  %v11770_v41 = vld [vmem:[#allocation98_spill] sm:$0xff] }
 0x2c5   : >> { %v4616_v51 = vmul.f32 %v6621_v5, %v6607_v36  ;;  %v4617_v47 = vmul.f32 %v6621_v5, %v6608_v13  ;;  %v4618_v29 = vmul.f32 %v6621_v5, %v11765_v11  ;;  %v4619_v20 = vmul.f32 %v6621_v5, %v11766_v9  ;;  %v11775_v11 = vld [vmem:[#allocation103_spill] sm:$0xff]  ;;  %v6637_v9 = vld [vmem:[%s7044_s5 + $0x177] sm:$0xff] }
 0x2c6   : >> { %v4620_v35 = vmul.f32 %v6621_v5, %v6611_v10  ;;  %v4621_v60 = vmul.f32 %v6621_v5, %v6612_v31  ;;  %v4622_v25 = vmul.f32 %v6621_v5, %v11767_v34  ;;  %v4623_v12 = vmul.f32 %v6621_v5, %v11768_v16  ;;  %v6624_v31 = vld [vmem:[%s7044_s5 + $0xdf] sm:$0xff]  ;;  %v11777_v34 = vld [vmem:[#allocation105_spill] sm:$0xff]  ;;  %v6640_v16 = vld [vmem:[%s7044_s5 + $0xe8] sm:$0xff] }
 0x2c7   : >> { %v4624_v30 = vmul.f32 %v6621_v5, %v6615_v39  ;;  %v4625_v50 = vmul.f32 %v6621_v5, %v6616_v32  ;;  %v4626_v4 = vmul.f32 %v6621_v5, %v11769_v28  ;;  %v4627_v17 = vmul.f32 %v6621_v5, %v11770_v41 }
 0x2c8   : >> { %v4628_v23 = vmul.f32 %v6621_v5, %v6619_v38  ;;  %v4629_v49 = vmul.f32 %v6621_v5, %v6620_v53  ;;  %v4630_v46 = vadd.f32 %v4614_v6, %v4576_v63  ;;  %v4631_v40 = vadd.f32 %v4615_v59, %v4577_v56  ;;  %v6625_v5 = vld [vmem:[%s7044_s5 + $0xe7] sm:$0xff]  ;;  %v6628_v6 = vld [vmem:[%s7044_s5 + $0x10f] sm:$0xff]  ;;  %v6629_v38 = vld [vmem:[%s7044_s5 + $0x117] sm:$0xff] }
 0x2c9   : >> { %v4632_v3 = vadd.f32 %v4616_v51, %v4578_v55  ;;  %v4633_v26 = vadd.f32 %v4617_v47, %v4579_v62  ;;  %v4634_v1 = vadd.f32 %v4618_v29, %v4580_v22  ;;  %v4635_v15 = vadd.f32 %v4619_v20, %v4581_v14  ;;  %v6632_v55 = vld [vmem:[%s7044_s5 + $0x13f] sm:$0xff]  ;;  %v6633_v62 = vld [vmem:[%s7044_s5 + $0x147] sm:$0xff] }
 0x2ca   : >> { %v4636_v36 = vadd.f32 %v4620_v35, %v4582_v48  ;;  %v4637_v13 = vadd.f32 %v4621_v60, %v4583_v24  ;;  %v4638_v10 = vadd.f32 %v4622_v25, %v4584_v44  ;;  %v4639_v63 = vadd.f32 %v4623_v12, %v4585_v58  ;;  %v11771_v22 = vld [vmem:[#allocation99_spill] sm:$0xff]  ;;  %v11772_v14 = vld [vmem:[#allocation100_spill] sm:$0xff]  ;;  %v11773_v58 = vld [vmem:[#allocation101_spill] sm:$0xff] }
 0x2cb   : >> { %v4640_v39 = vadd.f32 %v4624_v30, %v4586_v45  ;;  %v4641_v32 = vadd.f32 %v4625_v50, %v4587_v61  ;;  %v4642_v43 = vadd.f32 %v4626_v4, %v4588_v18  ;;  %v4643_v53 = vadd.f32 %v4627_v17, %v4589_v42  ;;  %v6636_v44 = vld [vmem:[%s7044_s5 + $0x16f] sm:$0xff]  ;;  %v11774_v18 = vld [vmem:[#allocation102_spill] sm:$0xff]  ;;  %v11778_v12 = vld [vmem:[#allocation3_spill] sm:$0xff] }
 0x2cc   : >> { %v4644_v56 = vadd.f32 %v4628_v23, %v4590_v21  ;;  %v4668_v27 = vmul.f32 %v6638_v7, %v11771_v22  ;;  %v4669_v48 = vmul.f32 %v6638_v7, %v11772_v14  ;;  %v4645_v24 = vadd.f32 %v4629_v49, %v4591_v54  ;;  %v10246_v61 = vld [vmem:[%s10535_s1 + $0x50] ss:$0 sm:$0xff]  ;;  %v11776_v20 = vld [vmem:[#allocation104_spill] sm:$0xff] }
 0x2cd   : >> { %v4670_v59 = vmul.f32 %v6638_v7, %v6624_v31  ;;  %v4671_v51 = vmul.f32 %v6638_v7, %v6625_v5  ;;  %v4672_v45 = vmul.f32 %v6638_v7, %v11773_v58  ;;  %v4673_v42 = vmul.f32 %v6638_v7, %v11774_v18  ;;  %v6836_v17 = vld [vmem:[%s7044_s5 + $0xc8] sm:$0xff] }
 0x2ce   : >> { %v4674_v21 = vmul.f32 %v6638_v7, %v6628_v6  ;;  %v4675_v47 = vmul.f32 %v6638_v7, %v6629_v38  ;;  %v4676_v29 = vmul.f32 %v6638_v7, %v11775_v11  ;;  %v4677_v54 = vmul.f32 %v6638_v7, %v11776_v20 }
 0x2cf   : >> { %v4678_v35 = vmul.f32 %v6638_v7, %v6632_v55  ;;  %v4679_v60 = vmul.f32 %v6638_v7, %v6633_v62  ;;  %v4680_v25 = vmul.f32 %v6638_v7, %v11777_v34  ;;  %v4681_v30 = vmul.f32 %v6638_v7, %v11778_v12 }
 0x2d0   : >> { %v4682_v50 = vmul.f32 %v6638_v7, %v6636_v44  ;;  %v4684_v28 = vadd.f32 %v4668_v27, %v4630_v46  ;;  %v4685_v4 = vadd.f32 %v4669_v48, %v4631_v40  ;;  %v4686_v41 = vadd.f32 %v4670_v59, %v4632_v3  ;;  %v6642_v46 = vld [vmem:[%s7044_s5 + $0x118] sm:$0xff] }
 0x2d1   : >> { %v4714_v23 = vmul.f32 %v6836_v17, %v10246_v61  ;;  %v4715_v49 = vmul.f32 %v10246_v61, %v10058_v33  ;;  %v4716_v31 = vmul.f32 %v10246_v61, %v10090_v0  ;;  %v4683_v5 = vmul.f32 %v6638_v7, %v6637_v9  ;;  %v6837_v40 = vld [vmem:[%s7044_s5 + $0xf8] sm:$0xff] }
 0x2d2   : >> { %v4687_v6 = vadd.f32 %v4671_v51, %v4633_v26  ;;  %v4688_v38 = vadd.f32 %v4672_v45, %v4634_v1  ;;  %v4717_v55 = vmul.f32 %v10246_v61, %v6640_v16  ;;  %v4689_v62 = vadd.f32 %v4673_v42, %v4635_v15  ;;  %v6838_v51 = vld [vmem:[%s7044_s5 + $0x128] sm:$0xff]  ;;  %v6646_v42 = vld [vmem:[%s7044_s5 + $0x178] sm:$0xff] }
 0x2d3   : >> { %v4690_v22 = vadd.f32 %v4674_v21, %v4636_v36  ;;  %v4691_v14 = vadd.f32 %v4675_v47, %v4637_v13  ;;  %v4718_v3 = vmul.f32 %v6837_v40, %v10246_v61  ;;  %v4692_v27 = vadd.f32 %v4676_v29, %v4638_v10  ;;  %v10273_v10 = vld [vmem:[%s10537_s3] ss:$0 sm:$0xff]  ;;  %v6839_v29 = vld [vmem:[%s7044_s5 + $0x158] sm:$0xff] }
 0x2d4   : >> { %v4693_v48 = vadd.f32 %v4677_v54, %v4639_v63  ;;  %v4694_v33 = vadd.f32 %v4678_v35, %v4640_v39  ;;  %v4719_v0 = vmul.f32 %v10246_v61, %v10061_v8  ;;  %v4720_v7 = vmul.f32 %v10246_v61, %v10094_v57  ;;  %v6644_v39 = vld [vmem:[%s7044_s5 + $0x148] sm:$0xff] }
 0x2d5   : >> { %v4730_v26 = vadd.f32 %v4714_v23, %v4684_v28  ;;  %v4731_v1 = vadd.f32 %v4715_v49, %v4685_v4  ;;  %v4732_v15 = vadd.f32 %v4716_v31, %v4686_v41  ;;  %v4695_v36 = vadd.f32 %v4679_v60, %v4641_v32 }
 0x2d6   : >> { %v4696_v13 = vadd.f32 %v4680_v25, %v4642_v43  ;;  %v4721_v44 = vmul.f32 %v10246_v61, %v6642_v46  ;;  %v4733_v59 = vadd.f32 %v4717_v55, %v4687_v6  ;;  %v4697_v63 = vadd.f32 %v4681_v30, %v4643_v53  ;;  %v4931_v6 = vld [vmem:[%s10536_s2] sm:$0xf] }
 0x2d7   : >> { %v4698_v8 = vadd.f32 %v4682_v50, %v4644_v56  ;;  %v4722_v57 = vmul.f32 %v6838_v51, %v10246_v61  ;;  %v4734_v58 = vadd.f32 %v4718_v3, %v4688_v38  ;;  %v4699_v45 = vadd.f32 %v4683_v5, %v4645_v24  ;;  %6699 = vmatprep.subr.msk.mxu0 %vm4992_vm2, %v4931_v6 }
 0x2d8   : >> { %v4723_v32 = vmul.f32 %v10246_v61, %v10064_v52  ;;  %v4724_v43 = vmul.f32 %v10246_v61, %v10098_v2  ;;  %v4735_v18 = vadd.f32 %v4719_v0, %v4689_v62  ;;  %v4736_v21 = vadd.f32 %v4720_v7, %v4690_v22  ;;  %6725 = vmatprep.subr.msk.mxu1 %vm4992_vm2, %v4931_v6 }
 0x2d9   : >> { %v4775_v47 = vadd.f32 %v10273_v10, %v4730_v26  ;;  %v4776_v53 = vadd.f32 %v10273_v10, %v4731_v1  ;;  %v4777_v56 = vadd.f32 %v10273_v10, %v4732_v15  ;;  %v4725_v11 = vmul.f32 %v10246_v61, %v6644_v39  ;;  %6700 = vmatpush3.msk.msra.mxu0 %vm4992_vm2, %v4931_v6 }
 0x2da   : >> { %v4726_v24 = vmul.f32 %v6839_v29, %v10246_v61  ;;  %v4737_v9 = vadd.f32 %v4721_v44, %v4691_v14  ;;  %v4778_v52 = vadd.f32 %v10273_v10, %v4733_v59  ;;  %v4727_v2 = vmul.f32 %v10246_v61, %v10068_v19  ;;  %6726 = vmatpush3.msk.msra.mxu1 %vm4992_vm2, %v4931_v6 }
 0x2db   : >> { %v4728_v20 = vmul.f32 %v10246_v61, %v10103_v37  ;;  %v4738_v54 = vadd.f32 %v4722_v57, %v4692_v27  ;;  %v4779_v35 = vadd.f32 %v10273_v10, %v4734_v58  ;;  %v4729_v60 = vmul.f32 %v10246_v61, %v6646_v42 }
 0x2dc   : >> { %v4739_v34 = vadd.f32 %v4723_v32, %v4693_v48  ;;  %v4740_v25 = vadd.f32 %v4724_v43, %v4694_v33  ;;  %v4780_v16 = vadd.f32 %v10273_v10, %v4735_v18  ;;  %v4781_v12 = vadd.f32 %v10273_v10, %v4736_v21  ;;  %v10322_v18 = vld [vmem:[%s10537_s3 + $0x1] ss:$0 sm:$0xff] }
 0x2dd   : >> { %v4807_v30 = vmul.f32 0.70710677, %v4775_v47  ;;  %v4808_v50 = vmul.f32 0.70710677, %v4776_v53  ;;  %v4809_v28 = vmul.f32 0.70710677, %v4777_v56  ;;  %v4741_v4 = vadd.f32 %v4725_v11, %v4695_v36 }
 0x2de   : >> { %v4742_v41 = vadd.f32 %v4726_v24, %v4696_v13  ;;  %v4782_v19 = vadd.f32 %v10273_v10, %v4737_v9  ;;  %v4810_v17 = vmul.f32 0.70710677, %v4778_v52  ;;  %v4743_v37 = vadd.f32 %v4727_v2, %v4697_v63 }
 0x2df   : >> { %v4783_v23 = vadd.f32 %v10273_v10, %v4738_v54  ;;  %v4811_v49 = vmul.f32 0.70710677, %v4779_v35  ;;  %6744 = verf.f32 %v4807_v30  ;;  %v4744_v61 = vadd.f32 %v4728_v20, %v4698_v8 }
 0x2e0   : >> { %v4784_v31 = vadd.f32 %v10273_v10, %v4739_v34  ;;  %v4812_v5 = vmul.f32 0.70710677, %v4780_v16  ;;  %6746 = verf.f32 %v4808_v50  ;;  %v4745_v38 = vadd.f32 %v4729_v60, %v4699_v45 }
 0x2e1   : >> { %v10305_v55 = vadd.f32 %v10273_v10, %v4740_v25  ;;  %v4813_v62 = vmul.f32 0.70710677, %v4781_v12  ;;  %6748 = verf.f32 %v4809_v28  ;;  %v10308_v22 = vadd.f32 %v10273_v10, %v4741_v4 }
 0x2e2   : >> { %v4814_v14 = vmul.f32 0.70710677, %v4782_v19  ;;  %6750 = verf.f32 %v4810_v17  ;;  %v10311_v46 = vadd.f32 %v10273_v10, %v4742_v41  ;;  %v4815_v40 = vmul.f32 0.70710677, %v4783_v23 }
 0x2e3   : >> { %6752 = verf.f32 %v4811_v49  ;;  %v4788_v3 = vadd.f32 %v10273_v10, %v4743_v37  ;;  %v4816_v27 = vmul.f32 0.70710677, %v4784_v31  ;;  %v4789_v48 = vadd.f32 %v10273_v10, %v4744_v61 }
 0x2e4   : >> { %6754 = verf.f32 %v4812_v5  ;;  %v4817_v33 = vmul.f32 0.70710677, %v10305_v55  ;;  %v4790_v0 = vadd.f32 %v10273_v10, %v4745_v38  ;;  %v4818_v7 = vmul.f32 0.70710677, %v10308_v22 }
 0x2e5   : >> { %6756 = verf.f32 %v4813_v62  ;;  %v4819_v26 = vmul.f32 0.70710677, %v10311_v46  ;;  %v4791_v1 = vmul.f32 0.5, %v4775_v47  ;;  %v4792_v15 = vmul.f32 0.5, %v4776_v53 }
 0x2e6   : >> { %6758 = verf.f32 %v4814_v14  ;;  %v4820_v36 = vmul.f32 0.70710677, %v4788_v3  ;;  %v4793_v44 = vmul.f32 0.5, %v4777_v56  ;;  %v4794_v59 = vmul.f32 0.5, %v4778_v52 }
 0x2e7   : >> { %6760 = verf.f32 %v4815_v40  ;;  %v4821_v63 = vmul.f32 0.70710677, %v4789_v48  ;;  %v4795_v39 = vmul.f32 0.5, %v4779_v35  ;;  %v4822_v51 = vmul.f32 0.70710677, %v4790_v0 }
 0x2e8   : >> { %6762 = verf.f32 %v4816_v27  ;;  %v4796_v58 = vmul.f32 0.5, %v4780_v16  ;;  %v4797_v45 = vmul.f32 0.5, %v4781_v12  ;;  %v4798_v42 = vmul.f32 0.5, %v4782_v19  ;;  %v10329_v16 = vld [vmem:[%s10537_s3 + $0x2] ss:$0 sm:$0xff] }
 0x2e9   : >> { %v6745_v13 = vpop.eup %6744  ;;  %6764 = verf.f32 %v4817_v33  ;;  %v4799_v56 = vmul.f32 0.5, %v4783_v23  ;;  %v4800_v9 = vmul.f32 0.5, %v4784_v31  ;;  %v4801_v12 = vmul.f32 0.5, %v10305_v55 }
 0x2ea   : >> { %v6747_v8 = vpop.eup %6746  ;;  %6766 = verf.f32 %v4818_v7  ;;  %v4839_v10 = vadd.f32 1.0, %v6745_v13  ;;  %v4802_v30 = vmul.f32 0.5, %v10308_v22  ;;  %v4803_v41 = vmul.f32 0.5, %v10311_v46 }
 0x2eb   : >> { %v6749_v57 = vpop.eup %6748  ;;  %6768 = verf.f32 %v4819_v26  ;;  %v4840_v32 = vadd.f32 1.0, %v6747_v8  ;;  %v4804_v19 = vmul.f32 0.5, %v4788_v3  ;;  %v4805_v49 = vmul.f32 0.5, %v4789_v48 }
 0x2ec   : >> { %v6751_v43 = vpop.eup %6750  ;;  %6770 = verf.f32 %v4820_v36  ;;  %v4841_v21 = vadd.f32 1.0, %v6749_v57  ;;  %v4855_v47 = vmul.f32 %v4839_v10, %v4791_v1  ;;  %v4806_v61 = vmul.f32 0.5, %v4790_v0 }
 0x2ed   : >> { %v6753_v53 = vpop.eup %6752  ;;  %6772 = verf.f32 %v4821_v63  ;;  %v4842_v11 = vadd.f32 1.0, %v6751_v43  ;;  %v4856_v29 = vmul.f32 %v4840_v32, %v4792_v15  ;;  %v4753_v63 = vld [vmem:[%s10342_s29] sm:$0xff] }
 0x2ee   : >> { %v6755_v24 = vpop.eup %6754  ;;  %6774 = verf.f32 %v4822_v51  ;;  %v4843_v52 = vadd.f32 1.0, %v6753_v53  ;;  %v4857_v2 = vmul.f32 %v4841_v21, %v4793_v44  ;;  %v4877_v60 = vmul.f32 %v10322_v18, %v4855_v47  ;;  %v4755_v21 = vld [vmem:[%s10342_s29 + $0x10] sm:$0xff] }
 0x2ef   : >> { %v6757_v20 = vpop.eup %6756  ;;  %v4844_v54 = vadd.f32 1.0, %v6755_v24  ;;  %v4858_v35 = vmul.f32 %v4842_v11, %v4794_v59  ;;  %v4878_v34 = vmul.f32 %v10322_v18, %v4856_v29  ;;  %v4756_v29 = vld [vmem:[%s10342_s29 + $0x18] sm:$0xff] }
 0x2f0   : >> { %v6759_v25 = vpop.eup %6758  ;;  %v4845_v50 = vadd.f32 1.0, %v6757_v20  ;;  %v4859_v28 = vmul.f32 %v4843_v52, %v4795_v39  ;;  %v4879_v37 = vmul.f32 %v10322_v18, %v4857_v2  ;;  %v4899_v62 = vadd.f32 %v10329_v16, %v4877_v60  ;;  %v4757_v20 = vld [vmem:[%s10342_s29 + $0x20] sm:$0xff] }
 0x2f1   : >> { %v6761_v4 = vpop.eup %6760  ;;  %v4846_v17 = vadd.f32 1.0, %v6759_v25  ;;  %v4860_v5 = vmul.f32 %v4844_v54, %v4796_v58  ;;  %v4880_v55 = vmul.f32 %v10322_v18, %v4858_v35  ;;  %v4900_v22 = vadd.f32 %v10329_v16, %v4878_v34  ;;  %v4754_v58 = vld [vmem:[%s10342_s29 + $0x8] sm:$0xff]  ;;  %v4761_v54 = vld [vmem:[%s10342_s29 + $0x40] sm:$0xff] }
 0x2f2   : >> { %v6763_v23 = vpop.eup %6762  ;;  %v4847_v31 = vadd.f32 1.0, %v6761_v4  ;;  %v4861_v40 = vmul.f32 %v4845_v50, %v4797_v45  ;;  %v4881_v27 = vmul.f32 %v10322_v18, %v4859_v28  ;;  %v4901_v26 = vadd.f32 %v10329_v16, %v4879_v37  ;;  %v4762_v25 = vld [vmem:[%s10342_s29 + $0x48] sm:$0xff] }
 0x2f3   : >> { %v6765_v6 = vpop.eup %6764  ;;  %v4848_v38 = vadd.f32 1.0, %v6763_v23  ;;  %v4862_v0 = vmul.f32 %v4846_v17, %v4798_v42  ;;  %v4882_v13 = vmul.f32 %v10322_v18, %v4860_v5  ;;  %v4902_v10 = vadd.f32 %v10329_v16, %v4880_v55  ;;  %v4758_v23 = vld [vmem:[%s10342_s29 + $0x28] sm:$0xff]  ;;  %v4765_v55 = vld [vmem:[%s10342_s29 + $0x60] sm:$0xff] }
 0x2f4   : >> { %v6767_v14 = vpop.eup %6766  ;;  %v4849_v46 = vadd.f32 1.0, %v6765_v6  ;;  %v4863_v3 = vmul.f32 %v4847_v31, %v4799_v56  ;;  %v4883_v43 = vmul.f32 %v10322_v18, %v4861_v40  ;;  %v4903_v11 = vadd.f32 %v10329_v16, %v4881_v27 }
 0x2f5   : >> { %v6769_v48 = vpop.eup %6768  ;;  %v4850_v33 = vadd.f32 1.0, %v6767_v14  ;;  %v4864_v7 = vmul.f32 %v4848_v38, %v4800_v9  ;;  %v4915_v2 = vadd.f32 %v4899_v62, %v4753_v63  ;;  %v4916_v34 = vadd.f32 %v4900_v22, %v4754_v58  ;;  %v4759_v38 = vld [vmem:[%s10342_s29 + $0x30] sm:$0xff] }
 0x2f6   : >> { %v6771_v1 = vpop.eup %6770  ;;  %v4851_v15 = vadd.f32 1.0, %v6769_v48  ;;  %v4865_v36 = vmul.f32 %v4849_v46, %v4801_v12  ;;  %v4885_v44 = vmul.f32 %v10322_v18, %v4863_v3  ;;  %v4763_v12 = vld [vmem:[%s10342_s29 + $0x50] sm:$0xff]  ;;  %v4884_v50 = vmul.f32 %v10322_v18, %v4862_v0  ;;  %v4760_v48 = vld [vmem:[%s10342_s29 + $0x38] sm:$0xff] }
 0x2f7   : >> { %v6773_v59 = vpop.eup %6772  ;;  %v4852_v8 = vadd.f32 1.0, %v6771_v1  ;;  %v4866_v39 = vmul.f32 %v4850_v33, %v4802_v30  ;;  %v4886_v51 = vmul.f32 %v10322_v18, %v4864_v7  ;;  %v4904_v28 = vadd.f32 %v10329_v16, %v4882_v13  ;;  %6701 = vmatprep.mubr.msk.f32.mxu0 %vm198_vm0, %v4915_v2  ;;  %v4766_v33 = vld [vmem:[%s10342_s29 + $0x68] sm:$0xff]  ;;  %v4768_v13 = vld [vmem:[%s10342_s29 + $0x78] sm:$0xff] }
 0x2f8   : >> { %v6775_v57 = vpop.eup %6774  ;;  %v4853_v45 = vadd.f32 1.0, %v6773_v59  ;;  %v4867_v32 = vmul.f32 %v4851_v15, %v4803_v41  ;;  %v4887_v42 = vmul.f32 %v10322_v18, %v4865_v36  ;;  %v4907_v52 = vadd.f32 %v10329_v16, %v4885_v44  ;;  %6702 = vmatmul.mubr.msk.f32.vlgmr.msra.gmra.mrb[0].mxu0 %vm198_vm0, %v4916_v34 }
 0x2f9   : >> { %v4854_v47 = vadd.f32 1.0, %v6775_v57  ;;  %v4868_v53 = vmul.f32 %v4852_v8, %v4804_v19  ;;  %v4888_v56 = vmul.f32 %v10322_v18, %v4866_v39  ;;  %v4908_v35 = vadd.f32 %v10329_v16, %v4886_v51 }
 0x2fa   : >> { %v4869_v24 = vmul.f32 %v4853_v45, %v4805_v49  ;;  %v4889_v9 = vmul.f32 %v10322_v18, %v4867_v32  ;;  %v4909_v60 = vadd.f32 %v10329_v16, %v4887_v42  ;;  %v4917_v4 = vadd.f32 %v4901_v26, %v4755_v21  ;;  %v4764_v49 = vld [vmem:[%s10342_s29 + $0x58] sm:$0xff] }
 0x2fb   : >> { %v4870_v30 = vmul.f32 %v4854_v47, %v4806_v61  ;;  %v4890_v41 = vmul.f32 %v10322_v18, %v4868_v53  ;;  %v4905_v19 = vadd.f32 %v10329_v16, %v4883_v43  ;;  %v4910_v17 = vadd.f32 %v10329_v16, %v4888_v56 }
 0x2fc   : >> { %v4918_v37 = vadd.f32 %v4902_v10, %v4756_v29  ;;  %v4891_v61 = vmul.f32 %v10322_v18, %v4869_v24  ;;  %v4911_v31 = vadd.f32 %v10329_v16, %v4889_v9  ;;  %v4919_v5 = vadd.f32 %v4903_v11, %v4757_v20  ;;  %6704 = vmatprep.mubr.msk.f32.mxu0 %vm198_vm0, %v4917_v4 }
 0x2fd   : >> { %v4923_v6 = vadd.f32 %v4907_v52, %v4761_v54  ;;  %v4924_v62 = vadd.f32 %v4908_v35, %v4762_v25  ;;  %v4925_v22 = vadd.f32 %v4909_v60, %v4763_v12  ;;  %v4892_v14 = vmul.f32 %v10322_v18, %v4870_v30  ;;  %v4767_v18 = vld [vmem:[%s10342_s29 + $0x70] sm:$0xff] }
 0x2fe   : >> { %v4906_v46 = vadd.f32 %v10329_v16, %v4884_v50  ;;  %v4912_v40 = vadd.f32 %v10329_v16, %v4890_v41  ;;  %v4920_v3 = vadd.f32 %v4904_v28, %v4758_v23  ;;  %v4926_v27 = vadd.f32 %v4910_v17, %v4764_v49  ;;  %6705 = vmatmul.mubr.msk.f32.gmra.mrb[2].mxu0 %vm198_vm0, %v4918_v37 }
 0x2ff   : >> { %6713 = vmatprep.mubr.msk.f32.mxu1 %vm198_vm0, %v4923_v6  ;;  %v4913_v0 = vadd.f32 %v10329_v16, %v4891_v61  ;;  %v4921_v7 = vadd.f32 %v4905_v19, %v4759_v38  ;;  %v4927_v26 = vadd.f32 %v4911_v31, %v4765_v55  ;;  %6707 = vmatprep.mubr.msk.f32.mxu0 %vm198_vm0, %v4919_v5 }
 0x300   : >> { %6714 = vmatmul.mubr.msk.f32.vlgmr.msra.gmra.mrb[0].mxu1 %vm198_vm0, %v4924_v62  ;;  %v4914_v1 = vadd.f32 %v10329_v16, %v4892_v14  ;;  %v4922_v15 = vadd.f32 %v4906_v46, %v4760_v48  ;;  %v4928_v36 = vadd.f32 %v4912_v40, %v4766_v33  ;;  %v10405_v16 = vld [vmem:[%s10537_s3 + $0x3] ss:$0 sm:$0xff] }
 0x301   : >> { %6716 = vmatprep.mubr.msk.f32.mxu1 %vm198_vm0, %v4925_v22  ;;  %v4929_v44 = vadd.f32 %v4913_v0, %v4767_v18  ;;  %v10438_v0 = vld [vmem:[%s10537_s3 + $0x4] ss:$0 sm:$0xff] }
 0x302   : >> { %6708 = vmatmul.mubr.msk.f32.gmra.mrb[4].mxu0 %vm198_vm0, %v4920_v3  ;;  %v4930_v59 = vadd.f32 %v4914_v1, %v4768_v13 }
 0x303   : >> { %6710 = vmatprep.mubr.msk.f32.mxu0 %vm198_vm0, %v4921_v7 }
 0x304   : >> { %6717 = vmatmul.mubr.msk.f32.gmra.mrb[2].mxu1 %vm198_vm0, %v4926_v27 }
 0x305   : >> { %6719 = vmatprep.mubr.msk.f32.mxu1 %vm198_vm0, %v4927_v26 }
 0x306   : >> { %6711 = vmatmul.mubr.msk.f32.gmra.mrb[6].mxu0 %vm198_vm0, %v4922_v15 }
 0x308   : >> { %6720 = vmatmul.mubr.msk.f32.gmra.mrb[4].mxu1 %vm198_vm0, %v4928_v36 }
 0x309   : >> { %6722 = vmatprep.mubr.msk.f32.mxu1 %vm198_vm0, %v4929_v44 }
 0x30c   : >> { %6723 = vmatmul.mubr.msk.f32.gmra.mrb[6].mxu1 %vm198_vm0, %v4930_v59 }
 0x3cb   : >> { %v6703_v63 = vpop.f32.mrb[0].mxu0 }
 0x3cc   : >> { %v5068_v8 = vadd.f32 %v6703_v63, %v10405_v16  ;;  %v5062_v39 = vpop.f32.mrb[1].mxu0 }
 0x3cd   : >> { %v5063_v51 = vadd.f32 %v10405_v16, %v5062_v39 }
 0x3ce   : >> { %v5158_v10 = vmul.f32 0.70710677, %v5068_v8  ;;  %v5142_v60 = vmul.f32 0.5, %v5068_v8 }
 0x3cf   : >> { %v5157_v45 = vmul.f32 0.70710677, %v5063_v51  ;;  %v5141_v17 = vmul.f32 0.5, %v5063_v51 }
 0x3d0   : >> { %6776 = verf.f32 %v5158_v10 }
 0x3d1   : >> { %v6706_v58 = vpop.f32.mrb[2].mxu0  ;;  %6778 = verf.f32 %v5157_v45 }
 0x3d2   : >> { %v5078_v43 = vadd.f32 %v6706_v58, %v10405_v16  ;;  %v5072_v42 = vpop.f32.mrb[3].mxu0 }
 0x3d3   : >> { %v6715_v57 = vpop.f32.mrb[0].mxu1  ;;  %v5073_v47 = vadd.f32 %v10405_v16, %v5072_v42 }
 0x3d4   : >> { %v5102_v32 = vpop.f32.mrb[1].mxu1  ;;  %v5160_v53 = vmul.f32 0.70710677, %v5078_v43  ;;  %v5108_v56 = vadd.f32 %v6715_v57, %v10405_v16  ;;  %v5144_v37 = vmul.f32 0.5, %v5078_v43 }
 0x3d5   : >> { %v5103_v21 = vadd.f32 %v10405_v16, %v5102_v32  ;;  %v6709_v29 = vpop.f32.mrb[4].mxu0  ;;  %v5159_v24 = vmul.f32 0.70710677, %v5073_v47  ;;  %v5143_v5 = vmul.f32 0.5, %v5073_v47 }
 0x3d6   : >> { %v5088_v52 = vadd.f32 %v6709_v29, %v10405_v16  ;;  %v5082_v2 = vpop.f32.mrb[5].mxu0  ;;  %6780 = verf.f32 %v5160_v53  ;;  %v5166_v28 = vmul.f32 0.70710677, %v5108_v56  ;;  %v10427_v6 = vmul.f32 0.5, %v5108_v56 }
 0x3d7   : >> { %v6718_v11 = vpop.f32.mrb[2].mxu1  ;;  %v5165_v20 = vmul.f32 0.70710677, %v5103_v21  ;;  %v5083_v54 = vadd.f32 %v10405_v16, %v5082_v2  ;;  %6782 = verf.f32 %v5159_v24  ;;  %v5149_v14 = vmul.f32 0.5, %v5103_v21 }
 0x3d8   : >> { %v5112_v9 = vpop.f32.mrb[3].mxu1  ;;  %v5162_v34 = vmul.f32 0.70710677, %v5088_v52  ;;  %v5118_v25 = vadd.f32 %v6718_v11, %v10405_v16  ;;  %v5146_v15 = vmul.f32 0.5, %v5088_v52 }
 0x3d9   : >> { %v5113_v35 = vadd.f32 %v10405_v16, %v5112_v9  ;;  %v6712_v30 = vpop.f32.mrb[6].mxu0  ;;  %v5161_v50 = vmul.f32 0.70710677, %v5083_v54  ;;  %6784 = verf.f32 %v5165_v20  ;;  %v5145_v58 = vmul.f32 0.5, %v5083_v54 }
 0x3da   : >> { %v10418_v41 = vadd.f32 %v6712_v30, %v10405_v16  ;;  %v5092_v19 = vpop.f32.mrb[7].mxu0  ;;  %6786 = verf.f32 %v5162_v34  ;;  %v6777_v31 = vpop.eup %6776  ;;  %v5168_v40 = vmul.f32 0.70710677, %v5118_v25  ;;  %v10443_v36 = vmul.f32 0.5, %v5118_v25 }
 0x3db   : >> { %v6721_v12 = vpop.f32.mrb[4].mxu1  ;;  %v10425_v61 = vadd.f32 %v10405_v16, %v5092_v19  ;;  %6788 = verf.f32 %v5161_v50  ;;  %v5167_v55 = vmul.f32 0.70710677, %v5113_v35  ;;  %v6779_v62 = vpop.eup %6778  ;;  %v5190_v18 = vadd.f32 1.0, %v6777_v31 }
 0x3dc   : >> { %v5122_v4 = vpop.f32.mrb[5].mxu1  ;;  %v5128_v23 = vadd.f32 %v6721_v12, %v10405_v16  ;;  %v5164_v38 = vmul.f32 0.70710677, %v10418_v41  ;;  %6790 = verf.f32 %v5166_v28  ;;  %v5189_v33 = vadd.f32 1.0, %v6779_v62 }
 0x3dd   : >> { %v10422_v49 = vadd.f32 %v10405_v16, %v5122_v4  ;;  %v5163_v46 = vmul.f32 0.70710677, %v10425_v61  ;;  %v5206_v51 = vmul.f32 %v5190_v18, %v5142_v60  ;;  %v5151_v45 = vmul.f32 0.5, %v5113_v35 }
 0x3de   : >> { %6792 = verf.f32 %v5164_v38  ;;  %v5170_v26 = vmul.f32 0.70710677, %v5128_v23  ;;  %v5205_v13 = vmul.f32 %v5189_v33, %v5141_v17  ;;  %v5148_v54 = vmul.f32 0.5, %v10418_v41 }
 0x3df   : >> { %v6724_v22 = vpop.f32.mrb[6].mxu1  ;;  %v5169_v48 = vmul.f32 0.70710677, %v10422_v49  ;;  %6794 = verf.f32 %v5163_v46  ;;  %v5228_v47 = vmul.f32 %v10438_v0, %v5206_v51  ;;  %v5154_v35 = vmul.f32 0.5, %v5128_v23 }
 0x3e0   : >> { %v5132_v3 = vpop.f32.mrb[7].mxu1  ;;  %v10432_v27 = vadd.f32 %v6724_v22, %v10405_v16  ;;  %v6781_v1 = vpop.eup %6780  ;;  %6796 = verf.f32 %v5167_v55  ;;  %v5227_v10 = vmul.f32 %v10438_v0, %v5205_v13  ;;  %v5147_v41 = vmul.f32 0.5, %v10425_v61 }
 0x3e1   : >> { %v10441_v7 = vadd.f32 %v10405_v16, %v5132_v3  ;;  %v6783_v44 = vpop.eup %6782  ;;  %6798 = verf.f32 %v5168_v40  ;;  %v5192_v8 = vadd.f32 1.0, %v6781_v1  ;;  %v10450_v16 = vld [vmem:[%s10537_s3 + $0x5] ss:$0 sm:$0xff]  ;;  %v5153_v19 = vmul.f32 0.5, %v10422_v49 }
 0x3e2   : >> { %v5172_v63 = vmul.f32 0.70710677, %v10432_v27  ;;  %6800 = verf.f32 %v5169_v48  ;;  %v5191_v39 = vadd.f32 1.0, %v6783_v44  ;;  %v5249_v29 = vadd.f32 %v10450_v16, %v5227_v10 }
 0x3e3   : >> { %v5171_v59 = vmul.f32 0.70710677, %v10441_v7  ;;  %v6785_v57 = vpop.eup %6784  ;;  %6802 = verf.f32 %v5170_v26  ;;  %v5208_v32 = vmul.f32 %v5192_v8, %v5144_v37  ;;  %v5250_v2 = vadd.f32 %v10450_v16, %v5228_v47 }
 0x3e4   : >> { %v6787_v43 = vpop.eup %6786  ;;  %v5197_v42 = vadd.f32 1.0, %v6785_v57  ;;  %v5207_v21 = vmul.f32 %v5191_v39, %v5143_v5  ;;  %5266 = vst.msk [vmem:[%s10457_s11] sm:$0xff] %vm198_vm0, %v5249_v29  ;;  %v5156_v49 = vmul.f32 0.5, %v10432_v27  ;;  %v5155_v26 = vmul.f32 0.5, %v10441_v7 }
 0x3e5   : >> { %6804 = verf.f32 %v5171_v59  ;;  %v6789_v53 = vpop.eup %6788  ;;  %v5194_v56 = vadd.f32 1.0, %v6787_v43  ;;  %v5230_v11 = vmul.f32 %v10438_v0, %v5208_v32  ;;  %5267 = vst.msk [vmem:[%s10457_s11 + $0x8] sm:$0xff] %vm198_vm0, %v5250_v2 }
 0x3e6   : >> { %6806 = verf.f32 %v5172_v63  ;;  %v5193_v24 = vadd.f32 1.0, %v6789_v53  ;;  %v5213_v9 = vmul.f32 %v5197_v42, %v5149_v14  ;;  %v5229_v52 = vmul.f32 %v10438_v0, %v5207_v21  ;;  %v6791_v20 = vpop.eup %6790 }
 0x3e7   : >> { %v5210_v60 = vmul.f32 %v5194_v56, %v5146_v15  ;;  %v5252_v34 = vadd.f32 %v10450_v16, %v5230_v11  ;;  %v5198_v12 = vadd.f32 1.0, %v6791_v20 }
 0x3e8   : >> { %v6793_v25 = vpop.eup %6792  ;;  %v5209_v30 = vmul.f32 %v5193_v24, %v5145_v58  ;;  %v5235_v50 = vmul.f32 %v10438_v0, %v5213_v9  ;;  %v5251_v28 = vadd.f32 %v10450_v16, %v5229_v52 }
 0x3e9   : >> { %v6795_v4 = vpop.eup %6794  ;;  %v5196_v17 = vadd.f32 1.0, %v6793_v25  ;;  %v5232_v37 = vmul.f32 %v10438_v0, %v5210_v60  ;;  %5269 = vst.msk [vmem:[%s10457_s11 + $0x18] sm:$0xff] %vm198_vm0, %v5252_v34  ;;  %v5214_v5 = vmul.f32 %v5198_v12, %v10427_v6 }
 0x3ea   : >> { %v6797_v23 = vpop.eup %6796  ;;  %v5195_v31 = vadd.f32 1.0, %v6795_v4  ;;  %v5231_v38 = vmul.f32 %v10438_v0, %v5209_v30  ;;  %v5257_v55 = vadd.f32 %v10450_v16, %v5235_v50  ;;  %5268 = vst.msk [vmem:[%s10457_s11 + $0x10] sm:$0xff] %vm198_vm0, %v5251_v28 }
 0x3eb   : >> { %v6799_v62 = vpop.eup %6798  ;;  %v5199_v61 = vadd.f32 1.0, %v6797_v23  ;;  %v5212_v22 = vmul.f32 %v5196_v17, %v5148_v54  ;;  %v5254_v14 = vadd.f32 %v10450_v16, %v5232_v37  ;;  %v5236_v6 = vmul.f32 %v10438_v0, %v5214_v5 }
 0x3ec   : >> { %v6801_v46 = vpop.eup %6800  ;;  %v5200_v40 = vadd.f32 1.0, %v6799_v62  ;;  %v5211_v3 = vmul.f32 %v5195_v31, %v5147_v41  ;;  %v5253_v48 = vadd.f32 %v10450_v16, %v5231_v38  ;;  %5274 = vst.msk [vmem:[%s10457_s11 + $0x40] sm:$0xff] %vm198_vm0, %v5257_v55 }
 0x3ed   : >> { %v6803_v33 = vpop.eup %6802  ;;  %v5201_v18 = vadd.f32 1.0, %v6801_v46  ;;  %v5215_v1 = vmul.f32 %v5199_v61, %v5151_v45  ;;  %v5234_v27 = vmul.f32 %v10438_v0, %v5212_v22  ;;  %5271 = vst.msk [vmem:[%s10457_s11 + $0x28] sm:$0xff] %vm198_vm0, %v5254_v14  ;;  %v5258_v63 = vadd.f32 %v10450_v16, %v5236_v6 }
 0x3ee   : >> { %v5202_v13 = vadd.f32 1.0, %v6803_v33  ;;  %v5216_v44 = vmul.f32 %v5200_v40, %v10443_v36  ;;  %v5233_v59 = vmul.f32 %v10438_v0, %v5211_v3  ;;  %5270 = vst.msk [vmem:[%s10457_s11 + $0x20] sm:$0xff] %vm198_vm0, %v5253_v48 }
 0x3ef   : >> { %v6805_v15 = vpop.eup %6804  ;;  %v5217_v39 = vmul.f32 %v5201_v18, %v5153_v19  ;;  %v5237_v51 = vmul.f32 %v10438_v0, %v5215_v1  ;;  %v5256_v10 = vadd.f32 %v10450_v16, %v5234_v27  ;;  %5275 = vst.msk [vmem:[%s10457_s11 + $0x48] sm:$0xff] %vm198_vm0, %v5258_v63 }
 0x3f0   : >> { %v6807_v8 = vpop.eup %6806  ;;  %v5203_v7 = vadd.f32 1.0, %v6805_v15  ;;  %v5218_v58 = vmul.f32 %v5202_v13, %v5154_v35  ;;  %v5238_v36 = vmul.f32 %v10438_v0, %v5216_v44  ;;  %v5255_v45 = vadd.f32 %v10450_v16, %v5233_v59 }
 0x3f1   : >> { %v5204_v57 = vadd.f32 1.0, %v6807_v8  ;;  %v5239_v43 = vmul.f32 %v10438_v0, %v5217_v39  ;;  %v5259_v42 = vadd.f32 %v10450_v16, %v5237_v51  ;;  %5273 = vst.msk [vmem:[%s10457_s11 + $0x38] sm:$0xff] %vm198_vm0, %v5256_v10 }
 0x3f2   : >> { %v5219_v32 = vmul.f32 %v5203_v7, %v5155_v26  ;;  %v5240_v47 = vmul.f32 %v10438_v0, %v5218_v58  ;;  %v5260_v53 = vadd.f32 %v10450_v16, %v5238_v36  ;;  %5272 = vst.msk [vmem:[%s10457_s11 + $0x30] sm:$0xff] %vm198_vm0, %v5255_v45 }
 0x3f3   : >> { %v5220_v21 = vmul.f32 %v5204_v57, %v5156_v49  ;;  %v5261_v11 = vadd.f32 %v10450_v16, %v5239_v43  ;;  %5276 = vst.msk [vmem:[%s10457_s11 + $0x50] sm:$0xff] %vm198_vm0, %v5259_v42  ;;  %326 = sbr.rel (!%p324_p4) target bundleno = 50 (0x32), region = 99 }
 0x3f4   : >> { %v5241_v56 = vmul.f32 %v10438_v0, %v5219_v32  ;;  %v5262_v24 = vadd.f32 %v10450_v16, %v5240_v47  ;;  %5277 = vst.msk [vmem:[%s10457_s11 + $0x58] sm:$0xff] %vm198_vm0, %v5260_v53 }
 0x3f5   : >> { %v5242_v29 = vmul.f32 %v10438_v0, %v5220_v21  ;;  %5278 = vst.msk [vmem:[%s10457_s11 + $0x60] sm:$0xff] %vm198_vm0, %v5261_v11 }
 0x3f6   : >> { %v5263_v9 = vadd.f32 %v10450_v16, %v5241_v56  ;;  %5279 = vst.msk [vmem:[%s10457_s11 + $0x68] sm:$0xff] %vm198_vm0, %v5262_v24 }
 0x3f7   : >> { %v5264_v52 = vadd.f32 %v10450_v16, %v5242_v29 }
 0x3f8   : >> { %5280 = vst.msk [vmem:[%s10457_s11 + $0x70] sm:$0xff] %vm198_vm0, %v5263_v9 }
 0x3f9   : >> { %5281 = vst.msk [vmem:[%s10457_s11 + $0x78] sm:$0xff] %vm198_vm0, %v5264_v52 }
 0x3fa PF: > { %s14_s15 = sadd.s32 1, %s6850_s15  }
 0x3fb   : > { %p11_p5 = scmp.ge.s32.totalorder %s14_s15, 4  }
 0x3fd   :  { %13 = sbr.rel (!%p11_p5) target bundleno = 1 (0x1), region = 110 }

</bundles_post_ra>
